<compile_context>
chip_gen: v7x
topology: tpu7x:2x2x1
jax: 0.10.0
libtpu: 0.0.40
codegen_flags: <defaults>
</compile_context>

<pallas_src>
import functools

import jax
import jax.numpy as jnp
from jax.experimental import pallas as pl
from jax.experimental.pallas import tpu as pltpu


# ----------------------------------------------------------------------------
# Pallas kernel: one batch element per grid step.
# ----------------------------------------------------------------------------
def igr_mh_kernel(x_ref, convw_ref, bn_shift_ref, qkvw_ref, qkvb_ref,
                  projw_ref, projb_ref, out_ref, *, num_heads):
    Hp, Wp, C = x_ref.shape
    H, W = Hp - 2, Wp - 2
    N = H * W
    cd = C // num_heads

    # --- 3x3 conv (stride 1, pad 1) as 9 accumulated bf16 matmuls. ---------
    # BN scale is already folded into the convw columns; conv bias + BN shift
    # are folded into bn_shift.
    acc = jnp.zeros((N, C), jnp.float32)
    for dy in range(3):
        for dx in range(3):
            tap = x_ref[dy:dy + H, dx:dx + W, :].reshape(N, C)   # (N, C) bf16
            t = dy * 3 + dx
            w_tap = convw_ref[t * C:(t + 1) * C, :]              # (C, C) bf16
            acc = acc + jnp.dot(tap, w_tap,
                                preferred_element_type=jnp.float32)
    feat = jnp.maximum(acc + bn_shift_ref[...], 0.0)             # folded BN+ReLU

    # --- 1x1 qkv conv; columns grouped [Q_allheads | K_allheads | V_allheads],
    # attention scale pre-folded into the Q weights/bias. --------------------
    qkv = jnp.dot(feat.astype(jnp.bfloat16), qkvw_ref[...],
                  preferred_element_type=jnp.float32) + qkvb_ref[...]
    qg, kg, vg = qkv[:, :C], qkv[:, C:2 * C], qkv[:, 2 * C:]

    # --- Per-head attention; each head's output is accumulated directly into
    # the proj matmul result (no lane concat of narrow (N, cd) slabs). -------
    # TODO(synk): for large H*W (N >~ 2048) the (N, N) score matrix should be
    # tiled flash-style over the key axis to stay inside v7x's 64 MiB VMEM.
    out = jnp.zeros((N, C), jnp.float32)
    for h in range(num_heads):
        lo, hi = h * cd, (h + 1) * cd
        q = qg[:, lo:hi].astype(jnp.bfloat16)       # (N, cd), scale included
        k = kg[:, lo:hi].astype(jnp.bfloat16)
        v = vg[:, lo:hi].astype(jnp.bfloat16)

        # s[n1, n2] = sum_d q[n1, d] * k[n2, d]  (== q^T k in torch layout)
        s = jax.lax.dot_general(q, k, (((1,), (1,)), ((), ())),
                                preferred_element_type=jnp.float32)
        s = s - jnp.max(s, axis=-1, keepdims=True)
        e = jnp.exp(s)
        p = e * pl.reciprocal(jnp.sum(e, axis=-1, keepdims=True), approx=True)

        # torch: out_h = value @ attn^T  ==  p @ v in this (N, d) layout
        o = jnp.dot(p.astype(jnp.bfloat16), v,
                    preferred_element_type=jnp.float32)           # (N, cd)
        out = out + jnp.dot(o.astype(jnp.bfloat16), projw_ref[lo:hi, :],
                            preferred_element_type=jnp.float32)
    out_ref[...] = (out + projb_ref[...]).astype(out_ref.dtype)


# ----------------------------------------------------------------------------
# Wrapper: NCHW in/out, all weight folding / permutation done once at trace time.
# ----------------------------------------------------------------------------
def igr_mh_forward(x_nchw, params, num_heads):
    (conv_w, conv_b, bn_g, bn_b, bn_m, bn_v,
     qkv_w, qkv_b, proj_w, proj_b) = params
    eps = 1e-5

    B, C, H, W = x_nchw.shape
    N = H * W
    Hp, Wp = H + 2, W + 2
    cd = C // num_heads
    scale = float(cd) ** (-0.5)

    # NCHW -> NHWC, zero-pad spatially by 1, cast once to bf16 (the kernel
    # builds the 3x3 conv from this halo'd tile directly — no im2col in HBM).
    x = jnp.transpose(x_nchw, (0, 2, 3, 1)).astype(jnp.bfloat16)
    xp = jnp.pad(x, ((0, 0), (1, 1), (1, 1), (0, 0)))

    # Conv weight (Cout, Cin, 3, 3) -> (9*Cin, Cout), rows ordered (dy, dx, cin)
    # with the BatchNorm scale folded into the output columns; conv bias + BN
    # shift folded into a single (1, C) shift.
    s = bn_g / jnp.sqrt(bn_v + eps)
    convw = (jnp.transpose(conv_w, (2, 3, 1, 0)).reshape(9 * C, C)
             * s[None, :]).astype(jnp.bfloat16)
    bn_shift = (bn_b + (conv_b - bn_m) * s).reshape(1, C).astype(jnp.float32)

    # qkv 1x1 conv: permute the torch per-head [q k v] channel blocks into a
    # grouped [Q_allheads | K_allheads | V_allheads] layout and fold the
    # attention scale into the Q columns (weights AND bias).
    w2d = qkv_w[:, :, 0, 0]                                        # (3C, C)
    w2d = w2d.reshape(num_heads, 3, cd, C).transpose(1, 0, 2, 3).reshape(3 * C, C)
    b1d = qkv_b.reshape(num_heads, 3, cd).transpose(1, 0, 2).reshape(3 * C)
    scale_vec = jnp.concatenate(
        [jnp.full((C,), scale, jnp.float32), jnp.ones((2 * C,), jnp.float32)])
    qkvw = (jnp.transpose(w2d, (1, 0)) * scale_vec[None, :]).astype(jnp.bfloat16)
    qkvb = (b1d * scale_vec).reshape(1, 3 * C).astype(jnp.float32)

    projw = jnp.transpose(proj_w[:, :, 0, 0], (1, 0)).astype(jnp.bfloat16)
    projb = proj_b.reshape(1, C).astype(jnp.float32)

    # One batch element per grid step; weights stay VMEM-resident across the
    # grid via the constant (0, 0) index_maps; "parallel" lets multi-core parts
    # pick up independent batch elements.
    # TODO(synk): when B < #cores or H*W grows, add an N-row-tile grid axis for
    # the conv/qkv/proj phase (weights stay resident via the (0,0) index_map).
    out = pl.pallas_call(
        functools.partial(igr_mh_kernel, num_heads=num_heads),
        out_shape=jax.ShapeDtypeStruct((B, N, C), x_nchw.dtype),
        grid_spec=pltpu.PrefetchScalarGridSpec(
            num_scalar_prefetch=0,
            grid=(B,),
            in_specs=[
                pl.BlockSpec((None, Hp, Wp, C), lambda b: (b, 0, 0, 0)),
                pl.BlockSpec((9 * C, C), lambda b: (0, 0)),
                pl.BlockSpec((1, C), lambda b: (0, 0)),
                pl.BlockSpec((C, 3 * C), lambda b: (0, 0)),
                pl.BlockSpec((1, 3 * C), lambda b: (0, 0)),
                pl.BlockSpec((C, C), lambda b: (0, 0)),
                pl.BlockSpec((1, C), lambda b: (0, 0)),
            ],
            out_specs=pl.BlockSpec((None, N, C), lambda b: (b, 0, 0)),
        ),
        compiler_params=pltpu.CompilerParams(
            dimension_semantics=("parallel",)),
    )(xp, convw, bn_shift, qkvw, qkvb, projw, projb)

    # (B, N, C) -> (B, C, H, W)
    return jnp.transpose(out.reshape(B, H, W, C), (0, 3, 1, 2))


# ----------------------------------------------------------------------------
# Pure-JAX f32 reference (mirrors the PyTorch forward, BN in inference mode).
# ----------------------------------------------------------------------------
def igr_mh_reference(x, params, num_heads):
    (conv_w, conv_b, bn_g, bn_b, bn_m, bn_v,
     qkv_w, qkv_b, proj_w, proj_b) = params
    eps = 1e-5
    dn = ("NCHW", "OIHW", "NCHW")

    y = jax.lax.conv_general_dilated(x, conv_w, (1, 1), "SAME",
                                     dimension_numbers=dn)
    y = y + conv_b[None, :, None, None]
    y = ((y - bn_m[None, :, None, None])
         / jnp.sqrt(bn_v[None, :, None, None] + eps)
         * bn_g[None, :, None, None] + bn_b[None, :, None, None])
    y = jnp.maximum(y, 0.0)

    B, C, H, W = y.shape
    N = H * W
    qkv = jax.lax.conv_general_dilated(y, qkv_w, (1, 1), "VALID",
                                       dimension_numbers=dn)
    qkv = qkv + qkv_b[None, :, None, None]
    qkv = qkv.reshape(B, num_heads, (C // num_heads) * 3, N)
    q, k, v = jnp.split(qkv, 3, axis=2)
    attn = jnp.einsum("bhdn,bhdm->bhnm", q, k) * (C / num_heads) ** (-0.5)
    attn = jax.nn.softmax(attn, axis=-1)
    out = jnp.einsum("bhdm,bhnm->bhdn", v, attn)
    out = out.reshape(B, C, H, W)
    out = jax.lax.conv_general_dilated(out, proj_w, (1, 1), "VALID",
                                       dimension_numbers=dn)
    return out + proj_b[None, :, None, None]


# ----------------------------------------------------------------------------
def make_params(key, dim):
    ks = jax.random.split(key, 6)
    conv_w = jax.random.normal(ks[0], (dim, dim, 3, 3), jnp.float32) * 0.1
    conv_b = jax.random.normal(ks[1], (dim,), jnp.float32) * 0.1
    # BatchNorm: default affine init, identity running stats (inference mode).
    bn_g = jnp.ones((dim,), jnp.float32)
    bn_b = jnp.zeros((dim,), jnp.float32)
    bn_m = jnp.zeros((dim,), jnp.float32)
    bn_v = jnp.ones((dim,), jnp.float32)
    qkv_w = jax.random.normal(ks[2], (dim * 3, dim, 1, 1), jnp.float32) * 0.1
    qkv_b = jax.random.normal(ks[3], (dim * 3,), jnp.float32) * 0.1
    proj_w = jax.random.normal(ks[4], (dim, dim, 1, 1), jnp.float32) * 0.1
    proj_b = jax.random.normal(ks[5], (dim,), jnp.float32) * 0.1
    return (conv_w, conv_b, bn_g, bn_b, bn_m, bn_v,
            qkv_w, qkv_b, proj_w, proj_b)


if __name__ == "__main__":
    B, dim, H, W = 2, 32, 16, 16
    num_heads = 4

    key = jax.random.PRNGKey(0)
    kx, kp = jax.random.split(key)
    x = jax.random.normal(kx, (B, dim, H, W), jnp.float32)
    params = make_params(kp, dim)

    out = igr_mh_forward(x, params, num_heads)
    out = jax.block_until_ready(out)

    ref = jax.block_until_ready(igr_mh_reference(x, params, num_heads))
    assert out.shape == (B, dim, H, W)

    # bf16 matmul operands (f32 accumulation, approx reciprocal in softmax) vs
    # the pure-f32 reference: expect a few-percent relative error; use a
    # meaningful but non-flaky bound.
    max_err = float(jnp.max(jnp.abs(out - ref)))
    rel_err = float(jnp.linalg.norm(out - ref) / jnp.linalg.norm(ref))
    assert rel_err < 5e-2 and max_err < 2e-1, (max_err, rel_err)

    print("KERNEL_OK")
</pallas_src>

<mosaic_0001>
module attributes {stable_mosaic.version = 11 : i64} {
  func.func @igr_mh_kernel(%arg0: i32, %arg1: memref<1x18x18x32xbf16, #tpu.memory_space<vmem>>, %arg2: memref<288x32xbf16, #tpu.memory_space<vmem>>, %arg3: memref<1x32xf32, #tpu.memory_space<vmem>>, %arg4: memref<32x96xbf16, #tpu.memory_space<vmem>>, %arg5: memref<1x96xf32, #tpu.memory_space<vmem>>, %arg6: memref<32x32xbf16, #tpu.memory_space<vmem>>, %arg7: memref<1x32xf32, #tpu.memory_space<vmem>>, %arg8: memref<1x256x32xf32, #tpu.memory_space<vmem>>) attributes {dimension_semantics = [#tpu.dimension_semantics<parallel>], iteration_bounds = array<i64: 2>, scalar_prefetch = 0 : i64, scratch_operands = 0 : i64, tpu.core_type = #tpu.core_type<tc>, window_params = [{transform_indices = @transform_0, window_bounds = array<i64: 1, 18, 18, 32>}, {pipeline_mode = #tpu.pipeline_mode<synchronous>, transform_indices = @transform_1, window_bounds = array<i64: 288, 32>}, {pipeline_mode = #tpu.pipeline_mode<synchronous>, transform_indices = @transform_2, window_bounds = array<i64: 1, 32>}, {pipeline_mode = #tpu.pipeline_mode<synchronous>, transform_indices = @transform_3, window_bounds = array<i64: 32, 96>}, {pipeline_mode = #tpu.pipeline_mode<synchronous>, transform_indices = @transform_4, window_bounds = array<i64: 1, 96>}, {pipeline_mode = #tpu.pipeline_mode<synchronous>, transform_indices = @transform_5, window_bounds = array<i64: 32, 32>}, {pipeline_mode = #tpu.pipeline_mode<synchronous>, transform_indices = @transform_6, window_bounds = array<i64: 1, 32>}, {transform_indices = @transform_7, window_bounds = array<i64: 1, 256, 32>}]} {
    %cst = arith.constant 0.000000e+00 : f32
    %0 = vector.broadcast %cst : f32 to vector<256x32xf32>
    %c0 = arith.constant 0 : index
    %c0_0 = arith.constant 0 : index
    %c0_1 = arith.constant 0 : index
    %c0_2 = arith.constant 0 : index
    %1 = vector.load %arg1[%c0, %c0_0, %c0_1, %c0_2] : memref<1x18x18x32xbf16, #tpu.memory_space<vmem>>, vector<1x16x16x32xbf16>
    %2 = vector.shape_cast %1 : vector<1x16x16x32xbf16> to vector<16x16x32xbf16>
    %3 = vector.shape_cast %2 : vector<16x16x32xbf16> to vector<256x32xbf16>
    %c0_3 = arith.constant 0 : index
    %c0_4 = arith.constant 0 : index
    %4 = vector.load %arg2[%c0_3, %c0_4] : memref<288x32xbf16, #tpu.memory_space<vmem>>, vector<32x32xbf16>
    %cst_5 = arith.constant dense<0.000000e+00> : vector<256x32xf32>
    %5 = tpu.matmul %3, %4, %cst_5 {dimension_numbers = #tpu.dot_dimension_numbers<[1], [0], [0], [1], [0, 0, 1, 1], [], []>} : vector<256x32xbf16>, vector<32x32xbf16>, vector<256x32xf32> -> vector<256x32xf32>
    %6 = arith.addf %0, %5 : vector<256x32xf32>
    %c0_6 = arith.constant 0 : index
    %c0_7 = arith.constant 0 : index
    %c1 = arith.constant 1 : index
    %c0_8 = arith.constant 0 : index
    %7 = vector.load %arg1[%c0_6, %c0_7, %c1, %c0_8] : memref<1x18x18x32xbf16, #tpu.memory_space<vmem>>, vector<1x16x16x32xbf16>
    %8 = vector.shape_cast %7 : vector<1x16x16x32xbf16> to vector<16x16x32xbf16>
    %9 = vector.shape_cast %8 : vector<16x16x32xbf16> to vector<256x32xbf16>
    %c32 = arith.constant 32 : index
    %c0_9 = arith.constant 0 : index
    %10 = vector.load %arg2[%c32, %c0_9] : memref<288x32xbf16, #tpu.memory_space<vmem>>, vector<32x32xbf16>
    %cst_10 = arith.constant dense<0.000000e+00> : vector<256x32xf32>
    %11 = tpu.matmul %9, %10, %cst_10 {dimension_numbers = #tpu.dot_dimension_numbers<[1], [0], [0], [1], [0, 0, 1, 1], [], []>} : vector<256x32xbf16>, vector<32x32xbf16>, vector<256x32xf32> -> vector<256x32xf32>
    %12 = arith.addf %6, %11 : vector<256x32xf32>
    %c0_11 = arith.constant 0 : index
    %c0_12 = arith.constant 0 : index
    %c2 = arith.constant 2 : index
    %c0_13 = arith.constant 0 : index
    %13 = vector.load %arg1[%c0_11, %c0_12, %c2, %c0_13] : memref<1x18x18x32xbf16, #tpu.memory_space<vmem>>, vector<1x16x16x32xbf16>
    %14 = vector.shape_cast %13 : vector<1x16x16x32xbf16> to vector<16x16x32xbf16>
    %15 = vector.shape_cast %14 : vector<16x16x32xbf16> to vector<256x32xbf16>
    %c64 = arith.constant 64 : index
    %c0_14 = arith.constant 0 : index
    %16 = vector.load %arg2[%c64, %c0_14] : memref<288x32xbf16, #tpu.memory_space<vmem>>, vector<32x32xbf16>
    %cst_15 = arith.constant dense<0.000000e+00> : vector<256x32xf32>
    %17 = tpu.matmul %15, %16, %cst_15 {dimension_numbers = #tpu.dot_dimension_numbers<[1], [0], [0], [1], [0, 0, 1, 1], [], []>} : vector<256x32xbf16>, vector<32x32xbf16>, vector<256x32xf32> -> vector<256x32xf32>
    %18 = arith.addf %12, %17 : vector<256x32xf32>
    %c0_16 = arith.constant 0 : index
    %c1_17 = arith.constant 1 : index
    %c0_18 = arith.constant 0 : index
    %c0_19 = arith.constant 0 : index
    %19 = vector.load %arg1[%c0_16, %c1_17, %c0_18, %c0_19] : memref<1x18x18x32xbf16, #tpu.memory_space<vmem>>, vector<1x16x16x32xbf16>
    %20 = vector.shape_cast %19 : vector<1x16x16x32xbf16> to vector<16x16x32xbf16>
    %21 = vector.shape_cast %20 : vector<16x16x32xbf16> to vector<256x32xbf16>
    %c96 = arith.constant 96 : index
    %c0_20 = arith.constant 0 : index
    %22 = vector.load %arg2[%c96, %c0_20] : memref<288x32xbf16, #tpu.memory_space<vmem>>, vector<32x32xbf16>
    %cst_21 = arith.constant dense<0.000000e+00> : vector<256x32xf32>
    %23 = tpu.matmul %21, %22, %cst_21 {dimension_numbers = #tpu.dot_dimension_numbers<[1], [0], [0], [1], [0, 0, 1, 1], [], []>} : vector<256x32xbf16>, vector<32x32xbf16>, vector<256x32xf32> -> vector<256x32xf32>
    %24 = arith.addf %18, %23 : vector<256x32xf32>
    %c0_22 = arith.constant 0 : index
    %c1_23 = arith.constant 1 : index
    %c1_24 = arith.constant 1 : index
    %c0_25 = arith.constant 0 : index
    %25 = vector.load %arg1[%c0_22, %c1_23, %c1_24, %c0_25] : memref<1x18x18x32xbf16, #tpu.memory_space<vmem>>, vector<1x16x16x32xbf16>
    %26 = vector.shape_cast %25 : vector<1x16x16x32xbf16> to vector<16x16x32xbf16>
    %27 = vector.shape_cast %26 : vector<16x16x32xbf16> to vector<256x32xbf16>
    %c128 = arith.constant 128 : index
    %c0_26 = arith.constant 0 : index
    %28 = vector.load %arg2[%c128, %c0_26] : memref<288x32xbf16, #tpu.memory_space<vmem>>, vector<32x32xbf16>
    %cst_27 = arith.constant dense<0.000000e+00> : vector<256x32xf32>
    %29 = tpu.matmul %27, %28, %cst_27 {dimension_numbers = #tpu.dot_dimension_numbers<[1], [0], [0], [1], [0, 0, 1, 1], [], []>} : vector<256x32xbf16>, vector<32x32xbf16>, vector<256x32xf32> -> vector<256x32xf32>
    %30 = arith.addf %24, %29 : vector<256x32xf32>
    %c0_28 = arith.constant 0 : index
    %c1_29 = arith.constant 1 : index
    %c2_30 = arith.constant 2 : index
    %c0_31 = arith.constant 0 : index
    %31 = vector.load %arg1[%c0_28, %c1_29, %c2_30, %c0_31] : memref<1x18x18x32xbf16, #tpu.memory_space<vmem>>, vector<1x16x16x32xbf16>
    %32 = vector.shape_cast %31 : vector<1x16x16x32xbf16> to vector<16x16x32xbf16>
    %33 = vector.shape_cast %32 : vector<16x16x32xbf16> to vector<256x32xbf16>
    %c160 = arith.constant 160 : index
    %c0_32 = arith.constant 0 : index
    %34 = vector.load %arg2[%c160, %c0_32] : memref<288x32xbf16, #tpu.memory_space<vmem>>, vector<32x32xbf16>
    %cst_33 = arith.constant dense<0.000000e+00> : vector<256x32xf32>
    %35 = tpu.matmul %33, %34, %cst_33 {dimension_numbers = #tpu.dot_dimension_numbers<[1], [0], [0], [1], [0, 0, 1, 1], [], []>} : vector<256x32xbf16>, vector<32x32xbf16>, vector<256x32xf32> -> vector<256x32xf32>
    %36 = arith.addf %30, %35 : vector<256x32xf32>
    %c0_34 = arith.constant 0 : index
    %c2_35 = arith.constant 2 : index
    %c0_36 = arith.constant 0 : index
    %c0_37 = arith.constant 0 : index
    %37 = vector.load %arg1[%c0_34, %c2_35, %c0_36, %c0_37] : memref<1x18x18x32xbf16, #tpu.memory_space<vmem>>, vector<1x16x16x32xbf16>
    %38 = vector.shape_cast %37 : vector<1x16x16x32xbf16> to vector<16x16x32xbf16>
    %39 = vector.shape_cast %38 : vector<16x16x32xbf16> to vector<256x32xbf16>
    %c192 = arith.constant 192 : index
    %c0_38 = arith.constant 0 : index
    %40 = vector.load %arg2[%c192, %c0_38] : memref<288x32xbf16, #tpu.memory_space<vmem>>, vector<32x32xbf16>
    %cst_39 = arith.constant dense<0.000000e+00> : vector<256x32xf32>
    %41 = tpu.matmul %39, %40, %cst_39 {dimension_numbers = #tpu.dot_dimension_numbers<[1], [0], [0], [1], [0, 0, 1, 1], [], []>} : vector<256x32xbf16>, vector<32x32xbf16>, vector<256x32xf32> -> vector<256x32xf32>
    %42 = arith.addf %36, %41 : vector<256x32xf32>
    %c0_40 = arith.constant 0 : index
    %c2_41 = arith.constant 2 : index
    %c1_42 = arith.constant 1 : index
    %c0_43 = arith.constant 0 : index
    %43 = vector.load %arg1[%c0_40, %c2_41, %c1_42, %c0_43] : memref<1x18x18x32xbf16, #tpu.memory_space<vmem>>, vector<1x16x16x32xbf16>
    %44 = vector.shape_cast %43 : vector<1x16x16x32xbf16> to vector<16x16x32xbf16>
    %45 = vector.shape_cast %44 : vector<16x16x32xbf16> to vector<256x32xbf16>
    %c224 = arith.constant 224 : index
    %c0_44 = arith.constant 0 : index
    %46 = vector.load %arg2[%c224, %c0_44] : memref<288x32xbf16, #tpu.memory_space<vmem>>, vector<32x32xbf16>
    %cst_45 = arith.constant dense<0.000000e+00> : vector<256x32xf32>
    %47 = tpu.matmul %45, %46, %cst_45 {dimension_numbers = #tpu.dot_dimension_numbers<[1], [0], [0], [1], [0, 0, 1, 1], [], []>} : vector<256x32xbf16>, vector<32x32xbf16>, vector<256x32xf32> -> vector<256x32xf32>
    %48 = arith.addf %42, %47 : vector<256x32xf32>
    %c0_46 = arith.constant 0 : index
    %c2_47 = arith.constant 2 : index
    %c2_48 = arith.constant 2 : index
    %c0_49 = arith.constant 0 : index
    %49 = vector.load %arg1[%c0_46, %c2_47, %c2_48, %c0_49] : memref<1x18x18x32xbf16, #tpu.memory_space<vmem>>, vector<1x16x16x32xbf16>
    %50 = vector.shape_cast %49 : vector<1x16x16x32xbf16> to vector<16x16x32xbf16>
    %51 = vector.shape_cast %50 : vector<16x16x32xbf16> to vector<256x32xbf16>
    %c256 = arith.constant 256 : index
    %c0_50 = arith.constant 0 : index
    %52 = vector.load %arg2[%c256, %c0_50] : memref<288x32xbf16, #tpu.memory_space<vmem>>, vector<32x32xbf16>
    %cst_51 = arith.constant dense<0.000000e+00> : vector<256x32xf32>
    %53 = tpu.matmul %51, %52, %cst_51 {dimension_numbers = #tpu.dot_dimension_numbers<[1], [0], [0], [1], [0, 0, 1, 1], [], []>} : vector<256x32xbf16>, vector<32x32xbf16>, vector<256x32xf32> -> vector<256x32xf32>
    %54 = arith.addf %48, %53 : vector<256x32xf32>
    %c0_52 = arith.constant 0 : index
    %c0_53 = arith.constant 0 : index
    %55 = vector.load %arg3[%c0_52, %c0_53] : memref<1x32xf32, #tpu.memory_space<vmem>>, vector<1x32xf32>
    %56 = vector.broadcast %55 : vector<1x32xf32> to vector<256x32xf32>
    %57 = arith.addf %54, %56 : vector<256x32xf32>
    %cst_54 = arith.constant 0.000000e+00 : f32
    %58 = vector.broadcast %cst_54 : f32 to vector<256x32xf32>
    %59 = arith.maximumf %57, %58 : vector<256x32xf32>
    %60 = arith.truncf %59 : vector<256x32xf32> to vector<256x32xbf16>
    %c0_55 = arith.constant 0 : index
    %c0_56 = arith.constant 0 : index
    %61 = vector.load %arg4[%c0_55, %c0_56] : memref<32x96xbf16, #tpu.memory_space<vmem>>, vector<32x96xbf16>
    %cst_57 = arith.constant dense<0.000000e+00> : vector<256x96xf32>
    %62 = tpu.matmul %60, %61, %cst_57 {dimension_numbers = #tpu.dot_dimension_numbers<[1], [0], [0], [1], [0, 0, 1, 1], [], []>} : vector<256x32xbf16>, vector<32x96xbf16>, vector<256x96xf32> -> vector<256x96xf32>
    %c0_58 = arith.constant 0 : index
    %c0_59 = arith.constant 0 : index
    %63 = vector.load %arg5[%c0_58, %c0_59] : memref<1x96xf32, #tpu.memory_space<vmem>>, vector<1x96xf32>
    %64 = vector.broadcast %63 : vector<1x96xf32> to vector<256x96xf32>
    %65 = arith.addf %62, %64 : vector<256x96xf32>
    %66 = vector.extract_strided_slice %65 {offsets = [0, 0], sizes = [256, 32], strides = [1, 1]} : vector<256x96xf32> to vector<256x32xf32>
    %67 = vector.extract_strided_slice %65 {offsets = [0, 32], sizes = [256, 32], strides = [1, 1]} : vector<256x96xf32> to vector<256x32xf32>
    %68 = vector.extract_strided_slice %65 {offsets = [0, 64], sizes = [256, 32], strides = [1, 1]} : vector<256x96xf32> to vector<256x32xf32>
    %cst_60 = arith.constant 0.000000e+00 : f32
    %69 = vector.broadcast %cst_60 : f32 to vector<256x32xf32>
    %70 = vector.extract_strided_slice %66 {offsets = [0, 0], sizes = [256, 8], strides = [1, 1]} : vector<256x32xf32> to vector<256x8xf32>
    %71 = arith.truncf %70 : vector<256x8xf32> to vector<256x8xbf16>
    %72 = vector.extract_strided_slice %67 {offsets = [0, 0], sizes = [256, 8], strides = [1, 1]} : vector<256x32xf32> to vector<256x8xf32>
    %73 = arith.truncf %72 : vector<256x8xf32> to vector<256x8xbf16>
    %74 = vector.extract_strided_slice %68 {offsets = [0, 0], sizes = [256, 8], strides = [1, 1]} : vector<256x32xf32> to vector<256x8xf32>
    %75 = arith.truncf %74 : vector<256x8xf32> to vector<256x8xbf16>
    %cst_61 = arith.constant dense<0.000000e+00> : vector<256x256xf32>
    %76 = tpu.matmul %71, %73, %cst_61 {dimension_numbers = #tpu.dot_dimension_numbers<[1], [1], [0], [0], [0, 0, 1, 0], [], []>} : vector<256x8xbf16>, vector<256x8xbf16>, vector<256x256xf32> -> vector<256x256xf32>
    %cst_62 = arith.constant dense<0xFF800000> : vector<256xf32>
    %77 = vector.multi_reduction <maximumf>, %76, %cst_62 [1] : vector<256x256xf32> to vector<256xf32>
    %78 = vector.shape_cast %77 : vector<256xf32> to vector<256x1xf32>
    %79 = vector.broadcast %78 : vector<256x1xf32> to vector<256x256xf32>
    %80 = arith.subf %76, %79 : vector<256x256xf32>
    %81 = math.exp %80 : vector<256x256xf32>
    %cst_63 = arith.constant dense<0.000000e+00> : vector<256xf32>
    %82 = vector.multi_reduction <add>, %81, %cst_63 [1] : vector<256x256xf32> to vector<256xf32>
    %83 = vector.shape_cast %82 : vector<256xf32> to vector<256x1xf32>
    %84 = tpu.reciprocal %83 {approx = true} : vector<256x1xf32> -> vector<256x1xf32>
    %85 = vector.broadcast %84 : vector<256x1xf32> to vector<256x256xf32>
    %86 = arith.mulf %81, %85 : vector<256x256xf32>
    %87 = arith.truncf %86 : vector<256x256xf32> to vector<256x256xbf16>
    %cst_64 = arith.constant dense<0.000000e+00> : vector<256x8xf32>
    %88 = tpu.matmul %87, %75, %cst_64 {dimension_numbers = #tpu.dot_dimension_numbers<[1], [0], [0], [1], [0, 0, 1, 1], [], []>} : vector<256x256xbf16>, vector<256x8xbf16>, vector<256x8xf32> -> vector<256x8xf32>
    %89 = arith.truncf %88 : vector<256x8xf32> to vector<256x8xbf16>
    %c0_65 = arith.constant 0 : index
    %c0_66 = arith.constant 0 : index
    %90 = vector.load %arg6[%c0_65, %c0_66] : memref<32x32xbf16, #tpu.memory_space<vmem>>, vector<8x32xbf16>
    %cst_67 = arith.constant dense<0.000000e+00> : vector<256x32xf32>
    %91 = tpu.matmul %89, %90, %cst_67 {dimension_numbers = #tpu.dot_dimension_numbers<[1], [0], [0], [1], [0, 0, 1, 1], [], []>} : vector<256x8xbf16>, vector<8x32xbf16>, vector<256x32xf32> -> vector<256x32xf32>
    %92 = arith.addf %69, %91 : vector<256x32xf32>
    %93 = vector.extract_strided_slice %66 {offsets = [0, 8], sizes = [256, 8], strides = [1, 1]} : vector<256x32xf32> to vector<256x8xf32>
    %94 = arith.truncf %93 : vector<256x8xf32> to vector<256x8xbf16>
    %95 = vector.extract_strided_slice %67 {offsets = [0, 8], sizes = [256, 8], strides = [1, 1]} : vector<256x32xf32> to vector<256x8xf32>
    %96 = arith.truncf %95 : vector<256x8xf32> to vector<256x8xbf16>
    %97 = vector.extract_strided_slice %68 {offsets = [0, 8], sizes = [256, 8], strides = [1, 1]} : vector<256x32xf32> to vector<256x8xf32>
    %98 = arith.truncf %97 : vector<256x8xf32> to vector<256x8xbf16>
    %cst_68 = arith.constant dense<0.000000e+00> : vector<256x256xf32>
    %99 = tpu.matmul %94, %96, %cst_68 {dimension_numbers = #tpu.dot_dimension_numbers<[1], [1], [0], [0], [0, 0, 1, 0], [], []>} : vector<256x8xbf16>, vector<256x8xbf16>, vector<256x256xf32> -> vector<256x256xf32>
    %cst_69 = arith.constant dense<0xFF800000> : vector<256xf32>
    %100 = vector.multi_reduction <maximumf>, %99, %cst_69 [1] : vector<256x256xf32> to vector<256xf32>
    %101 = vector.shape_cast %100 : vector<256xf32> to vector<256x1xf32>
    %102 = vector.broadcast %101 : vector<256x1xf32> to vector<256x256xf32>
    %103 = arith.subf %99, %102 : vector<256x256xf32>
    %104 = math.exp %103 : vector<256x256xf32>
    %cst_70 = arith.constant dense<0.000000e+00> : vector<256xf32>
    %105 = vector.multi_reduction <add>, %104, %cst_70 [1] : vector<256x256xf32> to vector<256xf32>
    %106 = vector.shape_cast %105 : vector<256xf32> to vector<256x1xf32>
    %107 = tpu.reciprocal %106 {approx = true} : vector<256x1xf32> -> vector<256x1xf32>
    %108 = vector.broadcast %107 : vector<256x1xf32> to vector<256x256xf32>
    %109 = arith.mulf %104, %108 : vector<256x256xf32>
    %110 = arith.truncf %109 : vector<256x256xf32> to vector<256x256xbf16>
    %cst_71 = arith.constant dense<0.000000e+00> : vector<256x8xf32>
    %111 = tpu.matmul %110, %98, %cst_71 {dimension_numbers = #tpu.dot_dimension_numbers<[1], [0], [0], [1], [0, 0, 1, 1], [], []>} : vector<256x256xbf16>, vector<256x8xbf16>, vector<256x8xf32> -> vector<256x8xf32>
    %112 = arith.truncf %111 : vector<256x8xf32> to vector<256x8xbf16>
    %c8 = arith.constant 8 : index
    %c0_72 = arith.constant 0 : index
    %113 = vector.load %arg6[%c8, %c0_72] : memref<32x32xbf16, #tpu.memory_space<vmem>>, vector<8x32xbf16>
    %cst_73 = arith.constant dense<0.000000e+00> : vector<256x32xf32>
    %114 = tpu.matmul %112, %113, %cst_73 {dimension_numbers = #tpu.dot_dimension_numbers<[1], [0], [0], [1], [0, 0, 1, 1], [], []>} : vector<256x8xbf16>, vector<8x32xbf16>, vector<256x32xf32> -> vector<256x32xf32>
    %115 = arith.addf %92, %114 : vector<256x32xf32>
    %116 = vector.extract_strided_slice %66 {offsets = [0, 16], sizes = [256, 8], strides = [1, 1]} : vector<256x32xf32> to vector<256x8xf32>
    %117 = arith.truncf %116 : vector<256x8xf32> to vector<256x8xbf16>
    %118 = vector.extract_strided_slice %67 {offsets = [0, 16], sizes = [256, 8], strides = [1, 1]} : vector<256x32xf32> to vector<256x8xf32>
    %119 = arith.truncf %118 : vector<256x8xf32> to vector<256x8xbf16>
    %120 = vector.extract_strided_slice %68 {offsets = [0, 16], sizes = [256, 8], strides = [1, 1]} : vector<256x32xf32> to vector<256x8xf32>
    %121 = arith.truncf %120 : vector<256x8xf32> to vector<256x8xbf16>
    %cst_74 = arith.constant dense<0.000000e+00> : vector<256x256xf32>
    %122 = tpu.matmul %117, %119, %cst_74 {dimension_numbers = #tpu.dot_dimension_numbers<[1], [1], [0], [0], [0, 0, 1, 0], [], []>} : vector<256x8xbf16>, vector<256x8xbf16>, vector<256x256xf32> -> vector<256x256xf32>
    %cst_75 = arith.constant dense<0xFF800000> : vector<256xf32>
    %123 = vector.multi_reduction <maximumf>, %122, %cst_75 [1] : vector<256x256xf32> to vector<256xf32>
    %124 = vector.shape_cast %123 : vector<256xf32> to vector<256x1xf32>
    %125 = vector.broadcast %124 : vector<256x1xf32> to vector<256x256xf32>
    %126 = arith.subf %122, %125 : vector<256x256xf32>
    %127 = math.exp %126 : vector<256x256xf32>
    %cst_76 = arith.constant dense<0.000000e+00> : vector<256xf32>
    %128 = vector.multi_reduction <add>, %127, %cst_76 [1] : vector<256x256xf32> to vector<256xf32>
    %129 = vector.shape_cast %128 : vector<256xf32> to vector<256x1xf32>
    %130 = tpu.reciprocal %129 {approx = true} : vector<256x1xf32> -> vector<256x1xf32>
    %131 = vector.broadcast %130 : vector<256x1xf32> to vector<256x256xf32>
    %132 = arith.mulf %127, %131 : vector<256x256xf32>
    %133 = arith.truncf %132 : vector<256x256xf32> to vector<256x256xbf16>
    %cst_77 = arith.constant dense<0.000000e+00> : vector<256x8xf32>
    %134 = tpu.matmul %133, %121, %cst_77 {dimension_numbers = #tpu.dot_dimension_numbers<[1], [0], [0], [1], [0, 0, 1, 1], [], []>} : vector<256x256xbf16>, vector<256x8xbf16>, vector<256x8xf32> -> vector<256x8xf32>
    %135 = arith.truncf %134 : vector<256x8xf32> to vector<256x8xbf16>
    %c16 = arith.constant 16 : index
    %c0_78 = arith.constant 0 : index
    %136 = vector.load %arg6[%c16, %c0_78] : memref<32x32xbf16, #tpu.memory_space<vmem>>, vector<8x32xbf16>
    %cst_79 = arith.constant dense<0.000000e+00> : vector<256x32xf32>
    %137 = tpu.matmul %135, %136, %cst_79 {dimension_numbers = #tpu.dot_dimension_numbers<[1], [0], [0], [1], [0, 0, 1, 1], [], []>} : vector<256x8xbf16>, vector<8x32xbf16>, vector<256x32xf32> -> vector<256x32xf32>
    %138 = arith.addf %115, %137 : vector<256x32xf32>
    %139 = vector.extract_strided_slice %66 {offsets = [0, 24], sizes = [256, 8], strides = [1, 1]} : vector<256x32xf32> to vector<256x8xf32>
    %140 = arith.truncf %139 : vector<256x8xf32> to vector<256x8xbf16>
    %141 = vector.extract_strided_slice %67 {offsets = [0, 24], sizes = [256, 8], strides = [1, 1]} : vector<256x32xf32> to vector<256x8xf32>
    %142 = arith.truncf %141 : vector<256x8xf32> to vector<256x8xbf16>
    %143 = vector.extract_strided_slice %68 {offsets = [0, 24], sizes = [256, 8], strides = [1, 1]} : vector<256x32xf32> to vector<256x8xf32>
    %144 = arith.truncf %143 : vector<256x8xf32> to vector<256x8xbf16>
    %cst_80 = arith.constant dense<0.000000e+00> : vector<256x256xf32>
    %145 = tpu.matmul %140, %142, %cst_80 {dimension_numbers = #tpu.dot_dimension_numbers<[1], [1], [0], [0], [0, 0, 1, 0], [], []>} : vector<256x8xbf16>, vector<256x8xbf16>, vector<256x256xf32> -> vector<256x256xf32>
    %cst_81 = arith.constant dense<0xFF800000> : vector<256xf32>
    %146 = vector.multi_reduction <maximumf>, %145, %cst_81 [1] : vector<256x256xf32> to vector<256xf32>
    %147 = vector.shape_cast %146 : vector<256xf32> to vector<256x1xf32>
    %148 = vector.broadcast %147 : vector<256x1xf32> to vector<256x256xf32>
    %149 = arith.subf %145, %148 : vector<256x256xf32>
    %150 = math.exp %149 : vector<256x256xf32>
    %cst_82 = arith.constant dense<0.000000e+00> : vector<256xf32>
    %151 = vector.multi_reduction <add>, %150, %cst_82 [1] : vector<256x256xf32> to vector<256xf32>
    %152 = vector.shape_cast %151 : vector<256xf32> to vector<256x1xf32>
    %153 = tpu.reciprocal %152 {approx = true} : vector<256x1xf32> -> vector<256x1xf32>
    %154 = vector.broadcast %153 : vector<256x1xf32> to vector<256x256xf32>
    %155 = arith.mulf %150, %154 : vector<256x256xf32>
    %156 = arith.truncf %155 : vector<256x256xf32> to vector<256x256xbf16>
    %cst_83 = arith.constant dense<0.000000e+00> : vector<256x8xf32>
    %157 = tpu.matmul %156, %144, %cst_83 {dimension_numbers = #tpu.dot_dimension_numbers<[1], [0], [0], [1], [0, 0, 1, 1], [], []>} : vector<256x256xbf16>, vector<256x8xbf16>, vector<256x8xf32> -> vector<256x8xf32>
    %158 = arith.truncf %157 : vector<256x8xf32> to vector<256x8xbf16>
    %c24 = arith.constant 24 : index
    %c0_84 = arith.constant 0 : index
    %159 = vector.load %arg6[%c24, %c0_84] : memref<32x32xbf16, #tpu.memory_space<vmem>>, vector<8x32xbf16>
    %cst_85 = arith.constant dense<0.000000e+00> : vector<256x32xf32>
    %160 = tpu.matmul %158, %159, %cst_85 {dimension_numbers = #tpu.dot_dimension_numbers<[1], [0], [0], [1], [0, 0, 1, 1], [], []>} : vector<256x8xbf16>, vector<8x32xbf16>, vector<256x32xf32> -> vector<256x32xf32>
    %161 = arith.addf %138, %160 : vector<256x32xf32>
    %c0_86 = arith.constant 0 : index
    %c0_87 = arith.constant 0 : index
    %162 = vector.load %arg7[%c0_86, %c0_87] : memref<1x32xf32, #tpu.memory_space<vmem>>, vector<1x32xf32>
    %163 = vector.broadcast %162 : vector<1x32xf32> to vector<256x32xf32>
    %164 = arith.addf %161, %163 : vector<256x32xf32>
    %c0_88 = arith.constant 0 : index
    %c0_89 = arith.constant 0 : index
    %c0_90 = arith.constant 0 : index
    %165 = vector.load %arg8[%c0_88, %c0_89, %c0_90] : memref<1x256x32xf32, #tpu.memory_space<vmem>>, vector<1x256x32xf32>
    %166 = vector.shape_cast %165 : vector<1x256x32xf32> to vector<256x32xf32>
    %167 = vector.shape_cast %164 : vector<256x32xf32> to vector<1x256x32xf32>
    tpu.vector_store %arg8[%c0_88, %c0_89, %c0_90], %167 {strides = array<i32>} : memref<1x256x32xf32, #tpu.memory_space<vmem>>, vector<1x256x32xf32>,
    return
  }
  func.func @transform_0(%arg0: i32) -> (i32, i32, i32, i32) {
    %c0_i32 = arith.constant 0 : i32
    %c0_i32_0 = arith.constant 0 : i32
    %c0_i32_1 = arith.constant 0 : i32
    %c0_i32_2 = arith.constant 0 : i32
    return %arg0, %c0_i32, %c0_i32_0, %c0_i32_1 : i32, i32, i32, i32
  }
  func.func @transform_1(%arg0: i32) -> (i32, i32) {
    %c0_i32 = arith.constant 0 : i32
    %c0_i32_0 = arith.constant 0 : i32
    %c0_i32_1 = arith.constant 0 : i32
    return %c0_i32, %c0_i32_0 : i32, i32
  }
  func.func @transform_2(%arg0: i32) -> (i32, i32) {
    %c0_i32 = arith.constant 0 : i32
    %c0_i32_0 = arith.constant 0 : i32
    %c0_i32_1 = arith.constant 0 : i32
    return %c0_i32, %c0_i32_0 : i32, i32
  }
  func.func @transform_3(%arg0: i32) -> (i32, i32) {
    %c0_i32 = arith.constant 0 : i32
    %c0_i32_0 = arith.constant 0 : i32
    %c0_i32_1 = arith.constant 0 : i32
    return %c0_i32, %c0_i32_0 : i32, i32
  }
  func.func @transform_4(%arg0: i32) -> (i32, i32) {
    %c0_i32 = arith.constant 0 : i32
    %c0_i32_0 = arith.constant 0 : i32
    %c0_i32_1 = arith.constant 0 : i32
    return %c0_i32, %c0_i32_0 : i32, i32
  }
  func.func @transform_5(%arg0: i32) -> (i32, i32) {
    %c0_i32 = arith.constant 0 : i32
    %c0_i32_0 = arith.constant 0 : i32
    %c0_i32_1 = arith.constant 0 : i32
    return %c0_i32, %c0_i32_0 : i32, i32
  }
  func.func @transform_6(%arg0: i32) -> (i32, i32) {
    %c0_i32 = arith.constant 0 : i32
    %c0_i32_0 = arith.constant 0 : i32
    %c0_i32_1 = arith.constant 0 : i32
    return %c0_i32, %c0_i32_0 : i32, i32
  }
  func.func @transform_7(%arg0: i32) -> (i32, i32, i32) {
    %c0_i32 = arith.constant 0 : i32
    %c0_i32_0 = arith.constant 0 : i32
    %c0_i32_1 = arith.constant 0 : i32
    return %arg0, %c0_i32, %c0_i32_0 : i32, i32, i32
  }
}

</mosaic_0001>

<bundles_post_ra>
// kernel: tpu_custom_call.1
= control target key start
LH: loop header
LB: loop body
LE: loop exit
PB: predicated region body
PF: predicated region fallthrough
CT: control target
= control target key end

     0   :  { %s14060_s24 = smov 0   ;;  %s19475_s0 = inlined_call_operand.vmem [shape: bf16[2,18,18,32], index: 0, kind: input, shape index: {}]   ;;  %s19476_s1 = inlined_call_operand.vmem [shape: bf16[288,32], index: 1, kind: input, shape index: {}]   ;;  %s19477_s2 = inlined_call_operand.vmem [shape: f32[1,32], index: 2, kind: input, shape index: {}]   ;;  %s19478_s3 = inlined_call_operand.vmem [shape: bf16[32,96], index: 3, kind: input, shape index: {}]   ;;  %s19479_s4 = inlined_call_operand.vmem [shape: f32[1,96], index: 4, kind: input, shape index: {}]   ;;  %s19480_s5 = inlined_call_operand.vmem [shape: bf16[32,32], index: 5, kind: input, shape index: {}]   ;;  %s19481_s6 = inlined_call_operand.vmem [shape: f32[1,32], index: 6, kind: input, shape index: {}]   ;;  %s19482_s7 = inlined_call_operand.vmem [shape: f32[2,256,32], index: 7, kind: output, shape index: {}]  }
   0x1 LB: > { %s10661_s25 = sadd.s32 4294967295, %s14007_s24   ;;  %p10665_p0 = scmp.ge.s32.totalorder %s14007_s24, 1  ;;  %s14007_s24 = sphi %s14060_s24, %s17_s24  }
   0x2   : > { %p237_p1 = scmp.lt.s32.totalorder %s14007_s24, 3 }
   0x4   : > { %p238_p2 = pnand %p10665_p0, %p237_p1 }
   0x6   : > { %241 = sbr.rel (%p238_p2) target bundleno = 4004 (0xfa4), region = 48 }
   0xd   : > { %v13159_v0 = vld [vmem:[%s19476_s1 + $0x10] sm:$0xff]   ;;  %p269_p3 = scmp.lt.s32.totalorder %s10661_s25, 1  ;;  %v13160_v1 = vld [vmem:[%s19476_s1 + $0x18] sm:$0xff]   ;;  %v14080_v2 = vld [vmem:[%s19476_s1] sm:$0xff]   ;;  %vm332_vm0 = vsmask.f32 3328 }
   0xe   : > { %12255 = vmatprep.subr.bf16.mxu0 %v13159_v0  ;;  %vm333_vm1 = vsmask.f32 7440  ;;  %vm783_vm3 = vcmask 261120   ;;  %vm1342_vm4 = vcmask 1042432   ;;  %vm1343_vm5 = vcmask 1046532   ;;  %s14009_s9 = smov 96  }
   0xf   : > { %s20517_s25 = smov (!%p269_p3, %s10661_s25), 1  ;;  %12256 = vmatpush3.bf16.msra.mxu0 %v13159_v0  ;;  %vm14118_vm2 = vmor %vm332_vm0, %vm333_vm1  ;;  %vm5321_vm7 = vcmask 64512   ;;  %s14010_s10 = smov 64   ;;  %vm7488_vm8 = vcmask 1043456  }
  0x10   : > { %12257 = vmatprep.subr.bf16.mxu0 %v13160_v1  ;;  %s13139_s30 = smul.u32 216, %s20517_s25  ;;  %vm14429_vm6 = vmor %vm1342_vm4, %vm1343_vm5  ;;  %s14011_s11 = smov 88  }
  0x11   : > { %s14012_s13 = smov 120   ;;  %s14013_s14 = smov 56  }
  0x12   : > { %s14085_s12 = scalar_lea.vmem %s19475_s0, %s13139_s30  ;;  %s14014_s15 = smov 80  }
  0x13   : > { %12258 = vmatpush3.bf16.msra.mxu0 %v13160_v1  ;;  %v14088_v3 = vld [vmem:[%s14085_s12] sm:$0xf]  ;;  %v14091_v4 = vld [vmem:[%s14085_s12 + $0x4] sm:$0xf]  ;;  %v316_v5 = vld [vmem:[%s14085_s12 + $0x8] sm:$0x1] }
  0x14   : > { %v336_v6 = vshrl.u32 %v14088_v3, 16  ;;  %v339_v7 = vshll.u32 %v14088_v3, 16  ;;  %v345_v8 = vshll.u32 %v14091_v4, 16  ;;  %v349_v9 = vshrl.u32 %v14091_v4, 16  ;;  %v14099_v10 = vld [vmem:[%s14085_s12 + $0xc] sm:$0xf]  ;;  %12291 = vmatprep.subr.bf16.mxu0 %v14080_v2 }
  0x15   : > { %v355_v11 = vshll.u32 %v316_v5, 16  ;;  %v14103_v12 = vld [vmem:[%s14085_s12 + $0x10] sm:$0xf]  ;;  %v14106_v13 = vld [vmem:[%s14085_s12 + $0x14] sm:$0x1]  ;;  %v360_v19 = vshrl.u32 %v14099_v10, 16 }
  0x16   : > { %v338_v14 = vrot.slane %v336_v6, 4  ;;  %v341_v15 = vrot.slane %v339_v7, 5  ;;  %v347_v16 = vrot.slane %v345_v8, 5  ;;  %v351_v17 = vrot.slane %v349_v9, 4  ;;  %v14114_v26 = vld [vmem:[%s14085_s12 + $0x18] sm:$0xf] }
  0x17   : > { %v357_v18 = vrot.slane %v355_v11, 5  ;;  %v363_v20 = vshll.u32 %v14099_v10, 16  ;;  %v369_v21 = vshll.u32 %v14103_v12, 16  ;;  %v373_v24 = vshrl.u32 %v14103_v12, 16  ;;  %v14123_v31 = vld [vmem:[%s14085_s12 + $0x1c] sm:$0xf] }
  0x18   : > { %v342_v22 = vor.u32 %v341_v15, %v338_v14  ;;  %v352_v23 = vor.u32 %v351_v17, %v347_v16  ;;  %v379_v25 = vshll.u32 %v14106_v13, 16  ;;  %v362_v28 = vrot.slane %v360_v19, 4  ;;  %v318_v38 = vld [vmem:[%s14085_s12 + $0x20] sm:$0x1]  ;;  %v14136_v45 = vld [vmem:[%s14085_s12 + $0x24] sm:$0xf] }
  0x19   : > { %v365_v29 = vrot.slane %v363_v20, 5  ;;  %v371_v30 = vrot.slane %v369_v21, 5  ;;  %v375_v34 = vrot.slane %v373_v24, 4  ;;  %v384_v39 = vshrl.u32 %v14114_v26, 16  ;;  %v14139_v50 = vld [vmem:[%s14085_s12 + $0x28] sm:$0xf] }
  0x1a   : > { %v343_v32 = vrot.slane %v342_v22, 4  ;;  %v353_v33 = vrot.slane %v352_v23, 4  ;;  %v381_v37 = vrot.slane %v379_v25, 5  ;;  %v387_v40 = vshll.u32 %v14114_v26, 16  ;;  %v319_v57 = vld [vmem:[%s14085_s12 + $0x2c] sm:$0x1] }
  0x1b   : > { %v366_v36 = vor.u32 %v365_v29, %v362_v28  ;;  %v376_v43 = vor.u32 %v375_v34, %v371_v30  ;;  %v393_v44 = vshll.u32 %v14123_v31, 16  ;;  %v386_v48 = vrot.slane %v384_v39, 4  ;;  %v14152_v0 = vld [vmem:[%s14085_s12 + $0x30] sm:$0xf]  ;;  %v14155_v8 = vld [vmem:[%s14085_s12 + $0x34] sm:$0xf] }
  0x1c   : > { %v348_v41 = vsel %vm14118_vm2, %v343_v32, %v347_v16  ;;  %v358_v42 = vsel %vm14118_vm2, %v353_v33, %v357_v18  ;;  %v389_v49 = vrot.slane %v387_v40, 5  ;;  %v397_v53 = vshrl.u32 %v14123_v31, 16  ;;  %v13162_v9 = vld [vmem:[%s19476_s1 + $0x8] sm:$0xff]   ;;  %v14165_v19 = vld [vmem:[%s14085_s12 + $0x38] sm:$0x1]  ;;  %v14174_v28 = vld [vmem:[%s19476_s1 + $0x20] sm:$0xff]  }
  0x1d   : > { %v10669_v46 = vcombine.low %v348_v41, %v358_v42  ;;  %v367_v47 = vrot.slane %v366_v36, 4  ;;  %v377_v51 = vrot.slane %v376_v43, 4  ;;  %v395_v52 = vrot.slane %v393_v44, 5  ;;  %v14178_v34 = vld [vmem:[%s14085_s12 + $0x3c] sm:$0xf]  ;;  %s14015_s16 = smov 112  }
  0x1e   : > { %v403_v54 = vshll.u32 %v318_v38, 16  ;;  %v390_v56 = vor.u32 %v389_v49, %v386_v48  ;;  %v408_v58 = vshrl.u32 %v14136_v45, 16  ;;  %v411_v59 = vshll.u32 %v14136_v45, 16  ;;  %v14184_v39 = vld [vmem:[%s14085_s12 + $0x40] sm:$0xf]  ;;  %s14016_s17 = smov 72  }
  0x1f   : > { %12259 = vmatprep.mubr.msk.bf16.mxu0 %vm783_vm3, %v10669_v46  ;;  %v372_v55 = vsel %vm14118_vm2, %v367_v47, %v371_v30  ;;  %v382_v60 = vsel %vm14118_vm2, %v377_v51, %v381_v37  ;;  %v399_v61 = vrot.slane %v397_v53, 4  ;;  %v417_v63 = vshll.u32 %v14139_v50, 16  ;;  %v14189_v44 = vld [vmem:[%s14085_s12 + $0x44] sm:$0x1]  ;;  %s14017_s18 = smov 104   ;;  %s14019_s23 = smov 40  }
  0x20   : > { %v405_v62 = vrot.slane %v403_v54, 5  ;;  %v10670_v1 = vcombine.low %v372_v55, %v382_v60  ;;  %v391_v5 = vrot.slane %v390_v56, 4  ;;  %v410_v6 = vrot.slane %v408_v58, 4  ;;  %v14197_v55 = vld [vmem:[%s14085_s12 + $0x48] sm:$0xf]  ;;  %s11366_s30 = sshll.u32 %s20517_s25, 8 }
  0x21   : > { %v413_v7 = vrot.slane %v411_v59, 5  ;;  %v400_v11 = vor.u32 %v399_v61, %v395_v52  ;;  %v419_v14 = vrot.slane %v417_v63, 5  ;;  %v421_v15 = vshrl.u32 %v14139_v50, 16  ;;  %v14204_v60 = vld [vmem:[%s14085_s12 + $0x4c] sm:$0xf] }
  0x22   : > { %v427_v16 = vshll.u32 %v319_v57, 16  ;;  %12260 = vmatmul.mubr.msk.bf16.vlgmr.msra.gmra.mrb[0].mxu0 %vm783_vm3, %v10670_v1  ;;  %v396_v17 = vsel %vm14118_vm2, %v391_v5, %v395_v52  ;;  %v432_v20 = vshrl.u32 %v14152_v0, 16  ;;  %v435_v21 = vshll.u32 %v14152_v0, 16 }
  0x23   : > { %v414_v18 = vor.u32 %v413_v7, %v410_v6  ;;  %12292 = vmatpush3.bf16.msra.mxu0 %v14080_v2  ;;  %v401_v22 = vrot.slane %v400_v11, 4  ;;  %v423_v23 = vrot.slane %v421_v15, 4  ;;  %v441_v25 = vshll.u32 %v14155_v8, 16 }
  0x24   : > { %v429_v24 = vrot.slane %v427_v16, 5  ;;  %v434_v30 = vrot.slane %v432_v20, 4  ;;  %v437_v32 = vrot.slane %v435_v21, 5  ;;  %v445_v33 = vshrl.u32 %v14155_v8, 16  ;;  %12293 = vmatprep.subr.bf16.mxu0 %v13162_v9 }
  0x25   : > { %v415_v29 = vrot.slane %v414_v18, 4  ;;  %v406_v2 = vsel %vm14118_vm2, %v401_v22, %v405_v62  ;;  %v424_v36 = vor.u32 %v423_v23, %v419_v14  ;;  %v443_v37 = vrot.slane %v441_v25, 5  ;;  %v14219_v18 = vld [vmem:[%s14085_s12 + $0x54] sm:$0xf] }
  0x26   : > { %v451_v38 = vshll.u32 %v14165_v19, 16  ;;  %v10671_v40 = vcombine.low %v396_v17, %v406_v2  ;;  %v438_v42 = vor.u32 %v437_v32, %v434_v30  ;;  %v447_v43 = vrot.slane %v445_v33, 4 }
  0x27   : > { %v420_v41 = vsel %vm14118_vm2, %v415_v29, %v419_v14  ;;  %v425_v46 = vrot.slane %v424_v36, 4  ;;  %v456_v48 = vshrl.u32 %v14178_v34, 16  ;;  %v459_v49 = vshll.u32 %v14178_v34, 16  ;;  %12294 = vmatpush3.bf16.msra.mxu0 %v13162_v9  ;;  %v14209_v9 = vld [vmem:[%s14085_s12 + $0x50] sm:$0x1] }
  0x28   : > { %v453_v47 = vrot.slane %v451_v38, 5  ;;  %12263 = vmatprep.mubr.msk.bf16.mxu0 %vm783_vm3, %v10671_v40  ;;  %v439_v51 = vrot.slane %v438_v42, 4  ;;  %v448_v52 = vor.u32 %v447_v43, %v443_v37  ;;  %v465_v53 = vshll.u32 %v14184_v39, 16  ;;  %12327 = vmatprep.subr.bf16.mxu0 %v14174_v28  ;;  %v14231_v42 = vld [vmem:[%s14085_s12 + $0x5c] sm:$0x1] }
  0x29   : > { %v469_v54 = vshrl.u32 %v14184_v39, 16  ;;  %v430_v56 = vsel %vm14118_vm2, %v425_v46, %v429_v24  ;;  %v458_v57 = vrot.slane %v456_v48, 4  ;;  %v461_v58 = vrot.slane %v459_v49, 5  ;;  %v14222_v24 = vld [vmem:[%s14085_s12 + $0x58] sm:$0xf] }
  0x2a   : > { %v475_v59 = vshll.u32 %v14189_v44, 16  ;;  %v10672_v61 = vcombine.low %v420_v41, %v430_v56  ;;  %v444_v62 = vsel %vm14118_vm2, %v439_v51, %v443_v37  ;;  %v449_v63 = vrot.slane %v448_v52, 4  ;;  %v14235_v46 = vld [vmem:[%s14085_s12 + $0x60] sm:$0xf]  ;;  %v14241_v52 = vld [vmem:[%s14085_s12 + $0x64] sm:$0xf] }
  0x2b   : > { %v467_v1 = vrot.slane %v465_v53, 5  ;;  %v462_v5 = vor.u32 %v461_v58, %v458_v57  ;;  %v471_v6 = vrot.slane %v469_v54, 4  ;;  %v480_v11 = vshrl.u32 %v14197_v55, 16 }
  0x2c   : > { %v477_v7 = vrot.slane %v475_v59, 5  ;;  %12264 = vmatmul.mubr.msk.bf16.gmra.mrb[4].mxu0 %vm783_vm3, %v10672_v61  ;;  %v454_v14 = vsel %vm14118_vm2, %v449_v63, %v453_v47  ;;  %v483_v15 = vshll.u32 %v14197_v55, 16  ;;  %v489_v16 = vshll.u32 %v14204_v60, 16 }
  0x2d   : > { %v493_v17 = vshrl.u32 %v14204_v60, 16  ;;  %v10673_v20 = vcombine.low %v444_v62, %v454_v14  ;;  %v463_v21 = vrot.slane %v462_v5, 4  ;;  %v472_v22 = vor.u32 %v471_v6, %v467_v1  ;;  %v14251_v5 = vld [vmem:[%s14085_s12 + $0x68] sm:$0x1] }
  0x2e   : > { %v482_v23 = vrot.slane %v480_v11, 4  ;;  %v485_v25 = vrot.slane %v483_v15, 5  ;;  %v491_v29 = vrot.slane %v489_v16, 5  ;;  %v499_v32 = vshll.u32 %v14209_v9, 16  ;;  %19810 = vst [vmem:[#allocation2_spill] sm:$0xff] %v14251_v5 }
  0x2f   : > { %v495_v30 = vrot.slane %v493_v17, 4  ;;  %12267 = vmatprep.mubr.msk.bf16.mxu0 %vm783_vm3, %v10673_v20  ;;  %v468_v33 = vsel %vm14118_vm2, %v463_v21, %v467_v1  ;;  %v473_v2 = vrot.slane %v472_v22, 4  ;;  %v504_v36 = vshrl.u32 %v14219_v18, 16  ;;  %v14256_v11 = vld [vmem:[%s14085_s12 + $0x6c] sm:$0xf] }
  0x30   : > { %v507_v37 = vshll.u32 %v14219_v18, 16  ;;  %v486_v38 = vor.u32 %v485_v25, %v482_v23  ;;  %v501_v41 = vrot.slane %v499_v32, 5  ;;  %v513_v43 = vshll.u32 %v14222_v24, 16  ;;  %v14259_v20 = vld [vmem:[%s14085_s12 + $0x70] sm:$0xf] }
  0x31   : > { %v496_v40 = vor.u32 %v495_v30, %v491_v29  ;;  %v478_v47 = vsel %vm14118_vm2, %v473_v2, %v477_v7  ;;  %v506_v48 = vrot.slane %v504_v36, 4  ;;  %v517_v51 = vshrl.u32 %v14222_v24, 16 }
  0x32   : > { %v509_v49 = vrot.slane %v507_v37, 5  ;;  %v10674_v53 = vcombine.low %v468_v33, %v478_v47  ;;  %v487_v54 = vrot.slane %v486_v38, 4  ;;  %v515_v57 = vrot.slane %v513_v43, 5 }
  0x33   : > { %v497_v56 = vrot.slane %v496_v40, 4  ;;  %v519_v59 = vrot.slane %v517_v51, 4  ;;  %v523_v61 = vshll.u32 %v14231_v42, 16  ;;  %v528_v62 = vshrl.u32 %v14235_v46, 16 }
  0x34   : > { %v510_v58 = vor.u32 %v509_v49, %v506_v48  ;;  %12268 = vmatmul.mubr.msk.bf16.gmra.mrb[8].mxu0 %vm783_vm3, %v10674_v53  ;;  %v492_v63 = vsel %vm14118_vm2, %v487_v54, %v491_v29  ;;  %v531_v6 = vshll.u32 %v14235_v46, 16  ;;  %v537_v7 = vshll.u32 %v14241_v52, 16  ;;  %v14263_v29 = vld [vmem:[%s14085_s12 + $0x74] sm:$0x1] }
  0x35   : > { %v502_v1 = vsel %vm14118_vm2, %v497_v56, %v501_v41  ;;  %v520_v16 = vor.u32 %v519_v59, %v515_v57  ;;  %v525_v17 = vrot.slane %v523_v61, 5  ;;  %v530_v21 = vrot.slane %v528_v62, 4  ;;  %19811 = vst [vmem:[#allocation3_spill] sm:$0xff] %v14263_v29  ;;  %v14273_v41 = vld [vmem:[%s14085_s12 + $0x78] sm:$0xf] }
  0x36   : > { %v10675_v14 = vcombine.low %v492_v63, %v502_v1  ;;  %v511_v15 = vrot.slane %v510_v58, 4  ;;  %v533_v22 = vrot.slane %v531_v6, 5  ;;  %v539_v23 = vrot.slane %v537_v7, 5  ;;  %v14282_v58 = vld [vmem:[%s14085_s12 + $0x80] sm:$0x1] }
  0x37   : > { %v541_v25 = vshrl.u32 %v14241_v52, 16  ;;  %v521_v32 = vrot.slane %v520_v16, 4  ;;  %v547_v33 = vshll.u32 %v14251_v5, 16  ;;  %v552_v2 = vshrl.u32 %v14256_v11, 16  ;;  %19812 = vst [vmem:[#allocation4_spill] sm:$0xff] %v14282_v58 }
  0x38   : > { %12271 = vmatprep.mubr.msk.bf16.mxu0 %vm783_vm3, %v10675_v14  ;;  %v516_v30 = vsel %vm14118_vm2, %v511_v15, %v515_v57  ;;  %v534_v36 = vor.u32 %v533_v22, %v530_v21  ;;  %v555_v38 = vshll.u32 %v14256_v11, 16  ;;  %v561_v40 = vshll.u32 %v14259_v20, 16  ;;  %v14279_v57 = vld [vmem:[%s14085_s12 + $0x7c] sm:$0xf]  ;;  %v14287_v1 = vld [vmem:[%s14085_s12 + $0x84] sm:$0xf] }
  0x39   : > { %v543_v37 = vrot.slane %v541_v25, 4  ;;  %v526_v43 = vsel %vm14118_vm2, %v521_v32, %v525_v17  ;;  %v549_v47 = vrot.slane %v547_v33, 5  ;;  %v554_v48 = vrot.slane %v552_v2, 4  ;;  %v14294_v16 = vld [vmem:[%s14085_s12 + $0x88] sm:$0xf] }
  0x3a   : > { %v565_v49 = vshrl.u32 %v14259_v20, 16  ;;  %v10676_v51 = vcombine.low %v516_v30, %v526_v43  ;;  %v535_v53 = vrot.slane %v534_v36, 4  ;;  %v557_v56 = vrot.slane %v555_v38, 5  ;;  %v14301_v2 = vld [vmem:[%s14085_s12 + $0x8c] sm:$0x1] }
  0x3b   : > { %v544_v54 = vor.u32 %v543_v37, %v539_v23  ;;  %v563_v59 = vrot.slane %v561_v40, 5  ;;  %v571_v62 = vshll.u32 %v14263_v29, 16  ;;  %v576_v63 = vshrl.u32 %v14273_v41, 16  ;;  %19813 = vst [vmem:[#allocation5_spill] sm:$0xff] %v14301_v2  ;;  %v14305_v43 = vld [vmem:[%s14085_s12 + $0x90] sm:$0xf] }
  0x3c   : > { %v567_v61 = vrot.slane %v565_v49, 4  ;;  %12272 = vmatmul.mubr.msk.bf16.gmra.mrb[12].mxu0 %vm783_vm3, %v10676_v51  ;;  %v540_v6 = vsel %vm14118_vm2, %v535_v53, %v539_v23  ;;  %v558_v14 = vor.u32 %v557_v56, %v554_v48  ;;  %v579_v15 = vshll.u32 %v14273_v41, 16  ;;  %v14311_v53 = vld [vmem:[%s14085_s12 + $0x94] sm:$0xf] }
  0x3d   : > { %v545_v7 = vrot.slane %v544_v54, 4  ;;  %v573_v21 = vrot.slane %v571_v62, 5  ;;  %v578_v22 = vrot.slane %v576_v63, 4  ;;  %v585_v25 = vshll.u32 %v14279_v57, 16 }
  0x3e   : > { %v568_v17 = vor.u32 %v567_v61, %v563_v59  ;;  %v559_v32 = vrot.slane %v558_v14, 4  ;;  %v581_v33 = vrot.slane %v579_v15, 5  ;;  %v589_v23 = vshrl.u32 %v14279_v57, 16 }
  0x3f   : > { %v550_v30 = vsel %vm14118_vm2, %v545_v7, %v549_v47  ;;  %v587_v38 = vrot.slane %v585_v25, 5  ;;  %v595_v40 = vshll.u32 %v14282_v58, 16  ;;  %v600_v47 = vshrl.u32 %v14287_v1, 16  ;;  %v14321_v25 = vld [vmem:[%s14085_s12 + $0x98] sm:$0x1] }
  0x40   : > { %v10677_v36 = vcombine.low %v540_v6, %v550_v30  ;;  %v569_v37 = vrot.slane %v568_v17, 4  ;;  %v564_v48 = vsel %vm14118_vm2, %v559_v32, %v563_v59  ;;  %v582_v49 = vor.u32 %v581_v33, %v578_v22  ;;  %19814 = vst [vmem:[#allocation6_spill] sm:$0xff] %v14321_v25  ;;  %v14324_v30 = vld [vmem:[%s14085_s12 + $0x9c] sm:$0xf] }
  0x41   : > { %v591_v51 = vrot.slane %v589_v23, 4  ;;  %v597_v56 = vrot.slane %v595_v40, 5  ;;  %v603_v61 = vshll.u32 %v14287_v1, 16  ;;  %v609_v62 = vshll.u32 %v14294_v16, 16  ;;  %v14378_v58 = vld [vmem:[%s14085_s12 + $0xbc] sm:$0x1] }
  0x42   : > { %12275 = vmatprep.mubr.msk.bf16.mxu0 %vm783_vm3, %v10677_v36  ;;  %v574_v54 = vsel %vm14118_vm2, %v569_v37, %v573_v21  ;;  %v583_v59 = vrot.slane %v582_v49, 4  ;;  %v602_v7 = vrot.slane %v600_v47, 4  ;;  %v613_v17 = vshrl.u32 %v14294_v16, 16 }
  0x43   : > { %v10678_v63 = vcombine.low %v564_v48, %v574_v54  ;;  %v592_v6 = vor.u32 %v591_v51, %v587_v38  ;;  %v605_v14 = vrot.slane %v603_v61, 5  ;;  %v611_v15 = vrot.slane %v609_v62, 5 }
  0x44   : > { %v619_v22 = vshll.u32 %v14301_v2, 16  ;;  %v588_v21 = vsel %vm14118_vm2, %v583_v59, %v587_v38  ;;  %v624_v33 = vshrl.u32 %v14305_v43, 16  ;;  %v627_v23 = vshll.u32 %v14305_v43, 16  ;;  %v14336_v38 = vld [vmem:[%s14085_s12 + $0xa0] sm:$0xf] }
  0x45   : > { %12276 = vmatmul.mubr.msk.bf16.gmra.mrb[16].mxu0 %vm783_vm3, %v10678_v63  ;;  %v593_v32 = vrot.slane %v592_v6, 4  ;;  %v606_v36 = vor.u32 %v605_v14, %v602_v7  ;;  %v615_v37 = vrot.slane %v613_v17, 4  ;;  %v633_v48 = vshll.u32 %v14311_v53, 16  ;;  %v14339_v6 = vld [vmem:[%s14085_s12 + $0xa4] sm:$0x1] }
  0x46   : > { %v621_v40 = vrot.slane %v619_v22, 5  ;;  %v626_v51 = vrot.slane %v624_v33, 4  ;;  %v629_v47 = vrot.slane %v627_v23, 5  ;;  %v637_v54 = vshrl.u32 %v14311_v53, 16  ;;  %19815 = vst [vmem:[#allocation7_spill] sm:$0xff] %v14339_v6 }
  0x47   : > { %v598_v49 = vsel %vm14118_vm2, %v593_v32, %v597_v56  ;;  %v607_v62 = vrot.slane %v606_v36, 4  ;;  %v616_v63 = vor.u32 %v615_v37, %v611_v15  ;;  %v635_v59 = vrot.slane %v633_v48, 5  ;;  %v14344_v56 = vld [vmem:[%s14085_s12 + $0xa8] sm:$0xf]  ;;  %v14352_v36 = vld [vmem:[%s14085_s12 + $0xac] sm:$0xf] }
  0x48   : > { %v10679_v61 = vcombine.low %v588_v21, %v598_v49  ;;  %v630_v7 = vor.u32 %v629_v47, %v626_v51  ;;  %v639_v14 = vrot.slane %v637_v54, 4  ;;  %v643_v17 = vshll.u32 %v14321_v25, 16 }
  0x49   : > { %v648_v22 = vshrl.u32 %v14324_v30, 16  ;;  %v612_v32 = vsel %vm14118_vm2, %v607_v62, %v611_v15  ;;  %v617_v21 = vrot.slane %v616_v63, 4  ;;  %v651_v33 = vshll.u32 %v14324_v30, 16  ;;  %v14358_v15 = vld [vmem:[%s14085_s12 + $0xb0] sm:$0x1] }
  0x4a   : > { %12279 = vmatprep.mubr.msk.bf16.mxu0 %vm783_vm3, %v10679_v61  ;;  %v657_v23 = vshll.u32 %v14336_v38, 16  ;;  %v631_v37 = vrot.slane %v630_v7, 4  ;;  %v640_v48 = vor.u32 %v639_v14, %v635_v59  ;;  %v645_v49 = vrot.slane %v643_v17, 5  ;;  %19816 = vst [vmem:[#allocation8_spill] sm:$0xff] %v14358_v15 }
  0x4b   : > { %v650_v51 = vrot.slane %v648_v22, 4  ;;  %v622_v47 = vsel %vm14118_vm2, %v617_v21, %v621_v40  ;;  %v653_v54 = vrot.slane %v651_v33, 5  ;;  %v661_v61 = vshrl.u32 %v14336_v38, 16 }
  0x4c   : > { %v659_v35 = vrot.slane %v657_v23, 5  ;;  %v10680_v62 = vcombine.low %v612_v32, %v622_v47  ;;  %v636_v63 = vsel %vm14118_vm2, %v631_v37, %v635_v59  ;;  %v641_v25 = vrot.slane %v640_v48, 4  ;;  %v14371_v23 = vld [vmem:[%s14085_s12 + $0xb4] sm:$0xf] }
  0x4d   : > { %v667_v7 = vshll.u32 %v14339_v6, 16  ;;  %v654_v14 = vor.u32 %v653_v54, %v650_v51  ;;  %v663_v17 = vrot.slane %v661_v61, 4  ;;  %v672_v22 = vshrl.u32 %v14344_v56, 16  ;;  %v14374_v54 = vld [vmem:[%s14085_s12 + $0xb8] sm:$0xf] }
  0x4e   : > { %v675_v40 = vshll.u32 %v14344_v56, 16  ;;  %12280 = vmatmul.mubr.msk.bf16.gmra.mrb[20].mxu0 %vm783_vm3, %v10680_v62  ;;  %v646_v21 = vsel %vm14118_vm2, %v641_v25, %v645_v49  ;;  %v681_v33 = vshll.u32 %v14352_v36, 16  ;;  %v685_v59 = vshrl.u32 %v14352_v36, 16 }
  0x4f   : > { %v669_v32 = vrot.slane %v667_v7, 5  ;;  %v10681_v37 = vcombine.low %v636_v63, %v646_v21  ;;  %v655_v48 = vrot.slane %v654_v14, 4  ;;  %v664_v51 = vor.u32 %v663_v17, %v659_v35 }
  0x50   : > { %v674_v47 = vrot.slane %v672_v22, 4  ;;  %v677_v61 = vrot.slane %v675_v40, 5  ;;  %v683_v6 = vrot.slane %v681_v33, 5  ;;  %v687_v2 = vrot.slane %v685_v59, 4 }
  0x51   : > { %v691_v62 = vshll.u32 %v14358_v15, 16  ;;  %12283 = vmatprep.mubr.msk.bf16.mxu0 %vm783_vm3, %v10681_v37  ;;  %v660_v25 = vsel %vm14118_vm2, %v655_v48, %v659_v35  ;;  %v665_v49 = vrot.slane %v664_v51, 4  ;;  %v696_v63 = vshrl.u32 %v14371_v23, 16 }
  0x52   : > { %v699_v7 = vshll.u32 %v14371_v23, 16  ;;  %v678_v14 = vor.u32 %v677_v61, %v674_v47  ;;  %v688_v17 = vor.u32 %v687_v2, %v683_v6  ;;  %v705_v40 = vshll.u32 %v14374_v54, 16 }
  0x53   : > { %v693_v22 = vrot.slane %v691_v62, 5  ;;  %v670_v21 = vsel %vm14118_vm2, %v665_v49, %v669_v32  ;;  %v698_v33 = vrot.slane %v696_v63, 4  ;;  %v709_v37 = vshrl.u32 %v14374_v54, 16 }
  0x54   : > { %v701_v59 = vrot.slane %v699_v7, 5  ;;  %v10682_v15 = vcombine.low %v660_v25, %v670_v21  ;;  %v679_v29 = vrot.slane %v678_v14, 4  ;;  %v689_v35 = vrot.slane %v688_v17, 4 }
  0x55   : > { %v707_v48 = vrot.slane %v705_v40, 5  ;;  %v711_v5 = vrot.slane %v709_v37, 4  ;;  %v715_v47 = vshll.u32 %v14378_v58, 16  ;;  %v10704_v2 = vcombine.low %v14099_v10, %v14103_v12 }
  0x56   : > { %v702_v51 = vor.u32 %v701_v59, %v698_v33  ;;  %v1354_v61 = vrot.slane %v14103_v12, 5  ;;  %v1357_v32 = vrot.slane %v14106_v13, 5  ;;  %12284 = vmatmul.mubr.msk.bf16.gmra.mrb[24].mxu0 %vm783_vm3, %v10682_v15  ;;  %v684_v62 = vsel %vm14118_vm2, %v679_v29, %v683_v6  ;;  %v1295_v29 = vld [vmem:[%s14085_s12 + $0xc] sm:$0xe]  ;;  %v1305_v59 = vld [vmem:[%s14085_s12 + $0x84] sm:$0xe] }
  0x57   : > { %v694_v25 = vsel %vm14118_vm2, %v689_v35, %v693_v22  ;;  %v712_v7 = vor.u32 %v711_v5, %v707_v48  ;;  %v717_v14 = vrot.slane %v715_v47, 5  ;;  %v10707_v17 = vcombine.low %v14152_v0, %v14155_v8  ;;  %v1306_v33 = vld [vmem:[%s14085_s12 + $0x90] sm:$0xe]  ;;  %v13226_v47 = vld [vmem:[%s19478_s3 + $0x8] sm:$0xff]  }
  0x58   : > { %v10683_v49 = vcombine.low %v684_v62, %v694_v25  ;;  %v703_v63 = vrot.slane %v702_v51, 4  ;;  %v10708_v10 = vcombine.low %v14178_v34, %v14184_v39  ;;  %v10709_v12 = vcombine.low %v14197_v55, %v14204_v60 }
  0x59   : > { %v713_v5 = vrot.slane %v712_v7, 4  ;;  %v10738_v62 = vrot.slane %v1295_v29, 9  ;;  %v1356_v25 = vrot.slane %v1354_v61, 4  ;;  %v1302_v29 = vld [vmem:[%s14085_s12 + $0x60] sm:$0xe]  ;;  %v19827_v55 = vcombine.low %v14219_v18, %v14222_v24 }
  0x5a   : > { %12287 = vmatprep.mubr.msk.bf16.mxu0 %vm783_vm3, %v10683_v49  ;;  %v708_v6 = vsel %vm14118_vm2, %v703_v63, %v707_v48  ;;  %v1298_v49 = vld [vmem:[%s14085_s12 + $0x30] sm:$0xe]  ;;  %v19819_v63 = vcombine.low %v14088_v3, %v14091_v4  ;;  %v10705_v3 = vcombine.low %v14114_v26, %v14123_v31  ;;  %v1378_v4 = vrot.slane %v14165_v19, 5 }
  0x5b   : > { %v718_v37 = vsel %vm14118_vm2, %v713_v5, %v717_v14  ;;  %v14441_v7 = vsel %vm14429_vm6, %v10738_v62, %v1354_v61  ;;  %v14445_v14 = vsel %vm14429_vm6, %v1356_v25, %v1357_v32  ;;  %v1300_v5 = vld [vmem:[%s14085_s12 + $0x48] sm:$0xe]  ;;  %v1382_v25 = vrot.slane %v14184_v39, 5 }
  0x5c   : > { %v10684_v51 = vcombine.low %v708_v6, %v718_v37  ;;  %v1299_v6 = vld [vmem:[%s14085_s12 + $0x3c] sm:$0xe]  ;;  %v10741_v37 = vrot.slane %v1298_v49, 9  ;;  %v13174_v49 = vld [vmem:[%s19476_s1 + $0x28] sm:$0xff]   ;;  %v1385_v48 = vrot.slane %v14189_v44, 5  ;;  %v10743_v26 = vrot.slane %v1300_v5, 9 }
  0x5d   : > { %v10742_v62 = vrot.slane %v1299_v6, 9  ;;  %v1389_v31 = vrot.slane %v14204_v60, 5  ;;  %v10706_v19 = vcombine.low %v14136_v45, %v14139_v50  ;;  %v1392_v50 = vrot.slane %v14209_v9, 5 }
  0x5e   : > { %12288 = vmatmul.mubr.msk.bf16.gmra.mrb[28].mxu0 %vm783_vm3, %v10684_v51  ;;  %v1375_v51 = vrot.slane %v14155_v8, 5  ;;  %v1399_v9 = vrot.slane %v14231_v42, 5  ;;  %v1403_v44 = vrot.slane %v14241_v52, 5  ;;  %v19824_v8 = vld [vmem:[#allocation6_spill] sm:$0xff]  ;;  %v19828_v60 = vcombine.low %v14235_v46, %v14241_v52 }
  0x5f   : > { %12295 = vmatprep.mubr.msk.bf16.mxu0 %vm783_vm3, %v19819_v63  ;;  %v1301_v63 = vld [vmem:[%s14085_s12 + $0x54] sm:$0xe]  ;;  %v14475_v6 = vsel %vm14429_vm6, %v10742_v62, %v1382_v25  ;;  %v14482_v5 = vsel %vm14429_vm6, %v10743_v26, %v1389_v31  ;;  %v1391_v45 = vrot.slane %v1389_v31, 4  ;;  %v1304_v26 = vld [vmem:[%s14085_s12 + $0x78] sm:$0xe]  ;;  %v10745_v31 = vrot.slane %v1302_v29, 9 }
  0x60   : > { %v14458_v61 = vsel %vm14429_vm6, %v10741_v37, %v1375_v51  ;;  %v1377_v32 = vrot.slane %v1375_v51, 4  ;;  %v1384_v51 = vrot.slane %v1382_v25, 4  ;;  %v10744_v62 = vrot.slane %v1301_v63, 9  ;;  %v13995_v46 = vld [vmem:[%s14085_s12 + $0x4] sm:$0xf] }
  0x61   : > { %v1396_v25 = vrot.slane %v14222_v24, 5  ;;  %v10747_v21 = vrot.slane %v1304_v26, 9  ;;  %v19831_v18 = vcombine.low %v14287_v1, %v14294_v16  ;;  %v19832_v24 = vcombine.low %v14305_v43, %v14311_v53 }
  0x62   : > { %v14471_v37 = vsel %vm14429_vm6, %v1377_v32, %v1378_v4  ;;  %v1303_v4 = vld [vmem:[%s14085_s12 + $0x6c] sm:$0xe]  ;;  %v14495_v32 = vsel %vm14429_vm6, %v1384_v51, %v1385_v48  ;;  %v19820_v51 = vld [vmem:[#allocation2_spill] sm:$0xff]  ;;  %v1347_v52 = vrot.slane %v13995_v46, 5  ;;  %v19833_v1 = vcombine.low %v14324_v30, %v14336_v38 }
  0x63   : > { %v14511_v63 = vsel %vm14429_vm6, %v10744_v62, %v1396_v25  ;;  %v1398_v42 = vrot.slane %v1396_v25, 4  ;;  %v1406_v35 = vrot.slane %v19820_v51, 5  ;;  %v10746_v29 = vrot.slane %v1303_v4, 9  ;;  %v19821_v62 = vld [vmem:[#allocation3_spill] sm:$0xff] }
  0x64   : > { %v1413_v25 = vrot.slane %v19821_v62, 5  ;;  %v1417_v51 = vrot.slane %v14279_v57, 5 }
  0x65   : > { %v14523_v48 = vsel %vm14429_vm6, %v1398_v42, %v1399_v9  ;;  %v1307_v9 = vld [vmem:[%s14085_s12 + $0x9c] sm:$0xe] }
  0x66   : > { %12296 = vmatmul.mubr.msk.bf16.vlgmr.msra.gmra.mrb[0].mxu0 %vm783_vm3, %v10704_v2  ;;  %v14491_v2 = vld [vmem:[%s19476_s1 + $0x30] sm:$0xff]   ;;  %v14543_v42 = vsel %vm14429_vm6, %v10747_v21, %v1417_v51  ;;  %v1419_v62 = vrot.slane %v1417_v51, 4  ;;  %v10749_v51 = vrot.slane %v1306_v33, 9  ;;  %v10750_v33 = vrot.slane %v1307_v9, 9 }
  0x67   : > { %12328 = vmatpush3.bf16.msra.mxu0 %v14174_v28  ;;  %12299 = vmatprep.mubr.msk.bf16.mxu0 %vm783_vm3, %v10705_v3  ;;  %v14504_v3 = vsel %vm14429_vm6, %v1391_v45, %v1392_v50  ;;  %v14517_v28 = vsel %vm14429_vm6, %v10745_v31, %v1403_v44  ;;  %v1405_v45 = vrot.slane %v1403_v44, 4  ;;  %v1410_v50 = vrot.slane %v14259_v20, 5  ;;  %v19822_v31 = vld [vmem:[#allocation4_spill] sm:$0xff] }
  0x68   : > { %12329 = vmatprep.subr.bf16.mxu0 %v13174_v49  ;;  %v1420_v40 = vrot.slane %v19822_v31, 5  ;;  %v19825_v31 = vld [vmem:[#allocation7_spill] sm:$0xff] }
  0x69   : > { %v14532_v44 = vsel %vm14429_vm6, %v1405_v45, %v1406_v35  ;;  %v1412_v4 = vrot.slane %v1410_v50, 4  ;;  %v10748_v45 = vrot.slane %v1305_v59, 9  ;;  %v1308_v59 = vld [vmem:[%s14085_s12 + $0xa8] sm:$0xe]  ;;  %v1441_v15 = vrot.slane %v19825_v31, 5 }
  0x6b   : > { %12330 = vmatpush3.bf16.msra.mxu0 %v13174_v49  ;;  %v14536_v49 = vsel %vm14429_vm6, %v10746_v29, %v1410_v50  ;;  %v14549_v35 = vsel %vm14429_vm6, %v1412_v4, %v1413_v25  ;;  %v1424_v29 = vrot.slane %v14294_v16, 5  ;;  %v19823_v50 = vld [vmem:[#allocation5_spill] sm:$0xff]  ;;  %v1431_v25 = vrot.slane %v14311_v53, 5 }
  0x6c   : > { %12363 = vmatprep.subr.bf16.mxu0 %v14491_v2  ;;  %v1427_v22 = vrot.slane %v19823_v50, 5  ;;  %v1309_v50 = vld [vmem:[%s14085_s12 + $0xb4] sm:$0xe]  ;;  %v19834_v16 = vcombine.low %v14344_v56, %v14352_v36  ;;  %v19835_v56 = vcombine.low %v14371_v23, %v14374_v54  ;;  %v13182_v23 = vld [vmem:[%s19476_s1 + $0x38] sm:$0xff]  }
  0x6d   : > { %v14569_v4 = vsel %vm14429_vm6, %v10748_v45, %v1424_v29  ;;  %v1426_v0 = vrot.slane %v1424_v29, 4  ;;  %v14575_v21 = vsel %vm14429_vm6, %v10749_v51, %v1431_v25  ;;  %v10751_v45 = vrot.slane %v1308_v59, 9 }
  0x6e   : > { %12300 = vmatmul.mubr.msk.bf16.gmra.mrb[4].mxu0 %vm783_vm3, %v10706_v19  ;;  %v14561_v19 = vsel %vm14429_vm6, %v1419_v62, %v1420_v40  ;;  %v1433_v40 = vrot.slane %v1431_v25, 4  ;;  %v1438_v62 = vrot.slane %v14336_v38, 5  ;;  %v1445_v29 = vrot.slane %v14352_v36, 5  ;;  %v13999_v36 = vld [vmem:[%s14085_s12 + $0x28] sm:$0xf] }
  0x6f   : > { %12303 = vmatprep.mubr.msk.bf16.mxu0 %vm783_vm3, %v10707_v17  ;;  %v1434_v17 = vrot.slane %v19824_v8, 5  ;;  %v14580_v26 = vsel %vm14429_vm6, %v1426_v0, %v1427_v22  ;;  %v19826_v0 = vld [vmem:[#allocation8_spill] sm:$0xff] }
  0x70   : > { %v14592_v9 = vsel %vm14429_vm6, %v10750_v33, %v1438_v62  ;;  %v1440_v25 = vrot.slane %v1438_v62, 4  ;;  %v14598_v59 = vsel %vm14429_vm6, %v10751_v45, %v1445_v29  ;;  %v1447_v31 = vrot.slane %v1445_v29, 4  ;;  %v13997_v29 = vld [vmem:[%s14085_s12 + $0x1c] sm:$0xf] }
  0x71   : > { %v14588_v51 = vsel %vm14429_vm6, %v1433_v40, %v1434_v17  ;;  %v1448_v13 = vrot.slane %v19826_v0, 5  ;;  %v10752_v17 = vrot.slane %v1309_v50, 9  ;;  %v1452_v40 = vrot.slane %v14374_v54, 5 }
  0x72   : > { %v10765_v22 = vcombine.low %v14575_v21, %v14588_v51  ;;  %v14603_v8 = vsel %vm14429_vm6, %v1440_v25, %v1441_v15  ;;  %v1455_v33 = vrot.slane %v14378_v58, 5  ;;  %v19830_v15 = vcombine.low %v14273_v41, %v14279_v57  ;;  %v13189_v51 = vld [vmem:[%s14085_s12 + $0x48] sm:$0xff]  }
  0x73   : > { %v10766_v62 = vcombine.low %v14592_v9, %v14603_v8  ;;  %v14615_v45 = vsel %vm14429_vm6, %v1447_v31, %v1448_v13  ;;  %v14625_v39 = vsel %vm14429_vm6, %v10752_v17, %v1452_v40  ;;  %v1454_v58 = vrot.slane %v1452_v40, 4  ;;  %v1296_v31 = vld [vmem:[%s14085_s12 + $0x18] sm:$0xe]  ;;  %v13998_v17 = vld [vmem:[%s14085_s12 + $0x20] sm:$0x1] }
  0x74   : > { %v10767_v34 = vcombine.low %v14598_v59, %v14615_v45  ;;  %v1349_v57 = vrot.slane %v1347_v52, 4  ;;  %v1361_v25 = vrot.slane %v13997_v29, 5  ;;  %v10739_v30 = vrot.slane %v1296_v31, 9  ;;  %v14791_v45 = vld [vmem:[%s14085_s12 + $0x64] sm:$0xf] }
  0x75   : > { %v1364_v40 = vrot.slane %v13998_v17, 5  ;;  %v19836_v54 = vcombine.low %v14441_v7, %v14445_v14  ;;  %v19837_v7 = vcombine.low %v14458_v61, %v14471_v37  ;;  %v19838_v14 = vcombine.low %v14475_v6, %v14495_v32  ;;  %v13183_v32 = vld [vmem:[%s14085_s12 + $0xc] sm:$0xff]   ;;  %v10856_v31 = vld [vmem:[%s14085_s12 + $0x18] sm:$0xf] }
  0x76   : > { %12304 = vmatmul.mubr.msk.bf16.gmra.mrb[8].mxu0 %vm783_vm3, %v10708_v10  ;;  %v14629_v10 = vsel %vm14429_vm6, %v1454_v58, %v1455_v33  ;;  %v1363_v38 = vrot.slane %v1361_v25, 4  ;;  %v1368_v33 = vrot.slane %v13999_v36, 5  ;;  %v19841_v61 = vcombine.low %v14517_v28, %v14532_v44  ;;  %v13184_v28 = vld [vmem:[%s14085_s12 + $0x18] sm:$0xff]   ;;  %v13187_v44 = vld [vmem:[%s14085_s12 + $0x30] sm:$0xff]  }
  0x77   : > { %12307 = vmatprep.mubr.msk.bf16.mxu0 %vm783_vm3, %v10709_v12  ;;  %v10768_v13 = vcombine.low %v14625_v39, %v14629_v10  ;;  %v19829_v12 = vcombine.low %v14256_v11, %v14259_v20  ;;  %v1294_v11 = vld [vmem:[%s14085_s12] sm:$0xe]  ;;  %v13996_v20 = vld [vmem:[%s14085_s12 + $0x8] sm:$0x1]  ;;  %v1362_v39 = vsel %vm14429_vm6, %v10739_v30, %v1361_v25  ;;  %v1297_v10 = vld [vmem:[%s14085_s12 + $0x24] sm:$0xe]  ;;  %v19842_v37 = vcombine.low %v14536_v49, %v14549_v35 }
  0x78   : > { %v1350_v50 = vrot.slane %v13996_v20, 5  ;;  %v10737_v41 = vrot.slane %v1294_v11, 9  ;;  %v1365_v58 = vsel %vm14429_vm6, %v1363_v38, %v1364_v40  ;;  %v19840_v20 = vcombine.low %v14511_v63, %v14523_v48  ;;  %v13194_v48 = vld [vmem:[%s19476_s1 + $0x48] sm:$0xff]   ;;  %v14761_v63 = vld [vmem:[%s19476_s1 + $0x50] sm:$0xff]   ;;  %v13188_v49 = vld [vmem:[%s14085_s12 + $0x3c] sm:$0xff]  }
  0x79   : > { %v19843_v6 = vcombine.low %v14543_v42, %v14561_v19  ;;  %v14771_v42 = vld [vmem:[%s14085_s12 + $0x50] sm:$0x1]  ;;  %v10940_v35 = vld [vmem:[%s14085_s12 + $0x48] sm:$0xe]  ;;  %v2205_v36 = vshrl.u32 %v10856_v31, 16 }
  0x7a   : > { %v1348_v43 = vsel %vm14429_vm6, %v10737_v41, %v1347_v52  ;;  %v1351_v53 = vsel %vm14429_vm6, %v1349_v57, %v1350_v50  ;;  %v13185_v52 = vld [vmem:[%s19476_s1 + $0x40] sm:$0xff]   ;;  %v2973_v19 = vrot.slane %v14771_v42, 5  ;;  %v2984_v50 = vrot.slane %v14791_v45, 5  ;;  %v13192_v25 = vld [vmem:[%s14085_s12 + $0x6c] sm:$0xff]  }
  0x7b   : > { %v10753_v0 = vcombine.low %v1348_v43, %v1351_v53  ;;  %v10853_v43 = vld [vmem:[%s14085_s12 + $0xc] sm:$0xf]  ;;  %v14803_v53 = vld [vmem:[%s14085_s12 + $0x10] sm:$0xf]  ;;  %v14959_v30 = vld [vmem:[%s14085_s12 + $0xc4] sm:$0xf] }
  0x7c   : > { %v2181_v38 = vshrl.u32 %v10853_v43, 16  ;;  %v2184_v17 = vshll.u32 %v10853_v43, 16  ;;  %v2190_v40 = vshll.u32 %v14803_v53, 16 }
  0x7e   : > { %12308 = vmatmul.mubr.msk.bf16.gmra.mrb[12].mxu0 %vm783_vm3, %v19827_v55  ;;  %v10755_v55 = vcombine.low %v1362_v39, %v1365_v58  ;;  %v14821_v39 = vld [vmem:[%s14085_s12 + $0x7c] sm:$0xf]  ;;  %v14824_v58 = vld [vmem:[%s14085_s12 + $0x80] sm:$0x1] }
  0x7f   : > { %12311 = vmatprep.mubr.msk.bf16.mxu0 %vm783_vm3, %v19828_v60  ;;  %v10740_v60 = vrot.slane %v1297_v10, 9  ;;  %v10944_v10 = vld [vmem:[%s14085_s12 + $0x78] sm:$0xe] }
  0x86   : > { %12312 = vmatmul.mubr.msk.bf16.gmra.mrb[16].mxu0 %vm783_vm3, %v19829_v12  ;;  %v1370_v12 = vrot.slane %v1368_v33, 4 }
  0x87   : > { %12315 = vmatprep.mubr.msk.bf16.mxu0 %vm783_vm3, %v19830_v15  ;;  %v14000_v15 = vld [vmem:[%s14085_s12 + $0x2c] sm:$0x1] }
  0x8e   : > { %12316 = vmatmul.mubr.msk.bf16.gmra.mrb[20].mxu0 %vm783_vm3, %v19831_v18  ;;  %v1371_v18 = vrot.slane %v14000_v15, 5  ;;  %v2183_v15 = vrot.slane %v2181_v38, 4 }
  0x8f   : > { %12319 = vmatprep.mubr.msk.bf16.mxu0 %vm783_vm3, %v19832_v24  ;;  %v1369_v24 = vsel %vm14429_vm6, %v10740_v60, %v1368_v33  ;;  %v2208_v33 = vshll.u32 %v10856_v31, 16  ;;  %v3001_v60 = vrot.slane %v14824_v58, 5  ;;  %v14879_v31 = vld [vmem:[%s14085_s12 + $0x34] sm:$0xf] }
  0x90   : > { %v1372_v46 = vsel %vm14429_vm6, %v1370_v12, %v1371_v18  ;;  %v10960_v12 = vrot.slane %v10944_v10, 9  ;;  %v2186_v18 = vrot.slane %v2184_v17, 5  ;;  %v13196_v17 = vld [vmem:[%s14085_s12 + $0x90] sm:$0xff]   ;;  %v13197_v10 = vld [vmem:[%s14085_s12 + $0x9c] sm:$0xff]  }
  0x91   : > { %v10756_v11 = vcombine.low %v1369_v24, %v1372_v46  ;;  %v13193_v46 = vld [vmem:[%s14085_s12 + $0x78] sm:$0xff]  }
  0x96   : > { %12320 = vmatmul.mubr.msk.bf16.gmra.mrb[24].mxu0 %vm783_vm3, %v19833_v1  ;;  %v2986_v1 = vrot.slane %v2984_v50, 4 }
  0x97   : > { %12323 = vmatprep.mubr.msk.bf16.mxu0 %vm783_vm3, %v19834_v16  ;;  %v13191_v16 = vld [vmem:[%s14085_s12 + $0x60] sm:$0xff]  }
  0x9e   : > { %12324 = vmatmul.mubr.msk.bf16.gmra.mrb[28].mxu0 %vm783_vm3, %v19835_v56  ;;  %v2194_v56 = vshrl.u32 %v14803_v53, 16 }
  0x9f   : > { %12331 = vmatprep.mubr.msk.bf16.mxu0 %vm783_vm3, %v10753_v0 }
  0xa6   : > { %12332 = vmatmul.mubr.msk.bf16.vlgmr.msra.gmra.mrb[0].mxu0 %vm783_vm3, %v19836_v54  ;;  %v14833_v54 = vld [vmem:[%s14085_s12 + $0x1c] sm:$0xf] }
  0xa7   : > { %12364 = vmatpush3.bf16.msra.mxu0 %v14491_v2  ;;  %12335 = vmatprep.mubr.msk.bf16.mxu0 %vm783_vm3, %v10755_v55  ;;  %v19839_v2 = vcombine.low %v14482_v5, %v14504_v3  ;;  %v19844_v5 = vcombine.low %v14569_v4, %v14580_v26  ;;  %v13186_v3 = vld [vmem:[%s14085_s12 + $0x24] sm:$0xff]   ;;  %v14768_v26 = vld [vmem:[%s14085_s12 + $0x4c] sm:$0xf]  ;;  %v10956_v4 = vrot.slane %v10940_v35, 9  ;;  %v2998_v55 = vrot.slane %v14821_v39, 5 }
  0xa8   : > { %12365 = vmatprep.subr.bf16.mxu0 %v13182_v23  ;;  %v2970_v21 = vrot.slane %v14768_v26, 5  ;;  %v14860_v35 = vld [vmem:[%s14085_s12 + $0x28] sm:$0xf] }
  0xa9   : > { %v3000_v24 = vrot.slane %v2998_v55, 4  ;;  %v2238_v43 = vshll.u32 %v14860_v35, 16 }
  0xaa   : > { %v2972_v8 = vrot.slane %v2970_v21, 4  ;;  %v14780_v9 = vsel %vm14429_vm6, %v10956_v4, %v2970_v21  ;;  %v14863_v21 = vld [vmem:[%s14085_s12 + $0x94] sm:$0xf] }
  0xab   : > { %12366 = vmatpush3.bf16.msra.mxu0 %v13182_v23  ;;  %v14830_v23 = vrot.slane %v2190_v40, 5 }
  0xac   : > { %12399 = vmatprep.subr.bf16.mxu0 %v13185_v52  ;;  %v14785_v59 = vsel %vm14429_vm6, %v2972_v8, %v2973_v19  ;;  %v14866_v19 = vld [vmem:[%s14085_s12 + $0x98] sm:$0x1] }
  0xae   : > { %12336 = vmatmul.mubr.msk.bf16.gmra.mrb[4].mxu0 %vm783_vm3, %v10756_v11  ;;  %v2196_v11 = vrot.slane %v2194_v56, 4 }
  0xaf   : > { %12339 = vmatprep.mubr.msk.bf16.mxu0 %vm783_vm3, %v19837_v7  ;;  %v2207_v7 = vrot.slane %v2205_v36, 4 }
  0xb6   : > { %12340 = vmatmul.mubr.msk.bf16.gmra.mrb[8].mxu0 %vm783_vm3, %v19838_v14  ;;  %v2210_v14 = vrot.slane %v2208_v33, 5 }
  0xb7   : > { %12343 = vmatprep.mubr.msk.bf16.mxu0 %vm783_vm3, %v19839_v2  ;;  %v14841_v2 = vsel %vm14429_vm6, %v10960_v12, %v2998_v55 }
  0xbe   : > { %12344 = vmatmul.mubr.msk.bf16.gmra.mrb[12].mxu0 %vm783_vm3, %v19840_v20  ;;  %v13195_v20 = vld [vmem:[%s14085_s12 + $0x84] sm:$0xff]  }
  0xbf   : > { %12347 = vmatprep.mubr.msk.bf16.mxu0 %vm783_vm3, %v19841_v61  ;;  %v14846_v61 = vsel %vm14429_vm6, %v3000_v24, %v3001_v60 }
  0xc0   : > { %19845 = vst [vmem:[#allocation2_spill] sm:$0xff] %v14846_v61  ;;  %v14986_v61 = vld [vmem:[%s14085_s12 + $0x58] sm:$0xf] }
  0xc6   : > { %12348 = vmatmul.mubr.msk.bf16.gmra.mrb[16].mxu0 %vm783_vm3, %v19842_v37  ;;  %v2214_v37 = vshll.u32 %v14833_v54, 16 }
  0xc7   : > { %12351 = vmatprep.mubr.msk.bf16.mxu0 %vm783_vm3, %v19843_v6  ;;  %v2218_v6 = vshrl.u32 %v14833_v54, 16 }
  0xce   : > { %12352 = vmatmul.mubr.msk.bf16.gmra.mrb[20].mxu0 %vm783_vm3, %v19844_v5  ;;  %v10859_v5 = vld [vmem:[%s14085_s12 + $0x24] sm:$0xf] }
  0xcf   : > { %12355 = vmatprep.mubr.msk.bf16.mxu0 %vm783_vm3, %v10765_v22  ;;  %v13190_v22 = vld [vmem:[%s14085_s12 + $0x54] sm:$0xff]   ;;  %v2229_v4 = vshrl.u32 %v10859_v5, 16  ;;  %v2232_v8 = vshll.u32 %v10859_v5, 16 }
  0xd1   : > { %v2231_v60 = vrot.slane %v2229_v4, 4  ;;  %v2234_v12 = vrot.slane %v2232_v8, 5  ;;  %v10948_v8 = vld [vmem:[%s14085_s12 + $0xa8] sm:$0xe] }
  0xd6   : > { %12356 = vmatmul.mubr.msk.bf16.gmra.mrb[24].mxu0 %vm783_vm3, %v10766_v62  ;;  %v14962_v62 = vld [vmem:[%s14085_s12 + $0xc8] sm:$0x1] }
  0xd7   : > { %12359 = vmatprep.mubr.msk.bf16.mxu0 %vm783_vm3, %v10767_v34  ;;  %v14794_v34 = vld [vmem:[%s14085_s12 + $0x68] sm:$0x1] }
  0xd8   : > { %v2987_v41 = vrot.slane %v14794_v34, 5 }
  0xda   : > { %v14813_v0 = vsel %vm14429_vm6, %v2986_v1, %v2987_v41  ;;  %v2220_v41 = vrot.slane %v2218_v6, 4  ;;  %v2266_v6 = vshrl.u32 %v14879_v31, 16 }
  0xde   : > { %12360 = vmatmul.mubr.msk.bf16.gmra.mrb[28].mxu0 %vm783_vm3, %v10768_v13  ;;  %v10942_v13 = vld [vmem:[%s14085_s12 + $0x60] sm:$0xe] }
  0xdf   : > { %12367 = vmatprep.mubr.msk.bf16.mxu0 %vm783_vm3, %v13183_v32  ;;  %v10958_v57 = vrot.slane %v10942_v13, 9  ;;  %v3015_v13 = vrot.slane %v14866_v19, 5  ;;  %v10868_v32 = vld [vmem:[%s14085_s12 + $0x48] sm:$0xf] }
  0xe1   : > { %v14807_v29 = vsel %vm14429_vm6, %v10958_v57, %v2984_v50  ;;  %v14872_v50 = vrot.slane %v2214_v37, 5  ;;  %v10862_v57 = vld [vmem:[%s14085_s12 + $0x30] sm:$0xf] }
  0xe2   : > { %v2253_v24 = vshrl.u32 %v10862_v57, 16 }
  0xe3   : > { %v2221_v5 = vor.u32 %v2220_v41, %v14872_v50 }
  0xe4   : > { %v2255_v41 = vrot.slane %v2253_v24, 4 }
  0xe6   : > { %12368 = vmatmul.mubr.msk.bf16.vlgmr.msra.gmra.mrb[0].mxu0 %vm783_vm3, %v13184_v28 }
  0xe7   : > { %12400 = vmatpush3.bf16.msra.mxu0 %v13185_v52  ;;  %12371 = vmatprep.mubr.msk.bf16.mxu0 %vm783_vm3, %v13186_v3  ;;  %v14837_v52 = vld [vmem:[%s14085_s12 + $0x14] sm:$0x1]  ;;  %v14855_v3 = vld [vmem:[%s14085_s12 + $0x20] sm:$0x1] }
  0xe8   : > { %12401 = vmatprep.subr.bf16.mxu0 %v13194_v48  ;;  %v2200_v28 = vshll.u32 %v14837_v52, 16 }
  0xea   : > { %v2202_v36 = vrot.slane %v2200_v28, 5  ;;  %v10865_v28 = vld [vmem:[%s14085_s12 + $0x3c] sm:$0xf] }
  0xeb   : > { %12402 = vmatpush3.bf16.msra.mxu0 %v13194_v48  ;;  %v2187_v48 = vor.u32 %v2186_v18, %v2183_v15  ;;  %v14894_v18 = vld [vmem:[%s14085_s12 + $0x2c] sm:$0x1] }
  0xec   : > { %12435 = vmatprep.subr.bf16.mxu0 %v14761_v63  ;;  %v2248_v4 = vshll.u32 %v14894_v18, 16 }
  0xed   : > { %v2188_v40 = vrot.slane %v2187_v48, 4  ;;  %v14908_v48 = vld [vmem:[%s14085_s12 + $0xac] sm:$0xf] }
  0xee   : > { %12372 = vmatmul.mubr.msk.bf16.gmra.mrb[4].mxu0 %vm783_vm3, %v13187_v44  ;;  %v2197_v44 = vor.u32 %v2196_v11, %v14830_v23  ;;  %v2262_v11 = vshll.u32 %v14879_v31, 16 }
  0xef   : > { %12375 = vmatprep.mubr.msk.bf16.mxu0 %vm783_vm3, %v13188_v49  ;;  %v2211_v49 = vor.u32 %v2210_v14, %v2207_v7  ;;  %v14942_v7 = vrot.slane %v2248_v4, 5 }
  0xf0   : > { %v2198_v56 = vrot.slane %v2197_v44, 4  ;;  %v14911_v44 = vld [vmem:[%s14085_s12 + $0xb0] sm:$0x1] }
  0xf1   : > { %v14887_v55 = vrot.slane %v2211_v49, 4  ;;  %v2235_v49 = vor.u32 %v2234_v12, %v2231_v60  ;;  %v13198_v60 = vld [vmem:[%s14085_s12 + $0xa8] sm:$0xff]   ;;  %v2193_v12 = vsel %vm14118_vm2, %v2188_v40, %v14830_v23 }
  0xf2   : > { %v2203_v24 = vsel %vm14118_vm2, %v2198_v56, %v2202_v36 }
  0xf6   : > { %12376 = vmatmul.mubr.msk.bf16.gmra.mrb[8].mxu0 %vm783_vm3, %v13189_v51  ;;  %v10946_v51 = vld [vmem:[%s14085_s12 + $0x90] sm:$0xe] }
  0xf7   : > { %12379 = vmatprep.mubr.msk.bf16.mxu0 %vm783_vm3, %v13190_v22  ;;  %v3012_v22 = vrot.slane %v14863_v21, 5  ;;  %v10962_v1 = vrot.slane %v10946_v51, 9  ;;  %v3026_v51 = vrot.slane %v14908_v48, 5 }
  0xf9   : > { %v3014_v38 = vrot.slane %v3012_v22, 4  ;;  %v14884_v33 = vsel %vm14429_vm6, %v10962_v1, %v3012_v22  ;;  %v3029_v22 = vrot.slane %v14911_v44, 5  ;;  %v14921_v1 = vrot.slane %v2262_v11, 5 }
  0xfa   : > { %19846 = vst [vmem:[#allocation3_spill] sm:$0xff] %v14884_v33  ;;  %v2310_v33 = vshll.u32 %v14768_v26, 16 }
  0xfb   : > { %v14891_v15 = vsel %vm14429_vm6, %v3014_v38, %v3015_v13  ;;  %v14919_v13 = vld [vmem:[%s14085_s12 + $0x38] sm:$0x1]  ;;  %v14925_v38 = vld [vmem:[%s14085_s12 + $0x40] sm:$0xf] }
  0xfc   : > { %19847 = vst [vmem:[#allocation4_spill] sm:$0xff] %v14891_v15  ;;  %v2272_v40 = vshll.u32 %v14919_v13, 16  ;;  %v2286_v56 = vshll.u32 %v14925_v38, 16  ;;  %v2290_v36 = vshrl.u32 %v14925_v38, 16  ;;  %v13200_v15 = vld [vmem:[%s14085_s12 + $0xc0] sm:$0xff]  }
  0xfe   : > { %12380 = vmatmul.mubr.msk.bf16.gmra.mrb[12].mxu0 %vm783_vm3, %v13191_v16  ;;  %v2224_v16 = vshll.u32 %v14855_v3, 16 }
  0xff   : > { %12383 = vmatprep.mubr.msk.bf16.mxu0 %vm783_vm3, %v13192_v25  ;;  %v2242_v25 = vshrl.u32 %v14860_v35, 16 }
 0x100   : > { %v14899_v14 = vrot.slane %v2224_v16, 5  ;;  %v10964_v16 = vrot.slane %v10948_v8, 9  ;;  %v13199_v8 = vld [vmem:[%s14085_s12 + $0xb4] sm:$0xff]  }
 0x101   : > { %v2244_v37 = vrot.slane %v2242_v25, 4  ;;  %v2268_v25 = vrot.slane %v2266_v6, 4  ;;  %v14940_v6 = vrot.slane %v2235_v49, 4 }
 0x102   : > { %v14935_v11 = vsel %vm14429_vm6, %v10964_v16, %v3026_v51 }
 0x103   : > { %19848 = vst [vmem:[#allocation5_spill] sm:$0xff] %v14935_v11  ;;  %v2269_v4 = vor.u32 %v2268_v25, %v14921_v1  ;;  %v10950_v25 = vld [vmem:[%s14085_s12 + $0xc0] sm:$0xe] }
 0x106   : > { %12384 = vmatmul.mubr.msk.bf16.gmra.mrb[16].mxu0 %vm783_vm3, %v13193_v46  ;;  %v2256_v46 = vshll.u32 %v10862_v57, 16 }
 0x107   : > { %12387 = vmatprep.mubr.msk.bf16.mxu0 %vm783_vm3, %v13195_v20  ;;  %v14901_v20 = vrot.slane %v2238_v43, 5 }
 0x108   : > { %v2258_v57 = vrot.slane %v2256_v46, 5  ;;  %v2280_v46 = vshll.u32 %v10865_v28, 16 }
 0x109   : > { %v2245_v43 = vor.u32 %v2244_v37, %v14901_v20  ;;  %v14938_v37 = vrot.slane %v2221_v5, 4  ;;  %v10966_v5 = vrot.slane %v10950_v25, 9 }
 0x10a   : > { %v2259_v49 = vor.u32 %v2258_v57, %v2255_v41  ;;  %v2282_v16 = vrot.slane %v2280_v46, 5  ;;  %v2217_v41 = vsel %vm14118_vm2, %v14887_v55, %v14872_v50  ;;  %v2304_v46 = vshll.u32 %v10868_v32, 16 }
 0x10b   : > { %v2227_v57 = vsel %vm14118_vm2, %v14938_v37, %v14899_v14  ;;  %v2270_v55 = vrot.slane %v2269_v4, 4 }
 0x10c   : > { %v2260_v50 = vrot.slane %v2259_v49, 4 }
 0x10e   : > { %12388 = vmatmul.mubr.msk.bf16.gmra.mrb[20].mxu0 %vm783_vm3, %v13196_v17  ;;  %v2277_v17 = vshrl.u32 %v10865_v28, 16  ;;  %v14954_v28 = vrot.slane %v2245_v43, 4  ;;  %v14974_v43 = vld [vmem:[%s14085_s12 + $0x44] sm:$0x1] }
 0x10f   : > { %12391 = vmatprep.mubr.msk.bf16.mxu0 %vm783_vm3, %v13197_v10  ;;  %v3028_v10 = vrot.slane %v3026_v51, 4  ;;  %v2296_v37 = vshll.u32 %v14974_v43, 16 }
 0x110   : > { %v2279_v51 = vrot.slane %v2277_v17, 4  ;;  %v3040_v17 = vrot.slane %v14959_v30, 5 }
 0x111   : > { %v14947_v23 = vsel %vm14429_vm6, %v3028_v10, %v3029_v22  ;;  %v10901_v22 = vcombine.low %v2193_v12, %v2203_v24  ;;  %v2301_v10 = vshrl.u32 %v10868_v32, 16  ;;  %v14979_v12 = vrot.slane %v2286_v56, 5 }
 0x112   : > { %19849 = vst [vmem:[#allocation6_spill] sm:$0xff] %v14947_v23  ;;  %v2292_v24 = vrot.slane %v2290_v36, 4  ;;  %v2274_v23 = vrot.slane %v2272_v40, 5  ;;  %v3042_v11 = vrot.slane %v3040_v17, 4  ;;  %v2283_v14 = vor.u32 %v2282_v16, %v2279_v51 }
 0x113   : > { %v14990_v56 = vsel %vm14429_vm6, %v10966_v5, %v3040_v17  ;;  %v2314_v32 = vshrl.u32 %v14768_v26, 16  ;;  %v2303_v51 = vrot.slane %v2301_v10, 4  ;;  %v2306_v16 = vrot.slane %v2304_v46, 5  ;;  %v10874_v10 = vld [vmem:[%s14085_s12 + $0x60] sm:$0xf] }
 0x114   : > { %19850 = vst [vmem:[#allocation7_spill] sm:$0xff] %v14990_v56  ;;  %v2293_v4 = vor.u32 %v2292_v24, %v14979_v12  ;;  %v2241_v5 = vsel %vm14118_vm2, %v14940_v6, %v14901_v20  ;;  %v2251_v26 = vsel %vm14118_vm2, %v14954_v28, %v14942_v7  ;;  %v2338_v17 = vshrl.u32 %v14986_v61, 16  ;;  %v15022_v56 = vld [vmem:[%s14085_s12 + $0x5c] sm:$0x1] }
 0x115   : > { %v2275_v20 = vsel %vm14118_vm2, %v2270_v55, %v2274_v23  ;;  %v2284_v6 = vrot.slane %v2283_v14, 4  ;;  %v2298_v24 = vrot.slane %v2296_v37, 5  ;;  %v15018_v7 = vrot.slane %v2310_v33, 5 }
 0x116   : > { %12392 = vmatmul.mubr.msk.bf16.gmra.mrb[24].mxu0 %vm783_vm3, %v13198_v60  ;;  %v3043_v60 = vrot.slane %v14962_v62, 5  ;;  %v2316_v28 = vrot.slane %v2314_v32, 4  ;;  %v2294_v25 = vrot.slane %v2293_v4, 4  ;;  %v2340_v55 = vrot.slane %v2338_v17, 4 }
 0x117   : > { %12395 = vmatprep.mubr.msk.bf16.mxu0 %vm783_vm3, %v13199_v8  ;;  %v10871_v8 = vld [vmem:[%s14085_s12 + $0x54] sm:$0xf]  ;;  %v2352_v14 = vshll.u32 %v10874_v10, 16  ;;  %v2358_v37 = vshll.u32 %v14791_v45, 16  ;;  %v2362_v32 = vshrl.u32 %v14791_v45, 16  ;;  %v13202_v45 = vld [vmem:[%s19476_s1 + $0x58] sm:$0xff]  }
 0x118   : > { %v2325_v36 = vshrl.u32 %v10871_v8, 16  ;;  %v2328_v49 = vshll.u32 %v10871_v8, 16  ;;  %v14995_v40 = vsel %vm14429_vm6, %v3042_v11, %v3043_v60  ;;  %v2334_v11 = vshll.u32 %v14986_v61, 16 }
 0x119   : > { %19851 = vst [vmem:[#allocation8_spill] sm:$0xff] %v14995_v40  ;;  %v2265_v60 = vsel %vm14118_vm2, %v2260_v50, %v14921_v1  ;;  %v2307_v40 = vor.u32 %v2306_v16, %v2303_v51  ;;  %v2349_v1 = vshrl.u32 %v10874_v10, 16  ;;  %v10902_v50 = vcombine.low %v2217_v41, %v2227_v57  ;;  %v15035_v57 = vld [vmem:[%s14085_s12 + $0x70] sm:$0xf] }
 0x11a   : > { %v2327_v46 = vrot.slane %v2325_v36, 4  ;;  %v2330_v8 = vrot.slane %v2328_v49, 5  ;;  %v15024_v23 = vrot.slane %v2334_v11, 5  ;;  %v10904_v33 = vcombine.low %v2265_v60, %v2275_v20  ;;  %v10877_v36 = vld [vmem:[%s14085_s12 + $0x6c] sm:$0xf] }
 0x11b   : > { %v2317_v49 = vor.u32 %v2316_v28, %v15018_v7  ;;  %v2344_v41 = vshll.u32 %v15022_v56, 16  ;;  %v2299_v51 = vsel %vm14118_vm2, %v2294_v25, %v2298_v24  ;;  %v2308_v16 = vrot.slane %v2307_v40, 4  ;;  %v10880_v60 = vld [vmem:[%s14085_s12 + $0x78] sm:$0xf] }
 0x11c   : > { %v2331_v4 = vor.u32 %v2330_v8, %v2327_v46  ;;  %v2341_v11 = vor.u32 %v2340_v55, %v15024_v23  ;;  %v2373_v17 = vshrl.u32 %v10877_v36, 16  ;;  %v2376_v10 = vshll.u32 %v10877_v36, 16 }
 0x11d   : > { %v15045_v20 = vrot.slane %v2358_v37, 5  ;;  %v2382_v25 = vshll.u32 %v15035_v57, 16  ;;  %v2386_v40 = vshrl.u32 %v15035_v57, 16  ;;  %v2318_v24 = vrot.slane %v2317_v49, 4  ;;  %v15061_v49 = vld [vmem:[%s14085_s12 + $0x74] sm:$0x1] }
 0x11e   : > { %12396 = vmatmul.mubr.msk.bf16.gmra.mrb[28].mxu0 %vm783_vm3, %v13200_v15  ;;  %v2320_v15 = vshll.u32 %v14771_v42, 16  ;;  %v2289_v42 = vsel %vm14118_vm2, %v2284_v6, %v14979_v12  ;;  %v2354_v12 = vrot.slane %v2352_v14, 5  ;;  %v2364_v6 = vrot.slane %v2362_v32, 4 }
 0x11f   : > { %12403 = vmatprep.mubr.msk.bf16.mxu0 %vm783_vm3, %v10901_v22  ;;  %v10903_v22 = vcombine.low %v2241_v5, %v2251_v26  ;;  %v2351_v26 = vrot.slane %v2349_v1, 4  ;;  %v2332_v28 = vrot.slane %v2331_v4, 4  ;;  %v2346_v46 = vrot.slane %v2344_v41, 5 }
 0x120   : > { %v2322_v5 = vrot.slane %v2320_v15, 5  ;;  %v2368_v8 = vshll.u32 %v14794_v34, 16  ;;  %v2397_v15 = vshrl.u32 %v10880_v60, 16  ;;  %v2400_v1 = vshll.u32 %v10880_v60, 16 }
 0x121   : > { %v2410_v55 = vshrl.u32 %v14821_v39, 16  ;;  %v2342_v14 = vrot.slane %v2341_v11, 4  ;;  %v2375_v37 = vrot.slane %v2373_v17, 4  ;;  %v2378_v32 = vrot.slane %v2376_v10, 5 }
 0x122   : > { %v10905_v36 = vcombine.low %v2289_v42, %v2299_v51  ;;  %v2365_v34 = vor.u32 %v2364_v6, %v15045_v20  ;;  %v15063_v4 = vrot.slane %v2382_v25, 5  ;;  %v2313_v41 = vsel %vm14118_vm2, %v2308_v16, %v15018_v7  ;;  %v10883_v42 = vld [vmem:[%s14085_s12 + $0x84] sm:$0xf]  ;;  %v15079_v6 = vld [vmem:[%s14085_s12 + $0x88] sm:$0xf] }
 0x123   : > { %v2323_v60 = vsel %vm14118_vm2, %v2318_v24, %v2322_v5  ;;  %v15073_v11 = vrot.slane %v2368_v8, 5  ;;  %v2399_v51 = vrot.slane %v2397_v15, 4  ;;  %v2412_v10 = vrot.slane %v2410_v55, 4 }
 0x124   : > { %v2347_v7 = vsel %vm14118_vm2, %v2342_v14, %v2346_v46  ;;  %v2379_v5 = vor.u32 %v2378_v32, %v2375_v37  ;;  %v2424_v24 = vshll.u32 %v10883_v42, 16  ;;  %v2434_v46 = vshrl.u32 %v15079_v6, 16  ;;  %v15097_v32 = vld [vmem:[%s14085_s12 + $0x8c] sm:$0x1] }
 0x125   : > { %v10906_v8 = vcombine.low %v2313_v41, %v2323_v60  ;;  %v10889_v60 = vld [vmem:[%s14085_s12 + $0x9c] sm:$0xf] }
 0x126   : > { %12404 = vmatmul.mubr.msk.bf16.vlgmr.msra.gmra.mrb[0].mxu0 %vm783_vm3, %v10902_v50  ;;  %v2406_v50 = vshll.u32 %v14821_v39, 16  ;;  %v2388_v39 = vrot.slane %v2386_v40, 4  ;;  %v2421_v40 = vshrl.u32 %v10883_v42, 16  ;;  %v2426_v41 = vrot.slane %v2424_v24, 5 }
 0x127   : > { %12436 = vmatpush3.bf16.msra.mxu0 %v14761_v63  ;;  %12407 = vmatprep.mubr.msk.bf16.mxu0 %vm783_vm3, %v10903_v22  ;;  %v15057_v63 = vld [vmem:[%s19476_s1 + $0x60] sm:$0xff]   ;;  %v2355_v22 = vor.u32 %v2354_v12, %v2351_v26  ;;  %v2337_v26 = vsel %vm14118_vm2, %v2332_v28, %v15024_v23  ;;  %v2402_v12 = vrot.slane %v2400_v1, 5  ;;  %v2392_v23 = vshll.u32 %v15061_v49, 16 }
 0x128   : > { %12437 = vmatprep.subr.bf16.mxu0 %v13202_v45  ;;  %v15076_v17 = vrot.slane %v2406_v50, 5  ;;  %v2389_v25 = vor.u32 %v2388_v39, %v15063_v4  ;;  %v2430_v28 = vshll.u32 %v15079_v6, 16  ;;  %v2416_v50 = vshll.u32 %v14824_v58, 16 }
 0x129   : > { %v2356_v16 = vrot.slane %v2355_v22, 4  ;;  %v2403_v15 = vor.u32 %v2402_v12, %v2399_v51  ;;  %v10907_v55 = vcombine.low %v2337_v26, %v2347_v7  ;;  %v2380_v22 = vrot.slane %v2379_v5, 4  ;;  %v15106_v12 = vld [vmem:[%s14085_s12 + $0xa0] sm:$0xf] }
 0x12a   : > { %v2413_v1 = vor.u32 %v2412_v10, %v15076_v17  ;;  %v2394_v37 = vrot.slane %v2392_v23, 5  ;;  %v2423_v39 = vrot.slane %v2421_v40, 4  ;;  %v15103_v58 = vrot.slane %v2430_v28, 5 }
 0x12b   : > { %12438 = vmatpush3.bf16.msra.mxu0 %v13202_v45  ;;  %v2366_v45 = vrot.slane %v2365_v34, 4  ;;  %v2361_v14 = vsel %vm14118_vm2, %v2356_v16, %v15045_v20  ;;  %v2390_v34 = vrot.slane %v2389_v25, 4  ;;  %v2436_v42 = vrot.slane %v2434_v46, 4 }
 0x12c   : > { %12471 = vmatprep.subr.bf16.mxu0 %v15057_v63  ;;  %v2404_v20 = vrot.slane %v2403_v15, 4  ;;  %v2414_v10 = vrot.slane %v2413_v1, 4  ;;  %v2418_v7 = vrot.slane %v2416_v50, 5  ;;  %v2440_v16 = vshll.u32 %v15097_v32, 16 }
 0x12d   : > { %v2454_v5 = vshll.u32 %v14863_v21, 16  ;;  %v2469_v23 = vshrl.u32 %v10889_v60, 16  ;;  %v2385_v25 = vsel %vm14118_vm2, %v2380_v22, %v15063_v4  ;;  %v2395_v40 = vsel %vm14118_vm2, %v2390_v34, %v2394_v37 }
 0x12e   : > { %12408 = vmatmul.mubr.msk.bf16.gmra.mrb[4].mxu0 %vm783_vm3, %v10904_v33  ;;  %v10886_v33 = vld [vmem:[%s14085_s12 + $0x90] sm:$0xf]  ;;  %v2478_v24 = vshll.u32 %v15106_v12, 16  ;;  %v2482_v28 = vshrl.u32 %v15106_v12, 16  ;;  %v2427_v46 = vor.u32 %v2426_v41, %v2423_v39  ;;  %v2409_v4 = vsel %vm14118_vm2, %v2404_v20, %v15076_v17  ;;  %v15129_v41 = vld [vmem:[%s14085_s12 + $0xa4] sm:$0x1] }
 0x12f   : > { %12411 = vmatprep.mubr.msk.bf16.mxu0 %vm783_vm3, %v10905_v36  ;;  %v2371_v36 = vsel %vm14118_vm2, %v2366_v45, %v15073_v11  ;;  %v2445_v26 = vshrl.u32 %v10886_v33, 16  ;;  %v2448_v51 = vshll.u32 %v10886_v33, 16  ;;  %v2458_v11 = vshrl.u32 %v14863_v21, 16 }
 0x130   : > { %v2472_v45 = vshll.u32 %v10889_v60, 16  ;;  %v2437_v21 = vor.u32 %v2436_v42, %v15103_v58  ;;  %v2419_v1 = vsel %vm14118_vm2, %v2414_v10, %v2418_v7  ;;  %v2442_v50 = vrot.slane %v2440_v16, 5 }
 0x131   : > { %v2447_v15 = vrot.slane %v2445_v26, 4  ;;  %v15126_v33 = vrot.slane %v2454_v5, 5  ;;  %v2460_v22 = vrot.slane %v2458_v11, 4  ;;  %v2471_v37 = vrot.slane %v2469_v23, 4  ;;  %v10892_v26 = vld [vmem:[%s14085_s12 + $0xa8] sm:$0xf] }
 0x132   : > { %v2474_v34 = vrot.slane %v2472_v45, 5  ;;  %v10909_v39 = vcombine.low %v2385_v25, %v2395_v40  ;;  %v2480_v60 = vrot.slane %v2478_v24, 5  ;;  %v2484_v42 = vrot.slane %v2482_v28, 4 }
 0x133   : > { %v2438_v17 = vrot.slane %v2437_v21, 4  ;;  %v2464_v10 = vshll.u32 %v14866_v19, 16  ;;  %v10910_v7 = vcombine.low %v2409_v4, %v2419_v1  ;;  %v2461_v16 = vor.u32 %v2460_v22, %v15126_v33 }
 0x134   : > { %v2475_v5 = vor.u32 %v2474_v34, %v2471_v37  ;;  %v2488_v11 = vshll.u32 %v15129_v41, 16  ;;  %v2493_v23 = vshrl.u32 %v10892_v26, 16  ;;  %v2485_v45 = vor.u32 %v2484_v42, %v2480_v60 }
 0x135   : > { %v2496_v25 = vshll.u32 %v10892_v26, 16  ;;  %v2502_v40 = vshll.u32 %v14908_v48, 16  ;;  %v2506_v24 = vshrl.u32 %v14908_v48, 16  ;;  %v2443_v28 = vsel %vm14118_vm2, %v2438_v17, %v2442_v50 }
 0x136   : > { %12412 = vmatmul.mubr.msk.bf16.gmra.mrb[8].mxu0 %vm783_vm3, %v10906_v8  ;;  %v2450_v8 = vrot.slane %v2448_v51, 5  ;;  %v2428_v51 = vrot.slane %v2427_v46, 4  ;;  %v2466_v21 = vrot.slane %v2464_v10, 5  ;;  %v2462_v22 = vrot.slane %v2461_v16, 4  ;;  %v10898_v10 = vld [vmem:[%s14085_s12 + $0xc0] sm:$0xf] }
 0x137   : > { %12415 = vmatprep.mubr.msk.bf16.mxu0 %vm783_vm3, %v10907_v55  ;;  %v10908_v55 = vcombine.low %v2361_v14, %v2371_v36  ;;  %v10895_v14 = vld [vmem:[%s14085_s12 + $0xb4] sm:$0xf]  ;;  %v15137_v36 = vld [vmem:[%s14085_s12 + $0xb8] sm:$0xf]  ;;  %v2476_v48 = vrot.slane %v2475_v5, 4  ;;  %v2490_v37 = vrot.slane %v2488_v11, 5 }
 0x138   : > { %v2451_v20 = vor.u32 %v2450_v8, %v2447_v15  ;;  %v2433_v19 = vsel %vm14118_vm2, %v2428_v51, %v15103_v58  ;;  %v2517_v15 = vshrl.u32 %v10895_v14, 16  ;;  %v2520_v8 = vshll.u32 %v10895_v14, 16  ;;  %v15158_v11 = vld [vmem:[%s14085_s12 + $0xbc] sm:$0x1] }
 0x139   : > { %v2526_v4 = vshll.u32 %v15137_v36, 16  ;;  %v2530_v1 = vshrl.u32 %v15137_v36, 16  ;;  %v2495_v34 = vrot.slane %v2493_v23, 4  ;;  %v2504_v58 = vrot.slane %v2502_v40, 5 }
 0x13a   : > { %v2452_v46 = vrot.slane %v2451_v20, 4  ;;  %v2508_v42 = vrot.slane %v2506_v24, 4  ;;  %v10911_v26 = vcombine.low %v2433_v19, %v2443_v28  ;;  %v2519_v50 = vrot.slane %v2517_v15, 4 }
 0x13b   : > { %v2522_v51 = vrot.slane %v2520_v8, 5  ;;  %v2528_v17 = vrot.slane %v2526_v4, 5  ;;  %v2532_v20 = vrot.slane %v2530_v1, 4  ;;  %v2467_v16 = vsel %vm14118_vm2, %v2462_v22, %v2466_v21 }
 0x13c   : > { %v2457_v14 = vsel %vm14118_vm2, %v2452_v46, %v15126_v33  ;;  %v2512_v5 = vshll.u32 %v14911_v44, 16  ;;  %v2481_v23 = vsel %vm14118_vm2, %v2476_v48, %v2480_v60  ;;  %v2509_v40 = vor.u32 %v2508_v42, %v2504_v58 }
 0x13d   : > { %v2541_v33 = vshrl.u32 %v10898_v10, 16  ;;  %v2544_v24 = vshll.u32 %v10898_v10, 16  ;;  %v2550_v19 = vshll.u32 %v14959_v30, 16  ;;  %v2554_v44 = vshrl.u32 %v14959_v30, 16 }
 0x13e   : > { %12416 = vmatmul.mubr.msk.bf16.gmra.mrb[12].mxu0 %vm783_vm3, %v10908_v55  ;;  %v2486_v55 = vrot.slane %v2485_v45, 4  ;;  %v2523_v28 = vor.u32 %v2522_v51, %v2519_v50  ;;  %v2533_v46 = vor.u32 %v2532_v20, %v2528_v17  ;;  %v10912_v21 = vcombine.low %v2457_v14, %v2467_v16  ;;  %v10935_v16 = vld [vmem:[%s14085_s12 + $0xc] sm:$0xe] }
 0x13f   : > { %12419 = vmatprep.mubr.msk.bf16.mxu0 %vm783_vm3, %v10909_v39  ;;  %v2498_v39 = vrot.slane %v2496_v25, 5  ;;  %v2510_v8 = vrot.slane %v2509_v40, 4  ;;  %v2514_v4 = vrot.slane %v2512_v5, 5  ;;  %v2543_v1 = vrot.slane %v2541_v33, 4 }
 0x140   : > { %v2491_v45 = vsel %vm14118_vm2, %v2486_v55, %v2490_v37  ;;  %v2546_v22 = vrot.slane %v2544_v24, 5  ;;  %v2552_v48 = vrot.slane %v2550_v19, 5  ;;  %v2556_v37 = vrot.slane %v2554_v44, 4 }
 0x141   : > { %v2499_v25 = vor.u32 %v2498_v39, %v2495_v34  ;;  %v10913_v15 = vcombine.low %v2481_v23, %v2491_v45  ;;  %v2524_v34 = vrot.slane %v2523_v28, 4  ;;  %v2534_v55 = vrot.slane %v2533_v46, 4  ;;  %v10936_v28 = vld [vmem:[%s14085_s12 + $0x18] sm:$0xe]  ;;  %v10937_v46 = vld [vmem:[%s14085_s12 + $0x24] sm:$0xe] }
 0x142   : > { %v2515_v42 = vsel %vm14118_vm2, %v2510_v8, %v2514_v4  ;;  %v2557_v50 = vor.u32 %v2556_v37, %v2552_v48  ;;  %v2560_v51 = vshll.u32 %v14962_v62, 16  ;;  %v2935_v14 = vrot.slane %v14803_v53, 5 }
 0x143   : > { %v2500_v60 = vrot.slane %v2499_v25, 4  ;;  %v2529_v20 = vsel %vm14118_vm2, %v2524_v34, %v2528_v17  ;;  %v10951_v40 = vrot.slane %v10935_v16, 9  ;;  %v2938_v62 = vrot.slane %v14837_v52, 5  ;;  %v10938_v34 = vld [vmem:[%s14085_s12 + $0x30] sm:$0xe] }
 0x144   : > { %v2558_v45 = vrot.slane %v2557_v50, 4  ;;  %v2562_v25 = vrot.slane %v2560_v51, 5  ;;  %v2937_v33 = vrot.slane %v2935_v14, 4  ;;  %v2942_v24 = vrot.slane %v14833_v54, 5 }
 0x145   : > { %v2505_v30 = vsel %vm14118_vm2, %v2500_v60, %v2504_v58  ;;  %v2936_v19 = vsel %vm14429_vm6, %v10951_v40, %v2935_v14  ;;  %v2949_v52 = vrot.slane %v14860_v35, 5  ;;  %v2945_v8 = vrot.slane %v14855_v3, 5 }
 0x146   : > { %12420 = vmatmul.mubr.msk.bf16.gmra.mrb[16].mxu0 %vm783_vm3, %v10910_v7  ;;  %v2536_v7 = vshll.u32 %v15158_v11, 16  ;;  %v10914_v58 = vcombine.low %v2505_v30, %v2515_v42  ;;  %v2563_v53 = vsel %vm14118_vm2, %v2558_v45, %v2562_v25  ;;  %v2939_v44 = vsel %vm14429_vm6, %v2937_v33, %v2938_v62 }
 0x147   : > { %12423 = vmatprep.mubr.msk.bf16.mxu0 %vm783_vm3, %v10911_v26  ;;  %v2547_v26 = vor.u32 %v2546_v22, %v2543_v1  ;;  %v2944_v60 = vrot.slane %v2942_v24, 4  ;;  %v10953_v4 = vrot.slane %v10937_v46, 9  ;;  %v2951_v54 = vrot.slane %v2949_v52, 4  ;;  %v10945_v46 = vld [vmem:[%s14085_s12 + $0x84] sm:$0xe] }
 0x148   : > { %v2538_v39 = vrot.slane %v2536_v7, 5  ;;  %v2952_v1 = vrot.slane %v14894_v18, 5  ;;  %v2963_v18 = vrot.slane %v14925_v38, 5  ;;  %v10954_v42 = vrot.slane %v10938_v34, 9  ;;  %v19856_v34 = vld [vmem:[#allocation3_spill] sm:$0xff] }
 0x149   : > { %v2548_v23 = vrot.slane %v2547_v26, 4  ;;  %v2946_v22 = vsel %vm14429_vm6, %v2944_v60, %v2945_v8  ;;  %v2950_v37 = vsel %vm14429_vm6, %v10953_v4, %v2949_v52  ;;  %v2959_v50 = vrot.slane %v14919_v13, 5  ;;  %v10947_v8 = vld [vmem:[%s14085_s12 + $0x9c] sm:$0xe] }
 0x14a   : > { %v2539_v10 = vsel %vm14118_vm2, %v2534_v55, %v2538_v39  ;;  %v2953_v3 = vsel %vm14429_vm6, %v2951_v54, %v2952_v1  ;;  %v10939_v55 = vld [vmem:[%s14085_s12 + $0x3c] sm:$0xe]  ;;  %v2977_v16 = vrot.slane %v14986_v61, 5  ;;  %v2980_v40 = vrot.slane %v15022_v56, 5 }
 0x14b   : > { %v10915_v5 = vcombine.low %v2529_v20, %v2539_v10  ;;  %v2553_v17 = vsel %vm14118_vm2, %v2548_v23, %v2552_v48  ;;  %v2956_v48 = vrot.slane %v14879_v31, 5  ;;  %v10969_v30 = vcombine.low %v2950_v37, %v2953_v3  ;;  %v13204_v10 = vld [vmem:[%s19476_s1 + $0x68] sm:$0xff]  }
 0x14c   : > { %v10916_v7 = vcombine.low %v2553_v17, %v2563_v53  ;;  %v10955_v51 = vrot.slane %v10939_v55, 9  ;;  %v2965_v20 = vrot.slane %v2963_v18, 4  ;;  %v2966_v31 = vrot.slane %v14974_v43, 5  ;;  %v10943_v17 = vld [vmem:[%s14085_s12 + $0x6c] sm:$0xe] }
 0x14d   : > { %v2958_v26 = vrot.slane %v2956_v48, 4  ;;  %v2957_v38 = vsel %vm14429_vm6, %v10954_v42, %v2956_v48  ;;  %v2979_v25 = vrot.slane %v2977_v16, 4  ;;  %v2991_v62 = vrot.slane %v15035_v57, 5  ;;  %v10949_v48 = vld [vmem:[%s14085_s12 + $0xb4] sm:$0xe]  ;;  %v19859_v42 = vld [vmem:[#allocation5_spill] sm:$0xff] }
 0x14e   : > { %12424 = vmatmul.mubr.msk.bf16.gmra.mrb[20].mxu0 %vm783_vm3, %v10912_v21  ;;  %v10967_v21 = vcombine.low %v2936_v19, %v2939_v44  ;;  %v2964_v14 = vsel %vm14429_vm6, %v10955_v51, %v2963_v18  ;;  %v2967_v43 = vsel %vm14429_vm6, %v2965_v20, %v2966_v31  ;;  %v2994_v56 = vrot.slane %v15061_v49, 5  ;;  %v19857_v18 = vld [vmem:[#allocation4_spill] sm:$0xff]  ;;  %v19862_v51 = vld [vmem:[#allocation7_spill] sm:$0xff] }
 0x14f   : > { %12427 = vmatprep.mubr.msk.bf16.mxu0 %vm783_vm3, %v10913_v15  ;;  %v10952_v15 = vrot.slane %v10936_v28, 9  ;;  %v2960_v13 = vsel %vm14429_vm6, %v2958_v26, %v2959_v50  ;;  %v10971_v23 = vcombine.low %v2964_v14, %v2967_v43  ;;  %v2981_v33 = vsel %vm14429_vm6, %v2979_v25, %v2980_v40  ;;  %v19860_v26 = vld [vmem:[#allocation6_spill] sm:$0xff]  ;;  %v19863_v20 = vld [vmem:[#allocation8_spill] sm:$0xff] }
 0x150   : > { %v2993_v19 = vrot.slane %v2991_v62, 4  ;;  %v19852_v44 = vcombine.low %v14780_v9, %v14785_v59  ;;  %v3005_v52 = vrot.slane %v15079_v6, 5  ;;  %v19853_v9 = vcombine.low %v14807_v29, %v14813_v0  ;;  %v19854_v29 = vld [vmem:[#allocation2_spill] sm:$0xff] }
 0x151   : > { %v2943_v35 = vsel %vm14429_vm6, %v10952_v15, %v2942_v24  ;;  %v10959_v24 = vrot.slane %v10943_v17, 9  ;;  %v3008_v15 = vrot.slane %v15097_v32, 5  ;;  %v3019_v60 = vrot.slane %v15106_v12, 5  ;;  %v15314_v14 = vld [vmem:[%s19476_s1 + $0x80] sm:$0xff]  }
 0x152   : > { %v10968_v39 = vcombine.low %v2943_v35, %v2946_v22  ;;  %v2995_v57 = vsel %vm14429_vm6, %v2993_v19, %v2994_v56  ;;  %v3007_v49 = vrot.slane %v3005_v52, 4  ;;  %v10963_v54 = vrot.slane %v10947_v8, 9  ;;  %v13209_v43 = vld [vmem:[%s14085_s12 + $0x3c] sm:$0xff]   ;;  %v15347_v19 = vld [vmem:[%s14085_s12 + $0x74] sm:$0x1] }
 0x153   : > { %v2992_v28 = vsel %vm14429_vm6, %v10959_v24, %v2991_v62  ;;  %v3021_v32 = vrot.slane %v3019_v60, 4  ;;  %v3022_v1 = vrot.slane %v15129_v41, 5  ;;  %v19855_v0 = vcombine.low %v14841_v2, %v19854_v29  ;;  %v13212_v62 = vld [vmem:[%s14085_s12 + $0x60] sm:$0xff]   ;;  %v15344_v24 = vld [vmem:[%s14085_s12 + $0x70] sm:$0xf] }
 0x154   : > { %v3009_v6 = vsel %vm14429_vm6, %v3007_v49, %v3008_v15  ;;  %v3020_v35 = vsel %vm14429_vm6, %v10963_v54, %v3019_v60  ;;  %v3033_v22 = vrot.slane %v15137_v36, 5  ;;  %v10965_v37 = vrot.slane %v10949_v48, 9  ;;  %v11156_v56 = vld [vmem:[%s14085_s12 + $0x6c] sm:$0xe]  ;;  %v13214_v15 = vld [vmem:[%s14085_s12 + $0x78] sm:$0xff]  }
 0x155   : > { %v3023_v12 = vsel %vm14429_vm6, %v3021_v32, %v3022_v1  ;;  %v3036_v2 = vrot.slane %v15158_v11, 5  ;;  %v19858_v55 = vcombine.low %v19856_v34, %v19857_v18  ;;  %v19861_v50 = vcombine.low %v19859_v42, %v19860_v26  ;;  %v13205_v11 = vld [vmem:[%s14085_s12 + $0x18] sm:$0xff]   ;;  %v15374_v29 = vld [vmem:[%s14085_s12 + $0x88] sm:$0xf]  ;;  %v13217_v26 = vld [vmem:[%s14085_s12 + $0x90] sm:$0xff]  }
 0x156   : > { %12428 = vmatmul.mubr.msk.bf16.gmra.mrb[24].mxu0 %vm783_vm3, %v10914_v58  ;;  %v10941_v58 = vld [vmem:[%s14085_s12 + $0x54] sm:$0xe]  ;;  %v10979_v41 = vcombine.low %v3020_v35, %v3023_v12  ;;  %v3035_v3 = vrot.slane %v3033_v22, 4  ;;  %v19864_v31 = vcombine.low %v19862_v51, %v19863_v20  ;;  %v11158_v35 = vld [vmem:[%s14085_s12 + $0x84] sm:$0xe]  ;;  %v4586_v12 = vrot.slane %v15374_v29, 5 }
 0x157   : > { %12431 = vmatprep.mubr.msk.bf16.mxu0 %vm783_vm3, %v10915_v5  ;;  %v10970_v5 = vcombine.low %v2957_v38, %v2960_v13  ;;  %v10957_v45 = vrot.slane %v10941_v58, 9  ;;  %v13208_v38 = vld [vmem:[%s14085_s12 + $0x30] sm:$0xff]   ;;  %v13216_v13 = vld [vmem:[%s19476_s1 + $0x78] sm:$0xff]   ;;  %v11174_v48 = vrot.slane %v11158_v35, 9  ;;  %v13215_v18 = vld [vmem:[%s14085_s12 + $0x84] sm:$0xff]  }
 0x158   : > { %v3037_v36 = vsel %vm14429_vm6, %v3035_v3, %v3036_v2  ;;  %v15324_v58 = vld [vmem:[%s14085_s12 + $0x5c] sm:$0x1]  ;;  %v15386_v2 = vld [vmem:[%s14085_s12 + $0x28] sm:$0xf]  ;;  %v4588_v34 = vrot.slane %v4586_v12, 4 }
 0x159   : > { %v2978_v61 = vsel %vm14429_vm6, %v10957_v45, %v2977_v16  ;;  %v13210_v16 = vld [vmem:[%s14085_s12 + $0x48] sm:$0xff]   ;;  %v4561_v45 = vrot.slane %v15324_v58, 5  ;;  %v15394_v42 = vsel %vm14429_vm6, %v11174_v48, %v4586_v12  ;;  %v3806_v51 = vshrl.u32 %v15386_v2, 16  ;;  %v11073_v20 = vld [vmem:[%s14085_s12 + $0x30] sm:$0xf] }
 0x15a   : > { %v10973_v53 = vcombine.low %v2978_v61, %v2981_v33  ;;  %v13211_v61 = vld [vmem:[%s14085_s12 + $0x54] sm:$0xff]   ;;  %v13219_v35 = vld [vmem:[%s14085_s12 + $0xa8] sm:$0xff]  }
 0x15e   : > { %12432 = vmatmul.mubr.msk.bf16.gmra.mrb[28].mxu0 %vm783_vm3, %v10916_v7  ;;  %v10975_v7 = vcombine.low %v2992_v28, %v2995_v57  ;;  %v4575_v28 = vrot.slane %v15347_v19, 5  ;;  %v11172_v57 = vrot.slane %v11156_v56, 9 }
 0x15f   : > { %12439 = vmatprep.mubr.msk.bf16.mxu0 %vm783_vm3, %v10967_v21  ;;  %v10961_v21 = vrot.slane %v10945_v46, 9  ;;  %v13213_v46 = vld [vmem:[%s14085_s12 + $0x6c] sm:$0xff]  }
 0x161   : > { %v3006_v59 = vsel %vm14429_vm6, %v10961_v21, %v3005_v52  ;;  %v15356_v21 = vld [vmem:[%s14085_s12 + $0x1c] sm:$0xf] }
 0x162   : > { %v10977_v4 = vcombine.low %v3006_v59, %v3009_v6  ;;  %v3782_v54 = vshrl.u32 %v15356_v21, 16  ;;  %v15512_v6 = vld [vmem:[%s14085_s12 + $0xd0] sm:$0xf] }
 0x166   : > { %12440 = vmatmul.mubr.msk.bf16.vlgmr.msra.gmra.mrb[0].mxu0 %vm783_vm3, %v10968_v39  ;;  %v3034_v39 = vsel %vm14429_vm6, %v10965_v37, %v3033_v22 }
 0x167   : > { %12472 = vmatpush3.bf16.msra.mxu0 %v15057_v63  ;;  %12443 = vmatprep.mubr.msk.bf16.mxu0 %vm783_vm3, %v10969_v30  ;;  %v15233_v63 = vld [vmem:[%s19476_s1 + $0x70] sm:$0xff]   ;;  %v10981_v30 = vcombine.low %v3034_v39, %v3037_v36  ;;  %v3784_v39 = vrot.slane %v3782_v54, 4 }
 0x168   : > { %12473 = vmatprep.subr.bf16.mxu0 %v13204_v10 }
 0x16b   : > { %12474 = vmatpush3.bf16.msra.mxu0 %v13204_v10  ;;  %v13206_v10 = vld [vmem:[%s14085_s12 + $0x24] sm:$0xff]  }
 0x16c   : > { %12507 = vmatprep.subr.bf16.mxu0 %v15233_v63 }
 0x16e   : > { %12444 = vmatmul.mubr.msk.bf16.gmra.mrb[4].mxu0 %vm783_vm3, %v10970_v5  ;;  %v11154_v5 = vld [vmem:[%s14085_s12 + $0x54] sm:$0xe] }
 0x16f   : > { %12447 = vmatprep.mubr.msk.bf16.mxu0 %vm783_vm3, %v10971_v23  ;;  %v11170_v25 = vrot.slane %v11154_v5, 9  ;;  %v15413_v5 = vld [vmem:[%s14085_s12 + $0x34] sm:$0xf] }
 0x176   : > { %12448 = vmatmul.mubr.msk.bf16.gmra.mrb[8].mxu0 %vm783_vm3, %v19852_v44  ;;  %v4572_v44 = vrot.slane %v15344_v24, 5 }
 0x177   : > { %12451 = vmatprep.mubr.msk.bf16.mxu0 %vm783_vm3, %v10973_v53  ;;  %v15515_v53 = vld [vmem:[%s14085_s12 + $0xd4] sm:$0x1] }
 0x178   : > { %v4574_v52 = vrot.slane %v4572_v44, 4  ;;  %v15360_v49 = vsel %vm14429_vm6, %v11172_v57, %v4572_v44  ;;  %v11076_v57 = vld [vmem:[%s14085_s12 + $0x3c] sm:$0xf] }
 0x17a   : > { %v15366_v59 = vsel %vm14429_vm6, %v4574_v52, %v4575_v28  ;;  %v3808_v28 = vrot.slane %v3806_v51, 4 }
 0x17e   : > { %12452 = vmatmul.mubr.msk.bf16.gmra.mrb[12].mxu0 %vm783_vm3, %v19853_v9  ;;  %v11070_v9 = vld [vmem:[%s14085_s12 + $0x24] sm:$0xf] }
 0x17f   : > { %12455 = vmatprep.mubr.msk.bf16.mxu0 %vm783_vm3, %v10975_v7  ;;  %v11067_v7 = vld [vmem:[%s14085_s12 + $0x18] sm:$0xf]  ;;  %v3793_v32 = vshrl.u32 %v11070_v9, 16  ;;  %v3796_v1 = vshll.u32 %v11070_v9, 16  ;;  %v15432_v9 = vld [vmem:[%s14085_s12 + $0x40] sm:$0xf] }
 0x180   : > { %v3769_v60 = vshrl.u32 %v11067_v7, 16  ;;  %v3772_v8 = vshll.u32 %v11067_v7, 16  ;;  %v3826_v7 = vshll.u32 %v15413_v5, 16  ;;  %v3854_v51 = vshrl.u32 %v15432_v9, 16 }
 0x181   : > { %v3795_v36 = vrot.slane %v3793_v32, 4 }
 0x182   : > { %v3774_v37 = vrot.slane %v3772_v8, 5  ;;  %v13218_v8 = vld [vmem:[%s14085_s12 + $0x9c] sm:$0xff]  }
 0x186   : > { %12456 = vmatmul.mubr.msk.bf16.gmra.mrb[16].mxu0 %vm783_vm3, %v19855_v0  ;;  %v15377_v0 = vld [vmem:[%s14085_s12 + $0x8c] sm:$0x1] }
 0x187   : > { %12459 = vmatprep.mubr.msk.bf16.mxu0 %vm783_vm3, %v10977_v4  ;;  %v3778_v4 = vshll.u32 %v15356_v21, 16  ;;  %v4589_v22 = vrot.slane %v15377_v0, 5 }
 0x189   : > { %v15383_v3 = vrot.slane %v3778_v4, 5 }
 0x18e   : > { %12460 = vmatmul.mubr.msk.bf16.gmra.mrb[20].mxu0 %vm783_vm3, %v19858_v55  ;;  %v15390_v55 = vld [vmem:[%s14085_s12 + $0x20] sm:$0x1] }
 0x18f   : > { %12463 = vmatprep.mubr.msk.bf16.mxu0 %vm783_vm3, %v10979_v41  ;;  %v3771_v41 = vrot.slane %v3769_v60, 4 }
 0x196   : > { %12464 = vmatmul.mubr.msk.bf16.gmra.mrb[24].mxu0 %vm783_vm3, %v19861_v50  ;;  %v15399_v50 = vsel %vm14429_vm6, %v4588_v34, %v4589_v22  ;;  %v3841_v34 = vshrl.u32 %v11076_v57, 16 }
 0x197   : > { %12467 = vmatprep.mubr.msk.bf16.mxu0 %vm783_vm3, %v10981_v30  ;;  %v3798_v30 = vrot.slane %v3796_v1, 5  ;;  %19865 = vst [vmem:[#allocation2_spill] sm:$0xff] %v15399_v50  ;;  %v15539_v50 = vld [vmem:[%s14085_s12 + $0x64] sm:$0xf] }
 0x19e   : > { %12468 = vmatmul.mubr.msk.bf16.gmra.mrb[28].mxu0 %vm783_vm3, %v19864_v31  ;;  %v11082_v31 = vld [vmem:[%s14085_s12 + $0x54] sm:$0xf] }
 0x19f   : > { %12475 = vmatprep.mubr.msk.bf16.mxu0 %vm783_vm3, %v13205_v11  ;;  %v3802_v11 = vshll.u32 %v15386_v2, 16 }
 0x1a1   : > { %v15425_v44 = vrot.slane %v3802_v11, 5 }
 0x1a6   : > { %12476 = vmatmul.mubr.msk.bf16.vlgmr.msra.gmra.mrb[0].mxu0 %vm783_vm3, %v13206_v10  ;;  %v3788_v10 = vshll.u32 %v15390_v55, 16 }
 0x1a7   : > { %12508 = vmatpush3.bf16.msra.mxu0 %v15233_v63  ;;  %12479 = vmatprep.mubr.msk.bf16.mxu0 %vm783_vm3, %v13208_v38  ;;  %v15321_v63 = vld [vmem:[%s14085_s12 + $0x58] sm:$0xf]  ;;  %v15408_v38 = vld [vmem:[%s14085_s12 + $0x2c] sm:$0x1] }
 0x1a8   : > { %12509 = vmatprep.subr.bf16.mxu0 %v13216_v13  ;;  %v4558_v23 = vrot.slane %v15321_v63, 5  ;;  %v3790_v32 = vrot.slane %v3788_v10, 5  ;;  %v11079_v10 = vld [vmem:[%s14085_s12 + $0x48] sm:$0xf]  ;;  %v4533_v27 = vrot.slane %v15408_v38, 5 }
 0x1aa   : > { %v4560_v40 = vrot.slane %v4558_v23, 4  ;;  %v15333_v33 = vsel %vm14429_vm6, %v11170_v25, %v4558_v23  ;;  %v15416_v23 = vld [vmem:[%s14085_s12 + $0xa0] sm:$0xf]  ;;  %v3817_v25 = vshrl.u32 %v11073_v20, 16 }
 0x1ab   : > { %12510 = vmatpush3.bf16.msra.mxu0 %v13216_v13  ;;  %v3775_v13 = vor.u32 %v3774_v37, %v3771_v41  ;;  %v15447_v37 = vld [vmem:[%s14085_s12 + $0x38] sm:$0x1] }
 0x1ac   : > { %12543 = vmatprep.subr.bf16.mxu0 %v15314_v14  ;;  %v15338_v17 = vsel %vm14429_vm6, %v4560_v40, %v4561_v45  ;;  %v15419_v45 = vld [vmem:[%s14085_s12 + $0xa4] sm:$0x1]  ;;  %v3820_v40 = vshll.u32 %v11073_v20, 16  ;;  %v3819_v22 = vrot.slane %v3817_v25, 4  ;;  %v3809_v20 = vor.u32 %v3808_v28, %v15425_v44 }
 0x1ad   : > { %v4603_v56 = vrot.slane %v15419_v45, 5  ;;  %v3776_v4 = vrot.slane %v3775_v13, 4  ;;  %v15461_v13 = vld [vmem:[%s14085_s12 + $0xb8] sm:$0xf]  ;;  %v3836_v25 = vshll.u32 %v15447_v37, 16  ;;  %v3843_v28 = vrot.slane %v3841_v34, 4 }
 0x1ae   : > { %12480 = vmatmul.mubr.msk.bf16.gmra.mrb[4].mxu0 %vm783_vm3, %v13209_v43  ;;  %v3785_v43 = vor.u32 %v3784_v39, %v15383_v3  ;;  %v3822_v48 = vrot.slane %v3820_v40, 5  ;;  %v3850_v39 = vshll.u32 %v15432_v9, 16  ;;  %v11162_v40 = vld [vmem:[%s14085_s12 + $0xb4] sm:$0xe] }
 0x1af   : > { %12483 = vmatprep.mubr.msk.bf16.mxu0 %vm783_vm3, %v13210_v16  ;;  %v3799_v16 = vor.u32 %v3798_v30, %v3795_v36  ;;  %v15495_v36 = vrot.slane %v3836_v25, 5 }
 0x1b0   : > { %v3786_v54 = vrot.slane %v3785_v43, 4  ;;  %v15464_v43 = vld [vmem:[%s14085_s12 + $0xbc] sm:$0x1] }
 0x1b1   : > { %v15440_v12 = vrot.slane %v3799_v16, 4  ;;  %v3823_v16 = vor.u32 %v3822_v48, %v3819_v22  ;;  %v13220_v22 = vld [vmem:[%s14085_s12 + $0xb4] sm:$0xff]   ;;  %v3781_v48 = vsel %vm14118_vm2, %v3776_v4, %v15383_v3 }
 0x1b2   : > { %v3791_v34 = vsel %vm14118_vm2, %v3786_v54, %v3790_v32 }
 0x1b6   : > { %12484 = vmatmul.mubr.msk.bf16.gmra.mrb[8].mxu0 %vm783_vm3, %v13211_v61  ;;  %v11160_v61 = vld [vmem:[%s14085_s12 + $0x9c] sm:$0xe] }
 0x1b7   : > { %12487 = vmatprep.mubr.msk.bf16.mxu0 %vm783_vm3, %v13212_v62  ;;  %v4600_v62 = vrot.slane %v15416_v23, 5  ;;  %v11176_v52 = vrot.slane %v11160_v61, 9  ;;  %v4614_v61 = vrot.slane %v15461_v13, 5 }
 0x1b9   : > { %v4602_v60 = vrot.slane %v4600_v62, 4  ;;  %v15437_v1 = vsel %vm14429_vm6, %v11176_v52, %v4600_v62  ;;  %v4617_v62 = vrot.slane %v15464_v43, 5  ;;  %v15474_v52 = vrot.slane %v3850_v39, 5 }
 0x1ba   : > { %19866 = vst [vmem:[#allocation3_spill] sm:$0xff] %v15437_v1  ;;  %v3898_v1 = vshll.u32 %v15321_v63, 16 }
 0x1bb   : > { %v15444_v41 = vsel %vm14429_vm6, %v4602_v60, %v4603_v56  ;;  %v15472_v56 = vld [vmem:[%s14085_s12 + $0x44] sm:$0x1]  ;;  %v15478_v60 = vld [vmem:[%s14085_s12 + $0x4c] sm:$0xf] }
 0x1bc   : > { %19867 = vst [vmem:[#allocation4_spill] sm:$0xff] %v15444_v41  ;;  %v3860_v4 = vshll.u32 %v15472_v56, 16  ;;  %v3874_v54 = vshll.u32 %v15478_v60, 16  ;;  %v3878_v32 = vshrl.u32 %v15478_v60, 16  ;;  %v13222_v41 = vld [vmem:[%s14085_s12 + $0xcc] sm:$0xff]  }
 0x1be   : > { %12488 = vmatmul.mubr.msk.bf16.gmra.mrb[12].mxu0 %vm783_vm3, %v13213_v46  ;;  %v3812_v46 = vshll.u32 %v15408_v38, 16 }
 0x1bf   : > { %12491 = vmatprep.mubr.msk.bf16.mxu0 %vm783_vm3, %v13214_v15  ;;  %v3830_v15 = vshrl.u32 %v15413_v5, 16 }
 0x1c0   : > { %v15452_v30 = vrot.slane %v3812_v46, 5  ;;  %v11178_v46 = vrot.slane %v11162_v40, 9  ;;  %v13221_v40 = vld [vmem:[%s14085_s12 + $0xc0] sm:$0xff]  }
 0x1c1   : > { %v3832_v11 = vrot.slane %v3830_v15, 4  ;;  %v3856_v15 = vrot.slane %v3854_v51, 4  ;;  %v15493_v51 = vrot.slane %v3823_v16, 4 }
 0x1c2   : > { %v15488_v39 = vsel %vm14429_vm6, %v11178_v46, %v4614_v61 }
 0x1c3   : > { %19868 = vst [vmem:[#allocation5_spill] sm:$0xff] %v15488_v39  ;;  %v3857_v25 = vor.u32 %v3856_v15, %v15474_v52  ;;  %v11164_v15 = vld [vmem:[%s14085_s12 + $0xcc] sm:$0xe] }
 0x1c6   : > { %12492 = vmatmul.mubr.msk.bf16.gmra.mrb[16].mxu0 %vm783_vm3, %v13215_v18  ;;  %v3844_v18 = vshll.u32 %v11076_v57, 16 }
 0x1c7   : > { %12495 = vmatprep.mubr.msk.bf16.mxu0 %vm783_vm3, %v13217_v26  ;;  %v15454_v26 = vrot.slane %v3826_v7, 5 }
 0x1c8   : > { %v3846_v57 = vrot.slane %v3844_v18, 5  ;;  %v3868_v18 = vshll.u32 %v11079_v10, 16 }
 0x1c9   : > { %v3833_v7 = vor.u32 %v3832_v11, %v15454_v26  ;;  %v15491_v11 = vrot.slane %v3809_v20, 4  ;;  %v11180_v20 = vrot.slane %v11164_v15, 9 }
 0x1ca   : > { %v3847_v16 = vor.u32 %v3846_v57, %v3843_v28  ;;  %v3870_v46 = vrot.slane %v3868_v18, 5  ;;  %v3805_v28 = vsel %vm14118_vm2, %v15440_v12, %v15425_v44  ;;  %v3892_v18 = vshll.u32 %v11082_v31, 16 }
 0x1cb   : > { %v3815_v57 = vsel %vm14118_vm2, %v15491_v11, %v15452_v30  ;;  %v3858_v12 = vrot.slane %v3857_v25, 4 }
 0x1cc   : > { %v3848_v44 = vrot.slane %v3847_v16, 4 }
 0x1ce   : > { %12496 = vmatmul.mubr.msk.bf16.gmra.mrb[20].mxu0 %vm783_vm3, %v13218_v8  ;;  %v3865_v8 = vshrl.u32 %v11079_v10, 16  ;;  %v15507_v10 = vrot.slane %v3833_v7, 4  ;;  %v15527_v7 = vld [vmem:[%s14085_s12 + $0x50] sm:$0x1] }
 0x1cf   : > { %12499 = vmatprep.mubr.msk.bf16.mxu0 %vm783_vm3, %v13219_v35  ;;  %v4616_v35 = vrot.slane %v4614_v61, 4  ;;  %v3884_v11 = vshll.u32 %v15527_v7, 16 }
 0x1d0   : > { %v3867_v61 = vrot.slane %v3865_v8, 4  ;;  %v4628_v8 = vrot.slane %v15512_v6, 5 }
 0x1d1   : > { %v15500_v3 = vsel %vm14429_vm6, %v4616_v35, %v4617_v62  ;;  %v11115_v62 = vcombine.low %v3781_v48, %v3791_v34  ;;  %v3889_v35 = vshrl.u32 %v11082_v31, 16  ;;  %v15532_v48 = vrot.slane %v3874_v54, 5 }
 0x1d2   : > { %19869 = vst [vmem:[#allocation6_spill] sm:$0xff] %v15500_v3  ;;  %v3880_v34 = vrot.slane %v3878_v32, 4  ;;  %v3862_v3 = vrot.slane %v3860_v4, 5  ;;  %v4630_v39 = vrot.slane %v4628_v8, 4  ;;  %v3871_v30 = vor.u32 %v3870_v46, %v3867_v61 }
 0x1d3   : > { %v15543_v54 = vsel %vm14429_vm6, %v11180_v20, %v4628_v8  ;;  %v3902_v31 = vshrl.u32 %v15321_v63, 16  ;;  %v3891_v61 = vrot.slane %v3889_v35, 4  ;;  %v3894_v46 = vrot.slane %v3892_v18, 5  ;;  %v11088_v35 = vld [vmem:[%s14085_s12 + $0x6c] sm:$0xf] }
 0x1d4   : > { %19870 = vst [vmem:[#allocation7_spill] sm:$0xff] %v15543_v54  ;;  %v3881_v25 = vor.u32 %v3880_v34, %v15532_v48  ;;  %v3829_v20 = vsel %vm14118_vm2, %v15493_v51, %v15454_v26  ;;  %v3839_v63 = vsel %vm14118_vm2, %v15507_v10, %v15495_v36  ;;  %v3926_v8 = vshrl.u32 %v15539_v50, 16  ;;  %v15575_v54 = vld [vmem:[%s14085_s12 + $0x68] sm:$0x1] }
 0x1d5   : > { %v3863_v26 = vsel %vm14118_vm2, %v3858_v12, %v3862_v3  ;;  %v3872_v51 = vrot.slane %v3871_v30, 4  ;;  %v3886_v34 = vrot.slane %v3884_v11, 5  ;;  %v15571_v36 = vrot.slane %v3898_v1, 5 }
 0x1d6   : > { %12500 = vmatmul.mubr.msk.bf16.gmra.mrb[24].mxu0 %vm783_vm3, %v13220_v22  ;;  %v4631_v22 = vrot.slane %v15515_v53, 5  ;;  %v3904_v10 = vrot.slane %v3902_v31, 4  ;;  %v3882_v15 = vrot.slane %v3881_v25, 4  ;;  %v3928_v12 = vrot.slane %v3926_v8, 4 }
 0x1d7   : > { %12503 = vmatprep.mubr.msk.bf16.mxu0 %vm783_vm3, %v13221_v40  ;;  %v11085_v40 = vld [vmem:[%s14085_s12 + $0x60] sm:$0xf]  ;;  %v3940_v30 = vshll.u32 %v11088_v35, 16  ;;  %v3946_v11 = vshll.u32 %v15344_v24, 16  ;;  %v3950_v31 = vshrl.u32 %v15344_v24, 16  ;;  %v13224_v24 = vld [vmem:[%s19476_s1 + $0x88] sm:$0xff]  }
 0x1d8   : > { %v3913_v32 = vshrl.u32 %v11085_v40, 16  ;;  %v3916_v16 = vshll.u32 %v11085_v40, 16  ;;  %v15548_v4 = vsel %vm14429_vm6, %v4630_v39, %v4631_v22  ;;  %v3922_v39 = vshll.u32 %v15539_v50, 16 }
 0x1d9   : > { %19871 = vst [vmem:[#allocation8_spill] sm:$0xff] %v15548_v4  ;;  %v3853_v22 = vsel %vm14118_vm2, %v3848_v44, %v15474_v52  ;;  %v3895_v4 = vor.u32 %v3894_v46, %v3891_v61  ;;  %v3937_v52 = vshrl.u32 %v11088_v35, 16  ;;  %v11116_v44 = vcombine.low %v3805_v28, %v3815_v57  ;;  %v15588_v57 = vld [vmem:[%s14085_s12 + $0x7c] sm:$0xf] }
 0x1da   : > { %v3915_v18 = vrot.slane %v3913_v32, 4  ;;  %v3918_v40 = vrot.slane %v3916_v16, 5  ;;  %v15577_v3 = vrot.slane %v3922_v39, 5  ;;  %v11118_v1 = vcombine.low %v3853_v22, %v3863_v26  ;;  %v11091_v32 = vld [vmem:[%s14085_s12 + $0x78] sm:$0xf] }
 0x1db   : > { %v3905_v16 = vor.u32 %v3904_v10, %v15571_v36  ;;  %v3932_v28 = vshll.u32 %v15575_v54, 16  ;;  %v3887_v61 = vsel %vm14118_vm2, %v3882_v15, %v3886_v34  ;;  %v3896_v46 = vrot.slane %v3895_v4, 4  ;;  %v11094_v22 = vld [vmem:[%s14085_s12 + $0x84] sm:$0xf] }
 0x1dc   : > { %v3919_v25 = vor.u32 %v3918_v40, %v3915_v18  ;;  %v3929_v39 = vor.u32 %v3928_v12, %v15577_v3  ;;  %v3961_v8 = vshrl.u32 %v11091_v32, 16  ;;  %v3964_v35 = vshll.u32 %v11091_v32, 16 }
 0x1dd   : > { %v15598_v26 = vrot.slane %v3946_v11, 5  ;;  %v3970_v15 = vshll.u32 %v15588_v57, 16  ;;  %v3974_v4 = vshrl.u32 %v15588_v57, 16  ;;  %v3906_v34 = vrot.slane %v3905_v16, 4  ;;  %v15609_v16 = vld [vmem:[%s14085_s12 + $0x80] sm:$0x1] }
 0x1de   : > { %12504 = vmatmul.mubr.msk.bf16.gmra.mrb[28].mxu0 %vm783_vm3, %v13222_v41  ;;  %v3908_v41 = vshll.u32 %v15324_v58, 16  ;;  %v3877_v58 = vsel %vm14118_vm2, %v3872_v51, %v15532_v48  ;;  %v3942_v48 = vrot.slane %v3940_v30, 5  ;;  %v3952_v51 = vrot.slane %v3950_v31, 4 }
 0x1df   : > { %12511 = vmatprep.mubr.msk.bf16.mxu0 %vm783_vm3, %v11115_v62  ;;  %v11117_v62 = vcombine.low %v3829_v20, %v3839_v63  ;;  %v3939_v63 = vrot.slane %v3937_v52, 4  ;;  %v3920_v10 = vrot.slane %v3919_v25, 4  ;;  %v3934_v18 = vrot.slane %v3932_v28, 5 }
 0x1e0   : > { %v3910_v20 = vrot.slane %v3908_v41, 5  ;;  %v3956_v40 = vshll.u32 %v15347_v19, 16  ;;  %v3985_v41 = vshrl.u32 %v11094_v22, 16  ;;  %v3988_v52 = vshll.u32 %v11094_v22, 16  ;;  %v15627_v22 = vld [vmem:[%s14085_s12 + $0x94] sm:$0xf] }
 0x1e1   : > { %v3998_v12 = vshrl.u32 %v15374_v29, 16  ;;  %v3930_v30 = vrot.slane %v3929_v39, 4  ;;  %v3943_v11 = vor.u32 %v3942_v48, %v3939_v63  ;;  %v3963_v31 = vrot.slane %v3961_v8, 4 }
 0x1e2   : > { %v3953_v32 = vor.u32 %v3952_v51, %v15598_v26  ;;  %v15611_v25 = vrot.slane %v3970_v15, 5  ;;  %v3976_v19 = vrot.slane %v3974_v4, 4  ;;  %v3901_v28 = vsel %vm14118_vm2, %v3896_v46, %v15571_v36 }
 0x1e3   : > { %v3925_v63 = vsel %vm14118_vm2, %v3920_v10, %v15577_v3  ;;  %v15621_v39 = vrot.slane %v3956_v40, 5  ;;  %v3990_v48 = vrot.slane %v3988_v52, 5  ;;  %v3935_v36 = vsel %vm14118_vm2, %v3930_v30, %v3934_v18 }
 0x1e4   : > { %v3944_v46 = vrot.slane %v3943_v11, 4  ;;  %v3980_v51 = vshll.u32 %v15609_v16, 16  ;;  %v3954_v3 = vrot.slane %v3953_v32, 4  ;;  %v4022_v10 = vshrl.u32 %v15627_v22, 16 }
 0x1e5   : > { %v4004_v52 = vshll.u32 %v15377_v0, 16 }
 0x1e6   : > { %12512 = vmatmul.mubr.msk.bf16.vlgmr.msra.gmra.mrb[0].mxu0 %vm783_vm3, %v11116_v44  ;;  %v3994_v44 = vshll.u32 %v15374_v29, 16  ;;  %v3911_v29 = vsel %vm14118_vm2, %v3906_v34, %v3910_v20  ;;  %v4018_v34 = vshll.u32 %v15627_v22, 16  ;;  %v3982_v11 = vrot.slane %v3980_v51, 5 }
 0x1e7   : > { %12544 = vmatpush3.bf16.msra.mxu0 %v15314_v14  ;;  %12515 = vmatprep.mubr.msk.bf16.mxu0 %vm783_vm3, %v11117_v62  ;;  %v3966_v14 = vrot.slane %v3964_v35, 5  ;;  %v11119_v62 = vcombine.low %v3877_v58, %v3887_v61  ;;  %v11097_v58 = vld [vmem:[%s14085_s12 + $0x90] sm:$0xf]  ;;  %v3987_v61 = vrot.slane %v3985_v41, 4  ;;  %v4000_v35 = vrot.slane %v3998_v12, 4 }
 0x1e8   : > { %12545 = vmatprep.subr.bf16.mxu0 %v13224_v24  ;;  %v15624_v8 = vrot.slane %v3994_v44, 5  ;;  %v4009_v15 = vshrl.u32 %v11097_v58, 16  ;;  %v4012_v4 = vshll.u32 %v11097_v58, 16  ;;  %v11120_v18 = vcombine.low %v3901_v28, %v3911_v29  ;;  %v11103_v28 = vld [vmem:[%s14085_s12 + $0xa8] sm:$0xf] }
 0x1e9   : > { %v3967_v20 = vor.u32 %v3966_v14, %v3963_v31  ;;  %v3991_v40 = vor.u32 %v3990_v48, %v3987_v61  ;;  %v11121_v44 = vcombine.low %v3925_v63, %v3935_v36  ;;  %v3949_v12 = vsel %vm14118_vm2, %v3944_v46, %v15598_v26  ;;  %v15644_v31 = vld [vmem:[%s14085_s12 + $0x98] sm:$0x1]  ;;  %v15653_v61 = vld [vmem:[%s14085_s12 + $0xac] sm:$0xf] }
 0x1ea   : > { %v4001_v41 = vor.u32 %v4000_v35, %v15624_v8  ;;  %v3959_v14 = vsel %vm14118_vm2, %v3954_v3, %v15621_v39  ;;  %v4011_v32 = vrot.slane %v4009_v15, 4  ;;  %v15650_v0 = vrot.slane %v4018_v34, 5 }
 0x1eb   : > { %12546 = vmatpush3.bf16.msra.mxu0 %v13224_v24  ;;  %v3977_v24 = vor.u32 %v3976_v19, %v15611_v25  ;;  %v3968_v30 = vrot.slane %v3967_v20, 4  ;;  %v4014_v19 = vrot.slane %v4012_v4, 5  ;;  %v4024_v29 = vrot.slane %v4022_v10, 4 }
 0x1ec   : > { %v3992_v26 = vrot.slane %v3991_v40, 4  ;;  %v4002_v48 = vrot.slane %v4001_v41, 4  ;;  %v4006_v35 = vrot.slane %v4004_v52, 5  ;;  %v4028_v36 = vshll.u32 %v15644_v31, 16 }
 0x1ed   : > { %v4042_v46 = vshll.u32 %v15416_v23, 16  ;;  %v4046_v39 = vshrl.u32 %v15416_v23, 16  ;;  %v4057_v20 = vshrl.u32 %v11103_v28, 16  ;;  %v4060_v51 = vshll.u32 %v11103_v28, 16 }
 0x1ee   : > { %12516 = vmatmul.mubr.msk.bf16.gmra.mrb[4].mxu0 %vm783_vm3, %v11118_v1  ;;  %v11100_v1 = vld [vmem:[%s14085_s12 + $0x9c] sm:$0xf]  ;;  %v3973_v3 = vsel %vm14118_vm2, %v3968_v30, %v15611_v25  ;;  %v4066_v15 = vshll.u32 %v15653_v61, 16  ;;  %v4070_v4 = vshrl.u32 %v15653_v61, 16  ;;  %v4015_v34 = vor.u32 %v4014_v19, %v4011_v32  ;;  %v15676_v32 = vld [vmem:[%s14085_s12 + $0xb0] sm:$0x1] }
 0x1ef   : > { %12519 = vmatprep.mubr.msk.bf16.mxu0 %vm783_vm3, %v11119_v62  ;;  %v3978_v62 = vrot.slane %v3977_v24, 4  ;;  %v4033_v63 = vshrl.u32 %v11100_v1, 16  ;;  %v4036_v58 = vshll.u32 %v11100_v1, 16  ;;  %v4025_v23 = vor.u32 %v4024_v29, %v15650_v0  ;;  %v11106_v29 = vld [vmem:[%s14085_s12 + $0xb4] sm:$0xf] }
 0x1f0   : > { %v3997_v25 = vsel %vm14118_vm2, %v3992_v26, %v15624_v8  ;;  %v4007_v40 = vsel %vm14118_vm2, %v4002_v48, %v4006_v35  ;;  %v4030_v41 = vrot.slane %v4028_v36, 5  ;;  %v15673_v52 = vrot.slane %v4042_v46, 5 }
 0x1f1   : > { %v3983_v24 = vsel %vm14118_vm2, %v3978_v62, %v3982_v11  ;;  %v4035_v10 = vrot.slane %v4033_v63, 4  ;;  %v4048_v1 = vrot.slane %v4046_v39, 4  ;;  %v4059_v30 = vrot.slane %v4057_v20, 4 }
 0x1f2   : > { %v4062_v11 = vrot.slane %v4060_v51, 5  ;;  %v11123_v62 = vcombine.low %v3973_v3, %v3983_v24  ;;  %v4068_v19 = vrot.slane %v4066_v15, 5  ;;  %v4072_v28 = vrot.slane %v4070_v4, 4 }
 0x1f3   : > { %v4016_v63 = vrot.slane %v4015_v34, 4  ;;  %v4026_v8 = vrot.slane %v4025_v23, 4  ;;  %v4052_v26 = vshll.u32 %v15419_v45, 16  ;;  %v11124_v48 = vcombine.low %v3997_v25, %v4007_v40 }
 0x1f4   : > { %v4049_v35 = vor.u32 %v4048_v1, %v15673_v52  ;;  %v4063_v36 = vor.u32 %v4062_v11, %v4059_v30  ;;  %v4076_v46 = vshll.u32 %v15676_v32, 16  ;;  %v4081_v39 = vshrl.u32 %v11106_v29, 16 }
 0x1f5   : > { %v4073_v20 = vor.u32 %v4072_v28, %v4068_v19  ;;  %v4084_v51 = vshll.u32 %v11106_v29, 16  ;;  %v4090_v3 = vshll.u32 %v15461_v13, 16  ;;  %v4094_v24 = vshrl.u32 %v15461_v13, 16 }
 0x1f6   : > { %12520 = vmatmul.mubr.msk.bf16.gmra.mrb[8].mxu0 %vm783_vm3, %v11120_v18  ;;  %v4038_v18 = vrot.slane %v4036_v58, 5  ;;  %v4021_v45 = vsel %vm14118_vm2, %v4016_v63, %v15650_v0  ;;  %v4031_v15 = vsel %vm14118_vm2, %v4026_v8, %v4030_v41  ;;  %v4054_v34 = vrot.slane %v4052_v26, 5 }
 0x1f7   : > { %12523 = vmatprep.mubr.msk.bf16.mxu0 %vm783_vm3, %v11121_v44  ;;  %v11122_v44 = vcombine.low %v3949_v12, %v3959_v14  ;;  %v11109_v12 = vld [vmem:[%s14085_s12 + $0xc0] sm:$0xf]  ;;  %v15684_v14 = vld [vmem:[%s14085_s12 + $0xc4] sm:$0xf]  ;;  %v4050_v40 = vrot.slane %v4049_v35, 4  ;;  %v4064_v13 = vrot.slane %v4063_v36, 4  ;;  %v11125_v28 = vcombine.low %v4021_v45, %v4031_v15 }
 0x1f8   : > { %v4039_v58 = vor.u32 %v4038_v18, %v4035_v10  ;;  %v4105_v23 = vshrl.u32 %v11109_v12, 16  ;;  %v4108_v10 = vshll.u32 %v11109_v12, 16  ;;  %v4114_v18 = vshll.u32 %v15684_v14, 16 }
 0x1f9   : > { %v4118_v25 = vshrl.u32 %v15684_v14, 16  ;;  %v4078_v1 = vrot.slane %v4076_v46, 5  ;;  %v4083_v30 = vrot.slane %v4081_v39, 4  ;;  %v4074_v11 = vrot.slane %v4073_v20, 4  ;;  %v15705_v46 = vld [vmem:[%s14085_s12 + $0xc8] sm:$0x1] }
 0x1fa   : > { %v4040_v4 = vrot.slane %v4039_v58, 4  ;;  %v4092_v0 = vrot.slane %v4090_v3, 5  ;;  %v4107_v41 = vrot.slane %v4105_v23, 4  ;;  %v4110_v29 = vrot.slane %v4108_v10, 5  ;;  %v11112_v58 = vld [vmem:[%s14085_s12 + $0xcc] sm:$0xf] }
 0x1fb   : > { %v4116_v63 = vrot.slane %v4114_v18, 5  ;;  %v4120_v8 = vrot.slane %v4118_v25, 4  ;;  %v4055_v35 = vsel %vm14118_vm2, %v4050_v40, %v4054_v34  ;;  %v4100_v36 = vshll.u32 %v15464_v43, 16 }
 0x1fc   : > { %v4045_v26 = vsel %vm14118_vm2, %v4040_v4, %v15673_v52  ;;  %v4069_v39 = vsel %vm14118_vm2, %v4064_v13, %v4068_v19  ;;  %v4079_v12 = vsel %vm14118_vm2, %v4074_v11, %v4078_v1  ;;  %v4129_v52 = vshrl.u32 %v11112_v58, 16 }
 0x1fd   : > { %v4132_v3 = vshll.u32 %v11112_v58, 16  ;;  %v4142_v43 = vshrl.u32 %v15512_v6, 16  ;;  %v4111_v45 = vor.u32 %v4110_v29, %v4107_v41  ;;  %v4121_v15 = vor.u32 %v4120_v8, %v4116_v63 }
 0x1fe   : > { %12524 = vmatmul.mubr.msk.bf16.gmra.mrb[12].mxu0 %vm783_vm3, %v11122_v44  ;;  %v4086_v44 = vrot.slane %v4084_v51, 5  ;;  %v11126_v4 = vcombine.low %v4045_v26, %v4055_v35  ;;  %v11127_v34 = vcombine.low %v4069_v39, %v4079_v12  ;;  %v4102_v10 = vrot.slane %v4100_v36, 5  ;;  %v11149_v26 = vld [vmem:[%s14085_s12 + $0x18] sm:$0xe] }
 0x1ff   : > { %12527 = vmatprep.mubr.msk.bf16.mxu0 %vm783_vm3, %v11123_v62  ;;  %v4096_v62 = vrot.slane %v4094_v24, 4  ;;  %v4138_v24 = vshll.u32 %v15512_v6, 16  ;;  %v4131_v18 = vrot.slane %v4129_v52, 4  ;;  %v4134_v25 = vrot.slane %v4132_v3, 5 }
 0x200   : > { %v4087_v20 = vor.u32 %v4086_v44, %v4083_v30  ;;  %v4144_v13 = vrot.slane %v4142_v43, 4  ;;  %v4112_v1 = vrot.slane %v4111_v45, 4  ;;  %v4122_v30 = vrot.slane %v4121_v15, 4  ;;  %v11150_v43 = vld [vmem:[%s14085_s12 + $0x24] sm:$0xe] }
 0x201   : > { %v4097_v51 = vor.u32 %v4096_v62, %v4092_v0  ;;  %v4140_v40 = vrot.slane %v4138_v24, 5  ;;  %v4135_v62 = vor.u32 %v4134_v25, %v4131_v18  ;;  %v4148_v41 = vshll.u32 %v15515_v53, 16  ;;  %v11151_v45 = vld [vmem:[%s14085_s12 + $0x30] sm:$0xe] }
 0x202   : > { %v4088_v19 = vrot.slane %v4087_v20, 4  ;;  %v4117_v29 = vsel %vm14118_vm2, %v4112_v1, %v4116_v63  ;;  %v4523_v58 = vrot.slane %v15356_v21, 5  ;;  %v11165_v20 = vrot.slane %v11149_v26, 9 }
 0x203   : > { %v4098_v23 = vrot.slane %v4097_v51, 4  ;;  %v4136_v36 = vrot.slane %v4135_v62, 4  ;;  %v4150_v12 = vrot.slane %v4148_v41, 5  ;;  %v4526_v53 = vrot.slane %v15390_v55, 5 }
 0x204   : > { %v4093_v6 = vsel %vm14118_vm2, %v4088_v19, %v4092_v0  ;;  %v4525_v51 = vrot.slane %v4523_v58, 4  ;;  %v4530_v52 = vrot.slane %v15386_v2, 5  ;;  %v4524_v3 = vsel %vm14429_vm6, %v11165_v20, %v4523_v58  ;;  %v11157_v20 = vld [vmem:[%s14085_s12 + $0x78] sm:$0xe] }
 0x205   : > { %v4103_v44 = vsel %vm14118_vm2, %v4098_v23, %v4102_v10  ;;  %v4141_v63 = vsel %vm14118_vm2, %v4136_v36, %v4140_v40  ;;  %v4537_v55 = vrot.slane %v15413_v5, 5  ;;  %v11167_v19 = vrot.slane %v11151_v45, 9 }
 0x206   : > { %12528 = vmatmul.mubr.msk.bf16.gmra.mrb[16].mxu0 %vm783_vm3, %v11124_v48  ;;  %v4124_v48 = vshll.u32 %v15705_v46, 16  ;;  %v11128_v0 = vcombine.low %v4093_v6, %v4103_v44  ;;  %v4527_v24 = vsel %vm14429_vm6, %v4525_v51, %v4526_v53  ;;  %v4540_v23 = vrot.slane %v15447_v37, 5 }
 0x207   : > { %12531 = vmatprep.mubr.msk.bf16.mxu0 %vm783_vm3, %v11125_v28  ;;  %v4145_v28 = vor.u32 %v4144_v13, %v4140_v40  ;;  %v4539_v2 = vrot.slane %v4537_v55, 4  ;;  %v4544_v18 = vrot.slane %v15432_v9, 5  ;;  %v4538_v25 = vsel %vm14429_vm6, %v11167_v19, %v4537_v55  ;;  %v11152_v40 = vld [vmem:[%s14085_s12 + $0x3c] sm:$0xe]  ;;  %v11153_v13 = vld [vmem:[%s14085_s12 + $0x48] sm:$0xe] }
 0x208   : > { %v4126_v11 = vrot.slane %v4124_v48, 5  ;;  %v11181_v48 = vcombine.low %v4524_v3, %v4527_v24  ;;  %v4551_v37 = vrot.slane %v15478_v60, 5  ;;  %v4547_v44 = vrot.slane %v15472_v56, 5  ;;  %v11159_v24 = vld [vmem:[%s14085_s12 + $0x90] sm:$0xe] }
 0x209   : > { %v4146_v39 = vrot.slane %v4145_v28, 4  ;;  %v4541_v38 = vsel %vm14429_vm6, %v4539_v2, %v4540_v23  ;;  %v4546_v6 = vrot.slane %v4544_v18, 4  ;;  %v11169_v62 = vrot.slane %v11153_v13, 9  ;;  %v11163_v23 = vld [vmem:[%s14085_s12 + $0xc0] sm:$0xe]  ;;  %v19879_v13 = vld [vmem:[#allocation5_spill] sm:$0xff] }
 0x20a   : > { %v4127_v8 = vsel %vm14118_vm2, %v4122_v30, %v4126_v11  ;;  %v11183_v30 = vcombine.low %v4538_v25, %v4541_v38  ;;  %v11168_v11 = vrot.slane %v11152_v40, 9  ;;  %v4553_v28 = vrot.slane %v4551_v37, 4  ;;  %v19876_v25 = vld [vmem:[#allocation3_spill] sm:$0xff] }
 0x20b   : > { %v11129_v35 = vcombine.low %v4117_v29, %v4127_v8  ;;  %v4151_v21 = vsel %vm14118_vm2, %v4146_v39, %v4150_v12  ;;  %v4554_v9 = vrot.slane %v15527_v7, 5  ;;  %v4548_v60 = vsel %vm14429_vm6, %v4546_v6, %v4547_v44  ;;  %v11155_v7 = vld [vmem:[%s14085_s12 + $0x60] sm:$0xe] }
 0x20c   : > { %v11130_v15 = vcombine.low %v4141_v63, %v4151_v21  ;;  %v4545_v41 = vsel %vm14429_vm6, %v11168_v11, %v4544_v18  ;;  %v4552_v29 = vsel %vm14429_vm6, %v11169_v62, %v4551_v37  ;;  %v4565_v8 = vrot.slane %v15539_v50, 5  ;;  %v19883_v11 = vld [vmem:[#allocation8_spill] sm:$0xff]  ;;  %v13225_v44 = vld [vmem:[%s19478_s3] sm:$0xff]  }
 0x20d   : > { %v4555_v56 = vsel %vm14429_vm6, %v4553_v28, %v4554_v9  ;;  %v11184_v58 = vcombine.low %v4545_v41, %v4548_v60  ;;  %v4568_v36 = vrot.slane %v15575_v54, 5  ;;  %v4579_v50 = vrot.slane %v15588_v57, 5  ;;  %12579 = vmatprep.subr.bf16.mxu1 %v13225_v44  ;;  %v15847_v62 = vld [vmem:[%s19477_s2] ss:$0 sm:$0xff] }
 0x20e   : > { %12532 = vmatmul.mubr.msk.bf16.gmra.mrb[20].mxu0 %vm783_vm3, %v11126_v4  ;;  %v11166_v4 = vrot.slane %v11150_v43, 9  ;;  %v11185_v26 = vcombine.low %v4552_v29, %v4555_v56  ;;  %v11173_v53 = vrot.slane %v11157_v20, 9  ;;  %v4582_v21 = vrot.slane %v15609_v16, 5  ;;  %12580 = vmatpush3.bf16.msra.mxu1 %v13225_v44 }
 0x20f   : > { %12535 = vmatprep.mubr.msk.bf16.mxu0 %vm783_vm3, %v11127_v34  ;;  %v4532_v34 = vrot.slane %v4530_v52, 4  ;;  %v4581_v63 = vrot.slane %v4579_v50, 4  ;;  %v19872_v54 = vcombine.low %v15333_v33, %v15338_v17  ;;  %v4593_v3 = vrot.slane %v15627_v22, 5  ;;  %12581 = vmatprep.subr.bf16.mxu1 %v13226_v47 }
 0x210   : > { %v4531_v5 = vsel %vm14429_vm6, %v11166_v4, %v4530_v52  ;;  %v4580_v52 = vsel %vm14429_vm6, %v11173_v53, %v4579_v50  ;;  %v11175_v55 = vrot.slane %v11159_v24, 9  ;;  %v4596_v45 = vrot.slane %v15644_v31, 5 }
 0x211   : > { %v4534_v10 = vsel %vm14429_vm6, %v4532_v34, %v4533_v27  ;;  %v4583_v57 = vsel %vm14429_vm6, %v4581_v63, %v4582_v21  ;;  %v4595_v16 = vrot.slane %v4593_v3, 4  ;;  %v19873_v33 = vcombine.low %v15360_v49, %v15366_v59  ;;  %v19874_v49 = vld [vmem:[#allocation2_spill] sm:$0xff] }
 0x212   : > { %v11182_v1 = vcombine.low %v4531_v5, %v4534_v10  ;;  %v11189_v43 = vcombine.low %v4580_v52, %v4583_v57  ;;  %v4594_v17 = vsel %vm14429_vm6, %v11175_v55, %v4593_v3  ;;  %v4610_v27 = vrot.slane %v15676_v32, 5  ;;  %12582 = vmatpush3.bf16.msra.mxu1 %v13226_v47 }
 0x213   : > { %v4597_v22 = vsel %vm14429_vm6, %v4595_v16, %v4596_v45  ;;  %v19875_v59 = vcombine.low %v15394_v42, %v19874_v49  ;;  %v11179_v10 = vrot.slane %v11163_v23, 9  ;;  %v4624_v32 = vrot.slane %v15705_v46, 5  ;;  %v19877_v42 = vld [vmem:[#allocation4_spill] sm:$0xff]  ;;  %v19882_v46 = vld [vmem:[#allocation7_spill] sm:$0xff] }
 0x214   : > { %v11191_v4 = vcombine.low %v4594_v17, %v4597_v22  ;;  %v19878_v38 = vcombine.low %v19876_v25, %v19877_v42  ;;  %v19884_v6 = vcombine.low %v19882_v46, %v19883_v11 }
 0x216   : > { %12536 = vmatmul.mubr.msk.bf16.gmra.mrb[24].mxu0 %vm783_vm3, %v11128_v0  ;;  %v11171_v0 = vrot.slane %v11155_v7, 9 }
 0x217   : > { %12539 = vmatprep.mubr.msk.bf16.mxu0 %vm783_vm3, %v11129_v35  ;;  %v4567_v35 = vrot.slane %v4565_v8, 4 }
 0x218   : > { %v4566_v39 = vsel %vm14429_vm6, %v11171_v0, %v4565_v8 }
 0x219   : > { %v4569_v12 = vsel %vm14429_vm6, %v4567_v35, %v4568_v36 }
 0x21a   : > { %v11187_v51 = vcombine.low %v4566_v39, %v4569_v12 }
 0x21e   : > { %12540 = vmatmul.mubr.msk.bf16.gmra.mrb[28].mxu0 %vm783_vm3, %v11130_v15  ;;  %v4607_v15 = vrot.slane %v15653_v61, 5  ;;  %v4621_v61 = vrot.slane %v15684_v14, 5 }
 0x21f   : > { %12547 = vmatprep.mubr.msk.bf16.mxu0 %vm783_vm3, %v11181_v48  ;;  %v11161_v48 = vld [vmem:[%s14085_s12 + $0xa8] sm:$0xe]  ;;  %s14018_s12 = smov 48  }
 0x220   : > { %v11177_v34 = vrot.slane %v11161_v48, 9  ;;  %v4609_v31 = vrot.slane %v4607_v15, 4  ;;  %v4623_v18 = vrot.slane %v4621_v61, 4  ;;  %v4622_v40 = vsel %vm14429_vm6, %v11179_v10, %v4621_v61 }
 0x222   : > { %v4608_v19 = vsel %vm14429_vm6, %v11177_v34, %v4607_v15  ;;  %v4611_v2 = vsel %vm14429_vm6, %v4609_v31, %v4610_v27  ;;  %v4625_v37 = vsel %vm14429_vm6, %v4623_v18, %v4624_v32 }
 0x223   : > { %v11193_v5 = vcombine.low %v4608_v19, %v4611_v2  ;;  %v11195_v14 = vcombine.low %v4622_v40, %v4625_v37 }
 0x226   : > { %12548 = vmatmul.mubr.msk.bf16.vlgmr.msra.gmra.mrb[0].mxu0 %vm783_vm3, %v11182_v1  ;;  %v19880_v1 = vld [vmem:[#allocation6_spill] sm:$0xff] }
 0x227   : > { %12551 = vmatprep.mubr.msk.bf16.mxu0 %vm783_vm3, %v11183_v30  ;;  %v19881_v30 = vcombine.low %v19879_v13, %v19880_v1 }
 0x22e   : > { %12552 = vmatmul.mubr.msk.bf16.gmra.mrb[4].mxu0 %vm783_vm3, %v11184_v58 }
 0x22f   : > { %12555 = vmatprep.mubr.msk.bf16.mxu0 %vm783_vm3, %v11185_v26 }
 0x236   : > { %12556 = vmatmul.mubr.msk.bf16.gmra.mrb[8].mxu0 %vm783_vm3, %v19872_v54 }
 0x237   : > { %12559 = vmatprep.mubr.msk.bf16.mxu0 %vm783_vm3, %v11187_v51 }
 0x23e   : > { %12560 = vmatmul.mubr.msk.bf16.gmra.mrb[12].mxu0 %vm783_vm3, %v19873_v33 }
 0x23f   : > { %12563 = vmatprep.mubr.msk.bf16.mxu0 %vm783_vm3, %v11189_v43 }
 0x246   : > { %12564 = vmatmul.mubr.msk.bf16.gmra.mrb[16].mxu0 %vm783_vm3, %v19875_v59 }
 0x247   : > { %12567 = vmatprep.mubr.msk.bf16.mxu0 %vm783_vm3, %v11191_v4 }
 0x24e   : > { %12568 = vmatmul.mubr.msk.bf16.gmra.mrb[20].mxu0 %vm783_vm3, %v19878_v38 }
 0x24f   : > { %12571 = vmatprep.mubr.msk.bf16.mxu0 %vm783_vm3, %v11193_v5 }
 0x256   : > { %12572 = vmatmul.mubr.msk.bf16.gmra.mrb[24].mxu0 %vm783_vm3, %v19881_v30 }
 0x257   : > { %12575 = vmatprep.mubr.msk.bf16.mxu0 %vm783_vm3, %v11195_v14 }
 0x25e   : > { %12576 = vmatmul.mubr.msk.bf16.gmra.mrb[28].mxu0 %vm783_vm3, %v19884_v6 }
 0x2f9   : > { %v12549_v28 = vpop.f32.mrb[0].mxu0 }
 0x2fa   : > { %v4947_v9 = vadd.f32 %v12549_v28, %v15847_v62  ;;  %v4779_v41 = vpop.f32.mrb[1].mxu0 }
 0x2fb   : > { %v4945_v60 = vadd.f32 %v15847_v62, %v4779_v41  ;;  %v12550_v29 = vpop.f32.mrb[2].mxu0 }
 0x2fc   : > { %v4948_v56 = vadd.f32 %v12550_v29, %v15847_v62  ;;  %v4782_v8 = vpop.f32.mrb[3].mxu0  ;;  %v4979_v58 = vmax.f32 %v4947_v9, 0.0 }
 0x2fd   : > { %v4946_v7 = vadd.f32 %v15847_v62, %v4782_v8  ;;  %v4977_v0 = vmax.f32 %v4945_v60, 0.0 }
 0x2fe   : > { %v4980_v26 = vmax.f32 %v4948_v56, 0.0 }
 0x2ff   : > { %v4978_v35 = vmax.f32 %v4946_v7, 0.0 }
 0x300   : > { %v5010_v36 = vpack.c.bf16 %v4980_v26, %v4979_v58 }
 0x301   : > { %v12553_v39 = vpop.f32.mrb[4].mxu0  ;;  %v5009_v12 = vpack.c.bf16 %v4978_v35, %v4977_v0 }
 0x302   : > { %v4951_v50 = vadd.f32 %v12553_v39, %v15847_v62  ;;  %v4795_v20 = vpop.f32.mrb[5].mxu0 }
 0x303   : > { %v4949_v51 = vadd.f32 %v15847_v62, %v4795_v20  ;;  %v12554_v53 = vpop.f32.mrb[6].mxu0  ;;  %12583 = vmatprep.mubr.msk.bf16.mxu1 %vm783_vm3, %v5009_v12 }
 0x304   : > { %v4952_v63 = vadd.f32 %v12554_v53, %v15847_v62  ;;  %v4798_v21 = vpop.f32.mrb[7].mxu0  ;;  %12584 = vmatmul.mubr.msk.bf16.vlgmr.msra.gmra.mrb[0].mxu1 %vm783_vm3, %v5010_v36  ;;  %v4983_v52 = vmax.f32 %v4951_v50, 0.0 }
 0x305   : > { %v4950_v54 = vadd.f32 %v15847_v62, %v4798_v21  ;;  %v4981_v3 = vmax.f32 %v4949_v51, 0.0 }
 0x306   : > { %v4984_v57 = vmax.f32 %v4952_v63, 0.0 }
 0x307   : > { %v4982_v24 = vmax.f32 %v4950_v54, 0.0 }
 0x308   : > { %v5012_v43 = vpack.c.bf16 %v4984_v57, %v4983_v52 }
 0x309   : > { %v5011_v55 = vpack.c.bf16 %v4982_v24, %v4981_v3  ;;  %v12557_v16 = vpop.f32.mrb[8].mxu0 }
 0x30a   : > { %v4955_v45 = vadd.f32 %v12557_v16, %v15847_v62  ;;  %v4811_v33 = vpop.f32.mrb[9].mxu0 }
 0x30b   : > { %v4953_v17 = vadd.f32 %v15847_v62, %v4811_v33  ;;  %v12558_v22 = vpop.f32.mrb[10].mxu0  ;;  %12587 = vmatprep.mubr.msk.bf16.mxu1 %vm783_vm3, %v5011_v55 }
 0x30c   : > { %v4956_v15 = vadd.f32 %v12558_v22, %v15847_v62  ;;  %v4814_v48 = vpop.f32.mrb[11].mxu0  ;;  %12588 = vmatmul.mubr.msk.bf16.gmra.mrb[4].mxu1 %vm783_vm3, %v5012_v43  ;;  %v4987_v34 = vmax.f32 %v4955_v45, 0.0 }
 0x30d   : > { %v4954_v4 = vadd.f32 %v15847_v62, %v4814_v48  ;;  %v4985_v27 = vmax.f32 %v4953_v17, 0.0 }
 0x30e   : > { %v4988_v31 = vmax.f32 %v4956_v15, 0.0 }
 0x30f   : > { %v4986_v49 = vmax.f32 %v4954_v4, 0.0 }
 0x310   : > { %v5014_v59 = vpack.c.bf16 %v4988_v31, %v4987_v34 }
 0x311   : > { %v5013_v19 = vpack.c.bf16 %v4986_v49, %v4985_v27  ;;  %v12561_v2 = vpop.f32.mrb[12].mxu0 }
 0x312   : > { %v4959_v61 = vadd.f32 %v12561_v2, %v15847_v62  ;;  %v4827_v23 = vpop.f32.mrb[13].mxu0 }
 0x313   : > { %v4957_v5 = vadd.f32 %v15847_v62, %v4827_v23  ;;  %v12562_v10 = vpop.f32.mrb[14].mxu0  ;;  %12591 = vmatprep.mubr.msk.bf16.mxu1 %vm783_vm3, %v5013_v19 }
 0x314   : > { %v4960_v18 = vadd.f32 %v12562_v10, %v15847_v62  ;;  %v4830_v32 = vpop.f32.mrb[15].mxu0  ;;  %12592 = vmatmul.mubr.msk.bf16.gmra.mrb[8].mxu1 %vm783_vm3, %v5014_v59  ;;  %v4991_v42 = vmax.f32 %v4959_v61, 0.0 }
 0x315   : > { %v4958_v25 = vadd.f32 %v15847_v62, %v4830_v32  ;;  %v4989_v40 = vmax.f32 %v4957_v5, 0.0 }
 0x316   : > { %v4992_v38 = vmax.f32 %v4960_v18, 0.0 }
 0x317   : > { %v4990_v37 = vmax.f32 %v4958_v25, 0.0 }
 0x318   : > { %v5016_v14 = vpack.c.bf16 %v4992_v38, %v4991_v42  ;;  %v15900_v42 = vld [vmem:[%s19479_s4] ss:$0 sm:$0xff] }
 0x319   : > { %v5015_v13 = vpack.c.bf16 %v4990_v37, %v4989_v40  ;;  %v12565_v1 = vpop.f32.mrb[16].mxu0 }
 0x31a   : > { %v4963_v30 = vadd.f32 %v12565_v1, %v15847_v62  ;;  %v4843_v46 = vpop.f32.mrb[17].mxu0 }
 0x31b   : > { %v4961_v11 = vadd.f32 %v15847_v62, %v4843_v46  ;;  %v12566_v6 = vpop.f32.mrb[18].mxu0  ;;  %12595 = vmatprep.mubr.msk.bf16.mxu1 %vm783_vm3, %v5015_v13 }
 0x31c   : > { %v4964_v44 = vadd.f32 %v12566_v6, %v15847_v62  ;;  %v4846_v47 = vpop.f32.mrb[19].mxu0  ;;  %12596 = vmatmul.mubr.msk.bf16.gmra.mrb[12].mxu1 %vm783_vm3, %v5016_v14  ;;  %v4995_v9 = vmax.f32 %v4963_v30, 0.0 }
 0x31d   : > { %v4962_v28 = vadd.f32 %v15847_v62, %v4846_v47  ;;  %v4993_v60 = vmax.f32 %v4961_v11, 0.0 }
 0x31e   : > { %v4996_v41 = vmax.f32 %v4964_v44, 0.0 }
 0x31f   : > { %v4994_v29 = vmax.f32 %v4962_v28, 0.0 }
 0x320   : > { %v5018_v56 = vpack.c.bf16 %v4996_v41, %v4995_v9 }
 0x321   : > { %v5017_v8 = vpack.c.bf16 %v4994_v29, %v4993_v60  ;;  %v12569_v7 = vpop.f32.mrb[20].mxu0 }
 0x322   : > { %v4967_v58 = vadd.f32 %v12569_v7, %v15847_v62  ;;  %v4859_v26 = vpop.f32.mrb[21].mxu0 }
 0x323   : > { %v4965_v0 = vadd.f32 %v15847_v62, %v4859_v26  ;;  %v12570_v35 = vpop.f32.mrb[22].mxu0  ;;  %12599 = vmatprep.mubr.msk.bf16.mxu1 %vm783_vm3, %v5017_v8 }
 0x324   : > { %v4968_v36 = vadd.f32 %v12570_v35, %v15847_v62  ;;  %v4862_v39 = vpop.f32.mrb[23].mxu0  ;;  %12600 = vmatmul.mubr.msk.bf16.gmra.mrb[16].mxu1 %vm783_vm3, %v5018_v56  ;;  %v4999_v50 = vmax.f32 %v4967_v58, 0.0 }
 0x325   : > { %v4966_v12 = vadd.f32 %v15847_v62, %v4862_v39  ;;  %v4997_v51 = vmax.f32 %v4965_v0, 0.0 }
 0x326   : > { %v5000_v20 = vmax.f32 %v4968_v36, 0.0 }
 0x327   : > { %v4998_v53 = vmax.f32 %v4966_v12, 0.0 }
 0x328   : > { %v5020_v63 = vpack.c.bf16 %v5000_v20, %v4999_v50 }
 0x329   : > { %v5019_v21 = vpack.c.bf16 %v4998_v53, %v4997_v51  ;;  %v12573_v54 = vpop.f32.mrb[24].mxu0 }
 0x32a   : > { %v4971_v52 = vadd.f32 %v12573_v54, %v15847_v62  ;;  %v4875_v57 = vpop.f32.mrb[25].mxu0 }
 0x32b   : > { %v4969_v3 = vadd.f32 %v15847_v62, %v4875_v57  ;;  %v12574_v24 = vpop.f32.mrb[26].mxu0  ;;  %12603 = vmatprep.mubr.msk.bf16.mxu1 %vm783_vm3, %v5019_v21 }
 0x32c   : > { %v4972_v43 = vadd.f32 %v12574_v24, %v15847_v62  ;;  %v4878_v55 = vpop.f32.mrb[27].mxu0  ;;  %12604 = vmatmul.mubr.msk.bf16.gmra.mrb[20].mxu1 %vm783_vm3, %v5020_v63  ;;  %v5003_v45 = vmax.f32 %v4971_v52, 0.0 }
 0x32d   : > { %v4970_v16 = vadd.f32 %v15847_v62, %v4878_v55  ;;  %v5001_v17 = vmax.f32 %v4969_v3, 0.0 }
 0x32e   : > { %v5004_v33 = vmax.f32 %v4972_v43, 0.0 }
 0x32f   : > { %v5002_v22 = vmax.f32 %v4970_v16, 0.0 }
 0x330   : > { %v5022_v15 = vpack.c.bf16 %v5004_v33, %v5003_v45 }
 0x331   : > { %v5021_v48 = vpack.c.bf16 %v5002_v22, %v5001_v17  ;;  %v12577_v4 = vpop.f32.mrb[28].mxu0 }
 0x332   : > { %v4975_v34 = vadd.f32 %v12577_v4, %v15847_v62  ;;  %v4891_v31 = vpop.f32.mrb[29].mxu0 }
 0x333   : > { %v4973_v27 = vadd.f32 %v15847_v62, %v4891_v31  ;;  %v12578_v49 = vpop.f32.mrb[30].mxu0  ;;  %12607 = vmatprep.mubr.msk.bf16.mxu1 %vm783_vm3, %v5021_v48 }
 0x334   : > { %v4976_v59 = vadd.f32 %v12578_v49, %v15847_v62  ;;  %v4894_v19 = vpop.f32.mrb[31].mxu0  ;;  %12608 = vmatmul.mubr.msk.bf16.gmra.mrb[24].mxu1 %vm783_vm3, %v5022_v15  ;;  %v5007_v61 = vmax.f32 %v4975_v34, 0.0 }
 0x335   : > { %v4974_v2 = vadd.f32 %v15847_v62, %v4894_v19  ;;  %v5005_v5 = vmax.f32 %v4973_v27, 0.0 }
 0x336   : > { %v5008_v23 = vmax.f32 %v4976_v59, 0.0 }
 0x337   : > { %v5006_v10 = vmax.f32 %v4974_v2, 0.0 }
 0x338   : > { %v5024_v18 = vpack.c.bf16 %v5008_v23, %v5007_v61 }
 0x339   : > { %v5023_v32 = vpack.c.bf16 %v5006_v10, %v5005_v5 }
 0x33b   : > { %12611 = vmatprep.mubr.msk.bf16.mxu1 %vm783_vm3, %v5023_v32 }
 0x33c   : > { %12612 = vmatmul.mubr.msk.bf16.gmra.mrb[28].mxu1 %vm783_vm3, %v5024_v18 }
 0x3d7   : > { %v12585_v25 = vpop.f32.mrb[0].mxu1 }
 0x3d8   : > { %v5130_v38 = vpop.f32.mrb[1].mxu1  ;;  %v5139_v62 = vadd.f32 %v12585_v25, %v15900_v42 }
 0x3d9   : > { %v12586_v40 = vpop.f32.mrb[2].mxu1  ;;  %v5131_v13 = vadd.f32 %v15900_v42, %v5130_v38 }
 0x3da   : > { %v5142_v37 = vadd.f32 %v12586_v40, %v15900_v42  ;;  %v5133_v14 = vpop.f32.mrb[3].mxu1 }
 0x3db   : > { %v5134_v1 = vadd.f32 %v15900_v42, %v5133_v14 }
 0x3dc   : > { %v15906_v30 = vpack.c.bf16 %v5142_v37, %v5139_v62 }
 0x3dd   : > { %v15908_v46 = vpack.c.bf16 %v5134_v1, %v5131_v13 }
 0x3de   : > { %19885 = vst [vmem:[#allocation2_spill] sm:$0xff] %v15906_v30  ;;  %5291 = vrot.lane.b32.xlu1 %v15906_v30, %s14009_s9 }
 0x3df   : > { %19886 = vst [vmem:[#allocation3_spill] sm:$0xff] %v15908_v46  ;;  %5289 = vrot.lane.b32.xlu0 %v15908_v46, %s14009_s9  ;;  %v12589_v11 = vpop.f32.mrb[4].mxu1  ;;  %11563 = vmatprep.mubr.msk.bf16.mxu1 %vm5321_vm7, %v15908_v46 }
 0x3e0   : > { %v5146_v6 = vpop.f32.mrb[5].mxu1  ;;  %v5155_v47 = vadd.f32 %v12589_v11, %v15900_v42 }
 0x3e1   : > { %v12590_v44 = vpop.f32.mrb[6].mxu1  ;;  %v5147_v41 = vadd.f32 %v15900_v42, %v5146_v6 }
 0x3e2   : > { %v5158_v28 = vadd.f32 %v12590_v44, %v15900_v42  ;;  %v5149_v9 = vpop.f32.mrb[7].mxu1 }
 0x3e3   : > { %v5150_v60 = vadd.f32 %v15900_v42, %v5149_v9 }
 0x3e4   : > { %v15920_v29 = vpack.c.bf16 %v5158_v28, %v5155_v47 }
 0x3e5   : > { %v15922_v56 = vpack.c.bf16 %v5150_v60, %v5147_v41 }
 0x3e6   : > { %19887 = vst [vmem:[#allocation4_spill] sm:$0xff] %v15920_v29 }
 0x3e7   : > { %19888 = vst [vmem:[#allocation5_spill] sm:$0xff] %v15922_v56  ;;  %v12593_v8 = vpop.f32.mrb[8].mxu1 }
 0x3e8   : > { %v5162_v7 = vpop.f32.mrb[9].mxu1  ;;  %v5171_v26 = vadd.f32 %v12593_v8, %v15900_v42 }
 0x3e9   : > { %v12594_v58 = vpop.f32.mrb[10].mxu1  ;;  %v5163_v36 = vadd.f32 %v15900_v42, %v5162_v7 }
 0x3ea   : > { %v5174_v0 = vadd.f32 %v12594_v58, %v15900_v42  ;;  %v5165_v35 = vpop.f32.mrb[11].mxu1 }
 0x3eb   : > { %v5166_v39 = vadd.f32 %v15900_v42, %v5165_v35 }
 0x3ec   : > { %v15928_v12 = vpack.c.bf16 %v5174_v0, %v5171_v26 }
 0x3ed   : > { %v15930_v50 = vpack.c.bf16 %v5166_v39, %v5163_v36 }
 0x3ef   : > { %19889 = vst [vmem:[#allocation6_spill] sm:$0xff] %v15930_v50  ;;  %v12597_v20 = vpop.f32.mrb[12].mxu1 }
 0x3f0   : > { %v5178_v51 = vpop.f32.mrb[13].mxu1  ;;  %v5187_v63 = vadd.f32 %v12597_v20, %v15900_v42 }
 0x3f1   : > { %v12598_v53 = vpop.f32.mrb[14].mxu1  ;;  %v5179_v52 = vadd.f32 %v15900_v42, %v5178_v51 }
 0x3f2   : > { %v5190_v21 = vadd.f32 %v12598_v53, %v15900_v42  ;;  %v5181_v54 = vpop.f32.mrb[15].mxu1 }
 0x3f3   : > { %v5182_v57 = vadd.f32 %v15900_v42, %v5181_v54 }
 0x3f4   : > { %v15936_v3 = vpack.c.bf16 %v5190_v21, %v5187_v63 }
 0x3f5   : > { %v15938_v24 = vpack.c.bf16 %v5182_v57, %v5179_v52 }
 0x3f6   : > { %19890 = vst [vmem:[#allocation7_spill] sm:$0xff] %v15936_v3 }
 0x3f7   : > { %19891 = vst [vmem:[#allocation8_spill] sm:$0xff] %v15938_v24  ;;  %v12601_v43 = vpop.f32.mrb[16].mxu1 }
 0x3f8   : > { %v5194_v55 = vpop.f32.mrb[17].mxu1  ;;  %v5203_v45 = vadd.f32 %v12601_v43, %v15900_v42 }
 0x3f9   : > { %v12602_v16 = vpop.f32.mrb[18].mxu1  ;;  %v5195_v22 = vadd.f32 %v15900_v42, %v5194_v55 }
 0x3fa   : > { %v5206_v33 = vadd.f32 %v12602_v16, %v15900_v42  ;;  %v5197_v17 = vpop.f32.mrb[19].mxu1 }
 0x3fb   : > { %v5198_v15 = vadd.f32 %v15900_v42, %v5197_v17 }
 0x3fc   : > { %v15944_v48 = vpack.c.bf16 %v5206_v33, %v5203_v45 }
 0x3fd   : > { %v15946_v4 = vpack.c.bf16 %v5198_v15, %v5195_v22 }
 0x3fe   : > { %19892 = vst [vmem:[#allocation9_spill] sm:$0xff] %v15944_v48  ;;  %5307 = vrot.lane.b32.xlu1 %v15944_v48, %s14009_s9 }
 0x3ff   : > { %19893 = vst [vmem:[#allocation10_spill] sm:$0xff] %v15946_v4  ;;  %5305 = vrot.lane.b32.xlu0 %v15946_v4, %s14009_s9  ;;  %v12605_v34 = vpop.f32.mrb[20].mxu1 }
 0x400   : > { %v5210_v31 = vpop.f32.mrb[21].mxu1  ;;  %v5219_v49 = vadd.f32 %v12605_v34, %v15900_v42 }
 0x401   : > { %v12606_v27 = vpop.f32.mrb[22].mxu1  ;;  %v5211_v2 = vadd.f32 %v15900_v42, %v5210_v31 }
 0x402   : > { %v5222_v59 = vadd.f32 %v12606_v27, %v15900_v42  ;;  %v5213_v19 = vpop.f32.mrb[23].mxu1 }
 0x403   : > { %v5214_v61 = vadd.f32 %v15900_v42, %v5213_v19  ;;  %5293 = vrot.lane.b32.xlu0 %v15922_v56, %s14009_s9 }
 0x404   : > { %v15958_v23 = vpack.c.bf16 %v5222_v59, %v5219_v49 }
 0x405   : > { %v15960_v5 = vpack.c.bf16 %v5214_v61, %v5211_v2 }
 0x406   : > { %19894 = vst [vmem:[#allocation11_spill] sm:$0xff] %v15958_v23 }
 0x407   : > { %19895 = vst [vmem:[#allocation12_spill] sm:$0xff] %v15960_v5  ;;  %5295 = vrot.lane.b32.xlu0 %v15920_v29, %s14009_s9  ;;  %5309 = vrot.lane.b32.xlu1 %v15960_v5, %s14009_s9  ;;  %v12609_v10 = vpop.f32.mrb[24].mxu1 }
 0x408   : > { %v5226_v18 = vpop.f32.mrb[25].mxu1  ;;  %v5235_v25 = vadd.f32 %v12609_v10, %v15900_v42 }
 0x409   : > { %v12610_v32 = vpop.f32.mrb[26].mxu1  ;;  %v5227_v62 = vadd.f32 %v15900_v42, %v5226_v18 }
 0x40a   : > { %v5238_v38 = vadd.f32 %v12610_v32, %v15900_v42  ;;  %v5229_v40 = vpop.f32.mrb[27].mxu1 }
 0x40b   : > { %v5230_v37 = vadd.f32 %v15900_v42, %v5229_v40  ;;  %5297 = vrot.lane.b32.xlu0 %v15930_v50, %s14009_s9  ;;  %5311 = vrot.lane.b32.xlu1 %v15958_v23, %s14009_s9 }
 0x40c   : > { %v15974_v14 = vpack.c.bf16 %v5238_v38, %v5235_v25 }
 0x40d   : > { %v15976_v13 = vpack.c.bf16 %v5230_v37, %v5227_v62 }
 0x40e   : > { %19896 = vst [vmem:[#allocation13_spill] sm:$0xff] %v15974_v14 }
 0x40f   : > { %5299 = vrot.lane.b32.xlu0 %v15928_v12, %s14009_s9  ;;  %5313 = vrot.lane.b32.xlu1 %v15976_v13, %s14009_s9  ;;  %v12613_v1 = vpop.f32.mrb[28].mxu1 }
 0x410   : > { %v5242_v11 = vpop.f32.mrb[29].mxu1  ;;  %v5251_v44 = vadd.f32 %v12613_v1, %v15900_v42 }
 0x411   : > { %v12614_v6 = vpop.f32.mrb[30].mxu1  ;;  %v5243_v9 = vadd.f32 %v15900_v42, %v5242_v11 }
 0x412   : > { %v5254_v47 = vadd.f32 %v12614_v6, %v15900_v42  ;;  %v5245_v28 = vpop.f32.mrb[31].mxu1 }
 0x413   : > { %v5246_v41 = vadd.f32 %v15900_v42, %v5245_v28  ;;  %5301 = vrot.lane.b32.xlu0 %v15938_v24, %s14009_s9  ;;  %5315 = vrot.lane.b32.xlu1 %v15974_v14, %s14009_s9 }
 0x414   : > { %v15990_v60 = vpack.c.bf16 %v5254_v47, %v5251_v44 }
 0x415   : > { %v15992_v8 = vpack.c.bf16 %v5246_v41, %v5243_v9 }
 0x416   : > { %19897 = vst [vmem:[#allocation14_spill] sm:$0xff] %v15990_v60 }
 0x417   : > { %19898 = vst [vmem:[#allocation15_spill] sm:$0xff] %v15992_v8  ;;  %5303 = vrot.lane.b32.xlu0 %v15936_v3, %s14009_s9  ;;  %5317 = vrot.lane.b32.xlu1 %v15992_v8, %s14009_s9 }
 0x41b   : > { %6123 = vrot.lane.b32.xlu0 %v15908_v46, %s14010_s10  ;;  %5319 = vrot.lane.b32.xlu1 %v15990_v60, %s14009_s9 }
 0x41f   : > { %6125 = vrot.lane.b32.xlu0 %v15906_v30, %s14010_s10  ;;  %6139 = vrot.lane.b32.xlu1 %v15946_v4, %s14010_s10 }
 0x423   : > { %6145 = vrot.lane.b32.xlu0 %v15958_v23, %s14010_s10  ;;  %6141 = vrot.lane.b32.xlu1 %v15944_v48, %s14010_s10 }
 0x427   : > { %6149 = vrot.lane.b32.xlu0 %v15974_v14, %s14010_s10  ;;  %6143 = vrot.lane.b32.xlu1 %v15960_v5, %s14010_s10 }
 0x42b   : > { %6153 = vrot.lane.b32.xlu0 %v15990_v60, %s14010_s10  ;;  %6127 = vrot.lane.b32.xlu1 %v15922_v56, %s14010_s10 }
 0x42f   : > { %6397 = vrot.lane.b32.xlu0 %v15946_v4, %s14011_s11  ;;  %6129 = vrot.lane.b32.xlu1 %v15920_v29, %s14010_s10 }
 0x433   : > { %6399 = vrot.lane.b32.xlu0 %v15944_v48, %s14011_s11  ;;  %6147 = vrot.lane.b32.xlu1 %v15976_v13, %s14010_s10 }
 0x437   : > { %6401 = vrot.lane.b32.xlu0 %v15960_v5, %s14011_s11  ;;  %6131 = vrot.lane.b32.xlu1 %v15930_v50, %s14010_s10 }
 0x43b   : > { %6403 = vrot.lane.b32.xlu0 %v15958_v23, %s14011_s11  ;;  %6133 = vrot.lane.b32.xlu1 %v15928_v12, %s14010_s10 }
 0x43f   : > { %6135 = vrot.lane.b32.xlu1 %v15938_v24, %s14010_s10 }
 0x443   : > { %6137 = vrot.lane.b32.xlu1 %v15936_v3, %s14010_s10 }
 0x447   : > { %6381 = vrot.lane.b32.xlu1 %v15908_v46, %s14011_s11 }
 0x44b   : > { %6383 = vrot.lane.b32.xlu1 %v15906_v30, %s14011_s11 }
 0x44f   : > { %6385 = vrot.lane.b32.xlu1 %v15922_v56, %s14011_s11 }
 0x450   : > { %v5292_v7 = vpop.permute.xlu1 %5291 }
 0x451   : > { %v5290_v42 = vpop.permute.xlu0 %5289  ;;  %v5374_v36 = vsel %vm5321_vm7, %v5292_v7, 0 }
 0x452   : > { %v5371_v26 = vsel %vm5321_vm7, %v5290_v42, 0 }
 0x453   : > { %6387 = vrot.lane.b32.xlu1 %v15920_v29, %s14011_s11 }
 0x457   : > { %6389 = vrot.lane.b32.xlu1 %v15930_v50, %s14011_s11 }
 0x45b   : > { %6151 = vrot.lane.b32.xlu1 %v15992_v8, %s14010_s10 }
 0x470   : > { %v5308_v0 = vpop.permute.xlu1 %5307 }
 0x471   : > { %v5306_v58 = vpop.permute.xlu0 %5305 }
 0x472   : > { %13103 = vmatprep.subr.msk.bf16.mxu1 %vm5321_vm7, %v5306_v58 }
 0x473   : > { %11548 = vmatpush3.bf16.xpose.msra.mxu1 %v5371_v26 }
 0x474   : > { %13104 = vmatprep.subr.msk.bf16.mxu1 %vm5321_vm7, %v5308_v0 }
 0x475   : > { %v5294_v20 = vpop.permute.xlu0 %5293 }
 0x476   : > { %v5377_v53 = vsel %vm5321_vm7, %v5294_v20, 0 }
 0x479   : > { %v5310_v35 = vpop.permute.xlu1 %5309  ;;  %v5296_v21 = vpop.permute.xlu0 %5295 }
 0x47a   : > { %v5380_v52 = vsel %vm5321_vm7, %v5296_v21, 0 }
 0x47b   : > { %11550 = vmatpush3.bf16.xpose.msra.mxu1 %v5374_v36 }
 0x47c   : > { %13105 = vmatprep.subr.msk.bf16.mxu1 %vm5321_vm7, %v5310_v35 }
 0x47d   : > { %v5312_v39 = vpop.permute.xlu1 %5311  ;;  %v5298_v43 = vpop.permute.xlu0 %5297 }
 0x47e   : > { %v5383_v16 = vsel %vm5321_vm7, %v5298_v43, 0 }
 0x481   : > { %v5314_v51 = vpop.permute.xlu1 %5313  ;;  %v5300_v33 = vpop.permute.xlu0 %5299 }
 0x482   : > { %v5386_v22 = vsel %vm5321_vm7, %v5300_v33, 0 }
 0x483   : > { %11552 = vmatpush3.bf16.xpose.msra.mxu1 %v5377_v53 }
 0x484   : > { %13106 = vmatprep.subr.msk.bf16.mxu1 %vm5321_vm7, %v5312_v39 }
 0x485   : > { %v5316_v63 = vpop.permute.xlu1 %5315  ;;  %v5302_v34 = vpop.permute.xlu0 %5301 }
 0x486   : > { %v5389_v27 = vsel %vm5321_vm7, %v5302_v34, 0 }
 0x489   : > { %v5318_v54 = vpop.permute.xlu1 %5317  ;;  %v5304_v59 = vpop.permute.xlu0 %5303 }
 0x48a   : > { %v5392_v2 = vsel %vm5321_vm7, %v5304_v59, 0 }
 0x48b   : > { %11554 = vmatpush3.bf16.xpose.msra.mxu1 %v5380_v52 }
 0x48c   : > { %13107 = vmatprep.subr.msk.bf16.mxu1 %vm5321_vm7, %v5314_v51 }
 0x48d   : > { %v5320_v57 = vpop.permute.xlu1 %5319  ;;  %v6124_v10 = vpop.permute.xlu0 %6123 }
 0x491   : > { %v6140_v55 = vpop.permute.xlu1 %6139  ;;  %v6126_v32 = vpop.permute.xlu0 %6125 }
 0x493   : > { %11556 = vmatpush3.bf16.xpose.msra.mxu1 %v5383_v16 }
 0x494   : > { %13108 = vmatprep.subr.msk.bf16.mxu1 %vm5321_vm7, %v5316_v63 }
 0x495   : > { %v6142_v45 = vpop.permute.xlu1 %6141  ;;  %v6146_v40 = vpop.permute.xlu0 %6145 }
 0x499   : > { %v6144_v17 = vpop.permute.xlu1 %6143  ;;  %v6150_v1 = vpop.permute.xlu0 %6149 }
 0x49b   : > { %11558 = vmatpush3.bf16.xpose.msra.mxu1 %v5386_v22 }
 0x49c   : > { %13109 = vmatprep.subr.msk.bf16.mxu1 %vm5321_vm7, %v5318_v54 }
 0x49d   : > { %v6128_v15 = vpop.permute.xlu1 %6127  ;;  %v6154_v44 = vpop.permute.xlu0 %6153 }
 0x4a1   : > { %v6130_v31 = vpop.permute.xlu1 %6129  ;;  %v6398_v28 = vpop.permute.xlu0 %6397 }
 0x4a3   : > { %11560 = vmatpush3.bf16.xpose.msra.mxu1 %v5389_v27 }
 0x4a4   : > { %13110 = vmatprep.subr.msk.bf16.mxu1 %vm5321_vm7, %v5320_v57 }
 0x4a5   : > { %v6148_v49 = vpop.permute.xlu1 %6147 }
 0x4a9   : > { %v6132_v19 = vpop.permute.xlu1 %6131 }
 0x4ab   : > { %11562 = vmatpush3.bf16.xpose.msra.mxu1 %v5392_v2 }
 0x4ac   : > { %11595 = vmatprep.subr.bf16.mxu1 %v6140_v55 }
 0x4ad   : > { %v6134_v61 = vpop.permute.xlu1 %6133 }
 0x4b1   : > { %v6136_v18 = vpop.permute.xlu1 %6135 }
 0x4b2   : > { %11564 = vmatmul.mubr.msk.bf16.vlgmr.msra.gmra.mrb[32].mxu1 %vm5321_vm7, %v15908_v46 }
 0x4b3   : > { %11565 = vmatprep.mubr.msk.bf16.mxu1 %vm5321_vm7, %v15906_v30  ;;  %11596 = vmatpush3.bf16.msra.mxu1 %v6124_v10 }
 0x4b4   : > { %11597 = vmatprep.subr.bf16.mxu1 %v6142_v45 }
 0x4b5   : > { %v6138_v25 = vpop.permute.xlu1 %6137 }
 0x4b7   : > { %11598 = vmatpush3.bf16.msra.mxu1 %v6126_v32 }
 0x4b8   : > { %11599 = vmatprep.subr.bf16.mxu1 %v6144_v17 }
 0x4b9   : > { %v16054_v38 = vpop.permute.xlu1 %6381 }
 0x4ba   : > { %19899 = vst [vmem:[#allocation16_spill] sm:$0xff] %v16054_v38  ;;  %11566 = vmatmul.mubr.msk.bf16.gmra.mrb[36].mxu1 %vm5321_vm7, %v15906_v30 }
 0x4bb   : > { %11567 = vmatprep.mubr.msk.bf16.mxu1 %vm5321_vm7, %v15922_v56  ;;  %11600 = vmatpush3.bf16.msra.mxu1 %v6128_v15 }
 0x4bc   : > { %11601 = vmatprep.subr.bf16.mxu1 %v6146_v40 }
 0x4bd   : > { %v16060_v62 = vpop.permute.xlu1 %6383 }
 0x4be   : > { %19900 = vst [vmem:[#allocation17_spill] sm:$0xff] %v16060_v62 }
 0x4bf   : > { %11602 = vmatpush3.bf16.msra.mxu1 %v6130_v31 }
 0x4c0   : > { %11603 = vmatprep.subr.bf16.mxu1 %v6148_v49 }
 0x4c1   : > { %v16062_v37 = vpop.permute.xlu1 %6385 }
 0x4c2   : > { %19901 = vst [vmem:[#allocation18_spill] sm:$0xff] %v16062_v37  ;;  %11568 = vmatmul.mubr.msk.bf16.gmra.mrb[40].mxu1 %vm5321_vm7, %v15922_v56 }
 0x4c3   : > { %11569 = vmatprep.mubr.msk.bf16.mxu1 %vm5321_vm7, %v15920_v29  ;;  %11604 = vmatpush3.bf16.msra.mxu1 %v6132_v19 }
 0x4c4   : > { %11605 = vmatprep.subr.bf16.mxu1 %v6150_v1 }
 0x4c5   : > { %v16068_v11 = vpop.permute.xlu1 %6387 }
 0x4c6   : > { %19902 = vst [vmem:[#allocation19_spill] sm:$0xff] %v16068_v11 }
 0x4c7   : > { %11606 = vmatpush3.bf16.msra.mxu1 %v6134_v61 }
 0x4c9   : > { %v16070_v6 = vpop.permute.xlu1 %6389 }
 0x4ca   : > { %19903 = vst [vmem:[#allocation20_spill] sm:$0xff] %v16070_v6  ;;  %11570 = vmatmul.mubr.msk.bf16.gmra.mrb[44].mxu1 %vm5321_vm7, %v15920_v29 }
 0x4cb   : > { %11571 = vmatprep.mubr.msk.bf16.mxu1 %vm5321_vm7, %v15930_v50 }
 0x4cd   : > { %v6152_v47 = vpop.permute.xlu1 %6151 }
 0x4ce   : > { %11607 = vmatprep.subr.bf16.mxu1 %v6152_v47 }
 0x4cf   : > { %11608 = vmatpush3.bf16.msra.mxu1 %v6136_v18 }
 0x4d0   : > { %11609 = vmatprep.subr.bf16.mxu1 %v6154_v44 }
 0x4d2   : > { %11572 = vmatmul.mubr.msk.bf16.gmra.mrb[48].mxu1 %vm5321_vm7, %v15930_v50 }
 0x4d3   : > { %11573 = vmatprep.mubr.msk.bf16.mxu1 %vm5321_vm7, %v15928_v12  ;;  %11610 = vmatpush3.bf16.msra.mxu1 %v6138_v25 }
 0x4d4   : > { %13111 = vmatprep.subr.msk.bf16.mxu1 %vm5321_vm7, %v6398_v28 }
 0x4da   : > { %11574 = vmatmul.mubr.msk.bf16.gmra.mrb[52].mxu1 %vm5321_vm7, %v15928_v12 }
 0x4db   : > { %11575 = vmatprep.mubr.msk.bf16.mxu1 %vm5321_vm7, %v15938_v24 }
 0x4e2   : > { %11576 = vmatmul.mubr.msk.bf16.gmra.mrb[56].mxu1 %vm5321_vm7, %v15938_v24 }
 0x4e3   : > { %11577 = vmatprep.mubr.msk.bf16.mxu1 %vm5321_vm7, %v15936_v3 }
 0x4ea   : > { %11578 = vmatmul.mubr.msk.bf16.gmra.mrb[60].mxu1 %vm5321_vm7, %v15936_v3 }
 0x4eb   : > { %11579 = vmatprep.mubr.msk.bf16.mxu1 %vm5321_vm7, %v15946_v4 }
 0x4f2   : > { %11580 = vmatmul.mubr.msk.bf16.gmra.mrb[64].mxu1 %vm5321_vm7, %v15946_v4 }
 0x4f3   : > { %11581 = vmatprep.mubr.msk.bf16.mxu1 %vm5321_vm7, %v15944_v48 }
 0x4fa   : > { %11582 = vmatmul.mubr.msk.bf16.gmra.mrb[68].mxu1 %vm5321_vm7, %v15944_v48 }
 0x4fb   : > { %11583 = vmatprep.mubr.msk.bf16.mxu1 %vm5321_vm7, %v15960_v5 }
 0x502   : > { %11584 = vmatmul.mubr.msk.bf16.gmra.mrb[72].mxu1 %vm5321_vm7, %v15960_v5 }
 0x503   : > { %11585 = vmatprep.mubr.msk.bf16.mxu1 %vm5321_vm7, %v15958_v23 }
 0x50a   : > { %11586 = vmatmul.mubr.msk.bf16.gmra.mrb[76].mxu1 %vm5321_vm7, %v15958_v23 }
 0x50b   : > { %11587 = vmatprep.mubr.msk.bf16.mxu1 %vm5321_vm7, %v15976_v13 }
 0x512   : > { %11588 = vmatmul.mubr.msk.bf16.gmra.mrb[80].mxu1 %vm5321_vm7, %v15976_v13 }
 0x513   : > { %11589 = vmatprep.mubr.msk.bf16.mxu1 %vm5321_vm7, %v15974_v14 }
 0x51a   : > { %11590 = vmatmul.mubr.msk.bf16.gmra.mrb[84].mxu1 %vm5321_vm7, %v15974_v14 }
 0x51b   : > { %11591 = vmatprep.mubr.msk.bf16.mxu1 %vm5321_vm7, %v15992_v8 }
 0x522   : > { %11592 = vmatmul.mubr.msk.bf16.gmra.mrb[88].mxu1 %vm5321_vm7, %v15992_v8 }
 0x523   : > { %11593 = vmatprep.mubr.msk.bf16.mxu1 %vm5321_vm7, %v15990_v60 }
 0x52a   : > { %11594 = vmatmul.mubr.msk.bf16.gmra.mrb[92].mxu1 %vm5321_vm7, %v15990_v60 }
 0x585   : > { %v16123_v9 = vpop.f32.mrb[32].mxu1 }
 0x586   : > { %v16125_v41 = vpop.f32.mrb[33].mxu1 }
 0x587   : > { %v16127_v42 = vpop.f32.mrb[34].mxu1  ;;  %v5611_v7 = vmax.f32 %v16123_v9, %v16125_v41 }
 0x588   : > { %v16131_v58 = vpop.f32.mrb[35].mxu1 }
 0x589   : > { %5612 = vmax.xlane.f32.xlu0 %v5611_v7  ;;  %v5614_v26 = vmax.f32 %v16127_v42, %v16131_v58 }
 0x58b   : > { %5615 = vmax.xlane.f32.xlu1 %v5614_v26 }
 0x58d   : > { %v16135_v0 = vpop.f32.mrb[36].mxu1 }
 0x58e   : > { %v16137_v35 = vpop.f32.mrb[37].mxu1 }
 0x58f   : > { %v16139_v36 = vpop.f32.mrb[38].mxu1  ;;  %v5617_v39 = vmax.f32 %v16135_v0, %v16137_v35 }
 0x590   : > { %v16143_v20 = vpop.f32.mrb[39].mxu1 }
 0x591   : > { %5618 = vmax.xlane.f32.xlu0 %v5617_v39  ;;  %v5620_v51 = vmax.f32 %v16139_v36, %v16143_v20 }
 0x595   : > { %5621 = vmax.xlane.f32.xlu0 %v5620_v51  ;;  %v16147_v53 = vpop.f32.mrb[40].mxu1 }
 0x596   : > { %v16149_v63 = vpop.f32.mrb[41].mxu1 }
 0x597   : > { %v16151_v21 = vpop.f32.mrb[42].mxu1  ;;  %v5623_v54 = vmax.f32 %v16147_v53, %v16149_v63 }
 0x598   : > { %v16155_v52 = vpop.f32.mrb[43].mxu1 }
 0x599   : > { %5624 = vmax.xlane.f32.xlu1 %v5623_v54  ;;  %v5626_v57 = vmax.f32 %v16151_v21, %v16155_v52 }
 0x59b   : > { %5627 = vmax.xlane.f32.xlu0 %v5626_v57 }
 0x59d   : > { %v16159_v43 = vpop.f32.mrb[44].mxu1 }
 0x59e   : > { %v16161_v55 = vpop.f32.mrb[45].mxu1 }
 0x59f   : > { %v16163_v16 = vpop.f32.mrb[46].mxu1  ;;  %v5629_v45 = vmax.f32 %v16159_v43, %v16161_v55 }
 0x5a0   : > { %v16167_v33 = vpop.f32.mrb[47].mxu1 }
 0x5a1   : > { %5630 = vmax.xlane.f32.xlu1 %v5629_v45  ;;  %v5632_v17 = vmax.f32 %v16163_v16, %v16167_v33 }
 0x5a3   : > { %5633 = vmax.xlane.f32.xlu0 %v5632_v17 }
 0x5a5   : > { %v16171_v22 = vpop.f32.mrb[48].mxu1 }
 0x5a6   : > { %v16173_v15 = vpop.f32.mrb[49].mxu1 }
 0x5a7   : > { %v16175_v34 = vpop.f32.mrb[50].mxu1  ;;  %v5635_v31 = vmax.f32 %v16171_v22, %v16173_v15 }
 0x5a8   : > { %v16179_v27 = vpop.f32.mrb[51].mxu1 }
 0x5a9   : > { %5636 = vmax.xlane.f32.xlu1 %v5635_v31  ;;  %v5638_v49 = vmax.f32 %v16175_v34, %v16179_v27 }
 0x5ab   : > { %5639 = vmax.xlane.f32.xlu0 %v5638_v49 }
 0x5ad   : > { %v16183_v59 = vpop.f32.mrb[52].mxu1 }
 0x5ae   : > { %v16185_v19 = vpop.f32.mrb[53].mxu1 }
 0x5af   : > { %v16187_v2 = vpop.f32.mrb[54].mxu1  ;;  %v5641_v61 = vmax.f32 %v16183_v59, %v16185_v19 }
 0x5b0   : > { %v16191_v10 = vpop.f32.mrb[55].mxu1 }
 0x5b1   : > { %5642 = vmax.xlane.f32.xlu1 %v5641_v61  ;;  %v5644_v18 = vmax.f32 %v16187_v2, %v16191_v10 }
 0x5b3   : > { %5645 = vmax.xlane.f32.xlu0 %v5644_v18 }
 0x5b5   : > { %v16195_v32 = vpop.f32.mrb[56].mxu1 }
 0x5b6   : > { %v16197_v25 = vpop.f32.mrb[57].mxu1 }
 0x5b7   : > { %v16199_v40 = vpop.f32.mrb[58].mxu1  ;;  %v5647_v1 = vmax.f32 %v16195_v32, %v16197_v25 }
 0x5b8   : > { %v16203_v44 = vpop.f32.mrb[59].mxu1 }
 0x5b9   : > { %5648 = vmax.xlane.f32.xlu1 %v5647_v1  ;;  %v5650_v47 = vmax.f32 %v16199_v40, %v16203_v44 }
 0x5bb   : > { %5651 = vmax.xlane.f32.xlu0 %v5650_v47 }
 0x5bd   : > { %v16207_v28 = vpop.f32.mrb[60].mxu1 }
 0x5be   : > { %v16209_v7 = vpop.f32.mrb[61].mxu1 }
 0x5bf   : > { %v16211_v26 = vpop.f32.mrb[62].mxu1  ;;  %v5653_v39 = vmax.f32 %v16207_v28, %v16209_v7 }
 0x5c0   : > { %v16215_v51 = vpop.f32.mrb[63].mxu1 }
 0x5c1   : > { %5654 = vmax.xlane.f32.xlu1 %v5653_v39  ;;  %v5656_v54 = vmax.f32 %v16211_v26, %v16215_v51 }
 0x5c3   : > { %5657 = vmax.xlane.f32.xlu0 %v5656_v54 }
 0x5c5   : > { %v16219_v57 = vpop.f32.mrb[64].mxu1 }
 0x5c6   : > { %v16221_v45 = vpop.f32.mrb[65].mxu1 }
 0x5c7   : > { %v16223_v17 = vpop.f32.mrb[66].mxu1  ;;  %v5659_v31 = vmax.f32 %v16219_v57, %v16221_v45 }
 0x5c8   : > { %v16227_v49 = vpop.f32.mrb[67].mxu1 }
 0x5c9   : > { %5660 = vmax.xlane.f32.xlu1 %v5659_v31  ;;  %v5662_v61 = vmax.f32 %v16223_v17, %v16227_v49 }
 0x5cb   : > { %5663 = vmax.xlane.f32.xlu0 %v5662_v61 }
 0x5cd   : > { %v16231_v18 = vpop.f32.mrb[68].mxu1 }
 0x5ce   : > { %v16233_v1 = vpop.f32.mrb[69].mxu1 }
 0x5cf   : > { %v16235_v47 = vpop.f32.mrb[70].mxu1  ;;  %v5665_v39 = vmax.f32 %v16231_v18, %v16233_v1 }
 0x5d0   : > { %v16239_v54 = vpop.f32.mrb[71].mxu1 }
 0x5d1   : > { %5666 = vmax.xlane.f32.xlu1 %v5665_v39  ;;  %v5668_v5 = vmax.f32 %v16235_v47, %v16239_v54 }
 0x5d3   : > { %5669 = vmax.xlane.f32.xlu0 %v5668_v5 }
 0x5d5   : > { %v16243_v31 = vpop.f32.mrb[72].mxu1 }
 0x5d6   : > { %v16245_v4 = vpop.f32.mrb[73].mxu1 }
 0x5d7   : > { %v16247_v61 = vpop.f32.mrb[74].mxu1  ;;  %v5671_v23 = vmax.f32 %v16243_v31, %v16245_v4 }
 0x5d8   : > { %v16251_v50 = vpop.f32.mrb[75].mxu1 }
 0x5d9   : > { %5672 = vmax.xlane.f32.xlu1 %v5671_v23  ;;  %v5674_v48 = vmax.f32 %v16247_v61, %v16251_v50 }
 0x5db   : > { %5675 = vmax.xlane.f32.xlu0 %v5674_v48 }
 0x5dd   : > { %v16255_v39 = vpop.f32.mrb[76].mxu1 }
 0x5de   : > { %v16257_v56 = vpop.f32.mrb[77].mxu1 }
 0x5df   : > { %v16259_v5 = vpop.f32.mrb[78].mxu1  ;;  %v5677_v46 = vmax.f32 %v16255_v39, %v16257_v56 }
 0x5e0   : > { %19904 = vst [vmem:[#allocation21_spill] sm:$0xff] %v16259_v5  ;;  %v16263_v6 = vpop.f32.mrb[79].mxu1 }
 0x5e1   : > { %19905 = vst [vmem:[#allocation22_spill] sm:$0xff] %v16263_v6  ;;  %5678 = vmax.xlane.f32.xlu0 %v5677_v46  ;;  %v5680_v3 = vmax.f32 %v16259_v5, %v16263_v6 }
 0x5e5   : > { %5681 = vmax.xlane.f32.xlu0 %v5680_v3  ;;  %v16267_v23 = vpop.f32.mrb[80].mxu1 }
 0x5e6   : > { %v16269_v29 = vpop.f32.mrb[81].mxu1 }
 0x5e7   : > { %19906 = vst [vmem:[#allocation23_spill] sm:$0xff] %v16269_v29  ;;  %v16271_v48 = vpop.f32.mrb[82].mxu1  ;;  %v5683_v30 = vmax.f32 %v16267_v23, %v16269_v29 }
 0x5e8   : > { %19907 = vst [vmem:[#allocation24_spill] sm:$0xff] %v16271_v48  ;;  %v16275_v11 = vpop.f32.mrb[83].mxu1 }
 0x5e9   : > { %19908 = vst [vmem:[#allocation25_spill] sm:$0xff] %v16275_v11  ;;  %5684 = vmax.xlane.f32.xlu1 %v5683_v30  ;;  %v5686_v60 = vmax.f32 %v16271_v48, %v16275_v11 }
 0x5eb   : > { %5687 = vmax.xlane.f32.xlu0 %v5686_v60 }
 0x5ed   : > { %v16279_v46 = vpop.f32.mrb[84].mxu1 }
 0x5ee   : > { %19909 = vst [vmem:[#allocation26_spill] sm:$0xff] %v16279_v46  ;;  %v16281_v37 = vpop.f32.mrb[85].mxu1 }
 0x5ef   : > { %19910 = vst [vmem:[#allocation27_spill] sm:$0xff] %v16281_v37  ;;  %v16283_v3 = vpop.f32.mrb[86].mxu1  ;;  %v5689_v62 = vmax.f32 %v16279_v46, %v16281_v37 }
 0x5f0   : > { %19911 = vst [vmem:[#allocation28_spill] sm:$0xff] %v16283_v3  ;;  %v16287_v38 = vpop.f32.mrb[87].mxu1 }
 0x5f1   : > { %19912 = vst [vmem:[#allocation29_spill] sm:$0xff] %v16287_v38  ;;  %5690 = vmax.xlane.f32.xlu1 %v5689_v62  ;;  %v5692_v24 = vmax.f32 %v16283_v3, %v16287_v38 }
 0x5f3   : > { %5693 = vmax.xlane.f32.xlu0 %v5692_v24 }
 0x5f5   : > { %v16291_v30 = vpop.f32.mrb[88].mxu1 }
 0x5f6   : > { %19913 = vst [vmem:[#allocation30_spill] sm:$0xff] %v16291_v30  ;;  %v16293_v8 = vpop.f32.mrb[89].mxu1 }
 0x5f7   : > { %19914 = vst [vmem:[#allocation31_spill] sm:$0xff] %v16293_v8  ;;  %v16295_v60 = vpop.f32.mrb[90].mxu1  ;;  %v5695_v11 = vmax.f32 %v16291_v30, %v16293_v8 }
 0x5f8   : > { %19915 = vst [vmem:[#allocation32_spill] sm:$0xff] %v16295_v60  ;;  %v16299_v48 = vpop.f32.mrb[91].mxu1 }
 0x5f9   : > { %19916 = vst [vmem:[#allocation33_spill] sm:$0xff] %v16299_v48  ;;  %5696 = vmax.xlane.f32.xlu1 %v5695_v11  ;;  %v5698_v37 = vmax.f32 %v16295_v60, %v16299_v48  ;;  %v16315_v11 = vpop.permute.xlu0 %6399 }
 0x5fa   : > { %19920 = vst [vmem:[#allocation37_spill] sm:$0xff] %v16315_v11 }
 0x5fb   : > { %5699 = vmax.xlane.f32.xlu0 %v5698_v37 }
 0x5fd   : > { %v16303_v62 = vpop.f32.mrb[92].mxu1  ;;  %v16317_v48 = vpop.permute.xlu0 %6401 }
 0x5fe   : > { %19917 = vst [vmem:[#allocation34_spill] sm:$0xff] %v16303_v62  ;;  %v16305_v38 = vpop.f32.mrb[93].mxu1  ;;  %19921 = vst [vmem:[#allocation38_spill] sm:$0xff] %v16317_v48 }
 0x5ff   : > { %19918 = vst [vmem:[#allocation35_spill] sm:$0xff] %v16305_v38  ;;  %v16307_v24 = vpop.f32.mrb[94].mxu1  ;;  %v5701_v3 = vmax.f32 %v16303_v62, %v16305_v38 }
 0x600   : > { %v16311_v46 = vpop.f32.mrb[95].mxu1 }
 0x601   : > { %19919 = vst [vmem:[#allocation36_spill] sm:$0xff] %v16311_v46  ;;  %5702 = vmax.xlane.f32.xlu1 %v5701_v3  ;;  %v5704_v8 = vmax.f32 %v16307_v24, %v16311_v46  ;;  %v16319_v37 = vpop.permute.xlu0 %6403 }
 0x602   : > { %19922 = vst [vmem:[#allocation39_spill] sm:$0xff] %v16319_v37 }
 0x603   : > { %5705 = vmax.xlane.f32.xlu0 %v5704_v8 }
 0x616   : > { %v5613_v60 = vpop.xlane.xlu0 %5612 }
 0x617   : > { %v5707_v30 = vsub.f32 %v16123_v9, %v5613_v60  ;;  %v5708_v6 = vsub.f32 %v16125_v41, %v5613_v60 }
 0x618   : > { %v5616_v5 = vpop.xlane.xlu1 %5615 }
 0x619   : > { %v5771_v38 = vmul.f32 1.442695, %v5707_v30  ;;  %v5773_v62 = vmul.f32 1.442695, %v5708_v6  ;;  %v5709_v3 = vsub.f32 %v16127_v42, %v5616_v5  ;;  %v5710_v29 = vsub.f32 %v16131_v58, %v5616_v5 }
 0x61b   : > { %13227 = vpow2.f32 %v5771_v38  ;;  %v5775_v8 = vmul.f32 1.442695, %v5709_v3  ;;  %v5777_v46 = vmul.f32 1.442695, %v5710_v29 }
 0x61c   : > { %13229 = vpow2.f32 %v5773_v62 }
 0x61d   : > { %13231 = vpow2.f32 %v5775_v8 }
 0x61e   : > { %13233 = vpow2.f32 %v5777_v46  ;;  %v5619_v48 = vpop.xlane.xlu0 %5618 }
 0x61f   : > { %v5711_v37 = vsub.f32 %v16135_v0, %v5619_v48  ;;  %v5712_v9 = vsub.f32 %v16137_v35, %v5619_v48 }
 0x621   : > { %v5779_v11 = vmul.f32 1.442695, %v5711_v37  ;;  %v5781_v41 = vmul.f32 1.442695, %v5712_v9 }
 0x622   : > { %v5622_v60 = vpop.xlane.xlu0 %5621 }
 0x623   : > { %13235 = vpow2.f32 %v5779_v11  ;;  %v5713_v6 = vsub.f32 %v16139_v36, %v5622_v60  ;;  %v5714_v42 = vsub.f32 %v16143_v20, %v5622_v60 }
 0x624   : > { %13237 = vpow2.f32 %v5781_v41 }
 0x625   : > { %v16329_v38 = vpop.eup %13227  ;;  %v5783_v29 = vmul.f32 1.442695, %v5713_v6  ;;  %v5785_v58 = vmul.f32 1.442695, %v5714_v42 }
 0x626   : > { %v16331_v5 = vpop.eup %13229  ;;  %v5625_v46 = vpop.xlane.xlu1 %5624 }
 0x627   : > { %v16333_v30 = vpop.eup %13231  ;;  %13239 = vpow2.f32 %v5783_v29  ;;  %v5715_v0 = vsub.f32 %v16147_v53, %v5625_v46  ;;  %v5716_v35 = vsub.f32 %v16149_v63, %v5625_v46  ;;  %v5899_v36 = vadd.f32 %v16331_v5, %v16329_v38 }
 0x628   : > { %v16339_v48 = vpop.eup %13233  ;;  %13241 = vpow2.f32 %v5785_v58  ;;  %v5628_v20 = vpop.xlane.xlu0 %5627 }
 0x629   : > { %v5787_v62 = vmul.f32 1.442695, %v5715_v0  ;;  %v5789_v11 = vmul.f32 1.442695, %v5716_v35  ;;  %v5717_v37 = vsub.f32 %v16151_v21, %v5628_v20  ;;  %v5718_v3 = vsub.f32 %v16155_v52, %v5628_v20  ;;  %5900 = vadd.xlane.f32.xlu1 %v5899_v36 }
 0x62a   : > { %v5902_v8 = vadd.f32 %v16339_v48, %v16333_v30 }
 0x62b   : > { %13243 = vpow2.f32 %v5787_v62  ;;  %v5791_v53 = vmul.f32 1.442695, %v5717_v37  ;;  %v5793_v63 = vmul.f32 1.442695, %v5718_v3 }
 0x62c   : > { %13245 = vpow2.f32 %v5789_v11  ;;  %5903 = vadd.xlane.f32.xlu0 %v5902_v8 }
 0x62d   : > { %v16345_v9 = vpop.eup %13235  ;;  %13247 = vpow2.f32 %v5791_v53 }
 0x62e   : > { %v16347_v41 = vpop.eup %13237  ;;  %13249 = vpow2.f32 %v5793_v63  ;;  %v5631_v60 = vpop.xlane.xlu1 %5630 }
 0x62f   : > { %v5719_v21 = vsub.f32 %v16159_v43, %v5631_v60  ;;  %v5720_v52 = vsub.f32 %v16161_v55, %v5631_v60  ;;  %v5905_v6 = vadd.f32 %v16347_v41, %v16345_v9 }
 0x630   : > { %v5634_v42 = vpop.xlane.xlu0 %5633 }
 0x631   : > { %v16353_v29 = vpop.eup %13239  ;;  %v5795_v58 = vmul.f32 1.442695, %v5719_v21  ;;  %v5797_v46 = vmul.f32 1.442695, %v5720_v52  ;;  %v5721_v0 = vsub.f32 %v16163_v16, %v5634_v42  ;;  %v5722_v35 = vsub.f32 %v16167_v33, %v5634_v42  ;;  %5906 = vadd.xlane.f32.xlu0 %v5905_v6 }
 0x632   : > { %v16357_v36 = vpop.eup %13241 }
 0x633   : > { %13251 = vpow2.f32 %v5795_v58  ;;  %v5799_v20 = vmul.f32 1.442695, %v5721_v0  ;;  %v5801_v43 = vmul.f32 1.442695, %v5722_v35  ;;  %v5908_v55 = vadd.f32 %v16357_v36, %v16353_v29 }
 0x634   : > { %13253 = vpow2.f32 %v5797_v46 }
 0x635   : > { %v16361_v62 = vpop.eup %13243  ;;  %13255 = vpow2.f32 %v5799_v20  ;;  %5909 = vadd.xlane.f32.xlu0 %v5908_v55 }
 0x636   : > { %v16363_v11 = vpop.eup %13245  ;;  %13257 = vpow2.f32 %v5801_v43  ;;  %v5637_v6 = vpop.xlane.xlu1 %5636 }
 0x637   : > { %v16365_v16 = vpop.eup %13247  ;;  %v5911_v33 = vadd.f32 %v16363_v11, %v16361_v62  ;;  %v5723_v42 = vsub.f32 %v16171_v22, %v5637_v6  ;;  %v5724_v58 = vsub.f32 %v16173_v15, %v5637_v6 }
 0x638   : > { %v16369_v37 = vpop.eup %13249  ;;  %v5640_v46 = vpop.xlane.xlu0 %5639 }
 0x639   : > { %5912 = vadd.xlane.f32.xlu0 %v5911_v33  ;;  %v5914_v3 = vadd.f32 %v16369_v37, %v16365_v16  ;;  %v5803_v0 = vmul.f32 1.442695, %v5723_v42  ;;  %v5725_v35 = vsub.f32 %v16175_v34, %v5640_v46  ;;  %v5805_v20 = vmul.f32 1.442695, %v5724_v58 }
 0x63a   : > { %6391 = vrot.lane.b32.xlu1 %v15928_v12, %s14011_s11  ;;  %v5726_v43 = vsub.f32 %v16179_v27, %v5640_v46 }
 0x63b   : > { %13259 = vpow2.f32 %v5803_v0  ;;  %v5807_v33 = vmul.f32 1.442695, %v5725_v35 }
 0x63c   : > { %13261 = vpow2.f32 %v5805_v20 }
 0x63d   : > { %v16375_v8 = vpop.eup %13251  ;;  %5915 = vadd.xlane.f32.xlu0 %v5914_v3  ;;  %13263 = vpow2.f32 %v5807_v33 }
 0x63e   : > { %v16377_v53 = vpop.eup %13253  ;;  %6407 = vrot.lane.b32.xlu1 %v15974_v14, %s14011_s11  ;;  %v5643_v55 = vpop.xlane.xlu1 %5642 }
 0x63f   : > { %v16381_v63 = vpop.eup %13255  ;;  %v5917_v60 = vadd.f32 %v16377_v53, %v16375_v8  ;;  %v5727_v3 = vsub.f32 %v16183_v59, %v5643_v55 }
 0x640   : > { %v16385_v21 = vpop.eup %13257  ;;  %v5646_v15 = vpop.xlane.xlu0 %5645 }
 0x641   : > { %5918 = vadd.xlane.f32.xlu0 %v5917_v60  ;;  %v5920_v52 = vadd.f32 %v16385_v21, %v16381_v63  ;;  %v5809_v60 = vmul.f32 1.442695, %v5726_v43  ;;  %v5811_v22 = vmul.f32 1.442695, %v5727_v3 }
 0x643   : > { %13265 = vpow2.f32 %v5809_v60 }
 0x644   : > { %13267 = vpow2.f32 %v5811_v22  ;;  %v5730_v22 = vsub.f32 %v16191_v10, %v5646_v15 }
 0x645   : > { %5921 = vadd.xlane.f32.xlu0 %v5920_v52  ;;  %v5728_v52 = vsub.f32 %v16185_v19, %v5643_v55  ;;  %v16401_v20 = vpop.eup %13259 }
 0x646   : > { %v5649_v14 = vpop.xlane.xlu1 %5648 }
 0x647   : > { %v5731_v6 = vsub.f32 %v16195_v32, %v5649_v14  ;;  %v5813_v34 = vmul.f32 1.442695, %v5728_v52  ;;  %v5732_v42 = vsub.f32 %v16197_v25, %v5649_v14  ;;  %v16403_v32 = vpop.eup %13261 }
 0x648   : > { %v5652_v46 = vpop.xlane.xlu0 %5651  ;;  %v16407_v3 = vpop.eup %13263  ;;  %v5923_v60 = vadd.f32 %v16403_v32, %v16401_v20 }
 0x649   : > { %v5819_v58 = vmul.f32 1.442695, %v5731_v6  ;;  %13269 = vpow2.f32 %v5813_v34  ;;  %v5821_v0 = vmul.f32 1.442695, %v5732_v42 }
 0x64b   : > { %13271 = vpow2.f32 %v5819_v58  ;;  %v5733_v58 = vsub.f32 %v16199_v40, %v5652_v46 }
 0x64c   : > { %13273 = vpow2.f32 %v5821_v0  ;;  %v5734_v0 = vsub.f32 %v16203_v44, %v5652_v46 }
 0x64d   : > { %v16412_v52 = vpop.eup %13265 }
 0x64e   : > { %v5655_v27 = vpop.xlane.xlu1 %5654  ;;  %v5825_v44 = vmul.f32 1.442695, %v5734_v0 }
 0x64f   : > { %v5735_v59 = vsub.f32 %v16207_v28, %v5655_v27  ;;  %v5736_v19 = vsub.f32 %v16209_v7, %v5655_v27  ;;  %v5729_v7 = vsub.f32 %v16187_v2, %v5646_v15  ;;  %v16419_v27 = vpop.eup %13267  ;;  %v5817_v15 = vmul.f32 1.442695, %v5730_v22 }
 0x650   : > { %v5658_v25 = vpop.xlane.xlu0 %5657 }
 0x651   : > { %v5827_v14 = vmul.f32 1.442695, %v5735_v59  ;;  %v5829_v55 = vmul.f32 1.442695, %v5736_v19  ;;  %v5815_v2 = vmul.f32 1.442695, %v5729_v7  ;;  %v5926_v59 = vadd.f32 %v16412_v52, %v16407_v3 }
 0x652   : > { %v5737_v46 = vsub.f32 %v16211_v26, %v5658_v25  ;;  %v5738_v7 = vsub.f32 %v16215_v51, %v5658_v25 }
 0x653   : > { %13275 = vpow2.f32 %v5827_v14  ;;  %v16424_v10 = vpop.eup %13269 }
 0x654   : > { %13277 = vpow2.f32 %v5829_v55  ;;  %v5823_v55 = vmul.f32 1.442695, %v5733_v58 }
 0x655   : > { %v16429_v40 = vpop.eup %13271 }
 0x656   : > { %v5661_v35 = vpop.xlane.xlu1 %5660 }
 0x657   : > { %v5739_v43 = vsub.f32 %v16219_v57, %v5661_v35  ;;  %v5740_v28 = vsub.f32 %v16221_v45, %v5661_v35 }
 0x658   : > { %v16415_v34 = vpop.xlane.xlu0 %5663 }
 0x659   : > { %v5835_v6 = vmul.f32 1.442695, %v5739_v43  ;;  %v5837_v45 = vmul.f32 1.442695, %v5740_v28  ;;  %v5929_v28 = vadd.f32 %v16424_v10, %v16419_v27  ;;  %v5741_v26 = vsub.f32 %v16223_v17, %v16415_v34 }
 0x65a   : > { %v5742_v25 = vsub.f32 %v16227_v49, %v16415_v34 }
 0x65b   : > { %6405 = vrot.lane.b32.xlu0 %v15976_v13, %s14011_s11  ;;  %13279 = vpow2.f32 %v5835_v6  ;;  %v5839_v49 = vmul.f32 1.442695, %v5741_v26 }
 0x65c   : > { %13281 = vpow2.f32 %v5837_v45  ;;  %v5831_v45 = vmul.f32 1.442695, %v5737_v46  ;;  %v5841_v34 = vmul.f32 1.442695, %v5742_v25 }
 0x65d   : > { %13283 = vpow2.f32 %v5815_v2 }
 0x65e   : > { %v5667_v33 = vpop.xlane.xlu1 %5666  ;;  %13285 = vpow2.f32 %v5817_v15 }
 0x65f   : > { %v5743_v57 = vsub.f32 %v16231_v18, %v5667_v33  ;;  %v5744_v42 = vsub.f32 %v16233_v1, %v5667_v33  ;;  %v16433_v33 = vpop.eup %13273 }
 0x660   : > { %v5670_v19 = vpop.xlane.xlu0 %5669  ;;  %v16437_v22 = vpop.eup %13275  ;;  %v5935_v6 = vadd.f32 %v16433_v33, %v16429_v40 }
 0x661   : > { %v5843_v18 = vmul.f32 1.442695, %v5743_v57  ;;  %v5845_v1 = vmul.f32 1.442695, %v5744_v42  ;;  %v16441_v57 = vpop.eup %13277  ;;  %v5833_v42 = vmul.f32 1.442695, %v5738_v7  ;;  %v5745_v15 = vsub.f32 %v16235_v47, %v5670_v19 }
 0x662   : > { %5924 = vadd.xlane.f32.xlu1 %v5923_v60  ;;  %v5941_v0 = vadd.f32 %v16441_v57, %v16437_v22 }
 0x663   : > { %13287 = vpow2.f32 %v5843_v18 }
 0x664   : > { %13289 = vpow2.f32 %v5845_v1 }
 0x665   : > { %13291 = vpow2.f32 %v5823_v55 }
 0x666   : > { %5927 = vadd.xlane.f32.xlu1 %v5926_v59  ;;  %v5673_v35 = vpop.xlane.xlu1 %5672  ;;  %13293 = vpow2.f32 %v5825_v44  ;;  %v16449_v59 = vpop.eup %13279 }
 0x667   : > { %v5747_v14 = vsub.f32 %v16243_v31, %v5673_v35  ;;  %v5748_v43 = vsub.f32 %v16245_v4, %v5673_v35  ;;  %v16454_v18 = vpop.eup %13281 }
 0x668   : > { %v5676_v31 = vpop.xlane.xlu0 %5675  ;;  %v16456_v1 = vpop.eup %13283 }
 0x669   : > { %v5851_v60 = vmul.f32 1.442695, %v5747_v14  ;;  %v5853_v4 = vmul.f32 1.442695, %v5748_v43  ;;  %v5847_v14 = vmul.f32 1.442695, %v5745_v15  ;;  %v5947_v43 = vadd.f32 %v16454_v18, %v16449_v59 }
 0x66a   : > { %5930 = vadd.xlane.f32.xlu1 %v5929_v28  ;;  %v5749_v28 = vsub.f32 %v16247_v61, %v5676_v31  ;;  %v19926_v15 = vld [vmem:[#allocation22_spill] sm:$0xff] }
 0x66b   : > { %13295 = vpow2.f32 %v5851_v60 }
 0x66c   : > { %13297 = vpow2.f32 %v5853_v4 }
 0x66d   : > { %13299 = vpow2.f32 %v5831_v45 }
 0x66e   : > { %5936 = vadd.xlane.f32.xlu1 %v5935_v6  ;;  %v5679_v51 = vpop.xlane.xlu0 %5678  ;;  %13301 = vpow2.f32 %v5833_v42  ;;  %v19923_v6 = vld [vmem:[#allocation23_spill] sm:$0xff] }
 0x66f   : > { %v5751_v2 = vsub.f32 %v16255_v39, %v5679_v51  ;;  %v5752_v58 = vsub.f32 %v16257_v56, %v5679_v51  ;;  %v5746_v39 = vsub.f32 %v16239_v54, %v5670_v19  ;;  %v16459_v56 = vpop.eup %13285  ;;  %v5750_v19 = vsub.f32 %v16251_v50, %v5676_v31  ;;  %v19925_v51 = vld [vmem:[#allocation21_spill] sm:$0xff] }
 0x670   : > { %v16461_v47 = vpop.eup %13287  ;;  %v5932_v61 = vadd.f32 %v16459_v56, %v16456_v1  ;;  %v5855_v31 = vmul.f32 1.442695, %v5749_v28 }
 0x671   : > { %v5859_v17 = vmul.f32 1.442695, %v5751_v2  ;;  %v5861_v35 = vmul.f32 1.442695, %v5752_v58  ;;  %v16465_v55 = vpop.eup %13289  ;;  %v5849_v54 = vmul.f32 1.442695, %v5746_v39 }
 0x672   : > { %5942 = vadd.xlane.f32.xlu1 %v5941_v0  ;;  %v16468_v44 = vpop.eup %13291  ;;  %v5682_v46 = vpop.xlane.xlu0 %5681  ;;  %v5953_v26 = vadd.f32 %v16465_v55, %v16461_v47 }
 0x673   : > { %13303 = vpow2.f32 %v5859_v17  ;;  %v16471_v60 = vpop.eup %13293  ;;  %v5753_v25 = vsub.f32 %v19925_v51, %v5682_v46  ;;  %v5754_v0 = vsub.f32 %v19926_v15, %v5682_v46 }
 0x674   : > { %13305 = vpow2.f32 %v5861_v35  ;;  %v5938_v39 = vadd.f32 %v16471_v60, %v16468_v44 }
 0x675   : > { %13307 = vpow2.f32 %v5839_v49  ;;  %v16475_v42 = vpop.eup %13295 }
 0x676   : > { %5948 = vadd.xlane.f32.xlu1 %v5947_v43  ;;  %v5685_v7 = vpop.xlane.xlu1 %5684  ;;  %13309 = vpow2.f32 %v5841_v34  ;;  %19924 = vst [vmem:[#allocation23_spill] sm:$0xff] %v16475_v42  ;;  %v16481_v50 = vpop.eup %13297  ;;  %v5863_v43 = vmul.f32 1.442695, %v5753_v25 }
 0x677   : > { %v5755_v4 = vsub.f32 %v16267_v23, %v5685_v7  ;;  %v5756_v45 = vsub.f32 %v19923_v6, %v5685_v7  ;;  %13311 = vpow2.f32 %v5847_v14  ;;  %v5857_v23 = vmul.f32 1.442695, %v5750_v19  ;;  %v16485_v17 = vpop.eup %13299  ;;  %v19929_v19 = vld [vmem:[#allocation24_spill] sm:$0xff] }
 0x678   : > { %13313 = vpow2.f32 %v5849_v54  ;;  %v5688_v35 = vpop.xlane.xlu0 %5687  ;;  %v16487_v49 = vpop.eup %13301  ;;  %v5959_v34 = vadd.f32 %v16481_v50, %v16475_v42  ;;  %v5865_v54 = vmul.f32 1.442695, %v5754_v0  ;;  %v19941_v42 = vld [vmem:[#allocation33_spill] sm:$0xff] }
 0x679   : > { %v5867_v2 = vmul.f32 1.442695, %v5755_v4  ;;  %v5869_v58 = vmul.f32 1.442695, %v5756_v45  ;;  %v5757_v46 = vsub.f32 %v19929_v19, %v5688_v35  ;;  %v19930_v4 = vld [vmem:[#allocation25_spill] sm:$0xff]  ;;  %v19931_v45 = vld [vmem:[#allocation26_spill] sm:$0xff] }
 0x67a   : > { %5933 = vadd.xlane.f32.xlu0 %v5932_v61  ;;  %5954 = vadd.xlane.f32.xlu1 %v5953_v26  ;;  %v5758_v6 = vsub.f32 %v19930_v4, %v5688_v35  ;;  %v19932_v26 = vld [vmem:[#allocation27_spill] sm:$0xff] }
 0x67b   : > { %13315 = vpow2.f32 %v5867_v2  ;;  %v5871_v19 = vmul.f32 1.442695, %v5757_v46 }
 0x67c   : > { %13317 = vpow2.f32 %v5869_v58  ;;  %v5944_v58 = vadd.f32 %v16487_v49, %v16485_v17 }
 0x67d   : > { %v16493_v14 = vpop.eup %13303  ;;  %13319 = vpow2.f32 %v5855_v31 }
 0x67e   : > { %19927 = vst [vmem:[#allocation21_spill] sm:$0xff] %v16493_v14  ;;  %v16495_v28 = vpop.eup %13305  ;;  %13321 = vpow2.f32 %v5857_v23  ;;  %5939 = vadd.xlane.f32.xlu0 %v5938_v39  ;;  %5960 = vadd.xlane.f32.xlu1 %v5959_v34  ;;  %v5691_v7 = vpop.xlane.xlu1 %5690  ;;  %v19933_v39 = vld [vmem:[#allocation28_spill] sm:$0xff] }
 0x67f   : > { %19928 = vst [vmem:[#allocation22_spill] sm:$0xff] %v16495_v28  ;;  %v5759_v61 = vsub.f32 %v19931_v45, %v5691_v7  ;;  %v5760_v51 = vsub.f32 %v19932_v26, %v5691_v7  ;;  %v5965_v2 = vadd.f32 %v16495_v28, %v16493_v14  ;;  %v16503_v31 = vpop.eup %13307  ;;  %13323 = vpow2.f32 %v5863_v43  ;;  %v19934_v7 = vld [vmem:[#allocation29_spill] sm:$0xff] }
 0x680   : > { %v5694_v25 = vpop.xlane.xlu0 %5693  ;;  %v16507_v23 = vpop.eup %13309  ;;  %13325 = vpow2.f32 %v5865_v54  ;;  %v5873_v45 = vmul.f32 1.442695, %v5758_v6  ;;  %v19938_v6 = vld [vmem:[#allocation30_spill] sm:$0xff] }
 0x681   : > { %v5875_v15 = vmul.f32 1.442695, %v5759_v61  ;;  %v5877_v0 = vmul.f32 1.442695, %v5760_v51  ;;  %v5761_v35 = vsub.f32 %v19933_v39, %v5694_v25  ;;  %v16510_v34 = vpop.eup %13311  ;;  %v5762_v4 = vsub.f32 %v19934_v7, %v5694_v25 }
 0x682   : > { %5945 = vadd.xlane.f32.xlu0 %v5944_v58  ;;  %5966 = vadd.xlane.f32.xlu1 %v5965_v2  ;;  %v16513_v26 = vpop.eup %13313  ;;  %v5950_v43 = vadd.f32 %v16507_v23, %v16503_v31  ;;  %v19939_v58 = vld [vmem:[#allocation31_spill] sm:$0xff] }
 0x683   : > { %13327 = vpow2.f32 %v5875_v15  ;;  %v5879_v14 = vmul.f32 1.442695, %v5761_v35  ;;  %v5881_v54 = vmul.f32 1.442695, %v5762_v4 }
 0x684   : > { %13329 = vpow2.f32 %v5877_v0 }
 0x685   : > { %v16517_v61 = vpop.eup %13315  ;;  %13331 = vpow2.f32 %v5871_v19  ;;  %v5956_v19 = vadd.f32 %v16513_v26, %v16510_v34 }
 0x686   : > { %19935 = vst [vmem:[#allocation24_spill] sm:$0xff] %v16517_v61  ;;  %v16519_v51 = vpop.eup %13317  ;;  %5951 = vadd.xlane.f32.xlu0 %v5950_v43  ;;  %v5697_v46 = vpop.xlane.xlu1 %5696  ;;  %13333 = vpow2.f32 %v5873_v45  ;;  %v19940_v43 = vld [vmem:[#allocation32_spill] sm:$0xff] }
 0x687   : > { %19936 = vst [vmem:[#allocation25_spill] sm:$0xff] %v16519_v51  ;;  %v16521_v25 = vpop.eup %13319  ;;  %v5763_v2 = vsub.f32 %v19938_v6, %v5697_v46  ;;  %v5764_v15 = vsub.f32 %v19939_v58, %v5697_v46  ;;  %v5971_v0 = vadd.f32 %v16519_v51, %v16517_v61  ;;  %13335 = vpow2.f32 %v5879_v14 }
 0x688   : > { %19937 = vst [vmem:[#allocation26_spill] sm:$0xff] %v16521_v25  ;;  %v16527_v39 = vpop.eup %13321  ;;  %v5700_v35 = vpop.xlane.xlu0 %5699  ;;  %13337 = vpow2.f32 %v5881_v54 }
 0x689   : > { %v5883_v7 = vmul.f32 1.442695, %v5763_v2  ;;  %v5885_v4 = vmul.f32 1.442695, %v5764_v15  ;;  %v5765_v28 = vsub.f32 %v19940_v43, %v5700_v35  ;;  %v5766_v45 = vsub.f32 %v19941_v42, %v5700_v35  ;;  %5972 = vadd.xlane.f32.xlu1 %v5971_v0  ;;  %v16533_v46 = vpop.eup %13323 }
 0x68a   : > { %5957 = vadd.xlane.f32.xlu0 %v5956_v19  ;;  %19942 = vst [vmem:[#allocation27_spill] sm:$0xff] %v16533_v46  ;;  %v16535_v61 = vpop.eup %13325  ;;  %v5962_v14 = vadd.f32 %v16527_v39, %v16521_v25 }
 0x68b   : > { %13339 = vpow2.f32 %v5883_v7  ;;  %v5887_v6 = vmul.f32 1.442695, %v5765_v28  ;;  %v5889_v58 = vmul.f32 1.442695, %v5766_v45  ;;  %19943 = vst [vmem:[#allocation28_spill] sm:$0xff] %v16535_v61  ;;  %v5968_v28 = vadd.f32 %v16535_v61, %v16533_v46 }
 0x68c   : > { %13341 = vpow2.f32 %v5885_v4 }
 0x68d   : > { %v16539_v2 = vpop.eup %13327  ;;  %13343 = vpow2.f32 %v5887_v6 }
 0x68e   : > { %19944 = vst [vmem:[#allocation29_spill] sm:$0xff] %v16539_v2  ;;  %v16541_v15 = vpop.eup %13329  ;;  %5963 = vadd.xlane.f32.xlu0 %v5962_v14  ;;  %13345 = vpow2.f32 %v5889_v58 }
 0x68f   : > { %19945 = vst [vmem:[#allocation30_spill] sm:$0xff] %v16541_v15  ;;  %v5977_v42 = vadd.f32 %v16541_v15, %v16539_v2  ;;  %v16545_v54 = vpop.eup %13331  ;;  %v19955_v2 = vld [vmem:[#allocation8_spill] sm:$0xff] }
 0x690   : > { %19946 = vst [vmem:[#allocation31_spill] sm:$0xff] %v16545_v54  ;;  %v16549_v0 = vpop.eup %13333 }
 0x691   : > { %19947 = vst [vmem:[#allocation32_spill] sm:$0xff] %v16549_v0  ;;  %5978 = vadd.xlane.f32.xlu1 %v5977_v42  ;;  %v16551_v35 = vpop.eup %13335  ;;  %v5974_v7 = vadd.f32 %v16549_v0, %v16545_v54 }
 0x692   : > { %19948 = vst [vmem:[#allocation33_spill] sm:$0xff] %v16551_v35  ;;  %5969 = vadd.xlane.f32.xlu0 %v5968_v28  ;;  %v16553_v19 = vpop.eup %13337  ;;  %v19954_v28 = vld [vmem:[#allocation15_spill] sm:$0xff] }
 0x693   : > { %19949 = vst [vmem:[#allocation40_spill] sm:$0xff] %v16553_v19  ;;  %v5980_v58 = vadd.f32 %v16553_v19, %v16551_v35  ;;  %v19957_v35 = vld [vmem:[#allocation35_spill] sm:$0xff] }
 0x695   : > { %v16557_v4 = vpop.eup %13339 }
 0x696   : > { %19950 = vst [vmem:[#allocation41_spill] sm:$0xff] %v16557_v4  ;;  %v16559_v43 = vpop.eup %13341  ;;  %5975 = vadd.xlane.f32.xlu0 %v5974_v7  ;;  %v5703_v7 = vpop.xlane.xlu1 %5702 }
 0x697   : > { %19951 = vst [vmem:[#allocation42_spill] sm:$0xff] %v16559_v43  ;;  %v5983_v45 = vadd.f32 %v16559_v43, %v16557_v4  ;;  %v16563_v6 = vpop.eup %13343  ;;  %v5706_v4 = vpop.xlane.xlu0 %5705  ;;  %v19956_v43 = vld [vmem:[#allocation34_spill] sm:$0xff]  ;;  %v5768_v19 = vsub.f32 %v19957_v35, %v5703_v7 }
 0x698   : > { %19952 = vst [vmem:[#allocation43_spill] sm:$0xff] %v16563_v6  ;;  %v16567_v14 = vpop.eup %13345  ;;  %v5767_v15 = vsub.f32 %v19956_v43, %v5703_v7  ;;  %v5769_v51 = vsub.f32 %v16307_v24, %v5706_v4 }
 0x699   : > { %19953 = vst [vmem:[#allocation44_spill] sm:$0xff] %v16567_v14  ;;  %5984 = vadd.xlane.f32.xlu1 %v5983_v45  ;;  %v5986_v42 = vadd.f32 %v16567_v14, %v16563_v6  ;;  %v19958_v6 = vld [vmem:[#allocation36_spill] sm:$0xff] }
 0x69a   : > { %5981 = vadd.xlane.f32.xlu0 %v5980_v58  ;;  %v5891_v58 = vmul.f32 1.442695, %v5767_v15  ;;  %v5770_v14 = vsub.f32 %v19958_v6, %v5706_v4  ;;  %v5895_v0 = vmul.f32 1.442695, %v5769_v51 }
 0x69c   : > { %v5897_v61 = vmul.f32 1.442695, %v5770_v14 }
 0x69e   : > { %5987 = vadd.xlane.f32.xlu0 %v5986_v42  ;;  %v5893_v42 = vmul.f32 1.442695, %v5768_v19 }
 0x6aa   : > { %6409 = vrot.lane.b32.xlu1 %v19954_v28, %s14011_s11 }
 0x6b4   : > { %6393 = vrot.lane.b32.xlu0 %v19955_v2, %s14011_s11 }
 0x6b6   : > { %v5901_v54 = vpop.xlane.xlu1 %5900 }
 0x6b7   : > { %13347 = vrcp.f32 %v5901_v54 }
 0x6b9   : > { %v5904_v45 = vpop.xlane.xlu0 %5903 }
 0x6ba   : > { %13349 = vrcp.f32 %v5904_v45 }
 0x6bb   : > { %13351 = vpow2.f32 %v5891_v58 }
 0x6bc   : > { %13353 = vpow2.f32 %v5893_v42 }
 0x6be   : > { %v5907_v46 = vpop.xlane.xlu0 %5906 }
 0x6bf   : > { %13355 = vrcp.f32 %v5907_v46 }
 0x6c0   : > { %13357 = vpow2.f32 %v5895_v0  ;;  %v19959_v0 = vld [vmem:[#allocation16_spill] sm:$0xff] }
 0x6c1   : > { %v13348_v25 = vpop.eup %13347 }
 0x6c2   : > { %v5910_v43 = vpop.xlane.xlu0 %5909  ;;  %v6027_v15 = vmul.f32 %v13348_v25, %v16329_v38  ;;  %v6028_v54 = vmul.f32 %v13348_v25, %v16331_v5 }
 0x6c3   : > { %13359 = vrcp.f32 %v5910_v43 }
 0x6c4   : > { %v13350_v35 = vpop.eup %13349  ;;  %13361 = vpow2.f32 %v5897_v61  ;;  %v6462_v61 = vsel %vm5321_vm7, %v19959_v0, 0 }
 0x6c5   : > { %v6029_v24 = vmul.f32 %v13350_v35, %v16333_v30  ;;  %v6030_v19 = vmul.f32 %v13350_v35, %v16339_v48  ;;  %v16583_v7 = vpop.eup %13351  ;;  %v19960_v30 = vld [vmem:[#allocation37_spill] sm:$0xff] }
 0x6c6   : > { %v5913_v4 = vpop.xlane.xlu0 %5912  ;;  %v16585_v46 = vpop.eup %13353 }
 0x6c7   : > { %v6092_v51 = vpack.c.bf16 %v6030_v19, %v6028_v54  ;;  %v6091_v6 = vpack.c.bf16 %v6029_v24, %v6027_v15  ;;  %13363 = vrcp.f32 %v5913_v4  ;;  %v5989_v48 = vadd.f32 %v16585_v46, %v16583_v7  ;;  %v19961_v4 = vld [vmem:[#allocation17_spill] sm:$0xff] }
 0x6c9   : > { %6203 = vmatprep.mubr.bf16.mxu1 %v6092_v51  ;;  %v13356_v14 = vpop.eup %13355  ;;  %v6465_v51 = vsel %vm5321_vm7, %v19961_v4, 0 }
 0x6ca   : > { %6204 = vmatmul.mubr.bf16.vlgmr.msra.gmra.mrb[96].mxu1 %v6091_v6  ;;  %v5916_v38 = vpop.xlane.xlu0 %5915  ;;  %v16589_v5 = vpop.eup %13357  ;;  %v6032_v42 = vmul.f32 %v13356_v14, %v16347_v41  ;;  %v6031_v35 = vmul.f32 %v13356_v14, %v16345_v9  ;;  %v19962_v41 = vld [vmem:[#allocation38_spill] sm:$0xff] }
 0x6cb   : > { %11708 = vmatpush3.bf16.xpose.msra.mxu1 %v6462_v61  ;;  %13365 = vrcp.f32 %v5916_v38 }
 0x6cc   : > { %13112 = vmatprep.subr.msk.bf16.mxu1 %vm5321_vm7, %v19960_v30 }
 0x6cd   : > { %v13360_v25 = vpop.eup %13359 }
 0x6ce   : > { %v16595_v45 = vpop.eup %13361  ;;  %v5919_v58 = vpop.xlane.xlu0 %5918  ;;  %5990 = vadd.xlane.f32.xlu1 %v5989_v48  ;;  %v6034_v43 = vmul.f32 %v13360_v25, %v16357_v36  ;;  %v6033_v15 = vmul.f32 %v13360_v25, %v16353_v29  ;;  %v19963_v48 = vld [vmem:[#allocation18_spill] sm:$0xff] }
 0x6cf   : > { %13367 = vrcp.f32 %v5919_v58  ;;  %v5992_v19 = vadd.f32 %v16595_v45, %v16589_v5  ;;  %v6468_v25 = vsel %vm5321_vm7, %v19963_v48, 0 }
 0x6d0   : > { %v6094_v24 = vpack.c.bf16 %v6034_v43, %v6032_v42  ;;  %v6093_v54 = vpack.c.bf16 %v6033_v15, %v6031_v35  ;;  %v19964_v42 = vld [vmem:[#allocation39_spill] sm:$0xff]  ;;  %v19965_v35 = vld [vmem:[#allocation14_spill] sm:$0xff] }
 0x6d1   : > { %v13364_v0 = vpop.eup %13363 }
 0x6d2   : > { %v5922_v6 = vpop.xlane.xlu0 %5921  ;;  %6211 = vmatprep.mubr.bf16.mxu1 %v6094_v24  ;;  %v6036_v29 = vmul.f32 %v13364_v0, %v16363_v11  ;;  %v6035_v61 = vmul.f32 %v13364_v0, %v16361_v62 }
 0x6d3   : > { %11710 = vmatpush3.bf16.xpose.msra.mxu1 %v6465_v51  ;;  %13369 = vrcp.f32 %v5922_v6  ;;  %5993 = vadd.xlane.f32.xlu0 %v5992_v19  ;;  %v19970_v51 = vld [vmem:[#allocation20_spill] sm:$0xff] }
 0x6d4   : > { %13113 = vmatprep.subr.msk.bf16.mxu1 %vm5321_vm7, %v19962_v41  ;;  %6212 = vmatmul.mubr.bf16.gmra.mrb[100].mxu1 %v6093_v54  ;;  %v19966_v54 = vld [vmem:[#allocation19_spill] sm:$0xff]  ;;  %v6474_v6 = vsel %vm5321_vm7, %v19970_v51, 0 }
 0x6d5   : > { %v13366_v9 = vpop.eup %13365  ;;  %v6471_v19 = vsel %vm5321_vm7, %v19966_v54, 0  ;;  %v19971_v41 = vld [vmem:[#allocation3_spill] sm:$0xff] }
 0x6d6   : > { %v6038_v36 = vmul.f32 %v13366_v9, %v16369_v37  ;;  %v6037_v38 = vmul.f32 %v13366_v9, %v16365_v16  ;;  %v6406_v4 = vpop.permute.xlu0 %6405 }
 0x6d8   : > { %v6096_v14 = vpack.c.bf16 %v6038_v36, %v6036_v29  ;;  %v6095_v30 = vpack.c.bf16 %v6037_v38, %v6035_v61  ;;  %v19972_v29 = vld [vmem:[#allocation5_spill] sm:$0xff] }
 0x6d9   : > { %v13368_v58 = vpop.eup %13367  ;;  %v19973_v61 = vld [vmem:[#allocation9_spill] sm:$0xff] }
 0x6da   : > { %6219 = vmatprep.mubr.bf16.mxu1 %v6096_v14  ;;  %v6040_v11 = vmul.f32 %v13368_v58, %v16377_v53  ;;  %v6039_v62 = vmul.f32 %v13368_v58, %v16375_v8  ;;  %v19967_v53 = vld [vmem:[#allocation2_spill] sm:$0xff]  ;;  %v6392_v8 = vpop.permute.xlu1 %6391 }
 0x6db   : > { %11712 = vmatpush3.bf16.xpose.msra.mxu1 %v6468_v25  ;;  %v6477_v36 = vsel %vm5321_vm7, %v6392_v8, 0  ;;  %v19974_v14 = vld [vmem:[#allocation6_spill] sm:$0xff]  ;;  %v19976_v25 = vld [vmem:[#allocation13_spill] sm:$0xff] }
 0x6dc   : > { %13114 = vmatprep.subr.msk.bf16.mxu1 %vm5321_vm7, %v19964_v42  ;;  %6220 = vmatmul.mubr.bf16.gmra.mrb[104].mxu1 %v6095_v30  ;;  %v19975_v30 = vld [vmem:[#allocation11_spill] sm:$0xff] }
 0x6dd   : > { %v13370_v43 = vpop.eup %13369 }
 0x6de   : > { %v6042_v37 = vmul.f32 %v13370_v43, %v16385_v21  ;;  %v6041_v16 = vmul.f32 %v13370_v43, %v16381_v63  ;;  %v19968_v63 = vld [vmem:[#allocation4_spill] sm:$0xff]  ;;  %v19969_v21 = vld [vmem:[#allocation7_spill] sm:$0xff]  ;;  %v6408_v0 = vpop.permute.xlu1 %6407  ;;  %v19977_v43 = vld [vmem:[#allocation10_spill] sm:$0xff] }
 0x6df   : > { %6411 = vrot.lane.b32.xlu1 %v19965_v35, %s14011_s11 }
 0x6e0   : > { %v6098_v15 = vpack.c.bf16 %v6042_v37, %v6040_v11  ;;  %v6097_v24 = vpack.c.bf16 %v6041_v16, %v6039_v62 }
 0x6e2   : > { %6227 = vmatprep.mubr.bf16.mxu1 %v6098_v15 }
 0x6e3   : > { %11714 = vmatpush3.bf16.xpose.msra.mxu1 %v6471_v19  ;;  %6351 = vrot.lane.b32.xlu1 %v19967_v53, %s14012_s13 }
 0x6e4   : > { %13115 = vmatprep.subr.msk.bf16.mxu1 %vm5321_vm7, %v6406_v4  ;;  %6228 = vmatmul.mubr.bf16.gmra.mrb[108].mxu1 %v6097_v24  ;;  %v19978_v24 = vld [vmem:[#allocation12_spill] sm:$0xff] }
 0x6e7   : > { %6355 = vrot.lane.b32.xlu1 %v19968_v63, %s14012_s13 }
 0x6e9   : > { %6395 = vrot.lane.b32.xlu0 %v19969_v21, %s14011_s11 }
 0x6eb   : > { %11716 = vmatpush3.bf16.xpose.msra.mxu1 %v6474_v6  ;;  %6359 = vrot.lane.b32.xlu1 %v15928_v12, %s14012_s13 }
 0x6ec   : > { %13116 = vmatprep.subr.msk.bf16.mxu1 %vm5321_vm7, %v6408_v0 }
 0x6ed   : > { %6349 = vrot.lane.b32.xlu0 %v19971_v41, %s14012_s13 }
 0x6ef   : > { %6363 = vrot.lane.b32.xlu1 %v19969_v21, %s14012_s13  ;;  %v5925_v9 = vpop.xlane.xlu1 %5924 }
 0x6f0   : > { %13371 = vrcp.f32 %v5925_v9 }
 0x6f1   : > { %6353 = vrot.lane.b32.xlu0 %v19972_v29, %s14012_s13 }
 0x6f3   : > { %11718 = vmatpush3.bf16.xpose.msra.mxu1 %v6477_v36  ;;  %6367 = vrot.lane.b32.xlu1 %v19973_v61, %s14012_s13  ;;  %v5928_v38 = vpop.xlane.xlu1 %5927 }
 0x6f4   : > { %13373 = vrcp.f32 %v5928_v38 }
 0x6f5   : > { %6357 = vrot.lane.b32.xlu0 %v19974_v14, %s14012_s13 }
 0x6f7   : > { %6371 = vrot.lane.b32.xlu1 %v19975_v30, %s14012_s13  ;;  %v5931_v48 = vpop.xlane.xlu1 %5930 }
 0x6f8   : > { %13375 = vrcp.f32 %v5931_v48 }
 0x6f9   : > { %6361 = vrot.lane.b32.xlu0 %v19955_v2, %s14012_s13 }
 0x6fa   : > { %v13372_v58 = vpop.eup %13371 }
 0x6fb   : > { %6375 = vrot.lane.b32.xlu1 %v19976_v25, %s14012_s13  ;;  %v5937_v42 = vpop.xlane.xlu1 %5936  ;;  %v6044_v37 = vmul.f32 %v13372_v58, %v16403_v32  ;;  %v6043_v16 = vmul.f32 %v13372_v58, %v16401_v20 }
 0x6fd   : > { %6365 = vrot.lane.b32.xlu0 %v19977_v43, %s14012_s13 }
 0x6fe   : > { %v13374_v11 = vpop.eup %13373 }
 0x6ff   : > { %6379 = vrot.lane.b32.xlu1 %v19965_v35, %s14012_s13  ;;  %v6046_v62 = vmul.f32 %v13374_v11, %v16412_v52  ;;  %v6045_v15 = vmul.f32 %v13374_v11, %v16407_v3  ;;  %v5943_v4 = vpop.xlane.xlu1 %5942 }
 0x701   : > { %6369 = vrot.lane.b32.xlu0 %v19978_v24, %s14012_s13  ;;  %v6100_v54 = vpack.c.bf16 %v6046_v62, %v6044_v37  ;;  %v6099_v19 = vpack.c.bf16 %v6045_v15, %v6043_v16 }
 0x702   : > { %v13376_v51 = vpop.eup %13375 }
 0x703   : > { %7230 = vrot.lane.b32.xlu1 %v19977_v43, %s14013_s14  ;;  %6235 = vmatprep.mubr.bf16.mxu1 %v6100_v54  ;;  %v5949_v20 = vpop.xlane.xlu1 %5948  ;;  %v6048_v9 = vmul.f32 %v13376_v51, %v16424_v10  ;;  %v6047_v38 = vmul.f32 %v13376_v51, %v16419_v27 }
 0x704   : > { %6236 = vmatmul.mubr.bf16.gmra.mrb[112].mxu1 %v6099_v19 }
 0x705   : > { %6373 = vrot.lane.b32.xlu0 %v15976_v13, %s14012_s13 }
 0x707   : > { %v5934_v32 = vpop.xlane.xlu0 %5933  ;;  %7232 = vrot.lane.b32.xlu1 %v19973_v61, %s14013_s14  ;;  %v5955_v52 = vpop.xlane.xlu1 %5954 }
 0x708   : > { %13377 = vrcp.f32 %v5934_v32 }
 0x709   : > { %6377 = vrot.lane.b32.xlu0 %v19954_v28, %s14012_s13  ;;  %13379 = vrcp.f32 %v5937_v42  ;;  %s19374_s13 = scalar_lea.vmem %s19482_s7, %s11366_s30 }
 0x70b   : > { %v5940_v3 = vpop.xlane.xlu0 %5939  ;;  %7234 = vrot.lane.b32.xlu1 %v19978_v24, %s14013_s14  ;;  %v5961_v42 = vpop.xlane.xlu1 %5960 }
 0x70c   : > { %13381 = vrcp.f32 %v5940_v3 }
 0x70d   : > { %7214 = vrot.lane.b32.xlu0 %v19971_v41, %s14013_s14  ;;  %13383 = vrcp.f32 %v5943_v4 }
 0x70f   : > { %v5946_v8 = vpop.xlane.xlu0 %5945  ;;  %7218 = vrot.lane.b32.xlu1 %v19972_v29, %s14013_s14  ;;  %v5967_v54 = vpop.xlane.xlu1 %5966 }
 0x710   : > { %13385 = vrcp.f32 %v5946_v8 }
 0x711   : > { %7216 = vrot.lane.b32.xlu0 %v19967_v53, %s14013_s14 }
 0x712   : > { %v13378_v6 = vpop.eup %13377 }
 0x713   : > { %v5952_v0 = vpop.xlane.xlu0 %5951  ;;  %7220 = vrot.lane.b32.xlu1 %v19968_v63, %s14013_s14  ;;  %v6050_v36 = vmul.f32 %v13378_v6, %v16459_v56  ;;  %v6049_v48 = vmul.f32 %v13378_v6, %v16456_v1  ;;  %v13380_v58 = vpop.eup %13379 }
 0x714   : > { %13387 = vrcp.f32 %v5952_v0  ;;  %v6052_v10 = vmul.f32 %v13380_v58, %v16433_v33 }
 0x715   : > { %7236 = vrot.lane.b32.xlu0 %v19975_v30, %s14013_s14  ;;  %v6102_v11 = vpack.c.bf16 %v6050_v36, %v6048_v9  ;;  %v6101_v37 = vpack.c.bf16 %v6049_v48, %v6047_v38  ;;  %13389 = vrcp.f32 %v5949_v20 }
 0x716   : > { %v13382_v62 = vpop.eup %13381  ;;  %v16700_v20 = vpop.xlane.xlu1 %5972 }
 0x717   : > { %v5958_v16 = vpop.xlane.xlu0 %5957  ;;  %7238 = vrot.lane.b32.xlu1 %v15976_v13, %s14013_s14  ;;  %6243 = vmatprep.mubr.bf16.mxu1 %v6102_v11  ;;  %v6054_v27 = vmul.f32 %v13382_v62, %v16471_v60  ;;  %v13384_v1 = vpop.eup %13383  ;;  %v6053_v19 = vmul.f32 %v13382_v62, %v16468_v44  ;;  %v6051_v60 = vmul.f32 %v13380_v58, %v16429_v40 }
 0x718   : > { %6244 = vmatmul.mubr.bf16.gmra.mrb[116].mxu1 %v6101_v37  ;;  %v6056_v32 = vmul.f32 %v13384_v1, %v16441_v57  ;;  %13391 = vrcp.f32 %v5958_v16  ;;  %v6055_v9 = vmul.f32 %v13384_v1, %v16437_v22 }
 0x719   : > { %7240 = vrot.lane.b32.xlu0 %v19976_v25, %s14013_s14  ;;  %v6104_v56 = vpack.c.bf16 %v6054_v27, %v6052_v10  ;;  %v6103_v3 = vpack.c.bf16 %v6053_v19, %v6051_v60  ;;  %13393 = vrcp.f32 %v5955_v52 }
 0x71a   : > { %v13386_v15 = vpop.eup %13385 }
 0x71b   : > { %v5964_v4 = vpop.xlane.xlu0 %5963  ;;  %7222 = vrot.lane.b32.xlu1 %v19974_v14, %s14013_s14  ;;  %6251 = vmatprep.mubr.bf16.mxu1 %v6104_v56  ;;  %v6058_v33 = vmul.f32 %v13386_v15, %v16487_v49  ;;  %v6057_v57 = vmul.f32 %v13386_v15, %v16485_v17 }
 0x71c   : > { %13395 = vrcp.f32 %v5964_v4 }
 0x71d   : > { %7244 = vrot.lane.b32.xlu0 %v19965_v35, %s14013_s14  ;;  %v6106_v44 = vpack.c.bf16 %v6058_v33, %v6056_v32  ;;  %v6105_v38 = vpack.c.bf16 %v6057_v57, %v6055_v9  ;;  %13397 = vrcp.f32 %v5961_v42  ;;  %v19979_v33 = vld [vmem:[#allocation26_spill] sm:$0xff]  ;;  %v19983_v57 = vld [vmem:[#allocation27_spill] sm:$0xff] }
 0x71e   : > { %v13388_v51 = vpop.eup %13387  ;;  %v16706_v49 = vpop.xlane.xlu1 %5978 }
 0x71f   : > { %v5970_v8 = vpop.xlane.xlu0 %5969  ;;  %7224 = vrot.lane.b32.xlu1 %v15928_v12, %s14013_s14  ;;  %v13390_v40 = vpop.eup %13389  ;;  %v6062_v0 = vmul.f32 %v13388_v51, %v16507_v23 }
 0x720   : > { %6252 = vmatmul.mubr.bf16.gmra.mrb[120].mxu1 %v6103_v3  ;;  %v6060_v52 = vmul.f32 %v13390_v40, %v16454_v18  ;;  %v6061_v18 = vmul.f32 %v13388_v51, %v16503_v31  ;;  %v6059_v62 = vmul.f32 %v13390_v40, %v16449_v59  ;;  %13399 = vrcp.f32 %v5970_v8  ;;  %v19982_v3 = vld [vmem:[#allocation22_spill] sm:$0xff] }
 0x721   : > { %7913 = vrot.lane.b32.xlu0 %v19977_v43, %s14014_s15  ;;  %6259 = vmatprep.mubr.bf16.mxu1 %v6106_v44  ;;  %13401 = vrcp.f32 %v5967_v54 }
 0x722   : > { %v6108_v17 = vpack.c.bf16 %v6062_v0, %v6060_v52  ;;  %v13392_v58 = vpop.eup %13391  ;;  %v6107_v16 = vpack.c.bf16 %v6061_v18, %v6059_v62  ;;  %v19984_v0 = vld [vmem:[#allocation32_spill] sm:$0xff]  ;;  %v19985_v52 = vld [vmem:[#allocation21_spill] sm:$0xff]  ;;  %v19987_v18 = vld [vmem:[#allocation31_spill] sm:$0xff] }
 0x723   : > { %v5976_v6 = vpop.xlane.xlu0 %5975  ;;  %7242 = vrot.lane.b32.xlu1 %v19954_v28, %s14013_s14  ;;  %v13394_v22 = vpop.eup %13393  ;;  %v6066_v37 = vmul.f32 %v13392_v58, %v16513_v26  ;;  %v6065_v26 = vmul.f32 %v13392_v58, %v16510_v34  ;;  %v19988_v62 = vld [vmem:[#allocation40_spill] sm:$0xff] }
 0x724   : > { %v6064_v42 = vmul.f32 %v13394_v22, %v16465_v55  ;;  %v6063_v56 = vmul.f32 %v13394_v22, %v16461_v47  ;;  %13403 = vrcp.f32 %v5976_v6  ;;  %v19980_v47 = vld [vmem:[#allocation28_spill] sm:$0xff] }
 0x725   : > { %7915 = vrot.lane.b32.xlu0 %v19973_v61, %s14014_s15  ;;  %13405 = vrcp.f32 %v16700_v20 }
 0x726   : > { %v16716_v36 = vpop.xlane.xlu1 %5984  ;;  %v6110_v31 = vpack.c.bf16 %v6066_v37, %v6064_v42  ;;  %v13396_v27 = vpop.eup %13395  ;;  %v6109_v19 = vpack.c.bf16 %v6065_v26, %v6063_v56 }
 0x727   : > { %v5982_v48 = vpop.xlane.xlu0 %5981  ;;  %7226 = vrot.lane.b32.xlu1 %v19955_v2, %s14013_s14  ;;  %v13398_v59 = vpop.eup %13397  ;;  %v6070_v55 = vmul.f32 %v13396_v27, %v16527_v39  ;;  %v6069_v60 = vmul.f32 %v13396_v27, %v19979_v33 }
 0x728   : > { %6260 = vmatmul.mubr.bf16.gmra.mrb[124].mxu1 %v6105_v38  ;;  %v6068_v15 = vmul.f32 %v13398_v59, %v16481_v50  ;;  %v19981_v50 = vld [vmem:[#allocation23_spill] sm:$0xff]  ;;  %13407 = vrcp.f32 %v5982_v48 }
 0x729   : > { %7917 = vrot.lane.b32.xlu0 %v19978_v24, %s14014_s15  ;;  %6267 = vmatprep.mubr.bf16.mxu1 %v6108_v17  ;;  %v6067_v32 = vmul.f32 %v13398_v59, %v19981_v50  ;;  %13409 = vrcp.f32 %v16706_v49  ;;  %v19986_v17 = vld [vmem:[#allocation25_spill] sm:$0xff] }
 0x72a   : > { %v6410_v23 = vpop.permute.xlu1 %6409  ;;  %v6112_v54 = vpack.c.bf16 %v6070_v55, %v6068_v15  ;;  %v13400_v4 = vpop.eup %13399  ;;  %v19991_v55 = vld [vmem:[#allocation33_spill] sm:$0xff] }
 0x72b   : > { %v5988_v11 = vpop.xlane.xlu0 %5987  ;;  %7228 = vrot.lane.b32.xlu1 %v19969_v21, %s14013_s14  ;;  %13117 = vmatprep.subr.msk.bf16.mxu1 %vm5321_vm7, %v6410_v23  ;;  %v13402_v34 = vpop.eup %13401  ;;  %v6074_v39 = vmul.f32 %v13400_v4, %v19980_v47  ;;  %v6111_v44 = vpack.c.bf16 %v6069_v60, %v6067_v32  ;;  %v6073_v6 = vmul.f32 %v13400_v4, %v19983_v57  ;;  %v19994_v4 = vld [vmem:[#allocation42_spill] sm:$0xff]  ;;  %v19995_v47 = vld [vmem:[#allocation43_spill] sm:$0xff]  ;;  %v19996_v32 = vld [vmem:[#allocation41_spill] sm:$0xff] }
 0x72c   : > { %v6072_v8 = vmul.f32 %v13402_v34, %v19982_v3  ;;  %v6071_v38 = vmul.f32 %v13402_v34, %v19985_v52  ;;  %13411 = vrcp.f32 %v5988_v11 }
 0x72d   : > { %7919 = vrot.lane.b32.xlu0 %v19975_v30, %s14014_s15  ;;  %13413 = vrcp.f32 %v16716_v36  ;;  %v19992_v36 = vld [vmem:[#allocation44_spill] sm:$0xff] }
 0x72e   : > { %v6114_v20 = vpack.c.bf16 %v6074_v39, %v6072_v8  ;;  %v13404_v51 = vpop.eup %13403  ;;  %v6113_v48 = vpack.c.bf16 %v6073_v6, %v6071_v38 }
 0x72f   : > { %v6394_v10 = vpop.permute.xlu0 %6393  ;;  %7897 = vrot.lane.b32.xlu1 %v19971_v41, %s14014_s15  ;;  %v13406_v40 = vpop.eup %13405  ;;  %v6078_v9 = vmul.f32 %v13404_v51, %v19984_v0  ;;  %v6077_v37 = vmul.f32 %v13404_v51, %v19987_v18 }
 0x730   : > { %v6480_v1 = vsel %vm5321_vm7, %v6394_v10, 0  ;;  %6268 = vmatmul.mubr.bf16.gmra.mrb[128].mxu1 %v6107_v16  ;;  %v6076_v58 = vmul.f32 %v13406_v40, %v19986_v17  ;;  %v19989_v16 = vld [vmem:[#allocation24_spill] sm:$0xff] }
 0x731   : > { %6275 = vmatprep.mubr.bf16.mxu1 %v6110_v31  ;;  %11720 = vmatpush3.bf16.xpose.msra.mxu1 %v6480_v1  ;;  %v6075_v10 = vmul.f32 %v13406_v40, %v19989_v16  ;;  %v19990_v31 = vld [vmem:[#allocation30_spill] sm:$0xff] }
 0x732   : > { %v6116_v22 = vpack.c.bf16 %v6078_v9, %v6076_v58  ;;  %v13408_v23 = vpop.eup %13407 }
 0x733   : > { %7899 = vrot.lane.b32.xlu1 %v19967_v53, %s14014_s15  ;;  %v13410_v49 = vpop.eup %13409  ;;  %v6082_v42 = vmul.f32 %v13408_v23, %v19988_v62  ;;  %v6115_v1 = vpack.c.bf16 %v6077_v37, %v6075_v10  ;;  %v6081_v56 = vmul.f32 %v13408_v23, %v19991_v55 }
 0x734   : > { %v6080_v27 = vmul.f32 %v13410_v49, %v19990_v31 }
 0x736   : > { %v6118_v59 = vpack.c.bf16 %v6082_v42, %v6080_v27  ;;  %v13412_v26 = vpop.eup %13411 }
 0x737   : > { %7901 = vrot.lane.b32.xlu1 %v19972_v29, %s14014_s15  ;;  %v13414_v11 = vpop.eup %13413  ;;  %v6086_v15 = vmul.f32 %v13412_v26, %v19992_v36  ;;  %v6085_v39 = vmul.f32 %v13412_v26, %v19995_v47 }
 0x738   : > { %6276 = vmatmul.mubr.bf16.gmra.mrb[132].mxu1 %v6109_v19  ;;  %v19993_v19 = vld [vmem:[#allocation29_spill] sm:$0xff]  ;;  %v6084_v34 = vmul.f32 %v13414_v11, %v19994_v4  ;;  %v6083_v3 = vmul.f32 %v13414_v11, %v19996_v32 }
 0x739   : > { %6283 = vmatprep.mubr.bf16.mxu1 %v6112_v54  ;;  %v6079_v54 = vmul.f32 %v13410_v49, %v19993_v19 }
 0x73a   : > { %v6120_v60 = vpack.c.bf16 %v6086_v15, %v6084_v34  ;;  %v6119_v8 = vpack.c.bf16 %v6085_v39, %v6083_v3 }
 0x73b   : > { %7903 = vrot.lane.b32.xlu1 %v19968_v63, %s14014_s15  ;;  %v6117_v33 = vpack.c.bf16 %v6081_v56, %v6079_v54 }
 0x73f   : > { %7905 = vrot.lane.b32.xlu1 %v19974_v14, %s14014_s15 }
 0x740   : > { %6284 = vmatmul.mubr.bf16.gmra.mrb[136].mxu1 %v6111_v44 }
 0x741   : > { %6291 = vmatprep.mubr.bf16.mxu1 %v6114_v20 }
 0x748   : > { %6292 = vmatmul.mubr.bf16.gmra.mrb[140].mxu1 %v6113_v48 }
 0x749   : > { %6299 = vmatprep.mubr.bf16.mxu1 %v6116_v22 }
 0x750   : > { %6300 = vmatmul.mubr.bf16.gmra.mrb[144].mxu1 %v6115_v1 }
 0x751   : > { %6307 = vmatprep.mubr.bf16.mxu1 %v6118_v59 }
 0x758   : > { %6308 = vmatmul.mubr.bf16.gmra.mrb[148].mxu1 %v6117_v33 }
 0x759   : > { %6315 = vmatprep.mubr.bf16.mxu1 %v6120_v60 }
 0x75b   : > { %v5991_v50 = vpop.xlane.xlu1 %5990 }
 0x75c   : > { %13415 = vrcp.f32 %v5991_v50 }
 0x75f   : > { %v6412_v44 = vpop.permute.xlu1 %6411 }
 0x760   : > { %v5994_v20 = vpop.xlane.xlu0 %5993  ;;  %6316 = vmatmul.mubr.bf16.gmra.mrb[152].mxu1 %v6119_v8  ;;  %13118 = vmatprep.subr.msk.bf16.mxu1 %vm5321_vm7, %v6412_v44 }
 0x761   : > { %13417 = vrcp.f32 %v5994_v20 }
 0x763   : > { %v6352_v51 = vpop.permute.xlu1 %6351 }
 0x764   : > { %v6396_v40 = vpop.permute.xlu0 %6395 }
 0x765   : > { %v6483_v57 = vsel %vm5321_vm7, %v6396_v40, 0 }
 0x766   : > { %11722 = vmatpush3.bf16.xpose.msra.mxu1 %v6483_v57  ;;  %v13416_v9 = vpop.eup %13415 }
 0x767   : > { %v6356_v6 = vpop.permute.xlu1 %6355  ;;  %v6088_v58 = vmul.f32 %v13416_v9, %v16585_v46  ;;  %v6087_v22 = vmul.f32 %v13416_v9, %v16583_v7 }
 0x768   : > { %v6350_v0 = vpop.permute.xlu0 %6349 }
 0x76b   : > { %v13418_v52 = vpop.eup %13417  ;;  %v6360_v38 = vpop.permute.xlu1 %6359 }
 0x76c   : > { %v6354_v17 = vpop.permute.xlu0 %6353  ;;  %v6090_v48 = vmul.f32 %v13418_v52, %v16595_v45  ;;  %v6089_v23 = vmul.f32 %v13418_v52, %v16589_v5 }
 0x76e   : > { %v6122_v49 = vpack.c.bf16 %v6090_v48, %v6088_v58  ;;  %v6121_v18 = vpack.c.bf16 %v6089_v23, %v6087_v22 }
 0x76f   : > { %v16773_v37 = vpop.permute.xlu1 %6363 }
 0x770   : > { %v6358_v62 = vpop.permute.xlu0 %6357  ;;  %6323 = vmatprep.mubr.bf16.mxu1 %v6122_v49 }
 0x771   : > { %6324 = vmatmul.mubr.bf16.gmra.mrb[156].mxu1 %v6121_v18 }
 0x772   : > { %11723 = vmatprep.mubr.msk.bf16.mxu1 %vm5321_vm7, %v6350_v0 }
 0x773   : > { %v16776_v42 = vpop.permute.xlu1 %6367 }
 0x774   : > { %v6362_v16 = vpop.permute.xlu0 %6361 }
 0x777   : > { %v16778_v10 = vpop.permute.xlu1 %6371 }
 0x778   : > { %v16780_v46 = vpop.permute.xlu0 %6365 }
 0x779   : > { %11724 = vmatmul.mubr.msk.bf16.vlgmr.msra.gmra.mrb[160].mxu1 %vm5321_vm7, %v6350_v0 }
 0x77a   : > { %11725 = vmatprep.mubr.msk.bf16.mxu1 %vm5321_vm7, %v6352_v51 }
 0x77b   : > { %v16784_v7 = vpop.permute.xlu1 %6375 }
 0x77c   : > { %v16786_v5 = vpop.permute.xlu0 %6369 }
 0x77f   : > { %v16788_v45 = vpop.permute.xlu1 %6379 }
 0x780   : > { %v16790_v31 = vpop.permute.xlu0 %6373 }
 0x781   : > { %11726 = vmatmul.mubr.msk.bf16.gmra.mrb[164].mxu1 %vm5321_vm7, %v6352_v51 }
 0x782   : > { %11727 = vmatprep.mubr.msk.bf16.mxu1 %vm5321_vm7, %v6354_v17 }
 0x783   : > { %v7231_v27 = vpop.permute.xlu1 %7230 }
 0x784   : > { %v16794_v1 = vpop.permute.xlu0 %6377  ;;  %11755 = vmatprep.subr.bf16.mxu1 %v7231_v27 }
 0x787   : > { %v7233_v59 = vpop.permute.xlu1 %7232 }
 0x788   : > { %v7215_v26 = vpop.permute.xlu0 %7214 }
 0x789   : > { %11728 = vmatmul.mubr.msk.bf16.gmra.mrb[168].mxu1 %vm5321_vm7, %v6354_v17 }
 0x78a   : > { %11756 = vmatpush3.bf16.msra.mxu1 %v7215_v26  ;;  %11729 = vmatprep.mubr.msk.bf16.mxu1 %vm5321_vm7, %v6356_v6 }
 0x78b   : > { %11757 = vmatprep.subr.bf16.mxu1 %v7233_v59  ;;  %v7235_v11 = vpop.permute.xlu1 %7234 }
 0x78c   : > { %v7217_v55 = vpop.permute.xlu0 %7216 }
 0x78e   : > { %11758 = vmatpush3.bf16.msra.mxu1 %v7217_v55 }
 0x78f   : > { %11759 = vmatprep.subr.bf16.mxu1 %v7235_v11  ;;  %v7219_v56 = vpop.permute.xlu1 %7218 }
 0x790   : > { %v7237_v36 = vpop.permute.xlu0 %7236 }
 0x791   : > { %11730 = vmatmul.mubr.msk.bf16.gmra.mrb[172].mxu1 %vm5321_vm7, %v6356_v6 }
 0x792   : > { %11760 = vmatpush3.bf16.msra.mxu1 %v7219_v56  ;;  %11731 = vmatprep.mubr.msk.bf16.mxu1 %vm5321_vm7, %v6358_v62 }
 0x793   : > { %11761 = vmatprep.subr.bf16.mxu1 %v7237_v36  ;;  %v7221_v15 = vpop.permute.xlu1 %7220 }
 0x794   : > { %v7241_v4 = vpop.permute.xlu0 %7240 }
 0x796   : > { %11762 = vmatpush3.bf16.msra.mxu1 %v7221_v15 }
 0x797   : > { %v7239_v19 = vpop.permute.xlu1 %7238 }
 0x798   : > { %11763 = vmatprep.subr.bf16.mxu1 %v7239_v19  ;;  %v7245_v44 = vpop.permute.xlu0 %7244 }
 0x799   : > { %11732 = vmatmul.mubr.msk.bf16.gmra.mrb[176].mxu1 %vm5321_vm7, %v6358_v62 }
 0x79a   : > { %11733 = vmatprep.mubr.msk.bf16.mxu1 %vm5321_vm7, %v6360_v38 }
 0x79b   : > { %v7223_v54 = vpop.permute.xlu1 %7222 }
 0x79c   : > { %11764 = vmatpush3.bf16.msra.mxu1 %v7223_v54 }
 0x79d   : > { %v11611_v34 = vpop.f32.mrb[96].mxu1  ;;  %11765 = vmatprep.subr.bf16.mxu1 %v7241_v4 }
 0x79e   : > { %v11612_v33 = vpop.f32.mrb[97].mxu1 }
 0x79f   : > { %v16802_v60 = vadd.f32 %v11612_v33, %v11611_v34  ;;  %v11614_v47 = vpop.f32.mrb[98].mxu1  ;;  %v7225_v39 = vpop.permute.xlu1 %7224 }
 0x7a0   : > { %v11615_v50 = vpop.f32.mrb[99].mxu1  ;;  %11766 = vmatpush3.bf16.msra.mxu1 %v7225_v39 }
 0x7a1   : > { %19997 = vst [vmem:[#allocation34_spill] sm:$0xff] %v16802_v60  ;;  %v16804_v32 = vadd.f32 %v11615_v50, %v11614_v47  ;;  %11734 = vmatmul.mubr.msk.bf16.gmra.mrb[180].mxu1 %vm5321_vm7, %v6360_v38  ;;  %v7914_v38 = vpop.permute.xlu0 %7913 }
 0x7a2   : > { %11735 = vmatprep.mubr.msk.bf16.mxu1 %vm5321_vm7, %v6362_v16 }
 0x7a3   : > { %19998 = vst [vmem:[#allocation35_spill] sm:$0xff] %v16804_v32  ;;  %v7243_v8 = vpop.permute.xlu1 %7242 }
 0x7a4   : > { %11767 = vmatprep.subr.bf16.mxu1 %v7243_v8 }
 0x7a7   : > { %v11617_v20 = vpop.f32.mrb[100].mxu1  ;;  %v7227_v51 = vpop.permute.xlu1 %7226 }
 0x7a8   : > { %v11618_v40 = vpop.f32.mrb[101].mxu1  ;;  %11768 = vmatpush3.bf16.msra.mxu1 %v7227_v51 }
 0x7a9   : > { %v16810_v57 = vadd.f32 %v11618_v40, %v11617_v20  ;;  %v11620_v6 = vpop.f32.mrb[102].mxu1  ;;  %11736 = vmatmul.mubr.msk.bf16.gmra.mrb[184].mxu1 %vm5321_vm7, %v6362_v16  ;;  %11769 = vmatprep.subr.bf16.mxu1 %v7245_v44 }
 0x7aa   : > { %v11621_v0 = vpop.f32.mrb[103].mxu1  ;;  %11737 = vmatprep.mubr.msk.bf16.mxu1 %vm5321_vm7, %v16773_v37 }
 0x7ab   : > { %19999 = vst [vmem:[#allocation36_spill] sm:$0xff] %v16810_v57  ;;  %v16815_v9 = vadd.f32 %v11621_v0, %v11620_v6  ;;  %v7229_v52 = vpop.permute.xlu1 %7228 }
 0x7ac   : > { %11770 = vmatpush3.bf16.msra.mxu1 %v7229_v52 }
 0x7ad   : > { %20000 = vst [vmem:[#allocation16_spill] sm:$0xff] %v16815_v9  ;;  %13121 = vmatprep.subr.msk.bf16.mxu1 %vm5321_vm7, %v7914_v38 }
 0x7af   : > { %v11623_v58 = vpop.f32.mrb[104].mxu1 }
 0x7b0   : > { %v11624_v48 = vpop.f32.mrb[105].mxu1 }
 0x7b1   : > { %v16820_v22 = vadd.f32 %v11624_v48, %v11623_v58  ;;  %v11626_v23 = vpop.f32.mrb[106].mxu1  ;;  %11738 = vmatmul.mubr.msk.bf16.gmra.mrb[188].mxu1 %vm5321_vm7, %v16773_v37 }
 0x7b2   : > { %v11627_v49 = vpop.f32.mrb[107].mxu1  ;;  %11739 = vmatprep.mubr.msk.bf16.mxu1 %vm5321_vm7, %v16780_v46 }
 0x7b3   : > { %20001 = vst [vmem:[#allocation37_spill] sm:$0xff] %v16820_v22  ;;  %v16826_v18 = vadd.f32 %v11627_v49, %v11626_v23 }
 0x7b5   : > { %20002 = vst [vmem:[#allocation17_spill] sm:$0xff] %v16826_v18 }
 0x7b7   : > { %v11629_v16 = vpop.f32.mrb[108].mxu1 }
 0x7b8   : > { %v11630_v27 = vpop.f32.mrb[109].mxu1 }
 0x7b9   : > { %v16830_v59 = vadd.f32 %v11630_v27, %v11629_v16  ;;  %v11632_v26 = vpop.f32.mrb[110].mxu1  ;;  %11740 = vmatmul.mubr.msk.bf16.gmra.mrb[192].mxu1 %vm5321_vm7, %v16780_v46 }
 0x7ba   : > { %v11633_v11 = vpop.f32.mrb[111].mxu1  ;;  %11741 = vmatprep.mubr.msk.bf16.mxu1 %vm5321_vm7, %v16776_v42 }
 0x7bb   : > { %20003 = vst [vmem:[#allocation38_spill] sm:$0xff] %v16830_v59  ;;  %v16836_v37 = vadd.f32 %v11633_v11, %v11632_v26 }
 0x7bd   : > { %20004 = vst [vmem:[#allocation18_spill] sm:$0xff] %v16836_v37 }
 0x7c1   : > { %11742 = vmatmul.mubr.msk.bf16.gmra.mrb[196].mxu1 %vm5321_vm7, %v16776_v42 }
 0x7c2   : > { %11743 = vmatprep.mubr.msk.bf16.mxu1 %vm5321_vm7, %v16786_v5 }
 0x7c9   : > { %11744 = vmatmul.mubr.msk.bf16.gmra.mrb[200].mxu1 %vm5321_vm7, %v16786_v5 }
 0x7ca   : > { %11745 = vmatprep.mubr.msk.bf16.mxu1 %vm5321_vm7, %v16778_v10 }
 0x7d1   : > { %11746 = vmatmul.mubr.msk.bf16.gmra.mrb[204].mxu1 %vm5321_vm7, %v16778_v10 }
 0x7d2   : > { %11747 = vmatprep.mubr.msk.bf16.mxu1 %vm5321_vm7, %v16790_v31 }
 0x7d7   : > { %v11635_v46 = vpop.f32.mrb[112].mxu1 }
 0x7d8   : > { %v11636_v56 = vpop.f32.mrb[113].mxu1 }
 0x7d9   : > { %v16852_v36 = vadd.f32 %v11636_v56, %v11635_v46  ;;  %v11638_v42 = vpop.f32.mrb[114].mxu1  ;;  %11748 = vmatmul.mubr.msk.bf16.gmra.mrb[208].mxu1 %vm5321_vm7, %v16790_v31 }
 0x7da   : > { %v11639_v15 = vpop.f32.mrb[115].mxu1  ;;  %11749 = vmatprep.mubr.msk.bf16.mxu1 %vm5321_vm7, %v16784_v7 }
 0x7db   : > { %20005 = vst [vmem:[#allocation39_spill] sm:$0xff] %v16852_v36  ;;  %v16858_v5 = vadd.f32 %v11639_v15, %v11638_v42 }
 0x7dd   : > { %20006 = vst [vmem:[#allocation19_spill] sm:$0xff] %v16858_v5 }
 0x7e1   : > { %11750 = vmatmul.mubr.msk.bf16.gmra.mrb[212].mxu1 %vm5321_vm7, %v16784_v7 }
 0x7e2   : > { %11751 = vmatprep.mubr.msk.bf16.mxu1 %vm5321_vm7, %v16794_v1 }
 0x7e9   : > { %11752 = vmatmul.mubr.msk.bf16.gmra.mrb[216].mxu1 %vm5321_vm7, %v16794_v1 }
 0x7ea   : > { %11753 = vmatprep.mubr.msk.bf16.mxu1 %vm5321_vm7, %v16788_v45 }
 0x7eb   : > { %v11641_v31 = vpop.f32.mrb[116].mxu1 }
 0x7ec   : > { %v11642_v19 = vpop.f32.mrb[117].mxu1 }
 0x7ed   : > { %v16870_v54 = vadd.f32 %v11642_v19, %v11641_v31  ;;  %v11644_v4 = vpop.f32.mrb[118].mxu1 }
 0x7ee   : > { %v11645_v34 = vpop.f32.mrb[119].mxu1 }
 0x7ef   : > { %20007 = vst [vmem:[#allocation20_spill] sm:$0xff] %v16870_v54  ;;  %v16872_v33 = vadd.f32 %v11645_v34, %v11644_v4 }
 0x7f1   : > { %20008 = vst [vmem:[#allocation26_spill] sm:$0xff] %v16872_v33  ;;  %11754 = vmatmul.mubr.msk.bf16.gmra.mrb[220].mxu1 %vm5321_vm7, %v16788_v45 }
 0x7f3   : > { %v11647_v47 = vpop.f32.mrb[120].mxu1 }
 0x7f4   : > { %v11648_v39 = vpop.f32.mrb[121].mxu1 }
 0x7f5   : > { %v16878_v1 = vadd.f32 %v11648_v39, %v11647_v47  ;;  %v11650_v50 = vpop.f32.mrb[122].mxu1 }
 0x7f6   : > { %v11651_v8 = vpop.f32.mrb[123].mxu1 }
 0x7f7   : > { %20009 = vst [vmem:[#allocation28_spill] sm:$0xff] %v16878_v1  ;;  %v16880_v44 = vadd.f32 %v11651_v8, %v11650_v50 }
 0x7f9   : > { %20010 = vst [vmem:[#allocation23_spill] sm:$0xff] %v16880_v44 }
 0x7fb   : > { %v11653_v51 = vpop.f32.mrb[124].mxu1 }
 0x7fc   : > { %v11654_v40 = vpop.f32.mrb[125].mxu1 }
 0x7fd   : > { %v16884_v6 = vadd.f32 %v11654_v40, %v11653_v51  ;;  %v11656_v0 = vpop.f32.mrb[126].mxu1 }
 0x7fe   : > { %v11657_v52 = vpop.f32.mrb[127].mxu1 }
 0x7ff   : > { %20011 = vst [vmem:[#allocation22_spill] sm:$0xff] %v16884_v6  ;;  %v16886_v38 = vadd.f32 %v11657_v52, %v11656_v0 }
 0x801   : > { %20012 = vst [vmem:[#allocation27_spill] sm:$0xff] %v16886_v38 }
 0x803   : > { %v11659_v58 = vpop.f32.mrb[128].mxu1 }
 0x804   : > { %v11660_v48 = vpop.f32.mrb[129].mxu1 }
 0x805   : > { %v16890_v23 = vadd.f32 %v11660_v48, %v11659_v58  ;;  %v11662_v49 = vpop.f32.mrb[130].mxu1 }
 0x806   : > { %v11663_v16 = vpop.f32.mrb[131].mxu1 }
 0x807   : > { %20013 = vst [vmem:[#allocation32_spill] sm:$0xff] %v16890_v23  ;;  %v16892_v27 = vadd.f32 %v11663_v16, %v11662_v49 }
 0x809   : > { %20014 = vst [vmem:[#allocation21_spill] sm:$0xff] %v16892_v27 }
 0x80b   : > { %v11665_v11 = vpop.f32.mrb[132].mxu1 }
 0x80c   : > { %v11666_v46 = vpop.f32.mrb[133].mxu1 }
 0x80d   : > { %v16896_v56 = vadd.f32 %v11666_v46, %v11665_v11  ;;  %v11668_v42 = vpop.f32.mrb[134].mxu1 }
 0x80e   : > { %v11669_v15 = vpop.f32.mrb[135].mxu1 }
 0x80f   : > { %20015 = vst [vmem:[#allocation25_spill] sm:$0xff] %v16896_v56  ;;  %v16898_v31 = vadd.f32 %v11669_v15, %v11668_v42 }
 0x811   : > { %20016 = vst [vmem:[#allocation31_spill] sm:$0xff] %v16898_v31 }
 0x813   : > { %v11671_v4 = vpop.f32.mrb[136].mxu1 }
 0x814   : > { %v11672_v34 = vpop.f32.mrb[137].mxu1 }
 0x815   : > { %v16902_v47 = vadd.f32 %v11672_v34, %v11671_v4  ;;  %v11674_v39 = vpop.f32.mrb[138].mxu1 }
 0x816   : > { %v11675_v50 = vpop.f32.mrb[139].mxu1 }
 0x817   : > { %20017 = vst [vmem:[#allocation40_spill] sm:$0xff] %v16902_v47  ;;  %v16904_v8 = vadd.f32 %v11675_v50, %v11674_v39 }
 0x819   : > { %20018 = vst [vmem:[#allocation24_spill] sm:$0xff] %v16904_v8 }
 0x81b   : > { %v11677_v40 = vpop.f32.mrb[140].mxu1 }
 0x81c   : > { %v11678_v0 = vpop.f32.mrb[141].mxu1 }
 0x81d   : > { %v16908_v52 = vadd.f32 %v11678_v0, %v11677_v40  ;;  %v11680_v58 = vpop.f32.mrb[142].mxu1 }
 0x81e   : > { %v11681_v48 = vpop.f32.mrb[143].mxu1 }
 0x81f   : > { %20019 = vst [vmem:[#allocation30_spill] sm:$0xff] %v16908_v52  ;;  %v16910_v49 = vadd.f32 %v11681_v48, %v11680_v58 }
 0x821   : > { %20020 = vst [vmem:[#allocation33_spill] sm:$0xff] %v16910_v49 }
 0x823   : > { %v11683_v11 = vpop.f32.mrb[144].mxu1 }
 0x824   : > { %v11684_v46 = vpop.f32.mrb[145].mxu1 }
 0x825   : > { %v16914_v42 = vadd.f32 %v11684_v46, %v11683_v11  ;;  %v11686_v15 = vpop.f32.mrb[146].mxu1 }
 0x826   : > { %v11687_v4 = vpop.f32.mrb[147].mxu1 }
 0x827   : > { %20021 = vst [vmem:[#allocation44_spill] sm:$0xff] %v16914_v42  ;;  %v16916_v34 = vadd.f32 %v11687_v4, %v11686_v15 }
 0x829   : > { %20022 = vst [vmem:[#allocation29_spill] sm:$0xff] %v16916_v34 }
 0x82b   : > { %v11689_v50 = vpop.f32.mrb[148].mxu1 }
 0x82c   : > { %v11690_v40 = vpop.f32.mrb[149].mxu1 }
 0x82d   : > { %v16920_v0 = vadd.f32 %v11690_v40, %v11689_v50  ;;  %v11692_v58 = vpop.f32.mrb[150].mxu1 }
 0x82e   : > { %v11693_v48 = vpop.f32.mrb[151].mxu1 }
 0x82f   : > { %20023 = vst [vmem:[#allocation42_spill] sm:$0xff] %v16920_v0  ;;  %v16922_v51 = vadd.f32 %v11693_v48, %v11692_v58 }
 0x831   : > { %20024 = vst [vmem:[#allocation43_spill] sm:$0xff] %v16922_v51 }
 0x833   : > { %v11695_v11 = vpop.f32.mrb[152].mxu1 }
 0x834   : > { %v11696_v46 = vpop.f32.mrb[153].mxu1 }
 0x835   : > { %v16926_v19 = vadd.f32 %v11696_v46, %v11695_v11  ;;  %v11698_v15 = vpop.f32.mrb[154].mxu1 }
 0x836   : > { %v11699_v4 = vpop.f32.mrb[155].mxu1 }
 0x837   : > { %20025 = vst [vmem:[#allocation41_spill] sm:$0xff] %v16926_v19  ;;  %v16928_v26 = vadd.f32 %v11699_v4, %v11698_v15 }
 0x839   : > { %20026 = vst [vmem:[#allocation45_spill] sm:$0xff] %v16928_v26 }
 0x844   : > { %v11701_v50 = vpop.f32.mrb[156].mxu1 }
 0x845   : > { %v11702_v40 = vpop.f32.mrb[157].mxu1 }
 0x846   : > { %v16932_v45 = vadd.f32 %v11702_v40, %v11701_v50  ;;  %v11704_v58 = vpop.f32.mrb[158].mxu1 }
 0x847   : > { %v11705_v48 = vpop.f32.mrb[159].mxu1 }
 0x848   : > { %20027 = vst [vmem:[#allocation46_spill] sm:$0xff] %v16932_v45  ;;  %v16934_v20 = vadd.f32 %v11705_v48, %v11704_v58 }
 0x84a   : > { %20028 = vst [vmem:[#allocation47_spill] sm:$0xff] %v16934_v20 }
 0x84c   : > { %v16938_v11 = vpop.f32.mrb[160].mxu1 }
 0x84d   : > { %v16940_v46 = vpop.f32.mrb[161].mxu1 }
 0x84e   : > { %v16942_v15 = vpop.f32.mrb[162].mxu1  ;;  %v6702_v4 = vmax.f32 %v16938_v11, %v16940_v46 }
 0x84f   : > { %v16946_v39 = vpop.f32.mrb[163].mxu1 }
 0x850   : > { %6703 = vmax.xlane.f32.xlu0 %v6702_v4  ;;  %v6705_v50 = vmax.f32 %v16942_v15, %v16946_v39 }
 0x852   : > { %6706 = vmax.xlane.f32.xlu1 %v6705_v50 }
 0x854   : > { %v16950_v40 = vpop.f32.mrb[164].mxu1 }
 0x855   : > { %v16952_v58 = vpop.f32.mrb[165].mxu1 }
 0x856   : > { %v16954_v48 = vpop.f32.mrb[166].mxu1  ;;  %v6708_v16 = vmax.f32 %v16950_v40, %v16952_v58 }
 0x857   : > { %v16958_v7 = vpop.f32.mrb[167].mxu1 }
 0x858   : > { %6709 = vmax.xlane.f32.xlu0 %v6708_v16  ;;  %v6711_v10 = vmax.f32 %v16954_v48, %v16958_v7 }
 0x85c   : > { %6712 = vmax.xlane.f32.xlu0 %v6711_v10  ;;  %v16962_v4 = vpop.f32.mrb[168].mxu1 }
 0x85d   : > { %v16964_v55 = vpop.f32.mrb[169].mxu1 }
 0x85e   : > { %v16966_v50 = vpop.f32.mrb[170].mxu1  ;;  %v6714_v62 = vmax.f32 %v16962_v4, %v16964_v55 }
 0x85f   : > { %v16970_v17 = vpop.f32.mrb[171].mxu1 }
 0x860   : > { %6715 = vmax.xlane.f32.xlu1 %v6714_v62  ;;  %v6717_v3 = vmax.f32 %v16966_v50, %v16970_v17 }
 0x862   : > { %6718 = vmax.xlane.f32.xlu0 %v6717_v3 }
 0x864   : > { %v16974_v16 = vpop.f32.mrb[172].mxu1 }
 0x865   : > { %v16976_v45 = vpop.f32.mrb[173].mxu1 }
 0x866   : > { %v16978_v10 = vpop.f32.mrb[174].mxu1  ;;  %v6720_v20 = vmax.f32 %v16974_v16, %v16976_v45 }
 0x867   : > { %v16982_v19 = vpop.f32.mrb[175].mxu1 }
 0x868   : > { %6721 = vmax.xlane.f32.xlu1 %v6720_v20  ;;  %v6723_v26 = vmax.f32 %v16978_v10, %v16982_v19 }
 0x86a   : > { %6724 = vmax.xlane.f32.xlu0 %v6723_v26 }
 0x86c   : > { %v16986_v62 = vpop.f32.mrb[176].mxu1 }
 0x86d   : > { %v16988_v0 = vpop.f32.mrb[177].mxu1 }
 0x86e   : > { %v16990_v3 = vpop.f32.mrb[178].mxu1  ;;  %v6726_v51 = vmax.f32 %v16986_v62, %v16988_v0 }
 0x86f   : > { %v16994_v42 = vpop.f32.mrb[179].mxu1 }
 0x870   : > { %6727 = vmax.xlane.f32.xlu1 %v6726_v51  ;;  %v6729_v34 = vmax.f32 %v16990_v3, %v16994_v42 }
 0x872   : > { %6730 = vmax.xlane.f32.xlu0 %v6729_v34 }
 0x874   : > { %v16998_v20 = vpop.f32.mrb[180].mxu1 }
 0x875   : > { %v17000_v52 = vpop.f32.mrb[181].mxu1 }
 0x876   : > { %v17002_v26 = vpop.f32.mrb[182].mxu1  ;;  %v6732_v49 = vmax.f32 %v16998_v20, %v17000_v52 }
 0x877   : > { %v17006_v47 = vpop.f32.mrb[183].mxu1 }
 0x878   : > { %6733 = vmax.xlane.f32.xlu1 %v6732_v49  ;;  %v6735_v8 = vmax.f32 %v17002_v26, %v17006_v47 }
 0x87a   : > { %6736 = vmax.xlane.f32.xlu0 %v6735_v8 }
 0x87c   : > { %v17010_v51 = vpop.f32.mrb[184].mxu1 }
 0x87d   : > { %v17012_v56 = vpop.f32.mrb[185].mxu1 }
 0x87e   : > { %v17014_v34 = vpop.f32.mrb[186].mxu1  ;;  %v6738_v31 = vmax.f32 %v17010_v51, %v17012_v56 }
 0x87f   : > { %v17018_v23 = vpop.f32.mrb[187].mxu1 }
 0x880   : > { %6739 = vmax.xlane.f32.xlu1 %v6738_v31  ;;  %v6741_v27 = vmax.f32 %v17014_v34, %v17018_v23 }
 0x882   : > { %6742 = vmax.xlane.f32.xlu0 %v6741_v27 }
 0x884   : > { %v17022_v49 = vpop.f32.mrb[188].mxu1 }
 0x885   : > { %v17024_v6 = vpop.f32.mrb[189].mxu1 }
 0x886   : > { %v17026_v8 = vpop.f32.mrb[190].mxu1  ;;  %v6744_v38 = vmax.f32 %v17022_v49, %v17024_v6 }
 0x887   : > { %v17030_v1 = vpop.f32.mrb[191].mxu1 }
 0x888   : > { %6745 = vmax.xlane.f32.xlu1 %v6744_v38  ;;  %v6747_v44 = vmax.f32 %v17026_v8, %v17030_v1 }
 0x88a   : > { %6748 = vmax.xlane.f32.xlu0 %v6747_v44 }
 0x88c   : > { %v17034_v31 = vpop.f32.mrb[192].mxu1 }
 0x88d   : > { %v17036_v54 = vpop.f32.mrb[193].mxu1 }
 0x88e   : > { %v17038_v27 = vpop.f32.mrb[194].mxu1  ;;  %v6750_v33 = vmax.f32 %v17034_v31, %v17036_v54 }
 0x88f   : > { %v17042_v36 = vpop.f32.mrb[195].mxu1 }
 0x890   : > { %6751 = vmax.xlane.f32.xlu1 %v6750_v33  ;;  %v6753_v5 = vmax.f32 %v17038_v27, %v17042_v36 }
 0x892   : > { %6754 = vmax.xlane.f32.xlu0 %v6753_v5 }
 0x894   : > { %v17046_v38 = vpop.f32.mrb[196].mxu1 }
 0x895   : > { %v17048_v59 = vpop.f32.mrb[197].mxu1 }
 0x896   : > { %v17050_v44 = vpop.f32.mrb[198].mxu1  ;;  %v6756_v37 = vmax.f32 %v17046_v38, %v17048_v59 }
 0x897   : > { %v17054_v22 = vpop.f32.mrb[199].mxu1 }
 0x898   : > { %6757 = vmax.xlane.f32.xlu1 %v6756_v37  ;;  %v6759_v18 = vmax.f32 %v17050_v44, %v17054_v22 }
 0x89a   : > { %6760 = vmax.xlane.f32.xlu0 %v6759_v18 }
 0x89c   : > { %v17058_v33 = vpop.f32.mrb[200].mxu1 }
 0x89d   : > { %v17060_v57 = vpop.f32.mrb[201].mxu1 }
 0x89e   : > { %v17062_v5 = vpop.f32.mrb[202].mxu1  ;;  %v6762_v9 = vmax.f32 %v17058_v33, %v17060_v57 }
 0x89f   : > { %v17066_v60 = vpop.f32.mrb[203].mxu1 }
 0x8a0   : > { %6763 = vmax.xlane.f32.xlu1 %v6762_v9  ;;  %v6765_v32 = vmax.f32 %v17062_v5, %v17066_v60 }
 0x8a2   : > { %6766 = vmax.xlane.f32.xlu0 %v6765_v32 }
 0x8a4   : > { %v17070_v37 = vpop.f32.mrb[204].mxu1 }
 0x8a5   : > { %v17072_v24 = vpop.f32.mrb[205].mxu1 }
 0x8a6   : > { %v17074_v18 = vpop.f32.mrb[206].mxu1  ;;  %v6768_v30 = vmax.f32 %v17070_v37, %v17072_v24 }
 0x8a7   : > { %20029 = vst [vmem:[#allocation48_spill] sm:$0xff] %v17074_v18  ;;  %v17078_v43 = vpop.f32.mrb[207].mxu1 }
 0x8a8   : > { %20030 = vst [vmem:[#allocation49_spill] sm:$0xff] %v17078_v43  ;;  %6769 = vmax.xlane.f32.xlu0 %v6768_v30  ;;  %v6771_v61 = vmax.f32 %v17074_v18, %v17078_v43 }
 0x8ac   : > { %6772 = vmax.xlane.f32.xlu0 %v6771_v61  ;;  %v17082_v9 = vpop.f32.mrb[208].mxu1 }
 0x8ad   : > { %v17084_v14 = vpop.f32.mrb[209].mxu1 }
 0x8ae   : > { %v17086_v32 = vpop.f32.mrb[210].mxu1  ;;  %v6774_v29 = vmax.f32 %v17082_v9, %v17084_v14 }
 0x8af   : > { %20031 = vst [vmem:[#allocation50_spill] sm:$0xff] %v17086_v32  ;;  %v17090_v41 = vpop.f32.mrb[211].mxu1 }
 0x8b0   : > { %20032 = vst [vmem:[#allocation51_spill] sm:$0xff] %v17090_v41  ;;  %6775 = vmax.xlane.f32.xlu1 %v6774_v29  ;;  %v6777_v21 = vmax.f32 %v17086_v32, %v17090_v41 }
 0x8b2   : > { %6778 = vmax.xlane.f32.xlu0 %v6777_v21 }
 0x8b4   : > { %v17094_v30 = vpop.f32.mrb[212].mxu1 }
 0x8b5   : > { %20033 = vst [vmem:[#allocation52_spill] sm:$0xff] %v17094_v30  ;;  %v17096_v63 = vpop.f32.mrb[213].mxu1 }
 0x8b6   : > { %20034 = vst [vmem:[#allocation53_spill] sm:$0xff] %v17096_v63  ;;  %v17098_v61 = vpop.f32.mrb[214].mxu1  ;;  %v6780_v53 = vmax.f32 %v17094_v30, %v17096_v63 }
 0x8b7   : > { %20035 = vst [vmem:[#allocation54_spill] sm:$0xff] %v17098_v61  ;;  %v17102_v35 = vpop.f32.mrb[215].mxu1 }
 0x8b8   : > { %20036 = vst [vmem:[#allocation55_spill] sm:$0xff] %v17102_v35  ;;  %6781 = vmax.xlane.f32.xlu1 %v6780_v53  ;;  %v6783_v2 = vmax.f32 %v17098_v61, %v17102_v35  ;;  %v17118_v53 = vpop.permute.xlu1 %7897 }
 0x8b9   : > { %20041 = vst [vmem:[#allocation60_spill] sm:$0xff] %v17118_v53 }
 0x8ba   : > { %6784 = vmax.xlane.f32.xlu0 %v6783_v2 }
 0x8bc   : > { %v17106_v29 = vpop.f32.mrb[216].mxu1 }
 0x8bd   : > { %20037 = vst [vmem:[#allocation56_spill] sm:$0xff] %v17106_v29  ;;  %v17108_v28 = vpop.f32.mrb[217].mxu1 }
 0x8be   : > { %20038 = vst [vmem:[#allocation57_spill] sm:$0xff] %v17108_v28  ;;  %v17110_v21 = vpop.f32.mrb[218].mxu1  ;;  %v6786_v41 = vmax.f32 %v17106_v29, %v17108_v28  ;;  %v17132_v28 = vpop.permute.xlu1 %7899 }
 0x8bf   : > { %20039 = vst [vmem:[#allocation58_spill] sm:$0xff] %v17110_v21  ;;  %v17114_v32 = vpop.f32.mrb[219].mxu1  ;;  %20046 = vst [vmem:[#allocation65_spill] sm:$0xff] %v17132_v28 }
 0x8c0   : > { %20040 = vst [vmem:[#allocation59_spill] sm:$0xff] %v17114_v32  ;;  %6787 = vmax.xlane.f32.xlu1 %v6786_v41  ;;  %v6789_v63 = vmax.f32 %v17110_v21, %v17114_v32 }
 0x8c2   : > { %6790 = vmax.xlane.f32.xlu0 %v6789_v63  ;;  %v17134_v63 = vpop.permute.xlu0 %7915  ;;  %v17136_v53 = vpop.permute.xlu1 %7901 }
 0x8c3   : > { %20047 = vst [vmem:[#allocation66_spill] sm:$0xff] %v17134_v63  ;;  %20048 = vst [vmem:[#allocation67_spill] sm:$0xff] %v17136_v53 }
 0x8c4   : > { %v17120_v35 = vpop.f32.mrb[220].mxu1 }
 0x8c5   : > { %20042 = vst [vmem:[#allocation61_spill] sm:$0xff] %v17120_v35  ;;  %v17122_v2 = vpop.f32.mrb[221].mxu1 }
 0x8c6   : > { %20043 = vst [vmem:[#allocation62_spill] sm:$0xff] %v17122_v2  ;;  %v17124_v61 = vpop.f32.mrb[222].mxu1  ;;  %v6792_v30 = vmax.f32 %v17120_v35, %v17122_v2  ;;  %v17138_v32 = vpop.permute.xlu0 %7917 }
 0x8c7   : > { %20044 = vst [vmem:[#allocation63_spill] sm:$0xff] %v17124_v61  ;;  %v17128_v43 = vpop.f32.mrb[223].mxu1  ;;  %20049 = vst [vmem:[#allocation68_spill] sm:$0xff] %v17138_v32  ;;  %v17140_v21 = vpop.permute.xlu1 %7903 }
 0x8c8   : > { %20045 = vst [vmem:[#allocation64_spill] sm:$0xff] %v17128_v43  ;;  %6793 = vmax.xlane.f32.xlu1 %v6792_v30  ;;  %v6795_v41 = vmax.f32 %v17124_v61, %v17128_v43  ;;  %20050 = vst [vmem:[#allocation69_spill] sm:$0xff] %v17140_v21 }
 0x8ca   : > { %6796 = vmax.xlane.f32.xlu0 %v6795_v41  ;;  %v17142_v29 = vpop.permute.xlu0 %7919 }
 0x8cb   : > { %20051 = vst [vmem:[#allocation70_spill] sm:$0xff] %v17142_v29  ;;  %v17144_v2 = vpop.permute.xlu1 %7905 }
 0x8cc   : > { %20052 = vst [vmem:[#allocation71_spill] sm:$0xff] %v17144_v2 }
 0x8dd   : > { %v6704_v35 = vpop.xlane.xlu0 %6703 }
 0x8de   : > { %v6798_v30 = vsub.f32 %v16938_v11, %v6704_v35  ;;  %v6799_v43 = vsub.f32 %v16940_v46, %v6704_v35 }
 0x8df   : > { %v6707_v61 = vpop.xlane.xlu1 %6706 }
 0x8e0   : > { %v6862_v28 = vmul.f32 1.442695, %v6798_v30  ;;  %v6864_v41 = vmul.f32 1.442695, %v6799_v43  ;;  %v6800_v63 = vsub.f32 %v16942_v15, %v6707_v61  ;;  %v6801_v53 = vsub.f32 %v16946_v39, %v6707_v61 }
 0x8e2   : > { %13419 = vpow2.f32 %v6862_v28  ;;  %v6866_v32 = vmul.f32 1.442695, %v6800_v63  ;;  %v6868_v18 = vmul.f32 1.442695, %v6801_v53 }
 0x8e3   : > { %13421 = vpow2.f32 %v6864_v41 }
 0x8e4   : > { %13423 = vpow2.f32 %v6866_v32 }
 0x8e5   : > { %13425 = vpow2.f32 %v6868_v18  ;;  %v6710_v21 = vpop.xlane.xlu0 %6709 }
 0x8e6   : > { %v6802_v2 = vsub.f32 %v16950_v40, %v6710_v21  ;;  %v6803_v11 = vsub.f32 %v16952_v58, %v6710_v21 }
 0x8e8   : > { %v6870_v29 = vmul.f32 1.442695, %v6802_v2  ;;  %v6872_v35 = vmul.f32 1.442695, %v6803_v11 }
 0x8e9   : > { %v6713_v46 = vpop.xlane.xlu0 %6712 }
 0x8ea   : > { %13427 = vpow2.f32 %v6870_v29  ;;  %v6804_v43 = vsub.f32 %v16954_v48, %v6713_v46  ;;  %v6805_v15 = vsub.f32 %v16958_v7, %v6713_v46 }
 0x8eb   : > { %13429 = vpow2.f32 %v6872_v35 }
 0x8ec   : > { %v17154_v28 = vpop.eup %13419  ;;  %v6874_v39 = vmul.f32 1.442695, %v6804_v43  ;;  %v6876_v61 = vmul.f32 1.442695, %v6805_v15 }
 0x8ed   : > { %v17156_v32 = vpop.eup %13421  ;;  %v6716_v18 = vpop.xlane.xlu1 %6715 }
 0x8ee   : > { %v17158_v53 = vpop.eup %13423  ;;  %13431 = vpow2.f32 %v6874_v39  ;;  %v6806_v40 = vsub.f32 %v16962_v4, %v6716_v18  ;;  %v6807_v58 = vsub.f32 %v16964_v55, %v6716_v18  ;;  %v6990_v48 = vadd.f32 %v17156_v32, %v17154_v28 }
 0x8ef   : > { %v17164_v29 = vpop.eup %13425  ;;  %13433 = vpow2.f32 %v6876_v61  ;;  %v6719_v7 = vpop.xlane.xlu0 %6718 }
 0x8f0   : > { %v6878_v21 = vmul.f32 1.442695, %v6806_v40  ;;  %v6880_v2 = vmul.f32 1.442695, %v6807_v58  ;;  %v6808_v63 = vsub.f32 %v16966_v50, %v6719_v7  ;;  %v6809_v30 = vsub.f32 %v16970_v17, %v6719_v7  ;;  %6991 = vadd.xlane.f32.xlu1 %v6990_v48 }
 0x8f1   : > { %v6993_v41 = vadd.f32 %v17164_v29, %v17158_v53 }
 0x8f2   : > { %13435 = vpow2.f32 %v6878_v21  ;;  %v6882_v4 = vmul.f32 1.442695, %v6808_v63  ;;  %v6884_v55 = vmul.f32 1.442695, %v6809_v30 }
 0x8f3   : > { %13437 = vpow2.f32 %v6880_v2  ;;  %6994 = vadd.xlane.f32.xlu0 %v6993_v41 }
 0x8f4   : > { %v17170_v11 = vpop.eup %13427  ;;  %13439 = vpow2.f32 %v6882_v4 }
 0x8f5   : > { %v17172_v35 = vpop.eup %13429  ;;  %13441 = vpow2.f32 %v6884_v55  ;;  %v6722_v46 = vpop.xlane.xlu1 %6721 }
 0x8f6   : > { %v6810_v50 = vsub.f32 %v16974_v16, %v6722_v46  ;;  %v6811_v17 = vsub.f32 %v16976_v45, %v6722_v46  ;;  %v6996_v43 = vadd.f32 %v17172_v35, %v17170_v11 }
 0x8f7   : > { %v6725_v15 = vpop.xlane.xlu0 %6724 }
 0x8f8   : > { %v17178_v39 = vpop.eup %13431  ;;  %v6886_v61 = vmul.f32 1.442695, %v6810_v50  ;;  %v6888_v18 = vmul.f32 1.442695, %v6811_v17  ;;  %v6812_v40 = vsub.f32 %v16978_v10, %v6725_v15  ;;  %v6813_v58 = vsub.f32 %v16982_v19, %v6725_v15  ;;  %6997 = vadd.xlane.f32.xlu0 %v6996_v43 }
 0x8f9   : > { %v17182_v48 = vpop.eup %13433 }
 0x8fa   : > { %13443 = vpow2.f32 %v6886_v61  ;;  %v6890_v7 = vmul.f32 1.442695, %v6812_v40  ;;  %v6892_v16 = vmul.f32 1.442695, %v6813_v58  ;;  %v6999_v45 = vadd.f32 %v17182_v48, %v17178_v39 }
 0x8fb   : > { %13445 = vpow2.f32 %v6888_v18 }
 0x8fc   : > { %v17186_v21 = vpop.eup %13435  ;;  %13447 = vpow2.f32 %v6890_v7  ;;  %7000 = vadd.xlane.f32.xlu0 %v6999_v45 }
 0x8fd   : > { %v17188_v2 = vpop.eup %13437  ;;  %13449 = vpow2.f32 %v6892_v16  ;;  %v6728_v43 = vpop.xlane.xlu1 %6727 }
 0x8fe   : > { %v17190_v10 = vpop.eup %13439  ;;  %v7002_v19 = vadd.f32 %v17188_v2, %v17186_v21  ;;  %v6814_v15 = vsub.f32 %v16986_v62, %v6728_v43  ;;  %v6815_v61 = vsub.f32 %v16988_v0, %v6728_v43 }
 0x8ff   : > { %v17194_v63 = vpop.eup %13441  ;;  %v6731_v18 = vpop.xlane.xlu0 %6730 }
 0x900   : > { %7003 = vadd.xlane.f32.xlu0 %v7002_v19  ;;  %v7005_v30 = vadd.f32 %v17194_v63, %v17190_v10  ;;  %v6894_v40 = vmul.f32 1.442695, %v6814_v15  ;;  %v6816_v58 = vsub.f32 %v16990_v3, %v6731_v18  ;;  %v6896_v7 = vmul.f32 1.442695, %v6815_v61 }
 0x901   : > { %7907 = vrot.lane.b32.xlu1 %v15928_v12, %s14014_s15  ;;  %v6817_v16 = vsub.f32 %v16994_v42, %v6731_v18 }
 0x902   : > { %13451 = vpow2.f32 %v6894_v40  ;;  %v6898_v19 = vmul.f32 1.442695, %v6816_v58 }
 0x903   : > { %13453 = vpow2.f32 %v6896_v7 }
 0x904   : > { %v17200_v41 = vpop.eup %13443  ;;  %7006 = vadd.xlane.f32.xlu0 %v7005_v30  ;;  %13455 = vpow2.f32 %v6898_v19 }
 0x905   : > { %v17202_v4 = vpop.eup %13445  ;;  %7923 = vrot.lane.b32.xlu1 %v19976_v25, %s14014_s15  ;;  %v6734_v45 = vpop.xlane.xlu1 %6733 }
 0x906   : > { %v17206_v55 = vpop.eup %13447  ;;  %v7008_v46 = vadd.f32 %v17202_v4, %v17200_v41  ;;  %v6818_v30 = vsub.f32 %v16998_v20, %v6734_v45 }
 0x907   : > { %v17210_v50 = vpop.eup %13449  ;;  %v6737_v0 = vpop.xlane.xlu0 %6736 }
 0x908   : > { %7009 = vadd.xlane.f32.xlu0 %v7008_v46  ;;  %v7011_v17 = vadd.f32 %v17210_v50, %v17206_v55  ;;  %v6900_v46 = vmul.f32 1.442695, %v6817_v16  ;;  %v6902_v62 = vmul.f32 1.442695, %v6818_v30 }
 0x90a   : > { %13457 = vpow2.f32 %v6900_v46 }
 0x90b   : > { %13459 = vpow2.f32 %v6902_v62  ;;  %v6821_v62 = vsub.f32 %v17006_v47, %v6737_v0 }
 0x90c   : > { %7012 = vadd.xlane.f32.xlu0 %v7011_v17  ;;  %v6819_v17 = vsub.f32 %v17000_v52, %v6734_v45  ;;  %v17226_v7 = vpop.eup %13451 }
 0x90d   : > { %v6740_v25 = vpop.xlane.xlu1 %6739 }
 0x90e   : > { %v6822_v43 = vsub.f32 %v17010_v51, %v6740_v25  ;;  %v6904_v3 = vmul.f32 1.442695, %v6819_v17  ;;  %v6823_v15 = vsub.f32 %v17012_v56, %v6740_v25  ;;  %v17228_v51 = vpop.eup %13453 }
 0x90f   : > { %v6743_v18 = vpop.xlane.xlu0 %6742  ;;  %v17232_v30 = vpop.eup %13455  ;;  %v7014_v46 = vadd.f32 %v17228_v51, %v17226_v7 }
 0x910   : > { %v6910_v61 = vmul.f32 1.442695, %v6822_v43  ;;  %13461 = vpow2.f32 %v6904_v3  ;;  %v6912_v40 = vmul.f32 1.442695, %v6823_v15 }
 0x912   : > { %13463 = vpow2.f32 %v6910_v61  ;;  %v6824_v61 = vsub.f32 %v17014_v34, %v6743_v18 }
 0x913   : > { %13465 = vpow2.f32 %v6912_v40  ;;  %v6825_v40 = vsub.f32 %v17018_v23, %v6743_v18 }
 0x914   : > { %v17237_v17 = vpop.eup %13457 }
 0x915   : > { %v6746_v42 = vpop.xlane.xlu1 %6745  ;;  %v6916_v23 = vmul.f32 1.442695, %v6825_v40 }
 0x916   : > { %v6826_v20 = vsub.f32 %v17022_v49, %v6746_v42  ;;  %v6827_v52 = vsub.f32 %v17024_v6, %v6746_v42  ;;  %v6820_v6 = vsub.f32 %v17002_v26, %v6737_v0  ;;  %v17244_v42 = vpop.eup %13459  ;;  %v6908_v0 = vmul.f32 1.442695, %v6821_v62 }
 0x917   : > { %v6749_v56 = vpop.xlane.xlu0 %6748 }
 0x918   : > { %v6918_v25 = vmul.f32 1.442695, %v6826_v20  ;;  %v6920_v45 = vmul.f32 1.442695, %v6827_v52  ;;  %v6906_v26 = vmul.f32 1.442695, %v6820_v6  ;;  %v7017_v20 = vadd.f32 %v17237_v17, %v17232_v30 }
 0x919   : > { %v6828_v18 = vsub.f32 %v17026_v8, %v6749_v56  ;;  %v6829_v6 = vsub.f32 %v17030_v1, %v6749_v56 }
 0x91a   : > { %13467 = vpow2.f32 %v6918_v25  ;;  %v17249_v47 = vpop.eup %13461 }
 0x91b   : > { %13469 = vpow2.f32 %v6920_v45  ;;  %v6914_v45 = vmul.f32 1.442695, %v6824_v61 }
 0x91c   : > { %v17254_v34 = vpop.eup %13463 }
 0x91d   : > { %v6752_v58 = vpop.xlane.xlu1 %6751 }
 0x91e   : > { %v6830_v16 = vsub.f32 %v17034_v31, %v6752_v58  ;;  %v6831_v49 = vsub.f32 %v17036_v54, %v6752_v58 }
 0x91f   : > { %v17240_v3 = vpop.xlane.xlu0 %6754 }
 0x920   : > { %v6926_v43 = vmul.f32 1.442695, %v6830_v16  ;;  %v6928_v54 = vmul.f32 1.442695, %v6831_v49  ;;  %v7020_v49 = vadd.f32 %v17249_v47, %v17244_v42  ;;  %v6832_v1 = vsub.f32 %v17038_v27, %v17240_v3 }
 0x921   : > { %v6833_v56 = vsub.f32 %v17042_v36, %v17240_v3 }
 0x922   : > { %7921 = vrot.lane.b32.xlu0 %v15976_v13, %s14014_s15  ;;  %13471 = vpow2.f32 %v6926_v43  ;;  %v6930_v36 = vmul.f32 1.442695, %v6832_v1  ;;  %v20054_v1 = vld [vmem:[#allocation48_spill] sm:$0xff] }
 0x923   : > { %13473 = vpow2.f32 %v6928_v54  ;;  %v6922_v54 = vmul.f32 1.442695, %v6828_v18  ;;  %v6932_v3 = vmul.f32 1.442695, %v6833_v56 }
 0x924   : > { %13475 = vpow2.f32 %v6906_v26 }
 0x925   : > { %v6758_v19 = vpop.xlane.xlu1 %6757  ;;  %13477 = vpow2.f32 %v6908_v0 }
 0x926   : > { %v6834_v31 = vsub.f32 %v17046_v38, %v6758_v19  ;;  %v6835_v15 = vsub.f32 %v17048_v59, %v6758_v19  ;;  %v17258_v19 = vpop.eup %13465 }
 0x927   : > { %v6761_v52 = vpop.xlane.xlu0 %6760  ;;  %v17262_v62 = vpop.eup %13467  ;;  %v7026_v43 = vadd.f32 %v17258_v19, %v17254_v34 }
 0x928   : > { %v6934_v38 = vmul.f32 1.442695, %v6834_v31  ;;  %v6936_v59 = vmul.f32 1.442695, %v6835_v15  ;;  %v17266_v31 = vpop.eup %13469  ;;  %v6924_v15 = vmul.f32 1.442695, %v6829_v6  ;;  %v6836_v0 = vsub.f32 %v17050_v44, %v6761_v52 }
 0x929   : > { %7015 = vadd.xlane.f32.xlu1 %v7014_v46  ;;  %v7032_v40 = vadd.f32 %v17266_v31, %v17262_v62 }
 0x92a   : > { %13479 = vpow2.f32 %v6934_v38 }
 0x92b   : > { %13481 = vpow2.f32 %v6936_v59 }
 0x92c   : > { %13483 = vpow2.f32 %v6914_v45 }
 0x92d   : > { %7018 = vadd.xlane.f32.xlu1 %v7017_v20  ;;  %v6764_v58 = vpop.xlane.xlu1 %6763  ;;  %13485 = vpow2.f32 %v6916_v23  ;;  %v17274_v20 = vpop.eup %13471 }
 0x92e   : > { %v6838_v25 = vsub.f32 %v17058_v33, %v6764_v58  ;;  %v6839_v16 = vsub.f32 %v17060_v57, %v6764_v58  ;;  %v17279_v38 = vpop.eup %13473 }
 0x92f   : > { %v6767_v33 = vpop.xlane.xlu0 %6766  ;;  %v17281_v59 = vpop.eup %13475 }
 0x930   : > { %v6942_v46 = vmul.f32 1.442695, %v6838_v25  ;;  %v6944_v57 = vmul.f32 1.442695, %v6839_v16  ;;  %v6938_v25 = vmul.f32 1.442695, %v6836_v0  ;;  %v7038_v16 = vadd.f32 %v17279_v38, %v17274_v20 }
 0x931   : > { %7021 = vadd.xlane.f32.xlu1 %v7020_v49  ;;  %v6840_v49 = vsub.f32 %v17062_v5, %v6767_v33 }
 0x932   : > { %13487 = vpow2.f32 %v6942_v46 }
 0x933   : > { %13489 = vpow2.f32 %v6944_v57 }
 0x934   : > { %13491 = vpow2.f32 %v6922_v54 }
 0x935   : > { %7027 = vadd.xlane.f32.xlu1 %v7026_v43  ;;  %v6770_v8 = vpop.xlane.xlu0 %6769  ;;  %13493 = vpow2.f32 %v6924_v15 }
 0x936   : > { %v6842_v26 = vsub.f32 %v17070_v37, %v6770_v8  ;;  %v6843_v61 = vsub.f32 %v17072_v24, %v6770_v8  ;;  %v6837_v37 = vsub.f32 %v17054_v22, %v6761_v52  ;;  %v17284_v24 = vpop.eup %13477  ;;  %v6841_v52 = vsub.f32 %v17066_v60, %v6767_v33 }
 0x937   : > { %v17286_v44 = vpop.eup %13479  ;;  %v7023_v5 = vadd.f32 %v17284_v24, %v17281_v59  ;;  %v6946_v33 = vmul.f32 1.442695, %v6840_v49  ;;  %v20058_v49 = vld [vmem:[#allocation50_spill] sm:$0xff] }
 0x938   : > { %v6950_v27 = vmul.f32 1.442695, %v6842_v26  ;;  %v6952_v58 = vmul.f32 1.442695, %v6843_v61  ;;  %v17290_v45 = vpop.eup %13481  ;;  %v6940_v22 = vmul.f32 1.442695, %v6837_v37 }
 0x939   : > { %7033 = vadd.xlane.f32.xlu1 %v7032_v40  ;;  %v17293_v23 = vpop.eup %13483  ;;  %v6773_v18 = vpop.xlane.xlu0 %6772  ;;  %v7044_v15 = vadd.f32 %v17290_v45, %v17286_v44  ;;  %v20055_v61 = vld [vmem:[#allocation49_spill] sm:$0xff] }
 0x93a   : > { %13495 = vpow2.f32 %v6950_v27  ;;  %v17296_v46 = vpop.eup %13485  ;;  %v6844_v8 = vsub.f32 %v20054_v1, %v6773_v18 }
 0x93b   : > { %13497 = vpow2.f32 %v6952_v58  ;;  %v7029_v58 = vadd.f32 %v17296_v46, %v17293_v23 }
 0x93c   : > { %13499 = vpow2.f32 %v6930_v36  ;;  %v17300_v54 = vpop.eup %13487 }
 0x93d   : > { %7039 = vadd.xlane.f32.xlu1 %v7038_v16  ;;  %v6776_v6 = vpop.xlane.xlu1 %6775  ;;  %13501 = vpow2.f32 %v6932_v3  ;;  %20053 = vst [vmem:[#allocation72_spill] sm:$0xff] %v17300_v54  ;;  %v17306_v60 = vpop.eup %13489  ;;  %v6954_v3 = vmul.f32 1.442695, %v6844_v8 }
 0x93e   : > { %v6846_v57 = vsub.f32 %v17082_v9, %v6776_v6  ;;  %v6847_v43 = vsub.f32 %v17084_v14, %v6776_v6  ;;  %13503 = vpow2.f32 %v6938_v25  ;;  %v6948_v9 = vmul.f32 1.442695, %v6841_v52  ;;  %v17310_v0 = vpop.eup %13491 }
 0x93f   : > { %13505 = vpow2.f32 %v6940_v22  ;;  %v6845_v14 = vsub.f32 %v20055_v61, %v6773_v18  ;;  %v6779_v40 = vpop.xlane.xlu0 %6778  ;;  %v17312_v27 = vpop.eup %13493  ;;  %v7050_v36 = vadd.f32 %v17306_v60, %v17300_v54  ;;  %v20059_v18 = vld [vmem:[#allocation51_spill] sm:$0xff] }
 0x940   : > { %v6958_v56 = vmul.f32 1.442695, %v6846_v57  ;;  %v6960_v26 = vmul.f32 1.442695, %v6847_v43  ;;  %v6848_v22 = vsub.f32 %v20058_v49, %v6779_v40  ;;  %v6849_v6 = vsub.f32 %v20059_v18, %v6779_v40  ;;  %v20060_v57 = vld [vmem:[#allocation52_spill] sm:$0xff]  ;;  %v20063_v49 = vld [vmem:[#allocation55_spill] sm:$0xff] }
 0x941   : > { %7024 = vadd.xlane.f32.xlu0 %v7023_v5  ;;  %7045 = vadd.xlane.f32.xlu1 %v7044_v15  ;;  %v6956_v16 = vmul.f32 1.442695, %v6845_v14  ;;  %v20061_v5 = vld [vmem:[#allocation53_spill] sm:$0xff]  ;;  %v20062_v14 = vld [vmem:[#allocation54_spill] sm:$0xff] }
 0x942   : > { %13507 = vpow2.f32 %v6958_v56  ;;  %v7035_v56 = vadd.f32 %v17312_v27, %v17310_v0  ;;  %v6964_v18 = vmul.f32 1.442695, %v6849_v6  ;;  %v20067_v6 = vld [vmem:[#allocation56_spill] sm:$0xff] }
 0x943   : > { %13509 = vpow2.f32 %v6960_v26 }
 0x944   : > { %v17318_v37 = vpop.eup %13495  ;;  %13511 = vpow2.f32 %v6946_v33 }
 0x945   : > { %20056 = vst [vmem:[#allocation48_spill] sm:$0xff] %v17318_v37  ;;  %v17320_v25 = vpop.eup %13497  ;;  %13513 = vpow2.f32 %v6948_v9  ;;  %7030 = vadd.xlane.f32.xlu0 %v7029_v58  ;;  %7051 = vadd.xlane.f32.xlu1 %v7050_v36  ;;  %v6782_v52 = vpop.xlane.xlu1 %6781  ;;  %v6962_v36 = vmul.f32 1.442695, %v6848_v22 }
 0x946   : > { %20057 = vst [vmem:[#allocation49_spill] sm:$0xff] %v17320_v25  ;;  %v6850_v43 = vsub.f32 %v20060_v57, %v6782_v52  ;;  %v6851_v15 = vsub.f32 %v20061_v5, %v6782_v52  ;;  %v7056_v1 = vadd.f32 %v17320_v25, %v17318_v37  ;;  %v17328_v33 = vpop.eup %13499  ;;  %13515 = vpow2.f32 %v6954_v3  ;;  %v20070_v25 = vld [vmem:[#allocation59_spill] sm:$0xff] }
 0x947   : > { %v6785_v8 = vpop.xlane.xlu0 %6784  ;;  %v17332_v26 = vpop.eup %13501  ;;  %13517 = vpow2.f32 %v6956_v16 }
 0x948   : > { %v6966_v9 = vmul.f32 1.442695, %v6850_v43  ;;  %v6968_v61 = vmul.f32 1.442695, %v6851_v15  ;;  %v6852_v40 = vsub.f32 %v20062_v14, %v6785_v8  ;;  %v17335_v58 = vpop.eup %13503  ;;  %v6853_v52 = vsub.f32 %v20063_v49, %v6785_v8 }
 0x949   : > { %7036 = vadd.xlane.f32.xlu0 %v7035_v56  ;;  %7057 = vadd.xlane.f32.xlu1 %v7056_v1  ;;  %v17338_v57 = vpop.eup %13505  ;;  %v7041_v3 = vadd.f32 %v17332_v26, %v17328_v33  ;;  %v20068_v56 = vld [vmem:[#allocation57_spill] sm:$0xff] }
 0x94a   : > { %13519 = vpow2.f32 %v6966_v9  ;;  %v6970_v5 = vmul.f32 1.442695, %v6852_v40  ;;  %v6972_v16 = vmul.f32 1.442695, %v6853_v52 }
 0x94b   : > { %13521 = vpow2.f32 %v6968_v61 }
 0x94c   : > { %v17342_v43 = vpop.eup %13507  ;;  %13523 = vpow2.f32 %v6962_v36  ;;  %v7047_v36 = vadd.f32 %v17338_v57, %v17335_v58 }
 0x94d   : > { %20064 = vst [vmem:[#allocation50_spill] sm:$0xff] %v17342_v43  ;;  %v17344_v15 = vpop.eup %13509  ;;  %7042 = vadd.xlane.f32.xlu0 %v7041_v3  ;;  %v6788_v22 = vpop.xlane.xlu1 %6787  ;;  %13525 = vpow2.f32 %v6964_v18  ;;  %v20069_v3 = vld [vmem:[#allocation58_spill] sm:$0xff] }
 0x94e   : > { %20065 = vst [vmem:[#allocation51_spill] sm:$0xff] %v17344_v15  ;;  %v17346_v8 = vpop.eup %13511  ;;  %v6854_v1 = vsub.f32 %v20067_v6, %v6788_v22  ;;  %v6855_v9 = vsub.f32 %v20068_v56, %v6788_v22  ;;  %v7062_v61 = vadd.f32 %v17344_v15, %v17342_v43  ;;  %13527 = vpow2.f32 %v6970_v5  ;;  %v20087_v15 = vld [vmem:[#allocation63_spill] sm:$0xff] }
 0x94f   : > { %20066 = vst [vmem:[#allocation52_spill] sm:$0xff] %v17346_v8  ;;  %v17352_v14 = vpop.eup %13513  ;;  %v6791_v40 = vpop.xlane.xlu0 %6790  ;;  %13529 = vpow2.f32 %v6972_v16 }
 0x950   : > { %v6974_v49 = vmul.f32 1.442695, %v6854_v1  ;;  %v6976_v52 = vmul.f32 1.442695, %v6855_v9  ;;  %v6856_v37 = vsub.f32 %v20069_v3, %v6791_v40  ;;  %v6857_v18 = vsub.f32 %v20070_v25, %v6791_v40  ;;  %7063 = vadd.xlane.f32.xlu1 %v7062_v61  ;;  %v17358_v22 = vpop.eup %13515 }
 0x951   : > { %7048 = vadd.xlane.f32.xlu0 %v7047_v36  ;;  %20071 = vst [vmem:[#allocation53_spill] sm:$0xff] %v17358_v22  ;;  %v17360_v43 = vpop.eup %13517  ;;  %v7053_v5 = vadd.f32 %v17352_v14, %v17346_v8 }
 0x952   : > { %13531 = vpow2.f32 %v6974_v49  ;;  %v6978_v6 = vmul.f32 1.442695, %v6856_v37  ;;  %v6980_v56 = vmul.f32 1.442695, %v6857_v18  ;;  %20072 = vst [vmem:[#allocation54_spill] sm:$0xff] %v17360_v43  ;;  %v7059_v37 = vadd.f32 %v17360_v43, %v17358_v22 }
 0x953   : > { %13533 = vpow2.f32 %v6976_v52 }
 0x954   : > { %v17364_v1 = vpop.eup %13519  ;;  %13535 = vpow2.f32 %v6978_v6 }
 0x955   : > { %20073 = vst [vmem:[#allocation55_spill] sm:$0xff] %v17364_v1  ;;  %v17366_v9 = vpop.eup %13521  ;;  %7054 = vadd.xlane.f32.xlu0 %v7053_v5  ;;  %13537 = vpow2.f32 %v6980_v56 }
 0x956   : > { %20074 = vst [vmem:[#allocation56_spill] sm:$0xff] %v17366_v9  ;;  %v7068_v25 = vadd.f32 %v17366_v9, %v17364_v1  ;;  %v17370_v16 = vpop.eup %13523  ;;  %v20084_v1 = vld [vmem:[#allocation8_spill] sm:$0xff] }
 0x957   : > { %20075 = vst [vmem:[#allocation57_spill] sm:$0xff] %v17370_v16  ;;  %v17374_v61 = vpop.eup %13525 }
 0x958   : > { %20076 = vst [vmem:[#allocation58_spill] sm:$0xff] %v17374_v61  ;;  %7069 = vadd.xlane.f32.xlu1 %v7068_v25  ;;  %v17376_v40 = vpop.eup %13527  ;;  %v7065_v49 = vadd.f32 %v17374_v61, %v17370_v16 }
 0x959   : > { %20077 = vst [vmem:[#allocation59_spill] sm:$0xff] %v17376_v40  ;;  %7060 = vadd.xlane.f32.xlu0 %v7059_v37  ;;  %v17378_v36 = vpop.eup %13529  ;;  %v20083_v37 = vld [vmem:[#allocation15_spill] sm:$0xff] }
 0x95a   : > { %20078 = vst [vmem:[#allocation73_spill] sm:$0xff] %v17378_v36  ;;  %v7071_v56 = vadd.f32 %v17378_v36, %v17376_v40  ;;  %v20086_v40 = vld [vmem:[#allocation62_spill] sm:$0xff] }
 0x95c   : > { %v17382_v52 = vpop.eup %13531 }
 0x95d   : > { %20079 = vst [vmem:[#allocation74_spill] sm:$0xff] %v17382_v52  ;;  %v17384_v3 = vpop.eup %13533  ;;  %7066 = vadd.xlane.f32.xlu0 %v7065_v49  ;;  %v6794_v49 = vpop.xlane.xlu1 %6793 }
 0x95e   : > { %20080 = vst [vmem:[#allocation75_spill] sm:$0xff] %v17384_v3  ;;  %v7074_v18 = vadd.f32 %v17384_v3, %v17382_v52  ;;  %v17388_v6 = vpop.eup %13535  ;;  %v6797_v52 = vpop.xlane.xlu0 %6796  ;;  %v20085_v3 = vld [vmem:[#allocation61_spill] sm:$0xff]  ;;  %v6859_v36 = vsub.f32 %v20086_v40, %v6794_v49 }
 0x95f   : > { %20081 = vst [vmem:[#allocation76_spill] sm:$0xff] %v17388_v6  ;;  %v17392_v5 = vpop.eup %13537  ;;  %v6858_v9 = vsub.f32 %v20085_v3, %v6794_v49  ;;  %v6860_v61 = vsub.f32 %v20087_v15, %v6797_v52 }
 0x960   : > { %20082 = vst [vmem:[#allocation77_spill] sm:$0xff] %v17392_v5  ;;  %7075 = vadd.xlane.f32.xlu1 %v7074_v18  ;;  %v7077_v25 = vadd.f32 %v17392_v5, %v17388_v6  ;;  %v20088_v6 = vld [vmem:[#allocation64_spill] sm:$0xff] }
 0x961   : > { %7072 = vadd.xlane.f32.xlu0 %v7071_v56  ;;  %v6982_v56 = vmul.f32 1.442695, %v6858_v9  ;;  %v6861_v5 = vsub.f32 %v20088_v6, %v6797_v52  ;;  %v6986_v22 = vmul.f32 1.442695, %v6860_v61 }
 0x963   : > { %v6988_v43 = vmul.f32 1.442695, %v6861_v5 }
 0x965   : > { %7078 = vadd.xlane.f32.xlu0 %v7077_v25  ;;  %v6984_v25 = vmul.f32 1.442695, %v6859_v36 }
 0x971   : > { %7925 = vrot.lane.b32.xlu1 %v20083_v37, %s14014_s15 }
 0x97b   : > { %7909 = vrot.lane.b32.xlu0 %v20084_v1, %s14014_s15 }
 0x97d   : > { %v6992_v16 = vpop.xlane.xlu1 %6991 }
 0x97e   : > { %13539 = vrcp.f32 %v6992_v16 }
 0x980   : > { %v6995_v18 = vpop.xlane.xlu0 %6994 }
 0x981   : > { %13541 = vrcp.f32 %v6995_v18 }
 0x982   : > { %13543 = vpow2.f32 %v6982_v56 }
 0x983   : > { %13545 = vpow2.f32 %v6984_v25 }
 0x985   : > { %v6998_v54 = vpop.xlane.xlu0 %6997 }
 0x986   : > { %13547 = vrcp.f32 %v6998_v54 }
 0x987   : > { %13549 = vpow2.f32 %v6986_v22  ;;  %v20089_v22 = vld [vmem:[#allocation60_spill] sm:$0xff] }
 0x988   : > { %v13540_v8 = vpop.eup %13539 }
 0x989   : > { %v7001_v3 = vpop.xlane.xlu0 %7000  ;;  %v7118_v9 = vmul.f32 %v13540_v8, %v17154_v28  ;;  %v7119_v16 = vmul.f32 %v13540_v8, %v17156_v32 }
 0x98a   : > { %13551 = vrcp.f32 %v7001_v3 }
 0x98b   : > { %v13542_v40 = vpop.eup %13541  ;;  %13553 = vpow2.f32 %v6988_v43  ;;  %v7978_v43 = vsel %vm5321_vm7, %v20089_v22, 0 }
 0x98c   : > { %v7120_v15 = vmul.f32 %v13542_v40, %v17158_v53  ;;  %v7121_v36 = vmul.f32 %v13542_v40, %v17164_v29  ;;  %v17408_v49 = vpop.eup %13543  ;;  %v20090_v53 = vld [vmem:[#allocation66_spill] sm:$0xff] }
 0x98d   : > { %v7004_v52 = vpop.xlane.xlu0 %7003  ;;  %v17410_v54 = vpop.eup %13545 }
 0x98e   : > { %v7183_v61 = vpack.c.bf16 %v7121_v36, %v7119_v16  ;;  %v7182_v6 = vpack.c.bf16 %v7120_v15, %v7118_v9  ;;  %13555 = vrcp.f32 %v7004_v52  ;;  %v7080_v29 = vadd.f32 %v17410_v54, %v17408_v49  ;;  %v20091_v52 = vld [vmem:[#allocation65_spill] sm:$0xff] }
 0x990   : > { %7294 = vmatprep.mubr.bf16.mxu1 %v7183_v61  ;;  %v13548_v5 = vpop.eup %13547  ;;  %v7981_v61 = vsel %vm5321_vm7, %v20091_v52, 0 }
 0x991   : > { %7295 = vmatmul.mubr.bf16.vlgmr.msra.gmra.mrb[224].mxu1 %v7182_v6  ;;  %v7007_v28 = vpop.xlane.xlu0 %7006  ;;  %v17414_v32 = vpop.eup %13549  ;;  %v7123_v25 = vmul.f32 %v13548_v5, %v17172_v35  ;;  %v7122_v40 = vmul.f32 %v13548_v5, %v17170_v11  ;;  %v20092_v35 = vld [vmem:[#allocation68_spill] sm:$0xff] }
 0x992   : > { %11902 = vmatpush3.bf16.xpose.msra.mxu1 %v7978_v43  ;;  %13557 = vrcp.f32 %v7007_v28 }
 0x993   : > { %13122 = vmatprep.subr.msk.bf16.mxu1 %vm5321_vm7, %v20090_v53 }
 0x994   : > { %v13552_v8 = vpop.eup %13551 }
 0x995   : > { %v17420_v18 = vpop.eup %13553  ;;  %v7010_v56 = vpop.xlane.xlu0 %7009  ;;  %7081 = vadd.xlane.f32.xlu1 %v7080_v29  ;;  %v7125_v3 = vmul.f32 %v13552_v8, %v17182_v48  ;;  %v7124_v9 = vmul.f32 %v13552_v8, %v17178_v39  ;;  %v20093_v29 = vld [vmem:[#allocation67_spill] sm:$0xff] }
 0x996   : > { %13559 = vrcp.f32 %v7010_v56  ;;  %v7083_v36 = vadd.f32 %v17420_v18, %v17414_v32  ;;  %v7984_v8 = vsel %vm5321_vm7, %v20093_v29, 0 }
 0x997   : > { %v7185_v15 = vpack.c.bf16 %v7125_v3, %v7123_v25  ;;  %v7184_v16 = vpack.c.bf16 %v7124_v9, %v7122_v40  ;;  %v20094_v25 = vld [vmem:[#allocation70_spill] sm:$0xff] }
 0x998   : > { %v13556_v22 = vpop.eup %13555  ;;  %v20095_v40 = vld [vmem:[#allocation14_spill] sm:$0xff] }
 0x999   : > { %v7013_v6 = vpop.xlane.xlu0 %7012  ;;  %7302 = vmatprep.mubr.bf16.mxu1 %v7185_v15  ;;  %v7127_v39 = vmul.f32 %v13556_v22, %v17188_v2  ;;  %v7126_v43 = vmul.f32 %v13556_v22, %v17186_v21 }
 0x99a   : > { %11904 = vmatpush3.bf16.xpose.msra.mxu1 %v7981_v61  ;;  %13561 = vrcp.f32 %v7013_v6  ;;  %7084 = vadd.xlane.f32.xlu0 %v7083_v36  ;;  %v20100_v61 = vld [vmem:[#allocation71_spill] sm:$0xff] }
 0x99b   : > { %13123 = vmatprep.subr.msk.bf16.mxu1 %vm5321_vm7, %v20092_v35  ;;  %7303 = vmatmul.mubr.bf16.gmra.mrb[228].mxu1 %v7184_v16  ;;  %v20096_v16 = vld [vmem:[#allocation69_spill] sm:$0xff]  ;;  %v7990_v6 = vsel %vm5321_vm7, %v20100_v61, 0  ;;  %v20101_v35 = vld [vmem:[#allocation3_spill] sm:$0xff] }
 0x99c   : > { %v13558_v11 = vpop.eup %13557  ;;  %v7987_v36 = vsel %vm5321_vm7, %v20096_v16, 0  ;;  %v20106_v16 = vld [vmem:[#allocation11_spill] sm:$0xff] }
 0x99d   : > { %v7129_v48 = vmul.f32 %v13558_v11, %v17194_v63  ;;  %v7128_v28 = vmul.f32 %v13558_v11, %v17190_v10  ;;  %v7922_v52 = vpop.permute.xlu0 %7921 }
 0x99f   : > { %v7187_v5 = vpack.c.bf16 %v7129_v48, %v7127_v39  ;;  %v7186_v53 = vpack.c.bf16 %v7128_v28, %v7126_v43  ;;  %v20102_v39 = vld [vmem:[#allocation5_spill] sm:$0xff]  ;;  %v20103_v28 = vld [vmem:[#allocation6_spill] sm:$0xff] }
 0x9a0   : > { %v13560_v56 = vpop.eup %13559 }
 0x9a1   : > { %7310 = vmatprep.mubr.bf16.mxu1 %v7187_v5  ;;  %v7131_v2 = vmul.f32 %v13560_v56, %v17202_v4  ;;  %v7130_v21 = vmul.f32 %v13560_v56, %v17200_v41  ;;  %v20097_v4 = vld [vmem:[#allocation2_spill] sm:$0xff]  ;;  %v7908_v41 = vpop.permute.xlu1 %7907  ;;  %v20104_v5 = vld [vmem:[#allocation9_spill] sm:$0xff] }
 0x9a2   : > { %11906 = vmatpush3.bf16.xpose.msra.mxu1 %v7984_v8  ;;  %v7993_v48 = vsel %vm5321_vm7, %v7908_v41, 0  ;;  %v20105_v56 = vld [vmem:[#allocation10_spill] sm:$0xff]  ;;  %v20108_v41 = vld [vmem:[#allocation13_spill] sm:$0xff] }
 0x9a3   : > { %13124 = vmatprep.subr.msk.bf16.mxu1 %vm5321_vm7, %v20094_v25  ;;  %7311 = vmatmul.mubr.bf16.gmra.mrb[232].mxu1 %v7186_v53 }
 0x9a4   : > { %v13562_v3 = vpop.eup %13561 }
 0x9a5   : > { %v7133_v63 = vmul.f32 %v13562_v3, %v17210_v50  ;;  %v7132_v10 = vmul.f32 %v13562_v3, %v17206_v55  ;;  %v20098_v55 = vld [vmem:[#allocation4_spill] sm:$0xff]  ;;  %v20099_v50 = vld [vmem:[#allocation7_spill] sm:$0xff]  ;;  %v7924_v22 = vpop.permute.xlu1 %7923 }
 0x9a6   : > { %7927 = vrot.lane.b32.xlu1 %v20095_v40, %s14014_s15 }
 0x9a7   : > { %v7189_v9 = vpack.c.bf16 %v7133_v63, %v7131_v2  ;;  %v7188_v15 = vpack.c.bf16 %v7132_v10, %v7130_v21 }
 0x9a9   : > { %7318 = vmatprep.mubr.bf16.mxu1 %v7189_v9 }
 0x9aa   : > { %11908 = vmatpush3.bf16.xpose.msra.mxu1 %v7987_v36  ;;  %7867 = vrot.lane.b32.xlu1 %v20097_v4, %s14015_s16 }
 0x9ab   : > { %13125 = vmatprep.subr.msk.bf16.mxu1 %vm5321_vm7, %v7922_v52  ;;  %7319 = vmatmul.mubr.bf16.gmra.mrb[236].mxu1 %v7188_v15 }
 0x9ae   : > { %7871 = vrot.lane.b32.xlu1 %v20098_v55, %s14015_s16 }
 0x9b0   : > { %7911 = vrot.lane.b32.xlu0 %v20099_v50, %s14014_s15 }
 0x9b2   : > { %11910 = vmatpush3.bf16.xpose.msra.mxu1 %v7990_v6  ;;  %7875 = vrot.lane.b32.xlu1 %v15928_v12, %s14015_s16 }
 0x9b3   : > { %13126 = vmatprep.subr.msk.bf16.mxu1 %vm5321_vm7, %v7924_v22 }
 0x9b4   : > { %7865 = vrot.lane.b32.xlu0 %v20101_v35, %s14015_s16 }
 0x9b6   : > { %7879 = vrot.lane.b32.xlu1 %v20099_v50, %s14015_s16  ;;  %v7016_v11 = vpop.xlane.xlu1 %7015 }
 0x9b7   : > { %13563 = vrcp.f32 %v7016_v11 }
 0x9b8   : > { %7869 = vrot.lane.b32.xlu0 %v20102_v39, %s14015_s16 }
 0x9ba   : > { %11912 = vmatpush3.bf16.xpose.msra.mxu1 %v7993_v48  ;;  %9232 = vrot.lane.b32.xlu1 %v20101_v35, %s14016_s17  ;;  %v7019_v43 = vpop.xlane.xlu1 %7018 }
 0x9bb   : > { %13565 = vrcp.f32 %v7019_v43 }
 0x9bc   : > { %7873 = vrot.lane.b32.xlu0 %v20103_v28, %s14015_s16 }
 0x9be   : > { %7883 = vrot.lane.b32.xlu1 %v20104_v5, %s14015_s16  ;;  %v7022_v53 = vpop.xlane.xlu1 %7021 }
 0x9bf   : > { %13567 = vrcp.f32 %v7022_v53 }
 0x9c0   : > { %7877 = vrot.lane.b32.xlu0 %v20084_v1, %s14015_s16 }
 0x9c1   : > { %v13564_v29 = vpop.eup %13563 }
 0x9c2   : > { %9250 = vrot.lane.b32.xlu1 %v20104_v5, %s14016_s17  ;;  %v7028_v8 = vpop.xlane.xlu1 %7027  ;;  %v7135_v3 = vmul.f32 %v13564_v29, %v17228_v51  ;;  %v7134_v63 = vmul.f32 %v13564_v29, %v17226_v7 }
 0x9c4   : > { %7881 = vrot.lane.b32.xlu0 %v20105_v56, %s14015_s16 }
 0x9c5   : > { %v13566_v25 = vpop.eup %13565 }
 0x9c6   : > { %9236 = vrot.lane.b32.xlu1 %v20102_v39, %s14016_s17  ;;  %v7137_v2 = vmul.f32 %v13566_v25, %v17237_v17  ;;  %v7136_v21 = vmul.f32 %v13566_v25, %v17232_v30  ;;  %v7034_v15 = vpop.xlane.xlu1 %7033  ;;  %v20107_v30 = vld [vmem:[#allocation12_spill] sm:$0xff] }
 0x9c8   : > { %9248 = vrot.lane.b32.xlu0 %v20105_v56, %s14016_s17  ;;  %v7191_v10 = vpack.c.bf16 %v7137_v2, %v7135_v3  ;;  %v7190_v9 = vpack.c.bf16 %v7136_v21, %v7134_v63 }
 0x9c9   : > { %v13568_v61 = vpop.eup %13567 }
 0x9ca   : > { %7887 = vrot.lane.b32.xlu1 %v20106_v16, %s14015_s16  ;;  %7326 = vmatprep.mubr.bf16.mxu1 %v7191_v10  ;;  %v7040_v7 = vpop.xlane.xlu1 %7039  ;;  %v7139_v11 = vmul.f32 %v13568_v61, %v17249_v47  ;;  %v7138_v43 = vmul.f32 %v13568_v61, %v17244_v42 }
 0x9cb   : > { %7327 = vmatmul.mubr.bf16.gmra.mrb[240].mxu1 %v7190_v9 }
 0x9cc   : > { %9234 = vrot.lane.b32.xlu0 %v20097_v4, %s14016_s17 }
 0x9ce   : > { %v7025_v51 = vpop.xlane.xlu0 %7024  ;;  %9254 = vrot.lane.b32.xlu1 %v20106_v16, %s14016_s17  ;;  %v7046_v36 = vpop.xlane.xlu1 %7045 }
 0x9cf   : > { %13569 = vrcp.f32 %v7025_v51 }
 0x9d0   : > { %7885 = vrot.lane.b32.xlu0 %v20107_v30, %s14015_s16  ;;  %13571 = vrcp.f32 %v7028_v8 }
 0x9d2   : > { %v7031_v17 = vpop.xlane.xlu0 %7030  ;;  %9240 = vrot.lane.b32.xlu1 %v20103_v28, %s14016_s17  ;;  %v7052_v8 = vpop.xlane.xlu1 %7051 }
 0x9d3   : > { %13573 = vrcp.f32 %v7031_v17 }
 0x9d4   : > { %9252 = vrot.lane.b32.xlu0 %v20107_v30, %s14016_s17  ;;  %13575 = vrcp.f32 %v7034_v15 }
 0x9d6   : > { %v7037_v52 = vpop.xlane.xlu0 %7036  ;;  %7891 = vrot.lane.b32.xlu1 %v20108_v41, %s14015_s16  ;;  %v7058_v10 = vpop.xlane.xlu1 %7057 }
 0x9d7   : > { %13577 = vrcp.f32 %v7037_v52 }
 0x9d8   : > { %9238 = vrot.lane.b32.xlu0 %v20098_v55, %s14016_s17 }
 0x9d9   : > { %v13570_v6 = vpop.eup %13569 }
 0x9da   : > { %v7043_v22 = vpop.xlane.xlu0 %7042  ;;  %9258 = vrot.lane.b32.xlu1 %v20108_v41, %s14016_s17  ;;  %v7141_v48 = vmul.f32 %v13570_v6, %v17284_v24  ;;  %v7140_v53 = vmul.f32 %v13570_v6, %v17281_v59  ;;  %v13572_v29 = vpop.eup %13571 }
 0x9db   : > { %13579 = vrcp.f32 %v7043_v22  ;;  %v7143_v47 = vmul.f32 %v13572_v29, %v17258_v19 }
 0x9dc   : > { %7889 = vrot.lane.b32.xlu0 %v15976_v13, %s14015_s16  ;;  %v7193_v25 = vpack.c.bf16 %v7141_v48, %v7139_v11  ;;  %v7192_v3 = vpack.c.bf16 %v7140_v53, %v7138_v43  ;;  %13581 = vrcp.f32 %v7040_v7 }
 0x9dd   : > { %v13574_v2 = vpop.eup %13573  ;;  %v17525_v7 = vpop.xlane.xlu1 %7063 }
 0x9de   : > { %v7049_v63 = vpop.xlane.xlu0 %7048  ;;  %9244 = vrot.lane.b32.xlu1 %v20084_v1, %s14016_s17  ;;  %7334 = vmatprep.mubr.bf16.mxu1 %v7193_v25  ;;  %v7145_v42 = vmul.f32 %v13574_v2, %v17296_v46  ;;  %v13576_v59 = vpop.eup %13575  ;;  %v7144_v9 = vmul.f32 %v13574_v2, %v17293_v23  ;;  %v7142_v46 = vmul.f32 %v13572_v29, %v17254_v34 }
 0x9df   : > { %7335 = vmatmul.mubr.bf16.gmra.mrb[244].mxu1 %v7192_v3  ;;  %v7147_v51 = vmul.f32 %v13576_v59, %v17266_v31  ;;  %13583 = vrcp.f32 %v7049_v63  ;;  %v7146_v11 = vmul.f32 %v13576_v59, %v17262_v62 }
 0x9e0   : > { %9256 = vrot.lane.b32.xlu0 %v15976_v13, %s14016_s17  ;;  %v7195_v24 = vpack.c.bf16 %v7145_v42, %v7143_v47  ;;  %v7194_v17 = vpack.c.bf16 %v7144_v9, %v7142_v46  ;;  %13585 = vrcp.f32 %v7046_v36 }
 0x9e1   : > { %v13578_v21 = vpop.eup %13577 }
 0x9e2   : > { %v7055_v15 = vpop.xlane.xlu0 %7054  ;;  %7895 = vrot.lane.b32.xlu1 %v20095_v40, %s14015_s16  ;;  %7342 = vmatprep.mubr.bf16.mxu1 %v7195_v24  ;;  %v7149_v19 = vmul.f32 %v13578_v21, %v17312_v27  ;;  %v7148_v31 = vmul.f32 %v13578_v21, %v17310_v0 }
 0x9e3   : > { %13587 = vrcp.f32 %v7055_v15 }
 0x9e4   : > { %9242 = vrot.lane.b32.xlu0 %v15928_v12, %s14016_s17  ;;  %v7197_v23 = vpack.c.bf16 %v7149_v19, %v7147_v51  ;;  %v7196_v43 = vpack.c.bf16 %v7148_v31, %v7146_v11  ;;  %13589 = vrcp.f32 %v7052_v8  ;;  %v7439_v8 = vld [vmem:[%s19480_s5 + $0x4] sm:$0xf]  ;;  %v20113_v11 = vld [vmem:[#allocation53_spill] sm:$0xff] }
 0x9e5   : > { %v13580_v61 = vpop.eup %13579  ;;  %v17531_v27 = vpop.xlane.xlu1 %7069  ;;  %13119 = vmatprep.subr.msk.bf16.mxu0 %vm7488_vm8, %v7439_v8 }
 0x9e6   : > { %v7061_v52 = vpop.xlane.xlu0 %7060  ;;  %9262 = vrot.lane.b32.xlu1 %v20095_v40, %s14016_s17  ;;  %v13582_v34 = vpop.eup %13581  ;;  %v7153_v22 = vmul.f32 %v13580_v61, %v17332_v26  ;;  %v7152_v26 = vmul.f32 %v13580_v61, %v17328_v33  ;;  %v7490_v33 = vsel %vm7488_vm8, %v7439_v8, 0 }
 0x9e7   : > { %7343 = vmatmul.mubr.bf16.gmra.mrb[248].mxu1 %v7194_v17  ;;  %v7151_v36 = vmul.f32 %v13582_v34, %v17279_v38  ;;  %v7150_v2 = vmul.f32 %v13582_v34, %v17274_v20  ;;  %12616 = vmatpush3.bf16.msra.mxu0 %v7490_v33  ;;  %13591 = vrcp.f32 %v7061_v52  ;;  %v20111_v17 = vld [vmem:[#allocation72_spill] sm:$0xff] }
 0x9e8   : > { %7893 = vrot.lane.b32.xlu0 %v20083_v37, %s14015_s16  ;;  %7350 = vmatprep.mubr.bf16.mxu1 %v7197_v23  ;;  %13593 = vrcp.f32 %v7058_v10  ;;  %v20112_v23 = vld [vmem:[#allocation49_spill] sm:$0xff] }
 0x9e9   : > { %v7199_v0 = vpack.c.bf16 %v7153_v22, %v7151_v36  ;;  %v13584_v29 = vpop.eup %13583  ;;  %v7198_v47 = vpack.c.bf16 %v7152_v26, %v7150_v2  ;;  %v20117_v2 = vld [vmem:[#allocation57_spill] sm:$0xff] }
 0x9ea   : > { %v7067_v6 = vpop.xlane.xlu0 %7066  ;;  %9202 = vrot.lane.b32.xlu1 %v20097_v4, %s14017_s18  ;;  %v13586_v62 = vpop.eup %13585  ;;  %v7157_v3 = vmul.f32 %v13584_v29, %v17338_v57 }
 0x9eb   : > { %v7155_v63 = vmul.f32 %v13586_v62, %v17290_v45  ;;  %v7156_v45 = vmul.f32 %v13584_v29, %v17335_v58  ;;  %v7154_v9 = vmul.f32 %v13586_v62, %v17286_v44  ;;  %13595 = vrcp.f32 %v7067_v6  ;;  %v17597_v6 = vld [vmem:[%s19480_s5] sm:$0xf]  ;;  %v20116_v29 = vld [vmem:[#allocation51_spill] sm:$0xff] }
 0x9ec   : > { %9260 = vrot.lane.b32.xlu0 %v20083_v37, %s14016_s17  ;;  %13597 = vrcp.f32 %v17525_v7  ;;  %13120 = vmatprep.subr.msk.bf16.mxu0 %vm7488_vm8, %v17597_v6 }
 0x9ed   : > { %v17541_v48 = vpop.xlane.xlu1 %7075  ;;  %v7201_v42 = vpack.c.bf16 %v7157_v3, %v7155_v63  ;;  %v13588_v59 = vpop.eup %13587  ;;  %v7200_v15 = vpack.c.bf16 %v7156_v45, %v7154_v9  ;;  %v20118_v63 = vld [vmem:[#allocation73_spill] sm:$0xff] }
 0x9ee   : > { %v7073_v53 = vpop.xlane.xlu0 %7072  ;;  %9206 = vrot.lane.b32.xlu1 %v20098_v55, %s14017_s18  ;;  %v13590_v24 = vpop.eup %13589  ;;  %v7161_v21 = vmul.f32 %v13588_v59, %v17352_v14  ;;  %v20109_v14 = vld [vmem:[#allocation52_spill] sm:$0xff] }
 0x9ef   : > { %7351 = vmatmul.mubr.bf16.gmra.mrb[252].mxu1 %v7196_v43  ;;  %v7159_v10 = vmul.f32 %v13590_v24, %v17306_v60  ;;  %v7160_v46 = vmul.f32 %v13588_v59, %v20109_v14  ;;  %v20110_v60 = vld [vmem:[#allocation54_spill] sm:$0xff]  ;;  %v7158_v52 = vmul.f32 %v13590_v24, %v20111_v17  ;;  %13599 = vrcp.f32 %v7073_v53  ;;  %v20115_v53 = vld [vmem:[#allocation48_spill] sm:$0xff] }
 0x9f0   : > { %9246 = vrot.lane.b32.xlu0 %v20099_v50, %s14016_s17  ;;  %7358 = vmatprep.mubr.bf16.mxu1 %v7199_v0  ;;  %13601 = vrcp.f32 %v17531_v27  ;;  %v20114_v27 = vld [vmem:[#allocation58_spill] sm:$0xff] }
 0x9f1   : > { %v7926_v38 = vpop.permute.xlu1 %7925  ;;  %v7203_v19 = vpack.c.bf16 %v7161_v21, %v7159_v10  ;;  %v13592_v58 = vpop.eup %13591  ;;  %v7202_v61 = vpack.c.bf16 %v7160_v46, %v7158_v52  ;;  %v20121_v21 = vld [vmem:[#allocation59_spill] sm:$0xff]  ;;  %v20122_v10 = vld [vmem:[#allocation77_spill] sm:$0xff] }
 0x9f2   : > { %v17548_v25 = vpop.xlane.xlu0 %7078  ;;  %9210 = vrot.lane.b32.xlu1 %v15928_v12, %s14017_s18  ;;  %13127 = vmatprep.subr.msk.bf16.mxu1 %vm5321_vm7, %v7926_v38  ;;  %v13594_v44 = vpop.eup %13593  ;;  %v7165_v51 = vmul.f32 %v13592_v58, %v20110_v60  ;;  %v7164_v36 = vmul.f32 %v13592_v58, %v20113_v11 }
 0x9f3   : > { %v7163_v7 = vmul.f32 %v13594_v44, %v20112_v23  ;;  %v7162_v0 = vmul.f32 %v13594_v44, %v20115_v53  ;;  %13603 = vrcp.f32 %v17548_v25  ;;  %v20124_v44 = vld [vmem:[#allocation75_spill] sm:$0xff]  ;;  %v20126_v23 = vld [vmem:[#allocation74_spill] sm:$0xff] }
 0x9f4   : > { %9200 = vrot.lane.b32.xlu0 %v20101_v35, %s14017_s18  ;;  %13605 = vrcp.f32 %v17541_v48 }
 0x9f5   : > { %v7205_v34 = vpack.c.bf16 %v7165_v51, %v7163_v7  ;;  %v13596_v31 = vpop.eup %13595  ;;  %v7204_v26 = vpack.c.bf16 %v7164_v36, %v7162_v0  ;;  %v20125_v51 = vld [vmem:[#allocation76_spill] sm:$0xff] }
 0x9f6   : > { %v7910_v57 = vpop.permute.xlu0 %7909  ;;  %9214 = vrot.lane.b32.xlu1 %v20099_v50, %s14017_s18  ;;  %v13598_v22 = vpop.eup %13597  ;;  %v7169_v43 = vmul.f32 %v13596_v31, %v20114_v27  ;;  %v7168_v33 = vmul.f32 %v13596_v31, %v20117_v2 }
 0x9f7   : > { %v7996_v20 = vsel %vm5321_vm7, %v7910_v57, 0  ;;  %7359 = vmatmul.mubr.bf16.gmra.mrb[0].mxu1 %v7198_v47  ;;  %v7167_v62 = vmul.f32 %v13598_v22, %v20116_v29  ;;  %v20119_v47 = vld [vmem:[#allocation50_spill] sm:$0xff] }
 0x9f8   : > { %9204 = vrot.lane.b32.xlu0 %v20102_v39, %s14017_s18  ;;  %7366 = vmatprep.mubr.bf16.mxu1 %v7201_v42  ;;  %v7166_v57 = vmul.f32 %v13598_v22, %v20119_v47  ;;  %v20120_v42 = vld [vmem:[#allocation56_spill] sm:$0xff] }
 0x9f9   : > { %11914 = vmatpush3.bf16.xpose.msra.mxu1 %v7996_v20  ;;  %v7207_v38 = vpack.c.bf16 %v7169_v43, %v7167_v62  ;;  %v13600_v3 = vpop.eup %13599 }
 0x9fa   : > { %9218 = vrot.lane.b32.xlu1 %v20104_v5, %s14017_s18  ;;  %v13602_v8 = vpop.eup %13601  ;;  %v7173_v25 = vmul.f32 %v13600_v3, %v20118_v63  ;;  %v7206_v59 = vpack.c.bf16 %v7168_v33, %v7166_v57  ;;  %v7172_v9 = vmul.f32 %v13600_v3, %v20121_v21 }
 0x9fb   : > { %v7171_v48 = vmul.f32 %v13602_v8, %v20120_v42 }
 0x9fc   : > { %9208 = vrot.lane.b32.xlu0 %v20103_v28, %s14017_s18 }
 0x9fd   : > { %v7209_v20 = vpack.c.bf16 %v7173_v25, %v7171_v48  ;;  %v13604_v24 = vpop.eup %13603 }
 0x9fe   : > { %9222 = vrot.lane.b32.xlu1 %v20106_v16, %s14017_s18  ;;  %v13606_v45 = vpop.eup %13605  ;;  %v7176_v17 = vmul.f32 %v13604_v24, %v20125_v51 }
 0x9ff   : > { %7367 = vmatmul.mubr.bf16.gmra.mrb[4].mxu1 %v7200_v15  ;;  %v7177_v15 = vmul.f32 %v13604_v24, %v20122_v10  ;;  %v7175_v14 = vmul.f32 %v13606_v45, %v20124_v44  ;;  %v7174_v7 = vmul.f32 %v13606_v45, %v20126_v23 }
 0xa00   : > { %9212 = vrot.lane.b32.xlu0 %v20084_v1, %s14017_s18  ;;  %7374 = vmatprep.mubr.bf16.mxu1 %v7203_v19  ;;  %v20123_v19 = vld [vmem:[#allocation55_spill] sm:$0xff] }
 0xa01   : > { %v7170_v58 = vmul.f32 %v13602_v8, %v20123_v19  ;;  %v7211_v60 = vpack.c.bf16 %v7177_v15, %v7175_v14 }
 0xa02   : > { %9226 = vrot.lane.b32.xlu1 %v20108_v41, %s14017_s18 }
 0xa03   : > { %v7208_v46 = vpack.c.bf16 %v7172_v9, %v7170_v58 }
 0xa04   : > { %9216 = vrot.lane.b32.xlu0 %v20105_v56, %s14017_s18 }
 0xa06   : > { %9230 = vrot.lane.b32.xlu1 %v20095_v40, %s14017_s18 }
 0xa07   : > { %7375 = vmatmul.mubr.bf16.gmra.mrb[8].mxu1 %v7202_v61  ;;  %v7210_v61 = vpack.c.bf16 %v7176_v17, %v7174_v7 }
 0xa08   : > { %9220 = vrot.lane.b32.xlu0 %v20107_v30, %s14017_s18  ;;  %7382 = vmatprep.mubr.bf16.mxu1 %v7205_v34 }
 0xa0a   : > { %8746 = vrot.lane.b32.xlu1 %v20105_v56, %s14018_s12 }
 0xa0c   : > { %9224 = vrot.lane.b32.xlu0 %v15976_v13, %s14017_s18 }
 0xa0e   : > { %8748 = vrot.lane.b32.xlu1 %v20104_v5, %s14018_s12 }
 0xa0f   : > { %7383 = vmatmul.mubr.bf16.gmra.mrb[12].mxu1 %v7204_v26 }
 0xa10   : > { %9228 = vrot.lane.b32.xlu0 %v20083_v37, %s14017_s18  ;;  %7390 = vmatprep.mubr.bf16.mxu1 %v7207_v38 }
 0xa12   : > { %8750 = vrot.lane.b32.xlu1 %v20107_v30, %s14018_s12 }
 0xa14   : > { %8730 = vrot.lane.b32.xlu0 %v20101_v35, %s14018_s12 }
 0xa16   : > { %8752 = vrot.lane.b32.xlu1 %v20106_v16, %s14018_s12 }
 0xa17   : > { %7391 = vmatmul.mubr.bf16.gmra.mrb[16].mxu1 %v7206_v59 }
 0xa18   : > { %8732 = vrot.lane.b32.xlu0 %v20097_v4, %s14018_s12  ;;  %7398 = vmatprep.mubr.bf16.mxu1 %v7209_v20 }
 0xa1a   : > { %8740 = vrot.lane.b32.xlu1 %v15928_v12, %s14018_s12 }
 0xa1c   : > { %8734 = vrot.lane.b32.xlu0 %v20102_v39, %s14018_s12 }
 0xa1e   : > { %8760 = vrot.lane.b32.xlu1 %v20095_v40, %s14018_s12 }
 0xa1f   : > { %7399 = vmatmul.mubr.bf16.gmra.mrb[20].mxu1 %v7208_v46 }
 0xa20   : > { %8736 = vrot.lane.b32.xlu0 %v20098_v55, %s14018_s12  ;;  %7406 = vmatprep.mubr.bf16.mxu1 %v7211_v60 }
 0xa22   : > { %8744 = vrot.lane.b32.xlu1 %v20099_v50, %s14018_s12  ;;  %v7082_v52 = vpop.xlane.xlu1 %7081 }
 0xa23   : > { %13607 = vrcp.f32 %v7082_v52 }
 0xa24   : > { %8754 = vrot.lane.b32.xlu0 %v15976_v13, %s14018_s12 }
 0xa26   : > { %10081 = vrot.lane.b32.xlu1 %v20105_v56, %s14019_s23  ;;  %v7928_v34 = vpop.permute.xlu1 %7927 }
 0xa27   : > { %v7085_v31 = vpop.xlane.xlu0 %7084  ;;  %7407 = vmatmul.mubr.bf16.gmra.mrb[24].mxu1 %v7210_v61  ;;  %13128 = vmatprep.subr.msk.bf16.mxu1 %vm5321_vm7, %v7928_v34 }
 0xa28   : > { %13609 = vrcp.f32 %v7085_v31  ;;  %8738 = vrot.lane.b32.xlu0 %v20103_v28, %s14018_s12 }
 0xa2a   : > { %10083 = vrot.lane.b32.xlu1 %v20104_v5, %s14019_s23  ;;  %v7868_v22 = vpop.permute.xlu1 %7867 }
 0xa2b   : > { %v7912_v11 = vpop.permute.xlu0 %7911 }
 0xa2c   : > { %v7999_v36 = vsel %vm5321_vm7, %v7912_v11, 0  ;;  %8756 = vrot.lane.b32.xlu0 %v20108_v41, %s14018_s12 }
 0xa2d   : > { %11916 = vmatpush3.bf16.xpose.msra.mxu1 %v7999_v36  ;;  %v13608_v43 = vpop.eup %13607 }
 0xa2e   : > { %10085 = vrot.lane.b32.xlu1 %v20107_v30, %s14019_s23  ;;  %v7872_v56 = vpop.permute.xlu1 %7871  ;;  %v7178_v0 = vmul.f32 %v13608_v43, %v17408_v49  ;;  %v7179_v26 = vmul.f32 %v13608_v43, %v17410_v54 }
 0xa2f   : > { %v7866_v27 = vpop.permute.xlu0 %7865 }
 0xa30   : > { %8758 = vrot.lane.b32.xlu0 %v20083_v37, %s14018_s12 }
 0xa32   : > { %v13610_v53 = vpop.eup %13609  ;;  %10087 = vrot.lane.b32.xlu1 %v20106_v16, %s14019_s23  ;;  %v17661_v5 = vpop.permute.xlu1 %7875 }
 0xa33   : > { %v7180_v29 = vmul.f32 %v13610_v53, %v17414_v32  ;;  %v7870_v62 = vpop.permute.xlu0 %7869  ;;  %v7181_v30 = vmul.f32 %v13610_v53, %v17420_v18 }
 0xa34   : > { %8742 = vrot.lane.b32.xlu0 %v20084_v1, %s14018_s12 }
 0xa35   : > { %v7212_v38 = vpack.c.bf16 %v7180_v29, %v7178_v0  ;;  %v7213_v3 = vpack.c.bf16 %v7181_v30, %v7179_v26  ;;  %v7702_v0 = vsel %vm7488_vm8, %v17597_v6, 0 }
 0xa36   : > { %10075 = vrot.lane.b32.xlu1 %v15928_v12, %s14019_s23  ;;  %v17671_v16 = vpop.permute.xlu1 %7879 }
 0xa37   : > { %v7874_v8 = vpop.permute.xlu0 %7873  ;;  %7414 = vmatprep.mubr.bf16.mxu1 %v7213_v3 }
 0xa38   : > { %10065 = vrot.lane.b32.xlu0 %v20101_v35, %s14019_s23  ;;  %7415 = vmatmul.mubr.bf16.gmra.mrb[28].mxu1 %v7212_v38 }
 0xa39   : > { %11917 = vmatprep.mubr.msk.bf16.mxu1 %vm5321_vm7, %v7866_v27 }
 0xa3a   : > { %v9233_v49 = vpop.permute.xlu1 %9232 }
 0xa3b   : > { %v17676_v54 = vpop.permute.xlu0 %7877  ;;  %v9313_v2 = vsel %vm5321_vm7, %v9233_v49, 0 }
 0xa3c   : > { %10067 = vrot.lane.b32.xlu0 %v20097_v4, %s14019_s23 }
 0xa3e   : > { %v17680_v32 = vpop.permute.xlu1 %7883 }
 0xa3f   : > { %v17682_v18 = vpop.permute.xlu0 %7881 }
 0xa40   : > { %10069 = vrot.lane.b32.xlu0 %v20102_v39, %s14019_s23  ;;  %11918 = vmatmul.mubr.msk.bf16.vlgmr.msra.gmra.mrb[32].mxu1 %vm5321_vm7, %v7866_v27 }
 0xa41   : > { %11919 = vmatprep.mubr.msk.bf16.mxu1 %vm5321_vm7, %v7868_v22 }
 0xa42   : > { %v9251_v12 = vpop.permute.xlu1 %9250 }
 0xa43   : > { %v9249_v35 = vpop.permute.xlu0 %9248 }
 0xa44   : > { %10071 = vrot.lane.b32.xlu0 %v20098_v55, %s14019_s23  ;;  %13130 = vmatprep.subr.msk.bf16.mxu1 %vm5321_vm7, %v9249_v35 }
 0xa45   : > { %12079 = vmatpush3.bf16.xpose.msra.mxu1 %v9313_v2 }
 0xa46   : > { %13131 = vmatprep.subr.msk.bf16.mxu1 %vm5321_vm7, %v9251_v12  ;;  %v9237_v4 = vpop.permute.xlu1 %9236 }
 0xa47   : > { %v9235_v33 = vpop.permute.xlu0 %9234  ;;  %v9319_v42 = vsel %vm5321_vm7, %v9237_v4, 0 }
 0xa48   : > { %10089 = vrot.lane.b32.xlu0 %v15976_v13, %s14019_s23  ;;  %11920 = vmatmul.mubr.msk.bf16.gmra.mrb[36].mxu1 %vm5321_vm7, %v7868_v22  ;;  %v9316_v55 = vsel %vm5321_vm7, %v9235_v33, 0 }
 0xa49   : > { %11921 = vmatprep.mubr.msk.bf16.mxu1 %vm5321_vm7, %v7870_v62 }
 0xa4a   : > { %v17697_v39 = vpop.permute.xlu1 %7887 }
 0xa4b   : > { %v17699_v63 = vpop.permute.xlu0 %7885 }
 0xa4c   : > { %10073 = vrot.lane.b32.xlu0 %v20103_v28, %s14019_s23 }
 0xa4d   : > { %12081 = vmatpush3.bf16.xpose.msra.mxu1 %v9316_v55 }
 0xa4e   : > { %v9255_v25 = vpop.permute.xlu1 %9254 }
 0xa4f   : > { %v9253_v47 = vpop.permute.xlu0 %9252 }
 0xa50   : > { %10091 = vrot.lane.b32.xlu0 %v20108_v41, %s14019_s23  ;;  %11922 = vmatmul.mubr.msk.bf16.gmra.mrb[40].mxu1 %vm5321_vm7, %v7870_v62 }
 0xa51   : > { %13132 = vmatprep.subr.msk.bf16.mxu1 %vm5321_vm7, %v9253_v47  ;;  %11923 = vmatprep.mubr.msk.bf16.mxu1 %vm5321_vm7, %v7872_v56 }
 0xa52   : > { %v9241_v13 = vpop.permute.xlu1 %9240 }
 0xa53   : > { %v9239_v57 = vpop.permute.xlu0 %9238  ;;  %v9325_v9 = vsel %vm5321_vm7, %v9241_v13, 0 }
 0xa54   : > { %10093 = vrot.lane.b32.xlu0 %v20083_v37, %s14019_s23  ;;  %v9322_v20 = vsel %vm5321_vm7, %v9239_v57, 0 }
 0xa55   : > { %12083 = vmatpush3.bf16.xpose.msra.mxu1 %v9319_v42 }
 0xa56   : > { %13133 = vmatprep.subr.msk.bf16.mxu1 %vm5321_vm7, %v9255_v25  ;;  %v17713_v28 = vpop.permute.xlu1 %7891 }
 0xa57   : > { %v17715_v48 = vpop.permute.xlu0 %7889 }
 0xa58   : > { %11924 = vmatmul.mubr.msk.bf16.gmra.mrb[44].mxu1 %vm5321_vm7, %v7872_v56 }
 0xa59   : > { %11925 = vmatprep.mubr.msk.bf16.mxu1 %vm5321_vm7, %v7874_v8 }
 0xa5a   : > { %v9259_v41 = vpop.permute.xlu1 %9258 }
 0xa5b   : > { %v9257_v59 = vpop.permute.xlu0 %9256 }
 0xa5d   : > { %12085 = vmatpush3.bf16.xpose.msra.mxu1 %v9322_v20 }
 0xa5e   : > { %13134 = vmatprep.subr.msk.bf16.mxu1 %vm5321_vm7, %v9257_v59  ;;  %v9245_v24 = vpop.permute.xlu1 %9244 }
 0xa5f   : > { %v9243_v37 = vpop.permute.xlu0 %9242  ;;  %v9331_v53 = vsel %vm5321_vm7, %v9245_v24, 0 }
 0xa60   : > { %11926 = vmatmul.mubr.msk.bf16.gmra.mrb[48].mxu1 %vm5321_vm7, %v7874_v8  ;;  %v9328_v23 = vsel %vm5321_vm7, %v9243_v37, 0 }
 0xa61   : > { %11927 = vmatprep.mubr.msk.bf16.mxu1 %vm5321_vm7, %v17661_v5 }
 0xa62   : > { %v17724_v45 = vpop.permute.xlu1 %7895 }
 0xa63   : > { %v17726_v21 = vpop.permute.xlu0 %7893 }
 0xa64   : > { %v11771_v10 = vpop.f32.mrb[224].mxu1 }
 0xa65   : > { %v11772_v15 = vpop.f32.mrb[225].mxu1  ;;  %12087 = vmatpush3.bf16.xpose.msra.mxu1 %v9325_v9 }
 0xa66   : > { %v11773_v19 = vadd.f32 %v11772_v15, %v11771_v10  ;;  %v11774_v58 = vpop.f32.mrb[226].mxu1  ;;  %13135 = vmatprep.subr.msk.bf16.mxu1 %vm5321_vm7, %v9259_v41  ;;  %v9263_v44 = vpop.permute.xlu1 %9262 }
 0xa67   : > { %v11775_v14 = vpop.f32.mrb[227].mxu1  ;;  %v9261_v46 = vpop.permute.xlu0 %9260 }
 0xa68   : > { %v11776_v60 = vadd.f32 %v11775_v14, %v11774_v58  ;;  %11928 = vmatmul.mubr.msk.bf16.gmra.mrb[52].mxu1 %vm5321_vm7, %v17661_v5 }
 0xa69   : > { %11929 = vmatprep.mubr.msk.bf16.mxu1 %vm5321_vm7, %v17676_v54 }
 0xa6a   : > { %v7423_v51 = vpack.c.bf16 %v11776_v60, %v11773_v19  ;;  %v17734_v17 = vpop.permute.xlu1 %9202 }
 0xa6b   : > { %v9247_v52 = vpop.permute.xlu0 %9246 }
 0xa6c   : > { %12617 = vmatprep.mubr.msk.bf16.mxu0 %vm5321_vm7, %v7423_v51  ;;  %v9334_v12 = vsel %vm5321_vm7, %v9247_v52, 0 }
 0xa6d   : > { %12089 = vmatpush3.bf16.xpose.msra.mxu1 %v9328_v23 }
 0xa6e   : > { %v11777_v7 = vpop.f32.mrb[228].mxu1  ;;  %13136 = vmatprep.subr.msk.bf16.mxu1 %vm5321_vm7, %v9261_v46  ;;  %v17739_v61 = vpop.permute.xlu1 %9206 }
 0xa6f   : > { %v11778_v34 = vpop.f32.mrb[229].mxu1  ;;  %v17741_v31 = vpop.permute.xlu0 %9200 }
 0xa70   : > { %v11779_v22 = vadd.f32 %v11778_v34, %v11777_v7  ;;  %v11780_v11 = vpop.f32.mrb[230].mxu1  ;;  %11930 = vmatmul.mubr.msk.bf16.gmra.mrb[56].mxu1 %vm5321_vm7, %v17676_v54 }
 0xa71   : > { %v11781_v36 = vpop.f32.mrb[231].mxu1  ;;  %11931 = vmatprep.mubr.msk.bf16.mxu1 %vm5321_vm7, %v17671_v16 }
 0xa72   : > { %v11782_v56 = vadd.f32 %v11781_v36, %v11780_v11  ;;  %v17747_v27 = vpop.permute.xlu1 %9210 }
 0xa73   : > { %v17749_v43 = vpop.permute.xlu0 %9204 }
 0xa74   : > { %v7424_v5 = vpack.c.bf16 %v11782_v56, %v11779_v22 }
 0xa75   : > { %12091 = vmatpush3.bf16.xpose.msra.mxu1 %v9331_v53 }
 0xa76   : > { %v11783_v29 = vpop.f32.mrb[232].mxu1  ;;  %12618 = vmatmul.mubr.msk.bf16.vlgmr.msra.gmra.mrb[32].mxu0 %vm5321_vm7, %v7424_v5  ;;  %13137 = vmatprep.subr.msk.bf16.mxu1 %vm5321_vm7, %v9263_v44  ;;  %v17756_v62 = vpop.permute.xlu1 %9214 }
 0xa77   : > { %v11784_v26 = vpop.f32.mrb[233].mxu1  ;;  %v17758_v30 = vpop.permute.xlu0 %9208  ;;  %12650 = vmatpush3.bf16.msra.mxu0 %v7702_v0 }
 0xa78   : > { %v11785_v38 = vadd.f32 %v11784_v26, %v11783_v29  ;;  %v11786_v3 = vpop.f32.mrb[234].mxu1  ;;  %11932 = vmatmul.mubr.msk.bf16.gmra.mrb[60].mxu1 %vm5321_vm7, %v17671_v16 }
 0xa79   : > { %v11787_v8 = vpop.f32.mrb[235].mxu1  ;;  %11933 = vmatprep.mubr.msk.bf16.mxu1 %vm5321_vm7, %v17682_v18 }
 0xa7a   : > { %v11788_v6 = vadd.f32 %v11787_v8, %v11786_v3  ;;  %v17764_v49 = vpop.permute.xlu1 %9218 }
 0xa7b   : > { %v17766_v54 = vpop.permute.xlu0 %9212 }
 0xa7c   : > { %v7425_v35 = vpack.c.bf16 %v11788_v6, %v11785_v38 }
 0xa7d   : > { %12093 = vmatpush3.bf16.xpose.msra.mxu1 %v9334_v12 }
 0xa7e   : > { %v11789_v2 = vpop.f32.mrb[236].mxu1  ;;  %12621 = vmatprep.mubr.msk.bf16.mxu0 %vm5321_vm7, %v7425_v35  ;;  %v17770_v4 = vpop.permute.xlu1 %9222 }
 0xa7f   : > { %v11790_v33 = vpop.f32.mrb[237].mxu1  ;;  %v17772_v16 = vpop.permute.xlu0 %9216 }
 0xa80   : > { %v11791_v55 = vadd.f32 %v11790_v33, %v11789_v2  ;;  %v11792_v25 = vpop.f32.mrb[238].mxu1  ;;  %11934 = vmatmul.mubr.msk.bf16.gmra.mrb[64].mxu1 %vm5321_vm7, %v17682_v18 }
 0xa81   : > { %v11793_v47 = vpop.f32.mrb[239].mxu1  ;;  %11935 = vmatprep.mubr.msk.bf16.mxu1 %vm5321_vm7, %v17680_v32 }
 0xa82   : > { %v11794_v13 = vadd.f32 %v11793_v47, %v11792_v25  ;;  %v17778_v57 = vpop.permute.xlu1 %9226 }
 0xa83   : > { %v17780_v42 = vpop.permute.xlu0 %9220 }
 0xa84   : > { %v7426_v41 = vpack.c.bf16 %v11794_v13, %v11791_v55 }
 0xa86   : > { %12622 = vmatmul.mubr.msk.bf16.gmra.mrb[36].mxu0 %vm5321_vm7, %v7426_v41  ;;  %v17783_v59 = vpop.permute.xlu1 %9230 }
 0xa87   : > { %v17785_v20 = vpop.permute.xlu0 %9224 }
 0xa88   : > { %11936 = vmatmul.mubr.msk.bf16.gmra.mrb[68].mxu1 %vm5321_vm7, %v17680_v32 }
 0xa89   : > { %11937 = vmatprep.mubr.msk.bf16.mxu1 %vm5321_vm7, %v17699_v63 }
 0xa8a   : > { %v8747_v18 = vpop.permute.xlu1 %8746 }
 0xa8b   : > { %v17791_v24 = vpop.permute.xlu0 %9228  ;;  %11949 = vmatprep.subr.bf16.mxu0 %v8747_v18 }
 0xa8e   : > { %v17793_v37 = vpop.permute.xlu1 %8748 }
 0xa8f   : > { %v17795_v9 = vpop.permute.xlu0 %8730 }
 0xa90   : > { %11938 = vmatmul.mubr.msk.bf16.gmra.mrb[72].mxu1 %vm5321_vm7, %v17699_v63 }
 0xa91   : > { %11939 = vmatprep.mubr.msk.bf16.mxu1 %vm5321_vm7, %v17697_v39 }
 0xa92   : > { %v17801_v10 = vpop.permute.xlu1 %8750 }
 0xa93   : > { %v17803_v32 = vpop.permute.xlu0 %8732 }
 0xa96   : > { %v17805_v15 = vpop.permute.xlu1 %8752 }
 0xa97   : > { %v17807_v19 = vpop.permute.xlu0 %8734 }
 0xa98   : > { %11940 = vmatmul.mubr.msk.bf16.gmra.mrb[76].mxu1 %vm5321_vm7, %v17697_v39 }
 0xa99   : > { %11941 = vmatprep.mubr.msk.bf16.mxu1 %vm5321_vm7, %v17715_v48 }
 0xa9a   : > { %v17813_v58 = vpop.permute.xlu1 %8740 }
 0xa9b   : > { %v17815_v63 = vpop.permute.xlu0 %8736 }
 0xa9e   : > { %v11795_v44 = vpop.f32.mrb[240].mxu1  ;;  %v17817_v14 = vpop.permute.xlu1 %8760 }
 0xa9f   : > { %v17819_v46 = vpop.permute.xlu0 %8754  ;;  %v11796_v60 = vpop.f32.mrb[241].mxu1 }
 0xaa0   : > { %v11797_v51 = vadd.f32 %v11796_v60, %v11795_v44  ;;  %v11798_v52 = vpop.f32.mrb[242].mxu1  ;;  %11942 = vmatmul.mubr.msk.bf16.gmra.mrb[80].mxu1 %vm5321_vm7, %v17715_v48 }
 0xaa1   : > { %v11799_v23 = vpop.f32.mrb[243].mxu1  ;;  %11943 = vmatprep.mubr.msk.bf16.mxu1 %vm5321_vm7, %v17713_v28 }
 0xaa2   : > { %v11800_v39 = vadd.f32 %v11799_v23, %v11798_v52  ;;  %v17825_v7 = vpop.permute.xlu1 %8744 }
 0xaa3   : > { %v17827_v34 = vpop.permute.xlu0 %8738 }
 0xaa4   : > { %v7427_v22 = vpack.c.bf16 %v11800_v39, %v11797_v51 }
 0xaa6   : > { %12625 = vmatprep.mubr.msk.bf16.mxu0 %vm5321_vm7, %v7427_v22  ;;  %v10082_v11 = vpop.permute.xlu1 %10081 }
 0xaa7   : > { %v17830_v36 = vpop.permute.xlu0 %8756  ;;  %12126 = vmatprep.subr.bf16.mxu1 %v10082_v11 }
 0xaa8   : > { %11944 = vmatmul.mubr.msk.bf16.gmra.mrb[84].mxu1 %vm5321_vm7, %v17713_v28 }
 0xaa9   : > { %11945 = vmatprep.mubr.msk.bf16.mxu1 %vm5321_vm7, %v17726_v21 }
 0xaaa   : > { %v10084_v35 = vpop.permute.xlu1 %10083 }
 0xaab   : > { %v17836_v48 = vpop.permute.xlu0 %8758 }
 0xaaf   : > { %v17838_v56 = vpop.permute.xlu0 %8742 }
 0xab0   : > { %11946 = vmatmul.mubr.msk.bf16.gmra.mrb[88].mxu1 %vm5321_vm7, %v17726_v21 }
 0xab1   : > { %11947 = vmatprep.mubr.msk.bf16.mxu1 %vm5321_vm7, %v17724_v45 }
 0xab2   : > { %v11801_v53 = vpop.f32.mrb[244].mxu1 }
 0xab3   : > { %v10066_v5 = vpop.permute.xlu0 %10065  ;;  %v11802_v0 = vpop.f32.mrb[245].mxu1 }
 0xab4   : > { %v11803_v29 = vadd.f32 %v11802_v0, %v11801_v53  ;;  %v11804_v26 = vpop.f32.mrb[246].mxu1 }
 0xab5   : > { %v11805_v38 = vpop.f32.mrb[247].mxu1 }
 0xab6   : > { %v11806_v28 = vadd.f32 %v11805_v38, %v11804_v26 }
 0xab7   : > { %v10068_v3 = vpop.permute.xlu0 %10067 }
 0xab8   : > { %v7428_v8 = vpack.c.bf16 %v11806_v28, %v11803_v29  ;;  %11948 = vmatmul.mubr.msk.bf16.gmra.mrb[92].mxu1 %vm5321_vm7, %v17724_v45  ;;  %v10086_v45 = vpop.permute.xlu1 %10085 }
 0xab9   : > { %12094 = vmatprep.mubr.msk.bf16.mxu1 %vm5321_vm7, %v17741_v31 }
 0xaba   : > { %v11807_v6 = vpop.f32.mrb[248].mxu1  ;;  %12626 = vmatmul.mubr.msk.bf16.gmra.mrb[40].mxu0 %vm5321_vm7, %v7428_v8 }
 0xabb   : > { %v10070_v21 = vpop.permute.xlu0 %10069  ;;  %v11808_v12 = vpop.f32.mrb[249].mxu1 }
 0xabc   : > { %v11809_v2 = vadd.f32 %v11808_v12, %v11807_v6  ;;  %v11810_v33 = vpop.f32.mrb[250].mxu1 }
 0xabd   : > { %v11811_v55 = vpop.f32.mrb[251].mxu1 }
 0xabe   : > { %v11812_v25 = vadd.f32 %v11811_v55, %v11810_v33 }
 0xabf   : > { %v10072_v47 = vpop.permute.xlu0 %10071 }
 0xac0   : > { %v7429_v13 = vpack.c.bf16 %v11812_v25, %v11809_v2  ;;  %12095 = vmatmul.mubr.msk.bf16.vlgmr.msra.gmra.mrb[96].mxu1 %vm5321_vm7, %v17741_v31  ;;  %v10088_v31 = vpop.permute.xlu1 %10087 }
 0xac1   : > { %12127 = vmatpush3.bf16.msra.mxu1 %v10066_v5  ;;  %12096 = vmatprep.mubr.msk.bf16.mxu1 %vm5321_vm7, %v17734_v17 }
 0xac2   : > { %12128 = vmatprep.subr.bf16.mxu1 %v10084_v35  ;;  %v11813_v41 = vpop.f32.mrb[252].mxu1  ;;  %12629 = vmatprep.mubr.msk.bf16.mxu0 %vm5321_vm7, %v7429_v13 }
 0xac3   : > { %v10090_v18 = vpop.permute.xlu0 %10089  ;;  %v11814_v44 = vpop.f32.mrb[253].mxu1 }
 0xac4   : > { %v11815_v60 = vadd.f32 %v11814_v44, %v11813_v41  ;;  %v11816_v51 = vpop.f32.mrb[254].mxu1  ;;  %v10076_v8 = vpop.permute.xlu1 %10075 }
 0xac5   : > { %12129 = vmatpush3.bf16.msra.mxu1 %v10068_v3  ;;  %v11817_v52 = vpop.f32.mrb[255].mxu1 }
 0xac6   : > { %v11818_v23 = vadd.f32 %v11817_v52, %v11816_v51  ;;  %12130 = vmatprep.subr.bf16.mxu1 %v10086_v45 }
 0xac7   : > { %v10074_v22 = vpop.permute.xlu0 %10073 }
 0xac8   : > { %v7430_v39 = vpack.c.bf16 %v11818_v23, %v11815_v60  ;;  %12097 = vmatmul.mubr.msk.bf16.gmra.mrb[100].mxu1 %vm5321_vm7, %v17734_v17 }
 0xac9   : > { %12131 = vmatpush3.bf16.msra.mxu1 %v10070_v21  ;;  %12098 = vmatprep.mubr.msk.bf16.mxu1 %vm5321_vm7, %v17749_v43 }
 0xaca   : > { %12132 = vmatprep.subr.bf16.mxu1 %v10088_v31  ;;  %v11819_v11 = vpop.f32.mrb[0].mxu1  ;;  %12630 = vmatmul.mubr.msk.bf16.gmra.mrb[44].mxu0 %vm5321_vm7, %v7430_v39 }
 0xacb   : > { %v11820_v53 = vpop.f32.mrb[1].mxu1  ;;  %v10092_v38 = vpop.permute.xlu0 %10091 }
 0xacc   : > { %v11821_v5 = vadd.f32 %v11820_v53, %v11819_v11  ;;  %v11822_v0 = vpop.f32.mrb[2].mxu1 }
 0xacd   : > { %12133 = vmatpush3.bf16.msra.mxu1 %v10072_v47  ;;  %v11823_v29 = vpop.f32.mrb[3].mxu1 }
 0xace   : > { %v11824_v26 = vadd.f32 %v11823_v29, %v11822_v0  ;;  %12134 = vmatprep.subr.bf16.mxu1 %v10090_v18 }
 0xacf   : > { %v10094_v12 = vpop.permute.xlu0 %10093 }
 0xad0   : > { %v7431_v28 = vpack.c.bf16 %v11824_v26, %v11821_v5  ;;  %12099 = vmatmul.mubr.msk.bf16.gmra.mrb[104].mxu1 %vm5321_vm7, %v17749_v43 }
 0xad1   : > { %12135 = vmatpush3.bf16.msra.mxu1 %v10074_v22  ;;  %12100 = vmatprep.mubr.msk.bf16.mxu1 %vm5321_vm7, %v17739_v61 }
 0xad2   : > { %12136 = vmatprep.subr.bf16.mxu1 %v10092_v38  ;;  %v11825_v17 = vpop.f32.mrb[4].mxu1  ;;  %12633 = vmatprep.mubr.msk.bf16.mxu0 %vm5321_vm7, %v7431_v28 }
 0xad3   : > { %v11826_v3 = vpop.f32.mrb[5].mxu1 }
 0xad4   : > { %v11827_v6 = vadd.f32 %v11826_v3, %v11825_v17  ;;  %v11828_v21 = vpop.f32.mrb[6].mxu1 }
 0xad5   : > { %12137 = vmatpush3.bf16.msra.mxu1 %v10076_v8  ;;  %v11829_v35 = vpop.f32.mrb[7].mxu1 }
 0xad6   : > { %v11830_v2 = vadd.f32 %v11829_v35, %v11828_v21  ;;  %12138 = vmatprep.subr.bf16.mxu1 %v10094_v12 }
 0xad8   : > { %v7432_v33 = vpack.c.bf16 %v11830_v2, %v11827_v6  ;;  %12101 = vmatmul.mubr.msk.bf16.gmra.mrb[108].mxu1 %vm5321_vm7, %v17739_v61 }
 0xad9   : > { %12102 = vmatprep.mubr.msk.bf16.mxu1 %vm5321_vm7, %v17758_v30 }
 0xada   : > { %v11831_v43 = vpop.f32.mrb[8].mxu1  ;;  %12634 = vmatmul.mubr.msk.bf16.gmra.mrb[48].mxu0 %vm5321_vm7, %v7432_v33 }
 0xadb   : > { %v11832_v55 = vpop.f32.mrb[9].mxu1 }
 0xadc   : > { %v11833_v25 = vadd.f32 %v11832_v55, %v11831_v43  ;;  %v11834_v47 = vpop.f32.mrb[10].mxu1 }
 0xadd   : > { %v11835_v13 = vpop.f32.mrb[11].mxu1 }
 0xade   : > { %v11836_v45 = vadd.f32 %v11835_v13, %v11834_v47  ;;  %v20128_v13 = vld [vmem:[#allocation34_spill] sm:$0xff] }
 0xae0   : > { %v7433_v41 = vpack.c.bf16 %v11836_v45, %v11833_v25  ;;  %12103 = vmatmul.mubr.msk.bf16.gmra.mrb[112].mxu1 %vm5321_vm7, %v17758_v30 }
 0xae1   : > { %12104 = vmatprep.mubr.msk.bf16.mxu1 %vm5321_vm7, %v17747_v27 }
 0xae2   : > { %v11837_v18 = vpop.f32.mrb[12].mxu1  ;;  %12637 = vmatprep.mubr.msk.bf16.mxu0 %vm5321_vm7, %v7433_v41 }
 0xae3   : > { %v11838_v61 = vpop.f32.mrb[13].mxu1 }
 0xae4   : > { %v11839_v44 = vadd.f32 %v11838_v61, %v11837_v18  ;;  %v11840_v60 = vpop.f32.mrb[14].mxu1 }
 0xae5   : > { %v11841_v51 = vpop.f32.mrb[15].mxu1 }
 0xae6   : > { %v11842_v52 = vadd.f32 %v11841_v51, %v11840_v60  ;;  %v20130_v60 = vld [vmem:[#allocation16_spill] sm:$0xff] }
 0xae7   : > { %v20131_v51 = vld [vmem:[#allocation36_spill] sm:$0xff] }
 0xae8   : > { %v7434_v23 = vpack.c.bf16 %v11842_v52, %v11839_v44  ;;  %12105 = vmatmul.mubr.msk.bf16.gmra.mrb[116].mxu1 %vm5321_vm7, %v17747_v27  ;;  %v20132_v52 = vpack.c.bf16 %v20130_v60, %v20131_v51 }
 0xae9   : > { %12106 = vmatprep.mubr.msk.bf16.mxu1 %vm5321_vm7, %v17766_v54 }
 0xaea   : > { %v11843_v39 = vpop.f32.mrb[16].mxu1  ;;  %12638 = vmatmul.mubr.msk.bf16.gmra.mrb[52].mxu0 %vm5321_vm7, %v7434_v23 }
 0xaeb   : > { %v11844_v30 = vpop.f32.mrb[17].mxu1 }
 0xaec   : > { %v11845_v31 = vadd.f32 %v11844_v30, %v11843_v39  ;;  %v11846_v22 = vpop.f32.mrb[18].mxu1  ;;  %v20133_v39 = vld [vmem:[#allocation17_spill] sm:$0xff] }
 0xaed   : > { %v11847_v11 = vpop.f32.mrb[19].mxu1  ;;  %v20134_v30 = vld [vmem:[#allocation37_spill] sm:$0xff] }
 0xaee   : > { %v11848_v53 = vadd.f32 %v11847_v11, %v11846_v22 }
 0xaf0   : > { %v7435_v5 = vpack.c.bf16 %v11848_v53, %v11845_v31  ;;  %12107 = vmatmul.mubr.msk.bf16.gmra.mrb[120].mxu1 %vm5321_vm7, %v17766_v54  ;;  %v20135_v31 = vpack.c.bf16 %v20133_v39, %v20134_v30  ;;  %v20160_v39 = vld [vmem:[#allocation33_spill] sm:$0xff]  ;;  %v20161_v30 = vld [vmem:[#allocation30_spill] sm:$0xff] }
 0xaf1   : > { %12108 = vmatprep.mubr.msk.bf16.mxu1 %vm5321_vm7, %v17756_v62 }
 0xaf2   : > { %v11849_v0 = vpop.f32.mrb[20].mxu1  ;;  %12641 = vmatprep.mubr.msk.bf16.mxu0 %vm5321_vm7, %v7435_v5 }
 0xaf3   : > { %v11850_v27 = vpop.f32.mrb[21].mxu1 }
 0xaf4   : > { %v11851_v29 = vadd.f32 %v11850_v27, %v11849_v0  ;;  %v11852_v26 = vpop.f32.mrb[22].mxu1 }
 0xaf5   : > { %v11853_v38 = vpop.f32.mrb[23].mxu1 }
 0xaf6   : > { %v11854_v28 = vadd.f32 %v11853_v38, %v11852_v26 }
 0xaf8   : > { %v7436_v17 = vpack.c.bf16 %v11854_v28, %v11851_v29  ;;  %12109 = vmatmul.mubr.msk.bf16.gmra.mrb[124].mxu1 %vm5321_vm7, %v17756_v62  ;;  %v20139_v29 = vld [vmem:[#allocation19_spill] sm:$0xff] }
 0xaf9   : > { %12110 = vmatprep.mubr.msk.bf16.mxu1 %vm5321_vm7, %v17772_v16 }
 0xafa   : > { %v11855_v3 = vpop.f32.mrb[24].mxu1  ;;  %12642 = vmatmul.mubr.msk.bf16.gmra.mrb[56].mxu0 %vm5321_vm7, %v7436_v17 }
 0xafb   : > { %v11856_v54 = vpop.f32.mrb[25].mxu1 }
 0xafc   : > { %v11857_v8 = vadd.f32 %v11856_v54, %v11855_v3  ;;  %v11858_v6 = vpop.f32.mrb[26].mxu1 }
 0xafd   : > { %v11859_v21 = vpop.f32.mrb[27].mxu1 }
 0xafe   : > { %v11860_v12 = vadd.f32 %v11859_v21, %v11858_v6 }
 0xb00   : > { %v7437_v35 = vpack.c.bf16 %v11860_v12, %v11857_v8  ;;  %12111 = vmatmul.mubr.msk.bf16.gmra.mrb[128].mxu1 %vm5321_vm7, %v17772_v16  ;;  %v20145_v8 = vld [vmem:[#allocation23_spill] sm:$0xff] }
 0xb01   : > { %12112 = vmatprep.mubr.msk.bf16.mxu1 %vm5321_vm7, %v17764_v49 }
 0xb02   : > { %12645 = vmatprep.mubr.msk.bf16.mxu0 %vm5321_vm7, %v7437_v35 }
 0xb08   : > { %12113 = vmatmul.mubr.msk.bf16.gmra.mrb[132].mxu1 %vm5321_vm7, %v17764_v49  ;;  %v20127_v49 = vld [vmem:[#allocation35_spill] sm:$0xff] }
 0xb09   : > { %12114 = vmatprep.mubr.msk.bf16.mxu1 %vm5321_vm7, %v17780_v42  ;;  %v20129_v45 = vpack.c.bf16 %v20127_v49, %v20128_v13  ;;  %v20155_v49 = vld [vmem:[#allocation25_spill] sm:$0xff] }
 0xb0b   : > { %v11861_v62 = vpop.f32.mrb[28].mxu1 }
 0xb0c   : > { %v11862_v2 = vpop.f32.mrb[29].mxu1 }
 0xb0d   : > { %v11863_v33 = vadd.f32 %v11862_v2, %v11861_v62  ;;  %v11864_v43 = vpop.f32.mrb[30].mxu1 }
 0xb0e   : > { %v11865_v55 = vpop.f32.mrb[31].mxu1 }
 0xb0f   : > { %v11866_v25 = vadd.f32 %v11865_v55, %v11864_v43 }
 0xb10   : > { %12115 = vmatmul.mubr.msk.bf16.gmra.mrb[136].mxu1 %vm5321_vm7, %v17780_v42 }
 0xb11   : > { %v7438_v16 = vpack.c.bf16 %v11866_v25, %v11863_v33  ;;  %12116 = vmatprep.mubr.msk.bf16.mxu1 %vm5321_vm7, %v17770_v4  ;;  %v20151_v33 = vld [vmem:[#allocation21_spill] sm:$0xff] }
 0xb13   : > { %12646 = vmatmul.mubr.msk.bf16.gmra.mrb[60].mxu0 %vm5321_vm7, %v7438_v16  ;;  %v17903_v47 = vpop.f32.mrb[32].mxu1 }
 0xb14   : > { %12651 = vmatprep.mubr.msk.bf16.mxu0 %vm5321_vm7, %v20129_v45  ;;  %v17909_v41 = vpop.f32.mrb[33].mxu1  ;;  %v20157_v45 = vld [vmem:[#allocation24_spill] sm:$0xff] }
 0xb15   : > { %v8218_v18 = vmax.f32 %v17903_v47, %v17909_v41  ;;  %v17913_v61 = vpop.f32.mrb[34].mxu1 }
 0xb16   : > { %v17915_v42 = vpop.f32.mrb[35].mxu1 }
 0xb17   : > { %v8221_v44 = vmax.f32 %v17913_v61, %v17915_v42  ;;  %8219 = vmax.xlane.f32.xlu0 %v8218_v18  ;;  %v20158_v18 = vld [vmem:[#allocation40_spill] sm:$0xff] }
 0xb18   : > { %12117 = vmatmul.mubr.msk.bf16.gmra.mrb[140].mxu1 %vm5321_vm7, %v17770_v4 }
 0xb19   : > { %8222 = vmax.xlane.f32.xlu1 %v8221_v44  ;;  %12118 = vmatprep.mubr.msk.bf16.mxu1 %vm5321_vm7, %v17785_v20  ;;  %v20159_v44 = vpack.c.bf16 %v20157_v45, %v20158_v18 }
 0xb1b   : > { %12652 = vmatmul.mubr.msk.bf16.vlgmr.msra.gmra.mrb[32].mxu0 %vm5321_vm7, %v20132_v52  ;;  %v17927_v23 = vpop.f32.mrb[36].mxu1 }
 0xb1c   : > { %11950 = vmatpush3.bf16.msra.mxu0 %v17795_v9  ;;  %12655 = vmatprep.mubr.msk.bf16.mxu0 %vm5321_vm7, %v20135_v31  ;;  %v17934_v22 = vpop.f32.mrb[37].mxu1  ;;  %v20136_v9 = vld [vmem:[#allocation18_spill] sm:$0xff]  ;;  %v20162_v31 = vpack.c.bf16 %v20160_v39, %v20161_v30 }
 0xb1d   : > { %v8224_v4 = vmax.f32 %v17927_v23, %v17934_v22  ;;  %11951 = vmatprep.subr.bf16.mxu0 %v17793_v37  ;;  %v17939_v11 = vpop.f32.mrb[38].mxu1  ;;  %v20137_v37 = vld [vmem:[#allocation38_spill] sm:$0xff] }
 0xb1e   : > { %v17941_v53 = vpop.f32.mrb[39].mxu1  ;;  %v20138_v0 = vpack.c.bf16 %v20136_v9, %v20137_v37  ;;  %v20165_v9 = vld [vmem:[#allocation44_spill] sm:$0xff] }
 0xb1f   : > { %v8227_v5 = vmax.f32 %v17939_v11, %v17941_v53  ;;  %8225 = vmax.xlane.f32.xlu0 %v8224_v4 }
 0xb20   : > { %11952 = vmatpush3.bf16.msra.mxu0 %v17803_v32  ;;  %12119 = vmatmul.mubr.msk.bf16.gmra.mrb[144].mxu1 %vm5321_vm7, %v17785_v20  ;;  %v20140_v32 = vld [vmem:[#allocation39_spill] sm:$0xff] }
 0xb21   : > { %11953 = vmatprep.subr.bf16.mxu0 %v17801_v10  ;;  %12120 = vmatprep.mubr.msk.bf16.mxu1 %vm5321_vm7, %v17778_v57  ;;  %v20141_v26 = vpack.c.bf16 %v20139_v29, %v20140_v32 }
 0xb23   : > { %12656 = vmatmul.mubr.msk.bf16.gmra.mrb[36].mxu0 %vm5321_vm7, %v20138_v0  ;;  %8228 = vmax.xlane.f32.xlu0 %v8227_v5  ;;  %v17955_v27 = vpop.f32.mrb[40].mxu1  ;;  %v20164_v5 = vld [vmem:[#allocation29_spill] sm:$0xff] }
 0xb24   : > { %11954 = vmatpush3.bf16.msra.mxu0 %v17807_v19  ;;  %12659 = vmatprep.mubr.msk.bf16.mxu0 %vm5321_vm7, %v20141_v26  ;;  %v17962_v20 = vpop.f32.mrb[41].mxu1  ;;  %v20143_v19 = vld [vmem:[#allocation20_spill] sm:$0xff]  ;;  %v20166_v37 = vpack.c.bf16 %v20164_v5, %v20165_v9 }
 0xb25   : > { %v8230_v10 = vmax.f32 %v17955_v27, %v17962_v20  ;;  %11955 = vmatprep.subr.bf16.mxu0 %v17805_v15  ;;  %v17967_v38 = vpop.f32.mrb[42].mxu1  ;;  %v20142_v15 = vld [vmem:[#allocation26_spill] sm:$0xff] }
 0xb26   : > { %v17969_v28 = vpop.f32.mrb[43].mxu1  ;;  %v20144_v3 = vpack.c.bf16 %v20142_v15, %v20143_v19  ;;  %v20169_v15 = vld [vmem:[#allocation42_spill] sm:$0xff] }
 0xb27   : > { %v8233_v17 = vmax.f32 %v17967_v38, %v17969_v28  ;;  %8231 = vmax.xlane.f32.xlu1 %v8230_v10 }
 0xb28   : > { %11956 = vmatpush3.bf16.msra.mxu0 %v17815_v63  ;;  %12121 = vmatmul.mubr.msk.bf16.gmra.mrb[148].mxu1 %vm5321_vm7, %v17778_v57  ;;  %v20146_v63 = vld [vmem:[#allocation28_spill] sm:$0xff] }
 0xb29   : > { %11957 = vmatprep.subr.bf16.mxu0 %v17819_v46  ;;  %8234 = vmax.xlane.f32.xlu0 %v8233_v17  ;;  %v20147_v6 = vpack.c.bf16 %v20145_v8, %v20146_v63  ;;  %v20168_v17 = vld [vmem:[#allocation43_spill] sm:$0xff]  ;;  %v20172_v8 = vld [vmem:[#allocation45_spill] sm:$0xff] }
 0xb2a   : > { %12122 = vmatprep.mubr.msk.bf16.mxu1 %vm5321_vm7, %v17791_v24  ;;  %v20170_v19 = vpack.c.bf16 %v20168_v17, %v20169_v15  ;;  %v20173_v63 = vld [vmem:[#allocation41_spill] sm:$0xff] }
 0xb2b   : > { %12660 = vmatmul.mubr.msk.bf16.gmra.mrb[40].mxu0 %vm5321_vm7, %v20144_v3  ;;  %v17983_v54 = vpop.f32.mrb[44].mxu1 }
 0xb2c   : > { %11958 = vmatpush3.bf16.msra.mxu0 %v17827_v34  ;;  %12663 = vmatprep.mubr.msk.bf16.mxu0 %vm5321_vm7, %v20147_v6  ;;  %v17990_v57 = vpop.f32.mrb[45].mxu1  ;;  %v20148_v34 = vld [vmem:[#allocation27_spill] sm:$0xff]  ;;  %v20174_v6 = vpack.c.bf16 %v20172_v8, %v20173_v63 }
 0xb2d   : > { %v8236_v46 = vmax.f32 %v17983_v54, %v17990_v57  ;;  %11959 = vmatprep.subr.bf16.mxu0 %v17830_v36  ;;  %v17995_v21 = vpop.f32.mrb[46].mxu1  ;;  %v20149_v36 = vld [vmem:[#allocation22_spill] sm:$0xff] }
 0xb2e   : > { %v17997_v12 = vpop.f32.mrb[47].mxu1  ;;  %v20150_v62 = vpack.c.bf16 %v20148_v34, %v20149_v36 }
 0xb2f   : > { %v8239_v35 = vmax.f32 %v17995_v21, %v17997_v12  ;;  %8237 = vmax.xlane.f32.xlu1 %v8236_v46 }
 0xb30   : > { %11960 = vmatpush3.bf16.msra.mxu0 %v17813_v58  ;;  %12123 = vmatmul.mubr.msk.bf16.gmra.mrb[152].mxu1 %vm5321_vm7, %v17791_v24  ;;  %v20152_v58 = vld [vmem:[#allocation32_spill] sm:$0xff] }
 0xb31   : > { %11961 = vmatprep.subr.bf16.mxu0 %v17836_v48  ;;  %8240 = vmax.xlane.f32.xlu0 %v8239_v35  ;;  %v20153_v43 = vpack.c.bf16 %v20151_v33, %v20152_v58  ;;  %v20176_v33 = vld [vmem:[#allocation47_spill] sm:$0xff]  ;;  %v20177_v58 = vld [vmem:[#allocation46_spill] sm:$0xff] }
 0xb32   : > { %12124 = vmatprep.mubr.msk.bf16.mxu1 %vm5321_vm7, %v17783_v59 }
 0xb33   : > { %12664 = vmatmul.mubr.msk.bf16.gmra.mrb[44].mxu0 %vm5321_vm7, %v20150_v62  ;;  %v18011_v2 = vpop.f32.mrb[48].mxu1 }
 0xb34   : > { %11962 = vmatpush3.bf16.msra.mxu0 %v17838_v56  ;;  %12667 = vmatprep.mubr.msk.bf16.mxu0 %vm5321_vm7, %v20153_v43  ;;  %v18018_v24 = vpop.f32.mrb[49].mxu1  ;;  %v20154_v56 = vld [vmem:[#allocation31_spill] sm:$0xff]  ;;  %v20178_v43 = vpack.c.bf16 %v20176_v33, %v20177_v58 }
 0xb35   : > { %v8242_v48 = vmax.f32 %v18011_v2, %v18018_v24  ;;  %11963 = vmatprep.subr.bf16.mxu0 %v17817_v14  ;;  %v18023_v55 = vpop.f32.mrb[50].mxu1  ;;  %v20156_v13 = vpack.c.bf16 %v20154_v56, %v20155_v49 }
 0xb36   : > { %v18025_v25 = vpop.f32.mrb[51].mxu1 }
 0xb37   : > { %v8245_v16 = vmax.f32 %v18023_v55, %v18025_v25  ;;  %8243 = vmax.xlane.f32.xlu1 %v8242_v48 }
 0xb38   : > { %11964 = vmatpush3.bf16.msra.mxu0 %v17825_v7  ;;  %12125 = vmatmul.mubr.msk.bf16.gmra.mrb[156].mxu1 %vm5321_vm7, %v17783_v59 }
 0xb39   : > { %8246 = vmax.xlane.f32.xlu0 %v8245_v16 }
 0xb3b   : > { %12668 = vmatmul.mubr.msk.bf16.gmra.mrb[48].mxu0 %vm5321_vm7, %v20156_v13  ;;  %v18036_v14 = vpop.f32.mrb[52].mxu1 }
 0xb3c   : > { %12671 = vmatprep.mubr.msk.bf16.mxu0 %vm5321_vm7, %v20159_v44  ;;  %v18042_v60 = vpop.f32.mrb[53].mxu1 }
 0xb3d   : > { %v8248_v7 = vmax.f32 %v18036_v14, %v18042_v60  ;;  %v18046_v51 = vpop.f32.mrb[54].mxu1 }
 0xb3e   : > { %v18048_v59 = vpop.f32.mrb[55].mxu1 }
 0xb3f   : > { %v8251_v52 = vmax.f32 %v18046_v51, %v18048_v59  ;;  %8249 = vmax.xlane.f32.xlu1 %v8248_v7 }
 0xb41   : > { %8252 = vmax.xlane.f32.xlu0 %v8251_v52 }
 0xb43   : > { %12672 = vmatmul.mubr.msk.bf16.gmra.mrb[52].mxu0 %vm5321_vm7, %v20162_v31  ;;  %v18056_v4 = vpop.f32.mrb[56].mxu1 }
 0xb44   : > { %20163 = vst [vmem:[#allocation15_spill] sm:$0xff] %v18056_v4  ;;  %12675 = vmatprep.mubr.msk.bf16.mxu0 %vm5321_vm7, %v20166_v37  ;;  %v18062_v0 = vpop.f32.mrb[57].mxu1 }
 0xb45   : > { %20167 = vst [vmem:[#allocation8_spill] sm:$0xff] %v18062_v0  ;;  %v8254_v29 = vmax.f32 %v18056_v4, %v18062_v0  ;;  %v18066_v32 = vpop.f32.mrb[58].mxu1 }
 0xb46   : > { %v18068_v26 = vpop.f32.mrb[59].mxu1 }
 0xb47   : > { %v8257_v10 = vmax.f32 %v18066_v32, %v18068_v26  ;;  %8255 = vmax.xlane.f32.xlu1 %v8254_v29 }
 0xb49   : > { %8258 = vmax.xlane.f32.xlu0 %v8257_v10 }
 0xb4b   : > { %12676 = vmatmul.mubr.msk.bf16.gmra.mrb[56].mxu0 %vm5321_vm7, %v20170_v19  ;;  %v18076_v3 = vpop.f32.mrb[60].mxu1 }
 0xb4c   : > { %20171 = vst [vmem:[#allocation61_spill] sm:$0xff] %v18076_v3  ;;  %12679 = vmatprep.mubr.msk.bf16.mxu0 %vm5321_vm7, %v20174_v6  ;;  %v18082_v46 = vpop.f32.mrb[61].mxu1 }
 0xb4d   : > { %20175 = vst [vmem:[#allocation62_spill] sm:$0xff] %v18082_v46  ;;  %v8260_v35 = vmax.f32 %v18076_v3, %v18082_v46  ;;  %v18086_v34 = vpop.f32.mrb[62].mxu1 }
 0xb4e   : > { %v18088_v36 = vpop.f32.mrb[63].mxu1 }
 0xb4f   : > { %v8263_v62 = vmax.f32 %v18086_v34, %v18088_v36  ;;  %8261 = vmax.xlane.f32.xlu1 %v8260_v35 }
 0xb51   : > { %8264 = vmax.xlane.f32.xlu0 %v8263_v62 }
 0xb53   : > { %12680 = vmatmul.mubr.msk.bf16.gmra.mrb[60].mxu0 %vm5321_vm7, %v20178_v43  ;;  %v18096_v48 = vpop.f32.mrb[64].mxu1 }
 0xb54   : > { %20179 = vst [vmem:[#allocation63_spill] sm:$0xff] %v18096_v48  ;;  %v18098_v16 = vpop.f32.mrb[65].mxu1 }
 0xb55   : > { %20180 = vst [vmem:[#allocation64_spill] sm:$0xff] %v18098_v16  ;;  %v8266_v56 = vmax.f32 %v18096_v48, %v18098_v16  ;;  %v18102_v49 = vpop.f32.mrb[66].mxu1 }
 0xb56   : > { %20181 = vst [vmem:[#allocation60_spill] sm:$0xff] %v18102_v49  ;;  %v18104_v13 = vpop.f32.mrb[67].mxu1 }
 0xb57   : > { %20182 = vst [vmem:[#allocation66_spill] sm:$0xff] %v18104_v13  ;;  %v8269_v45 = vmax.f32 %v18102_v49, %v18104_v13  ;;  %8267 = vmax.xlane.f32.xlu1 %v8266_v56 }
 0xb59   : > { %8270 = vmax.xlane.f32.xlu0 %v8269_v45 }
 0xb5b   : > { %v18108_v18 = vpop.f32.mrb[68].mxu1 }
 0xb5c   : > { %20183 = vst [vmem:[#allocation65_spill] sm:$0xff] %v18108_v18  ;;  %v18110_v44 = vpop.f32.mrb[69].mxu1 }
 0xb5d   : > { %20184 = vst [vmem:[#allocation68_spill] sm:$0xff] %v18110_v44  ;;  %v8272_v7 = vmax.f32 %v18108_v18, %v18110_v44  ;;  %v18114_v52 = vpop.f32.mrb[70].mxu1 }
 0xb5e   : > { %20185 = vst [vmem:[#allocation67_spill] sm:$0xff] %v18114_v52  ;;  %v18116_v39 = vpop.f32.mrb[71].mxu1 }
 0xb5f   : > { %20186 = vst [vmem:[#allocation70_spill] sm:$0xff] %v18116_v39  ;;  %v8275_v30 = vmax.f32 %v18114_v52, %v18116_v39  ;;  %8273 = vmax.xlane.f32.xlu1 %v8272_v7 }
 0xb61   : > { %8276 = vmax.xlane.f32.xlu0 %v8275_v30 }
 0xb63   : > { %v18120_v31 = vpop.f32.mrb[72].mxu1 }
 0xb64   : > { %20187 = vst [vmem:[#allocation14_spill] sm:$0xff] %v18120_v31  ;;  %v18122_v5 = vpop.f32.mrb[73].mxu1 }
 0xb65   : > { %20188 = vst [vmem:[#allocation69_spill] sm:$0xff] %v18122_v5  ;;  %v8278_v9 = vmax.f32 %v18120_v31, %v18122_v5  ;;  %v18126_v37 = vpop.f32.mrb[74].mxu1 }
 0xb66   : > { %20189 = vst [vmem:[#allocation2_spill] sm:$0xff] %v18126_v37  ;;  %v18128_v29 = vpop.f32.mrb[75].mxu1 }
 0xb67   : > { %20190 = vst [vmem:[#allocation4_spill] sm:$0xff] %v18128_v29  ;;  %v8281_v10 = vmax.f32 %v18126_v37, %v18128_v29  ;;  %8279 = vmax.xlane.f32.xlu1 %v8278_v9 }
 0xb69   : > { %8282 = vmax.xlane.f32.xlu0 %v8281_v10 }
 0xb6b   : > { %v18132_v17 = vpop.f32.mrb[76].mxu1 }
 0xb6c   : > { %20191 = vst [vmem:[#allocation71_spill] sm:$0xff] %v18132_v17  ;;  %v18134_v15 = vpop.f32.mrb[77].mxu1 }
 0xb6d   : > { %20192 = vst [vmem:[#allocation3_spill] sm:$0xff] %v18134_v15  ;;  %v8284_v19 = vmax.f32 %v18132_v17, %v18134_v15  ;;  %v18138_v8 = vpop.f32.mrb[78].mxu1 }
 0xb6e   : > { %20193 = vst [vmem:[#allocation5_spill] sm:$0xff] %v18138_v8  ;;  %v18140_v63 = vpop.f32.mrb[79].mxu1 }
 0xb6f   : > { %20194 = vst [vmem:[#allocation6_spill] sm:$0xff] %v18140_v63  ;;  %v8287_v6 = vmax.f32 %v18138_v8, %v18140_v63  ;;  %8285 = vmax.xlane.f32.xlu0 %v8284_v19 }
 0xb73   : > { %8288 = vmax.xlane.f32.xlu0 %v8287_v6  ;;  %v18144_v35 = vpop.f32.mrb[80].mxu1 }
 0xb74   : > { %20195 = vst [vmem:[#allocation9_spill] sm:$0xff] %v18144_v35  ;;  %v18146_v62 = vpop.f32.mrb[81].mxu1 }
 0xb75   : > { %20196 = vst [vmem:[#allocation10_spill] sm:$0xff] %v18146_v62  ;;  %v8290_v33 = vmax.f32 %v18144_v35, %v18146_v62  ;;  %v18150_v58 = vpop.f32.mrb[82].mxu1 }
 0xb76   : > { %20197 = vst [vmem:[#allocation11_spill] sm:$0xff] %v18150_v58  ;;  %v18152_v43 = vpop.f32.mrb[83].mxu1 }
 0xb77   : > { %20198 = vst [vmem:[#allocation12_spill] sm:$0xff] %v18152_v43  ;;  %v8293_v56 = vmax.f32 %v18150_v58, %v18152_v43  ;;  %8291 = vmax.xlane.f32.xlu1 %v8290_v33 }
 0xb79   : > { %8294 = vmax.xlane.f32.xlu0 %v8293_v56 }
 0xb7b   : > { %v18156_v45 = vpop.f32.mrb[84].mxu1 }
 0xb7c   : > { %20199 = vst [vmem:[#allocation13_spill] sm:$0xff] %v18156_v45  ;;  %v18158_v7 = vpop.f32.mrb[85].mxu1 }
 0xb7d   : > { %20200 = vst [vmem:[#allocation52_spill] sm:$0xff] %v18158_v7  ;;  %v8296_v30 = vmax.f32 %v18156_v45, %v18158_v7  ;;  %v18162_v9 = vpop.f32.mrb[86].mxu1 }
 0xb7e   : > { %20201 = vst [vmem:[#allocation54_spill] sm:$0xff] %v18162_v9  ;;  %v18164_v10 = vpop.f32.mrb[87].mxu1 }
 0xb7f   : > { %20202 = vst [vmem:[#allocation72_spill] sm:$0xff] %v18164_v10  ;;  %v8299_v19 = vmax.f32 %v18162_v9, %v18164_v10  ;;  %8297 = vmax.xlane.f32.xlu0 %v8296_v30 }
 0xb81   : > { %8300 = vmax.xlane.f32.xlu1 %v8299_v19 }
 0xb83   : > { %v18168_v6 = vpop.f32.mrb[88].mxu1 }
 0xb84   : > { %20203 = vst [vmem:[#allocation49_spill] sm:$0xff] %v18168_v6  ;;  %v18170_v33 = vpop.f32.mrb[89].mxu1 }
 0xb85   : > { %20204 = vst [vmem:[#allocation53_spill] sm:$0xff] %v18170_v33  ;;  %v8302_v56 = vmax.f32 %v18168_v6, %v18170_v33  ;;  %v18174_v50 = vpop.f32.mrb[90].mxu1 }
 0xb86   : > { %20205 = vst [vmem:[#allocation58_spill] sm:$0xff] %v18174_v50  ;;  %v18176_v43 = vpop.f32.mrb[91].mxu1 }
 0xb87   : > { %20206 = vst [vmem:[#allocation48_spill] sm:$0xff] %v18176_v43  ;;  %v8305_v58 = vmax.f32 %v18174_v50, %v18176_v43  ;;  %8303 = vmax.xlane.f32.xlu0 %v8302_v56 }
 0xb89   : > { %8306 = vmax.xlane.f32.xlu1 %v8305_v58 }
 0xb8b   : > { %v18180_v62 = vpop.f32.mrb[92].mxu1 }
 0xb8c   : > { %20207 = vst [vmem:[#allocation51_spill] sm:$0xff] %v18180_v62  ;;  %v18182_v30 = vpop.f32.mrb[93].mxu1 }
 0xb8d   : > { %20208 = vst [vmem:[#allocation57_spill] sm:$0xff] %v18182_v30  ;;  %v8308_v19 = vmax.f32 %v18180_v62, %v18182_v30  ;;  %v18186_v10 = vpop.f32.mrb[94].mxu1 }
 0xb8e   : > { %20209 = vst [vmem:[#allocation73_spill] sm:$0xff] %v18186_v10  ;;  %v18188_v9 = vpop.f32.mrb[95].mxu1 }
 0xb8f   : > { %20210 = vst [vmem:[#allocation50_spill] sm:$0xff] %v18188_v9  ;;  %v8311_v35 = vmax.f32 %v18186_v10, %v18188_v9  ;;  %8309 = vmax.xlane.f32.xlu1 %v8308_v19 }
 0xb91   : > { %8312 = vmax.xlane.f32.xlu0 %v8311_v35 }
 0xb93   : > { %v18192_v63 = vpop.f32.mrb[96].mxu1 }
 0xb94   : > { %20211 = vst [vmem:[#allocation56_spill] sm:$0xff] %v18192_v63  ;;  %v18194_v56 = vpop.f32.mrb[97].mxu1 }
 0xb95   : > { %20212 = vst [vmem:[#allocation59_spill] sm:$0xff] %v18194_v56  ;;  %v9553_v58 = vmax.f32 %v18192_v63, %v18194_v56  ;;  %v18198_v43 = vpop.f32.mrb[98].mxu1 }
 0xb96   : > { %20213 = vst [vmem:[#allocation77_spill] sm:$0xff] %v18198_v43  ;;  %v18200_v50 = vpop.f32.mrb[99].mxu1 }
 0xb97   : > { %20214 = vst [vmem:[#allocation55_spill] sm:$0xff] %v18200_v50  ;;  %v9556_v30 = vmax.f32 %v18198_v43, %v18200_v50  ;;  %9554 = vmax.xlane.f32.xlu1 %v9553_v58 }
 0xb99   : > { %9557 = vmax.xlane.f32.xlu0 %v9556_v30 }
 0xb9b   : > { %v18204_v62 = vpop.f32.mrb[100].mxu1 }
 0xb9c   : > { %20215 = vst [vmem:[#allocation75_spill] sm:$0xff] %v18204_v62  ;;  %v18206_v19 = vpop.f32.mrb[101].mxu1 }
 0xb9d   : > { %20216 = vst [vmem:[#allocation76_spill] sm:$0xff] %v18206_v19  ;;  %v9559_v35 = vmax.f32 %v18204_v62, %v18206_v19  ;;  %v18210_v8 = vpop.f32.mrb[102].mxu1 }
 0xb9e   : > { %v18212_v15 = vpop.f32.mrb[103].mxu1 }
 0xba3   : > { %v18216_v63 = vpop.f32.mrb[104].mxu1 }
 0xba4   : > { %v18218_v17 = vpop.f32.mrb[105].mxu1 }
 0xba5   : > { %v18222_v58 = vpop.f32.mrb[106].mxu1 }
 0xba6   : > { %v18224_v50 = vpop.f32.mrb[107].mxu1  ;;  %v8223_v5 = vpop.xlane.xlu1 %8222 }
 0xba7   : > { %20217 = vst [vmem:[#allocation74_spill] sm:$0xff] %v18224_v50 }
 0xba8   : > { %10095 = vrot.lane.b32.xlu1 %v20095_v40, %s14019_s23 }
 0xbab   : > { %v18230_v62 = vpop.f32.mrb[108].mxu1 }
 0xbac   : > { %v18232_v56 = vpop.f32.mrb[109].mxu1 }
 0xbad   : > { %v18236_v9 = vpop.f32.mrb[110].mxu1 }
 0xbae   : > { %v18238_v30 = vpop.f32.mrb[111].mxu1 }
 0xbaf   : > { %20218 = vst [vmem:[#allocation35_spill] sm:$0xff] %v18238_v30  ;;  %10077 = vrot.lane.b32.xlu0 %v20084_v1, %s14019_s23  ;;  %v8220_v1 = vpop.xlane.xlu0 %8219 }
 0xbb0   : > { %v8314_v45 = vsub.f32 %v17903_v47, %v8220_v1  ;;  %v8315_v18 = vsub.f32 %v17909_v41, %v8220_v1 }
 0xbb2   : > { %v8378_v39 = vmul.f32 1.442695, %v8314_v45  ;;  %v8380_v13 = vmul.f32 1.442695, %v8315_v18  ;;  %v8317_v18 = vsub.f32 %v17915_v42, %v8223_v5  ;;  %v20224_v42 = vmax.f32 %v18210_v8, %v18212_v15 }
 0xbb3   : > { %v18244_v19 = vpop.f32.mrb[112].mxu1  ;;  %v8226_v44 = vpop.xlane.xlu0 %8225 }
 0xbb4   : > { %v18246_v40 = vpop.f32.mrb[113].mxu1  ;;  %v18256_v33 = vpop.xlane.xlu1 %8231  ;;  %13611 = vpow2.f32 %v8378_v39 }
 0xbb5   : > { %v18250_v37 = vpop.f32.mrb[114].mxu1  ;;  %13613 = vpow2.f32 %v8380_v13 }
 0xbb6   : > { %v18252_v43 = vpop.f32.mrb[115].mxu1 }
 0xbb7   : > { %v18282_v0 = vpop.xlane.xlu0 %8228 }
 0xbbb   : > { %v18258_v10 = vpop.f32.mrb[116].mxu1  ;;  %v18290_v45 = vpop.xlane.xlu0 %8234 }
 0xbbc   : > { %v18260_v6 = vpop.f32.mrb[117].mxu1  ;;  %v8238_v7 = vpop.xlane.xlu1 %8237 }
 0xbbd   : > { %v18264_v52 = vpop.f32.mrb[118].mxu1  ;;  %v8326_v16 = vsub.f32 %v17983_v54, %v8238_v7  ;;  %v8327_v48 = vsub.f32 %v17990_v57, %v8238_v7  ;;  %v8316_v54 = vsub.f32 %v17913_v61, %v8223_v5 }
 0xbbe   : > { %v18266_v29 = vpop.f32.mrb[119].mxu1 }
 0xbbf   : > { %v8402_v31 = vmul.f32 1.442695, %v8326_v16  ;;  %v8404_v41 = vmul.f32 1.442695, %v8327_v48  ;;  %v8382_v16 = vmul.f32 1.442695, %v8316_v54  ;;  %v18306_v5 = vpop.xlane.xlu0 %8240 }
 0xbc0   : > { %v8384_v48 = vmul.f32 1.442695, %v8317_v18  ;;  %v20226_v18 = vmax.f32 %v18216_v63, %v18218_v17 }
 0xbc1   : > { %13615 = vpow2.f32 %v8402_v31 }
 0xbc2   : > { %13617 = vpow2.f32 %v8404_v41  ;;  %v8318_v41 = vsub.f32 %v17927_v23, %v8226_v44 }
 0xbc3   : > { %v18274_v46 = vpop.f32.mrb[120].mxu1  ;;  %13619 = vpow2.f32 %v8382_v16 }
 0xbc4   : > { %20219 = vst [vmem:[#allocation34_spill] sm:$0xff] %v18274_v46  ;;  %v18276_v3 = vpop.f32.mrb[121].mxu1  ;;  %v8244_v7 = vpop.xlane.xlu1 %8243  ;;  %13621 = vpow2.f32 %v8384_v48  ;;  %v20231_v48 = vmax.f32 %v18230_v62, %v18232_v56 }
 0xbc5   : > { %20220 = vst [vmem:[#allocation16_spill] sm:$0xff] %v18276_v3  ;;  %v18280_v47 = vpop.f32.mrb[122].mxu1  ;;  %v8330_v13 = vsub.f32 %v18011_v2, %v8244_v7  ;;  %v8319_v2 = vsub.f32 %v17934_v22, %v8226_v44 }
 0xbc6   : > { %v18284_v4 = vpop.f32.mrb[123].mxu1 }
 0xbc7   : > { %v8410_v57 = vmul.f32 1.442695, %v8330_v13  ;;  %v8388_v13 = vmul.f32 1.442695, %v8319_v2 }
 0xbc9   : > { %13623 = vpow2.f32 %v8410_v57 }
 0xbcb   : > { %v18292_v1 = vpop.f32.mrb[124].mxu1 }
 0xbcc   : > { %20221 = vst [vmem:[#allocation36_spill] sm:$0xff] %v18292_v1  ;;  %9560 = vmax.xlane.f32.xlu1 %v9559_v35  ;;  %v18294_v49 = vpop.f32.mrb[125].mxu1  ;;  %v8331_v35 = vsub.f32 %v18018_v24, %v8244_v7  ;;  %v8247_v7 = vpop.xlane.xlu0 %8246 }
 0xbcd   : > { %20222 = vst [vmem:[#allocation17_spill] sm:$0xff] %v18294_v49  ;;  %v9595_v61 = vmax.f32 %v18292_v1, %v18294_v49  ;;  %v18298_v39 = vpop.f32.mrb[126].mxu1  ;;  %v20227_v49 = vmax.f32 %v18222_v58, %v18224_v50  ;;  %v8386_v1 = vmul.f32 1.442695, %v8318_v41  ;;  %v20235_v41 = vmax.f32 %v18236_v9, %v18238_v30 }
 0xbce   : > { %20223 = vst [vmem:[#allocation37_spill] sm:$0xff] %v18298_v39  ;;  %9563 = vmax.xlane.f32.xlu0 %v20224_v42  ;;  %v18304_v31 = vpop.f32.mrb[127].mxu1  ;;  %v18316_v42 = vpop.eup %13611  ;;  %v8412_v23 = vmul.f32 1.442695, %v8331_v35  ;;  %v8332_v35 = vsub.f32 %v18023_v55, %v8247_v7  ;;  %v8333_v2 = vsub.f32 %v18025_v25, %v8247_v7 }
 0xbcf   : > { %20225 = vst [vmem:[#allocation18_spill] sm:$0xff] %v18304_v31  ;;  %v18321_v24 = vpop.eup %13613  ;;  %v8250_v7 = vpop.xlane.xlu1 %8249 }
 0xbd0   : > { %9566 = vmax.xlane.f32.xlu1 %v20226_v18  ;;  %20228 = vst [vmem:[#allocation38_spill] sm:$0xff] %v18321_v24  ;;  %v18325_v54 = vpop.eup %13615  ;;  %13625 = vpow2.f32 %v8412_v23  ;;  %v8414_v23 = vmul.f32 1.442695, %v8332_v35  ;;  %v8334_v35 = vsub.f32 %v18036_v14, %v8250_v7 }
 0xbd1   : > { %20230 = vst [vmem:[#allocation39_spill] sm:$0xff] %v18325_v54  ;;  %v18332_v44 = vpop.eup %13617  ;;  %13627 = vpow2.f32 %v8386_v1  ;;  %v8416_v1 = vmul.f32 1.442695, %v8333_v2 }
 0xbd2   : > { %9569 = vmax.xlane.f32.xlu0 %v20227_v49  ;;  %20233 = vst [vmem:[#allocation20_spill] sm:$0xff] %v18332_v44  ;;  %v8320_v49 = vsub.f32 %v17939_v11, %v18282_v0  ;;  %v8524_v55 = vadd.f32 %v18332_v44, %v18325_v54  ;;  %13629 = vpow2.f32 %v8388_v13  ;;  %v18355_v30 = vpop.eup %13619 }
 0xbd3   : > { %v18323_v16 = vpop.f32.mrb[128].mxu1  ;;  %v18357_v25 = vpop.eup %13621  ;;  %13631 = vpow2.f32 %v8414_v23 }
 0xbd4   : > { %20229 = vst [vmem:[#allocation19_spill] sm:$0xff] %v18323_v16  ;;  %9572 = vmax.xlane.f32.xlu1 %v20231_v48  ;;  %v18330_v22 = vpop.f32.mrb[129].mxu1  ;;  %v8506_v48 = vadd.f32 %v18321_v24, %v18316_v42  ;;  %v8390_v24 = vmul.f32 1.442695, %v8320_v49  ;;  %v8509_v49 = vadd.f32 %v18357_v25, %v18355_v30  ;;  %13633 = vpow2.f32 %v8416_v1  ;;  %v18376_v54 = vpop.eup %13623 }
 0xbd5   : > { %20232 = vst [vmem:[#allocation26_spill] sm:$0xff] %v18330_v22  ;;  %v18336_v18 = vpop.f32.mrb[130].mxu1  ;;  %20242 = vst [vmem:[#allocation31_spill] sm:$0xff] %v18376_v54 }
 0xbd6   : > { %20234 = vst [vmem:[#allocation23_spill] sm:$0xff] %v18336_v18  ;;  %9575 = vmax.xlane.f32.xlu0 %v20235_v41  ;;  %v18342_v50 = vpop.f32.mrb[131].mxu1  ;;  %v8321_v41 = vsub.f32 %v17941_v53, %v18282_v0  ;;  %13635 = vpow2.f32 %v8390_v24  ;;  %v20245_v24 = vmax.f32 %v18298_v39, %v18304_v31 }
 0xbd7   : > { %20236 = vst [vmem:[#allocation28_spill] sm:$0xff] %v18342_v50 }
 0xbd8   : > { %8507 = vadd.xlane.f32.xlu1 %v8506_v48  ;;  %v20238_v48 = vmax.f32 %v18244_v19, %v18246_v40  ;;  %v8392_v13 = vmul.f32 1.442695, %v8321_v41  ;;  %v8322_v41 = vsub.f32 %v17955_v27, %v18256_v33 }
 0xbda   : > { %8525 = vadd.xlane.f32.xlu0 %v8524_v55  ;;  %v8335_v55 = vsub.f32 %v18042_v60, %v8250_v7  ;;  %v18382_v14 = vpop.eup %13625  ;;  %13637 = vpow2.f32 %v8392_v13  ;;  %v8418_v60 = vmul.f32 1.442695, %v8334_v35  ;;  %v8394_v13 = vmul.f32 1.442695, %v8322_v41 }
 0xbdb   : > { %v18359_v11 = vpop.f32.mrb[132].mxu1  ;;  %20243 = vst [vmem:[#allocation25_spill] sm:$0xff] %v18382_v14  ;;  %v18386_v1 = vpop.eup %13627 }
 0xbdc   : > { %20237 = vst [vmem:[#allocation27_spill] sm:$0xff] %v18359_v11  ;;  %9578 = vmax.xlane.f32.xlu1 %v20238_v48  ;;  %v18364_v57 = vpop.f32.mrb[133].mxu1  ;;  %v8253_v48 = vpop.xlane.xlu0 %8252  ;;  %20244 = vst [vmem:[#allocation24_spill] sm:$0xff] %v18386_v1  ;;  %v8420_v53 = vmul.f32 1.442695, %v8335_v55  ;;  %13639 = vpow2.f32 %v8418_v60 }
 0xbdd   : > { %20239 = vst [vmem:[#allocation22_spill] sm:$0xff] %v18364_v57  ;;  %v18368_v0 = vpop.f32.mrb[134].mxu1  ;;  %v8336_v7 = vsub.f32 %v18046_v51, %v8253_v48  ;;  %v18392_v27 = vpop.eup %13629  ;;  %v8530_v51 = vadd.f32 %v18382_v14, %v18376_v54 }
 0xbde   : > { %20240 = vst [vmem:[#allocation21_spill] sm:$0xff] %v18368_v0  ;;  %v18371_v2 = vpop.f32.mrb[135].mxu1  ;;  %9596 = vmax.xlane.f32.xlu0 %v9595_v61  ;;  %v8323_v61 = vsub.f32 %v17962_v20, %v18256_v33  ;;  %20246 = vst [vmem:[#allocation40_spill] sm:$0xff] %v18392_v27  ;;  %v20249_v20 = vmax.f32 %v18250_v37, %v18252_v43  ;;  %13641 = vpow2.f32 %v8420_v53  ;;  %v18412_v31 = vpop.eup %13631 }
 0xbdf   : > { %20241 = vst [vmem:[#allocation32_spill] sm:$0xff] %v18371_v2  ;;  %20252 = vst [vmem:[#allocation43_spill] sm:$0xff] %v18412_v31  ;;  %13643 = vpow2.f32 %v8394_v13  ;;  %v18418_v60 = vpop.eup %13633 }
 0xbe0   : > { %8510 = vadd.xlane.f32.xlu1 %v8509_v49  ;;  %v8337_v49 = vsub.f32 %v18048_v59, %v8253_v48  ;;  %v8396_v33 = vmul.f32 1.442695, %v8323_v61  ;;  %v8422_v59 = vmul.f32 1.442695, %v8336_v7  ;;  %v8512_v48 = vadd.f32 %v18392_v27, %v18386_v1  ;;  %20253 = vst [vmem:[#allocation42_spill] sm:$0xff] %v18418_v60 }
 0xbe1   : > { %v8324_v61 = vsub.f32 %v17967_v38, %v18290_v45  ;;  %v8325_v7 = vsub.f32 %v17969_v28, %v18290_v45  ;;  %v20259_v28 = vmax.f32 %v18258_v10, %v18260_v6 }
 0xbe2   : > { %9599 = vmax.xlane.f32.xlu0 %v20245_v24  ;;  %v8424_v41 = vmul.f32 1.442695, %v8337_v49  ;;  %13645 = vpow2.f32 %v8396_v33  ;;  %v20255_v49 = vmax.f32 %v18323_v16, %v18330_v22  ;;  %v8256_v16 = vpop.xlane.xlu1 %8255 }
 0xbe3   : > { %v18395_v23 = vpop.f32.mrb[136].mxu1  ;;  %13647 = vpow2.f32 %v8422_v59  ;;  %v8398_v33 = vmul.f32 1.442695, %v8324_v61  ;;  %v8400_v45 = vmul.f32 1.442695, %v8325_v7  ;;  %v8328_v7 = vsub.f32 %v17995_v21, %v18306_v5 }
 0xbe4   : > { %20247 = vst [vmem:[#allocation33_spill] sm:$0xff] %v18395_v23  ;;  %v18397_v44 = vpop.f32.mrb[137].mxu1  ;;  %9581 = vmax.xlane.f32.xlu1 %v20249_v20  ;;  %v8259_v20 = vpop.xlane.xlu0 %8258  ;;  %13649 = vpow2.f32 %v8424_v41 }
 0xbe5   : > { %20248 = vst [vmem:[#allocation30_spill] sm:$0xff] %v18397_v44  ;;  %v18406_v24 = vpop.f32.mrb[138].mxu1  ;;  %v8340_v53 = vsub.f32 %v18066_v32, %v8259_v20  ;;  %v8341_v13 = vsub.f32 %v18068_v26, %v8259_v20  ;;  %v8533_v32 = vadd.f32 %v18418_v60, %v18412_v31  ;;  %13651 = vpow2.f32 %v8398_v33 }
 0xbe6   : > { %20250 = vst [vmem:[#allocation29_spill] sm:$0xff] %v18406_v24  ;;  %v18408_v55 = vpop.f32.mrb[139].mxu1  ;;  %8531 = vadd.xlane.f32.xlu0 %v8530_v51  ;;  %v18422_v51 = vpop.eup %13635  ;;  %13653 = vpow2.f32 %v8400_v45  ;;  %v20264_v33 = vmax.f32 %v18336_v18, %v18342_v50  ;;  %v8406_v45 = vmul.f32 1.442695, %v8328_v7  ;;  %v20272_v18 = vld [vmem:[#allocation8_spill] sm:$0xff] }
 0xbe7   : > { %20251 = vst [vmem:[#allocation44_spill] sm:$0xff] %v18408_v55  ;;  %20254 = vst [vmem:[#allocation45_spill] sm:$0xff] %v18422_v51  ;;  %v18428_v38 = vpop.eup %13637  ;;  %v8430_v41 = vmul.f32 1.442695, %v8340_v53  ;;  %v8432_v54 = vmul.f32 1.442695, %v8341_v13  ;;  %v8329_v53 = vsub.f32 %v17997_v12, %v18306_v5  ;;  %v20269_v12 = vmax.f32 %v18264_v52, %v18266_v29 }
 0xbe8   : > { %8513 = vadd.xlane.f32.xlu1 %v8512_v48  ;;  %20256 = vst [vmem:[#allocation41_spill] sm:$0xff] %v18428_v38  ;;  %v8265_v26 = vpop.xlane.xlu0 %8264  ;;  %v8515_v61 = vadd.f32 %v18428_v38, %v18422_v51  ;;  %v18448_v22 = vpop.eup %13639  ;;  %v8339_v39 = vsub.f32 %v20272_v18, %v8256_v16 }
 0xbe9   : > { %20261 = vst [vmem:[#allocation79_spill] sm:$0xff] %v18448_v22  ;;  %v18454_v59 = vpop.eup %13641  ;;  %13655 = vpow2.f32 %v8430_v41  ;;  %v8344_v7 = vsub.f32 %v18086_v34, %v8265_v26 }
 0xbea   : > { %9602 = vmax.xlane.f32.xlu0 %v20255_v49  ;;  %20262 = vst [vmem:[#allocation80_spill] sm:$0xff] %v18454_v59  ;;  %13657 = vpow2.f32 %v8432_v54  ;;  %v8536_v5 = vadd.f32 %v18454_v59, %v18448_v22  ;;  %v8345_v22 = vsub.f32 %v18088_v36, %v8265_v26  ;;  %v8262_v54 = vpop.xlane.xlu1 %8261 }
 0xbeb   : > { %v18431_v48 = vpop.f32.mrb[140].mxu1  ;;  %13659 = vpow2.f32 %v8406_v45 }
 0xbec   : > { %20257 = vst [vmem:[#allocation47_spill] sm:$0xff] %v18431_v48  ;;  %v18433_v35 = vpop.f32.mrb[141].mxu1  ;;  %9584 = vmax.xlane.f32.xlu1 %v20259_v28  ;;  %v18460_v13 = vpop.xlane.xlu0 %8270  ;;  %v8440_v26 = vmul.f32 1.442695, %v8345_v22  ;;  %v20280_v22 = vld [vmem:[#allocation60_spill] sm:$0xff] }
 0xbed   : > { %20258 = vst [vmem:[#allocation46_spill] sm:$0xff] %v18433_v35  ;;  %v18442_v49 = vpop.f32.mrb[142].mxu1 }
 0xbee   : > { %v18444_v20 = vpop.f32.mrb[143].mxu1  ;;  %8534 = vadd.xlane.f32.xlu0 %v8533_v32  ;;  %v18458_v32 = vpop.eup %13643 }
 0xbef   : > { %20260 = vst [vmem:[#allocation78_spill] sm:$0xff] %v18444_v20  ;;  %20263 = vst [vmem:[#allocation81_spill] sm:$0xff] %v18458_v32  ;;  %v18465_v21 = vpop.eup %13645 }
 0xbf0   : > { %8516 = vadd.xlane.f32.xlu1 %v8515_v61  ;;  %20265 = vst [vmem:[#allocation82_spill] sm:$0xff] %v18465_v21  ;;  %v18469_v61 = vpop.eup %13647  ;;  %v18485_v60 = vpop.xlane.xlu0 %8276 }
 0xbf1   : > { %20267 = vst [vmem:[#allocation84_spill] sm:$0xff] %v18469_v61  ;;  %v18478_v41 = vpop.eup %13649 }
 0xbf2   : > { %9605 = vmax.xlane.f32.xlu0 %v20264_v33  ;;  %20270 = vst [vmem:[#allocation86_spill] sm:$0xff] %v18478_v41  ;;  %v8408_v33 = vmul.f32 1.442695, %v8329_v53  ;;  %v20271_v53 = vld [vmem:[#allocation15_spill] sm:$0xff]  ;;  %v8539_v34 = vadd.f32 %v18478_v41, %v18469_v61  ;;  %v18498_v51 = vpop.eup %13651  ;;  %v8348_v61 = vsub.f32 %v20280_v22, %v18460_v13  ;;  %v20283_v22 = vld [vmem:[#allocation61_spill] sm:$0xff] }
 0xbf3   : > { %v18467_v28 = vpop.f32.mrb[144].mxu1  ;;  %v8338_v59 = vsub.f32 %v20271_v53, %v8256_v16  ;;  %20273 = vst [vmem:[#allocation15_spill] sm:$0xff] %v18498_v51  ;;  %v18502_v36 = vpop.eup %13653  ;;  %v20278_v16 = vmax.f32 %v18274_v46, %v18276_v3  ;;  %v8342_v3 = vsub.f32 %v20283_v22, %v8262_v54 }
 0xbf4   : > { %20266 = vst [vmem:[#allocation83_spill] sm:$0xff] %v18467_v28  ;;  %v18471_v31 = vpop.f32.mrb[145].mxu1  ;;  %9587 = vmax.xlane.f32.xlu1 %v20269_v12  ;;  %v8518_v12 = vadd.f32 %v18465_v21, %v18458_v32  ;;  %13661 = vpow2.f32 %v8408_v33  ;;  %20274 = vst [vmem:[#allocation8_spill] sm:$0xff] %v18502_v36  ;;  %v18506_v53 = vpop.eup %13655  ;;  %v8428_v33 = vmul.f32 1.442695, %v8339_v39  ;;  %v20281_v21 = vmax.f32 %v18368_v0, %v18371_v2 }
 0xbf5   : > { %20268 = vst [vmem:[#allocation85_spill] sm:$0xff] %v18471_v31  ;;  %v18482_v14 = vpop.f32.mrb[146].mxu1  ;;  %20276 = vst [vmem:[#allocation88_spill] sm:$0xff] %v18506_v53  ;;  %v18513_v18 = vpop.eup %13657  ;;  %v8521_v39 = vadd.f32 %v18502_v36, %v18498_v51  ;;  %v8434_v22 = vmul.f32 1.442695, %v8342_v3  ;;  %v20289_v36 = vld [vmem:[#allocation64_spill] sm:$0xff]  ;;  %v20292_v3 = vmax.f32 %v18406_v24, %v18408_v55 }
 0xbf6   : > { %v18487_v50 = vpop.f32.mrb[147].mxu1  ;;  %8537 = vadd.xlane.f32.xlu0 %v8536_v5  ;;  %v8438_v5 = vmul.f32 1.442695, %v8344_v7  ;;  %v18500_v1 = vpop.xlane.xlu0 %8282  ;;  %20279 = vst [vmem:[#allocation90_spill] sm:$0xff] %v18513_v18  ;;  %v8545_v38 = vadd.f32 %v18513_v18, %v18506_v53 }
 0xbf7   : > { %v8268_v46 = vpop.xlane.xlu1 %8267  ;;  %v18538_v0 = vpop.eup %13659 }
 0xbf8   : > { %8519 = vadd.xlane.f32.xlu1 %v8518_v12  ;;  %v8426_v12 = vmul.f32 1.442695, %v8338_v59  ;;  %13663 = vpow2.f32 %v8438_v5  ;;  %20285 = vst [vmem:[#allocation60_spill] sm:$0xff] %v18538_v0 }
 0xbf9   : > { %13665 = vpow2.f32 %v8440_v26  ;;  %v8446_v26 = vmul.f32 1.442695, %v8348_v61 }
 0xbfa   : > { %8540 = vadd.xlane.f32.xlu0 %v8539_v34  ;;  %13667 = vpow2.f32 %v8426_v12 }
 0xbfb   : > { %v18504_v45 = vpop.f32.mrb[148].mxu1  ;;  %13669 = vpow2.f32 %v8428_v33 }
 0xbfc   : > { %20275 = vst [vmem:[#allocation87_spill] sm:$0xff] %v18504_v45  ;;  %v18508_v32 = vpop.f32.mrb[149].mxu1  ;;  %9590 = vmax.xlane.f32.xlu1 %v20278_v16  ;;  %v18521_v59 = vpop.xlane.xlu0 %8285  ;;  %v20282_v16 = vld [vmem:[#allocation66_spill] sm:$0xff]  ;;  %13671 = vpow2.f32 %v8446_v26 }
 0xbfd   : > { %20277 = vst [vmem:[#allocation89_spill] sm:$0xff] %v18508_v32  ;;  %v18517_v34 = vpop.f32.mrb[150].mxu1  ;;  %v8349_v7 = vsub.f32 %v20282_v16, %v18460_v13  ;;  %v20287_v13 = vld [vmem:[#allocation63_spill] sm:$0xff] }
 0xbfe   : > { %v18523_v41 = vpop.f32.mrb[151].mxu1  ;;  %9611 = vmax.xlane.f32.xlu0 %v20281_v21  ;;  %v20284_v21 = vld [vmem:[#allocation62_spill] sm:$0xff]  ;;  %v18540_v51 = vpop.eup %13661  ;;  %v8346_v16 = vsub.f32 %v20287_v13, %v8268_v46 }
 0xbff   : > { %v8343_v2 = vsub.f32 %v20284_v21, %v8262_v54  ;;  %20286 = vst [vmem:[#allocation66_spill] sm:$0xff] %v18540_v51  ;;  %v8448_v5 = vmul.f32 1.442695, %v8349_v7  ;;  %v20291_v54 = vmax.f32 %v18280_v47, %v18284_v4 }
 0xc00   : > { %8522 = vadd.xlane.f32.xlu1 %v8521_v39  ;;  %v8347_v39 = vsub.f32 %v20289_v36, %v8268_v46  ;;  %v18546_v27 = vpop.xlane.xlu0 %8288  ;;  %v8527_v46 = vadd.f32 %v18540_v51, %v18538_v0  ;;  %v8442_v36 = vmul.f32 1.442695, %v8346_v16  ;;  %v20296_v16 = vmax.f32 %v18431_v48, %v18433_v35 }
 0xc01   : > { %v8436_v61 = vmul.f32 1.442695, %v8343_v2  ;;  %13673 = vpow2.f32 %v8448_v5 }
 0xc02   : > { %8546 = vadd.xlane.f32.xlu0 %v8545_v38  ;;  %v18564_v21 = vpop.eup %13663  ;;  %13675 = vpow2.f32 %v8434_v22  ;;  %v8444_v2 = vmul.f32 1.442695, %v8347_v39  ;;  %v8274_v38 = vpop.xlane.xlu1 %8273  ;;  %v20299_v39 = vld [vmem:[#allocation65_spill] sm:$0xff] }
 0xc03   : > { %v18543_v12 = vpop.f32.mrb[152].mxu1  ;;  %20293 = vst [vmem:[#allocation63_spill] sm:$0xff] %v18564_v21  ;;  %13677 = vpow2.f32 %v8436_v61  ;;  %v8350_v18 = vsub.f32 %v20299_v39, %v8274_v38  ;;  %v20301_v61 = vmax.f32 %v18359_v11, %v18364_v57  ;;  %v20319_v11 = vmax.f32 %v18482_v14, %v18487_v50 }
 0xc04   : > { %20288 = vst [vmem:[#allocation61_spill] sm:$0xff] %v18543_v12  ;;  %v18548_v53 = vpop.f32.mrb[153].mxu1  ;;  %9593 = vmax.xlane.f32.xlu1 %v20291_v54  ;;  %v18570_v54 = vpop.eup %13665  ;;  %13679 = vpow2.f32 %v8442_v36  ;;  %v20303_v36 = vld [vmem:[#allocation13_spill] sm:$0xff] }
 0xc05   : > { %20290 = vst [vmem:[#allocation62_spill] sm:$0xff] %v18548_v53  ;;  %v18555_v33 = vpop.f32.mrb[154].mxu1  ;;  %20294 = vst [vmem:[#allocation64_spill] sm:$0xff] %v18570_v54  ;;  %13681 = vpow2.f32 %v8444_v2  ;;  %v8551_v35 = vadd.f32 %v18570_v54, %v18564_v21  ;;  %v20304_v2 = vld [vmem:[#allocation52_spill] sm:$0xff]  ;;  %v8450_v0 = vmul.f32 1.442695, %v8350_v18 }
 0xc06   : > { %v18557_v7 = vpop.f32.mrb[155].mxu1  ;;  %9617 = vmax.xlane.f32.xlu0 %v20292_v3  ;;  %v18566_v13 = vpop.xlane.xlu0 %8294  ;;  %v20306_v21 = vld [vmem:[#allocation67_spill] sm:$0xff] }
 0xc07   : > { %v18572_v3 = vpop.eup %13667  ;;  %v8352_v51 = vsub.f32 %v20306_v21, %v18485_v60  ;;  %13683 = vpow2.f32 %v8450_v0  ;;  %v20312_v21 = vmax.f32 %v18395_v23, %v18397_v44  ;;  %v20315_v0 = vld [vmem:[#allocation53_spill] sm:$0xff]  ;;  %v20320_v23 = vld [vmem:[#allocation2_spill] sm:$0xff] }
 0xc08   : > { %8528 = vadd.xlane.f32.xlu1 %v8527_v46  ;;  %20295 = vst [vmem:[#allocation91_spill] sm:$0xff] %v18572_v3  ;;  %v18577_v5 = vpop.eup %13669 }
 0xc09   : > { %20297 = vst [vmem:[#allocation92_spill] sm:$0xff] %v18577_v5  ;;  %v8454_v18 = vmul.f32 1.442695, %v8352_v51 }
 0xc0a   : > { %9620 = vmax.xlane.f32.xlu0 %v20296_v16  ;;  %v20302_v16 = vld [vmem:[#allocation68_spill] sm:$0xff] }
 0xc0b   : > { %v18579_v22 = vpop.f32.mrb[156].mxu1  ;;  %v8351_v48 = vsub.f32 %v20302_v16, %v8274_v38  ;;  %v18606_v16 = vpop.eup %13671 }
 0xc0c   : > { %20298 = vst [vmem:[#allocation93_spill] sm:$0xff] %v18579_v22  ;;  %v18582_v26 = vpop.xlane.xlu0 %8297  ;;  %v18584_v46 = vpop.f32.mrb[157].mxu1  ;;  %9608 = vmax.xlane.f32.xlu1 %v20301_v61  ;;  %v8542_v61 = vadd.f32 %v18577_v5, %v18572_v3  ;;  %20305 = vst [vmem:[#allocation68_spill] sm:$0xff] %v18606_v16  ;;  %v20310_v3 = vmax.f32 %v18442_v49, %v18444_v20 }
 0xc0d   : > { %20300 = vst [vmem:[#allocation65_spill] sm:$0xff] %v18584_v46  ;;  %v18598_v55 = vpop.f32.mrb[158].mxu1  ;;  %v18610_v54 = vpop.eup %13673  ;;  %v8452_v39 = vmul.f32 1.442695, %v8351_v48  ;;  %v20308_v46 = vld [vmem:[#allocation70_spill] sm:$0xff] }
 0xc0e   : > { %v18600_v24 = vpop.f32.mrb[159].mxu1  ;;  %8552 = vadd.xlane.f32.xlu0 %v8551_v35  ;;  %20307 = vst [vmem:[#allocation13_spill] sm:$0xff] %v18610_v54  ;;  %v8353_v22 = vsub.f32 %v20308_v46, %v18485_v60  ;;  %v8280_v35 = vpop.xlane.xlu1 %8279  ;;  %v8557_v60 = vadd.f32 %v18610_v54, %v18606_v16  ;;  %v20317_v16 = vld [vmem:[#allocation14_spill] sm:$0xff] }
 0xc0f   : > { %v18614_v57 = vpop.eup %13675  ;;  %13685 = vpow2.f32 %v8452_v39  ;;  %v8354_v54 = vsub.f32 %v20317_v16, %v8280_v35  ;;  %v20321_v16 = vld [vmem:[#allocation4_spill] sm:$0xff] }
 0xc10   : > { %8543 = vadd.xlane.f32.xlu1 %v8542_v61  ;;  %20309 = vst [vmem:[#allocation52_spill] sm:$0xff] %v18614_v57  ;;  %v18619_v38 = vpop.eup %13677  ;;  %v8456_v46 = vmul.f32 1.442695, %v8353_v22  ;;  %13687 = vpow2.f32 %v8454_v18  ;;  %v20318_v22 = vld [vmem:[#allocation69_spill] sm:$0xff] }
 0xc11   : > { %20311 = vst [vmem:[#allocation67_spill] sm:$0xff] %v18619_v38  ;;  %v18628_v48 = vpop.eup %13679  ;;  %v8355_v39 = vsub.f32 %v20318_v22, %v8280_v35 }
 0xc12   : > { %9623 = vmax.xlane.f32.xlu0 %v20310_v3  ;;  %20313 = vst [vmem:[#allocation70_spill] sm:$0xff] %v18628_v48  ;;  %v18630_v61 = vpop.xlane.xlu1 %8291  ;;  %v20314_v3 = vld [vmem:[#allocation49_spill] sm:$0xff]  ;;  %v18636_v20 = vpop.eup %13681  ;;  %13689 = vpow2.f32 %v8456_v46  ;;  %v8357_v46 = vsub.f32 %v20321_v16, %v18500_v1  ;;  %v20327_v16 = vmax.f32 %v18467_v28, %v18471_v31 }
 0xc13   : > { %20316 = vst [vmem:[#allocation49_spill] sm:$0xff] %v18636_v20  ;;  %v8554_v51 = vadd.f32 %v18636_v20, %v18628_v48  ;;  %v8460_v18 = vmul.f32 1.442695, %v8355_v39  ;;  %v18655_v35 = vpop.eup %13683 }
 0xc14   : > { %v18621_v5 = vpop.xlane.xlu0 %8303  ;;  %9614 = vmax.xlane.f32.xlu1 %v20312_v21  ;;  %v8548_v21 = vadd.f32 %v18619_v38, %v18614_v57  ;;  %v8356_v57 = vsub.f32 %v20320_v23, %v18500_v1  ;;  %20322 = vst [vmem:[#allocation53_spill] sm:$0xff] %v18655_v35  ;;  %v8464_v20 = vmul.f32 1.442695, %v8357_v46 }
 0xc16   : > { %8558 = vadd.xlane.f32.xlu0 %v8557_v60  ;;  %v18642_v44 = vpop.xlane.xlu1 %8300  ;;  %v8458_v60 = vmul.f32 1.442695, %v8354_v54  ;;  %v20325_v54 = vld [vmem:[#allocation73_spill] sm:$0xff]  ;;  %v8462_v1 = vmul.f32 1.442695, %v8356_v57  ;;  %v20331_v57 = vld [vmem:[#allocation71_spill] sm:$0xff] }
 0xc18   : > { %8549 = vadd.xlane.f32.xlu1 %v8548_v21  ;;  %13691 = vpow2.f32 %v8458_v60  ;;  %v8358_v60 = vsub.f32 %v20331_v57, %v18521_v59 }
 0xc19   : > { %v18662_v48 = vpop.eup %13685  ;;  %13693 = vpow2.f32 %v8460_v18  ;;  %v20332_v18 = vld [vmem:[#allocation3_spill] sm:$0xff] }
 0xc1a   : > { %9629 = vmax.xlane.f32.xlu0 %v20319_v11  ;;  %v18653_v21 = vpop.xlane.xlu1 %8306  ;;  %v20323_v11 = vmax.f32 %v18504_v45, %v18508_v32  ;;  %20324 = vst [vmem:[#allocation14_spill] sm:$0xff] %v18662_v48  ;;  %v18673_v32 = vpop.eup %13687  ;;  %v8560_v23 = vadd.f32 %v18662_v48, %v18655_v35  ;;  %13695 = vpow2.f32 %v8462_v1  ;;  %v8359_v46 = vsub.f32 %v20332_v18, %v18521_v59  ;;  %v20334_v1 = vld [vmem:[#allocation6_spill] sm:$0xff]  ;;  %v20336_v45 = vld [vmem:[#allocation56_spill] sm:$0xff] }
 0xc1b   : > { %20328 = vst [vmem:[#allocation69_spill] sm:$0xff] %v18673_v32  ;;  %13697 = vpow2.f32 %v8464_v20  ;;  %v8361_v28 = vsub.f32 %v20334_v1, %v18546_v27 }
 0xc1c   : > { %8555 = vadd.xlane.f32.xlu1 %v8554_v51  ;;  %v20326_v51 = vld [vmem:[#allocation50_spill] sm:$0xff]  ;;  %v18680_v39 = vpop.eup %13689  ;;  %v8468_v48 = vmul.f32 1.442695, %v8359_v46 }
 0xc1d   : > { %20330 = vst [vmem:[#allocation2_spill] sm:$0xff] %v18680_v39 }
 0xc1e   : > { %v18657_v22 = vpop.xlane.xlu0 %8312  ;;  %9632 = vmax.xlane.f32.xlu0 %v20323_v11  ;;  %v18671_v38 = vpop.xlane.xlu1 %8309  ;;  %v20329_v11 = vmax.f32 %v18543_v12, %v18548_v53  ;;  %v8563_v53 = vadd.f32 %v18680_v39, %v18673_v32  ;;  %v20333_v12 = vld [vmem:[#allocation5_spill] sm:$0xff] }
 0xc1f   : > { %v8360_v35 = vsub.f32 %v20333_v12, %v18546_v27  ;;  %v20338_v12 = vld [vmem:[#allocation59_spill] sm:$0xff] }
 0xc20   : > { %9626 = vmax.xlane.f32.xlu1 %v20327_v16 }
 0xc21   : > { %v8470_v18 = vmul.f32 1.442695, %v8360_v35 }
 0xc22   : > { %9638 = vmax.xlane.f32.xlu0 %v20329_v11  ;;  %v8466_v11 = vmul.f32 1.442695, %v8358_v60  ;;  %v18692_v57 = vpop.eup %13691  ;;  %v20337_v60 = vmax.f32 %v18517_v34, %v18523_v41 }
 0xc23   : > { %20335 = vst [vmem:[#allocation4_spill] sm:$0xff] %v18692_v57 }
 0xc24   : > { %8561 = vadd.xlane.f32.xlu1 %v8560_v23  ;;  %v9555_v16 = vpop.xlane.xlu1 %9554  ;;  %v18694_v23 = vpop.eup %13693  ;;  %13699 = vpow2.f32 %v8466_v11  ;;  %v20339_v11 = vld [vmem:[#allocation77_spill] sm:$0xff] }
 0xc25   : > { %v9649_v32 = vsub.f32 %v20336_v45, %v9555_v16  ;;  %13701 = vpow2.f32 %v8468_v48  ;;  %v9650_v27 = vsub.f32 %v20338_v12, %v9555_v16  ;;  %v18701_v46 = vpop.eup %13695  ;;  %v8566_v1 = vadd.f32 %v18694_v23, %v18692_v57 }
 0xc26   : > { %v9558_v31 = vpop.xlane.xlu0 %9557  ;;  %v18705_v39 = vpop.eup %13697  ;;  %13703 = vpow2.f32 %v8470_v18 }
 0xc27   : > { %v9713_v35 = vmul.f32 1.442695, %v9649_v32  ;;  %v9651_v45 = vsub.f32 %v20339_v11, %v9558_v31  ;;  %v20343_v32 = vmax.f32 %v18555_v33, %v18557_v7 }
 0xc28   : > { %8564 = vadd.xlane.f32.xlu1 %v8563_v53  ;;  %v10096_v59 = vpop.permute.xlu1 %10095  ;;  %v8472_v53 = vmul.f32 1.442695, %v8361_v28  ;;  %v8569_v28 = vadd.f32 %v18705_v39, %v18701_v46 }
 0xc29   : > { %v9717_v48 = vmul.f32 1.442695, %v9651_v45 }
 0xc2a   : > { %v10078_v20 = vpop.permute.xlu0 %10077  ;;  %13705 = vpow2.f32 %v8472_v53 }
 0xc2b   : > { %12139 = vmatpush3.bf16.msra.mxu1 %v10078_v20  ;;  %v9715_v20 = vmul.f32 1.442695, %v9650_v27  ;;  %13707 = vpow2.f32 %v9713_v35 }
 0xc2c   : > { %9635 = vmax.xlane.f32.xlu1 %v20337_v60  ;;  %12140 = vmatprep.subr.bf16.mxu1 %v10096_v59  ;;  %v20340_v60 = vld [vmem:[#allocation55_spill] sm:$0xff] }
 0xc2d   : > { %v9652_v59 = vsub.f32 %v20340_v60, %v9558_v31  ;;  %13709 = vpow2.f32 %v9715_v20 }
 0xc2e   : > { %v18711_v12 = vpop.eup %13699  ;;  %13711 = vpow2.f32 %v9717_v48 }
 0xc2f   : > { %v9719_v16 = vmul.f32 1.442695, %v9652_v59  ;;  %20341 = vst [vmem:[#allocation73_spill] sm:$0xff] %v18711_v12  ;;  %v18713_v57 = vpop.eup %13701 }
 0xc30   : > { %8567 = vadd.xlane.f32.xlu1 %v8566_v1  ;;  %20342 = vst [vmem:[#allocation50_spill] sm:$0xff] %v18713_v57  ;;  %v18718_v18 = vpop.eup %13703  ;;  %v8572_v31 = vadd.f32 %v18713_v57, %v18711_v12 }
 0xc31   : > { %13713 = vpow2.f32 %v9719_v16  ;;  %20344 = vst [vmem:[#allocation71_spill] sm:$0xff] %v18718_v18  ;;  %v20350_v16 = vld [vmem:[#allocation76_spill] sm:$0xff] }
 0xc34   : > { %8570 = vadd.xlane.f32.xlu1 %v8569_v28  ;;  %v18722_v53 = vpop.eup %13705  ;;  %v20349_v28 = vld [vmem:[#allocation75_spill] sm:$0xff] }
 0xc35   : > { %20345 = vst [vmem:[#allocation3_spill] sm:$0xff] %v18722_v53  ;;  %v18724_v27 = vpop.eup %13707  ;;  %v8575_v1 = vadd.f32 %v18722_v53, %v18718_v18 }
 0xc36   : > { %20346 = vst [vmem:[#allocation5_spill] sm:$0xff] %v18724_v27 }
 0xc37   : > { %v18728_v35 = vpop.eup %13709 }
 0xc38   : > { %9641 = vmax.xlane.f32.xlu1 %v20343_v32  ;;  %20347 = vst [vmem:[#allocation6_spill] sm:$0xff] %v18728_v35  ;;  %v18730_v11 = vpop.eup %13711  ;;  %v9841_v45 = vadd.f32 %v18728_v35, %v18724_v27 }
 0xc39   : > { %20348 = vst [vmem:[#allocation56_spill] sm:$0xff] %v18730_v11 }
 0xc3b   : > { %v18734_v20 = vpop.eup %13713 }
 0xc3c   : > { %8573 = vadd.xlane.f32.xlu1 %v8572_v31  ;;  %v9844_v60 = vadd.f32 %v18734_v20, %v18730_v11 }
 0xc40   : > { %8576 = vadd.xlane.f32.xlu1 %v8575_v1 }
 0xc44   : > { %9842 = vadd.xlane.f32.xlu1 %v9841_v45 }
 0xc48   : > { %9845 = vadd.xlane.f32.xlu1 %v9844_v60 }
 0xc59   : > { %v9561_v59 = vpop.xlane.xlu1 %9560 }
 0xc5a   : > { %v9653_v48 = vsub.f32 %v20349_v28, %v9561_v59  ;;  %v9654_v32 = vsub.f32 %v20350_v16, %v9561_v59  ;;  %v20351_v16 = vld [vmem:[#allocation74_spill] sm:$0xff] }
 0xc5b   : > { %v9564_v31 = vpop.xlane.xlu0 %9563 }
 0xc5c   : > { %v9721_v12 = vmul.f32 1.442695, %v9653_v48  ;;  %v9723_v1 = vmul.f32 1.442695, %v9654_v32  ;;  %v9655_v18 = vsub.f32 %v18210_v8, %v9564_v31  ;;  %v9656_v57 = vsub.f32 %v18212_v15, %v9564_v31  ;;  %v20353_v31 = vld [vmem:[#allocation35_spill] sm:$0xff] }
 0xc5d   : > { %v9567_v27 = vpop.xlane.xlu1 %9566 }
 0xc5e   : > { %13715 = vpow2.f32 %v9721_v12  ;;  %v9725_v35 = vmul.f32 1.442695, %v9655_v18  ;;  %v9727_v45 = vmul.f32 1.442695, %v9656_v57  ;;  %v9657_v53 = vsub.f32 %v18216_v63, %v9567_v27  ;;  %v20352_v12 = vld [vmem:[#allocation9_spill] sm:$0xff] }
 0xc5f   : > { %13717 = vpow2.f32 %v9723_v1  ;;  %v9658_v60 = vsub.f32 %v18218_v17, %v9567_v27  ;;  %v9570_v11 = vpop.xlane.xlu0 %9569  ;;  %v8362_v57 = vsub.f32 %v20352_v12, %v18630_v61 }
 0xc60   : > { %13719 = vpow2.f32 %v9725_v35  ;;  %v9729_v28 = vmul.f32 1.442695, %v9657_v53  ;;  %v9659_v59 = vsub.f32 %v18222_v58, %v9570_v11  ;;  %v9660_v8 = vsub.f32 %v20351_v16, %v9570_v11 }
 0xc61   : > { %13721 = vpow2.f32 %v9727_v45  ;;  %v9731_v48 = vmul.f32 1.442695, %v9658_v60  ;;  %v9573_v32 = vpop.xlane.xlu1 %9572  ;;  %v20354_v45 = vld [vmem:[#allocation10_spill] sm:$0xff]  ;;  %v8474_v60 = vmul.f32 1.442695, %v8362_v57 }
 0xc62   : > { %v9661_v15 = vsub.f32 %v18230_v62, %v9573_v32  ;;  %v9662_v63 = vsub.f32 %v18232_v56, %v9573_v32  ;;  %13723 = vpow2.f32 %v9729_v28  ;;  %v9733_v17 = vmul.f32 1.442695, %v9659_v59  ;;  %v20355_v28 = vld [vmem:[#allocation11_spill] sm:$0xff] }
 0xc63   : > { %v9576_v18 = vpop.xlane.xlu0 %9575  ;;  %13725 = vpow2.f32 %v9731_v48  ;;  %v9735_v58 = vmul.f32 1.442695, %v9660_v8  ;;  %v8363_v62 = vsub.f32 %v20354_v45, %v18630_v61  ;;  %v8364_v59 = vsub.f32 %v20355_v28, %v18566_v13  ;;  %v20356_v8 = vld [vmem:[#allocation12_spill] sm:$0xff] }
 0xc64   : > { %v9737_v27 = vmul.f32 1.442695, %v9661_v15  ;;  %v9663_v53 = vsub.f32 %v18236_v9, %v9576_v18  ;;  %v9739_v35 = vmul.f32 1.442695, %v9662_v63  ;;  %v9664_v1 = vsub.f32 %v20353_v31, %v9576_v18 }
 0xc65   : > { %v8508_v11 = vpop.xlane.xlu1 %8507  ;;  %v8365_v32 = vsub.f32 %v20356_v8, %v18566_v13  ;;  %v8476_v57 = vmul.f32 1.442695, %v8363_v62 }
 0xc66   : > { %13727 = vpow2.f32 %v9737_v27  ;;  %v9741_v9 = vmul.f32 1.442695, %v9663_v53  ;;  %v9743_v15 = vmul.f32 1.442695, %v9664_v1 }
 0xc67   : > { %13729 = vpow2.f32 %v9739_v35  ;;  %v18754_v16 = vpop.xlane.xlu0 %8525  ;;  %v8480_v53 = vmul.f32 1.442695, %v8365_v32 }
 0xc68   : > { %v18756_v56 = vpop.eup %13715  ;;  %13731 = vpow2.f32 %v9733_v17  ;;  %v8478_v17 = vmul.f32 1.442695, %v8364_v59  ;;  %v20362_v59 = vld [vmem:[#allocation54_spill] sm:$0xff] }
 0xc69   : > { %v18760_v48 = vpop.eup %13717  ;;  %13733 = vpow2.f32 %v9735_v58  ;;  %v9579_v61 = vpop.xlane.xlu1 %9578 }
 0xc6a   : > { %v18764_v12 = vpop.eup %13719  ;;  %v9847_v63 = vadd.f32 %v18760_v48, %v18756_v56  ;;  %13735 = vpow2.f32 %v8474_v60  ;;  %v20361_v60 = vsub.f32 %v20303_v36, %v18582_v26 }
 0xc6b   : > { %v18768_v18 = vpop.eup %13721  ;;  %v18770_v27 = vpop.xlane.xlu0 %9596  ;;  %13737 = vpow2.f32 %v9741_v9  ;;  %v8368_v9 = vsub.f32 %v20362_v59, %v18642_v44 }
 0xc6c   : > { %9848 = vadd.xlane.f32.xlu1 %v9847_v63  ;;  %13739 = vpow2.f32 %v9743_v15  ;;  %v18772_v58 = vpop.eup %13723  ;;  %v9850_v35 = vadd.f32 %v18768_v18, %v18764_v12  ;;  %v8482_v28 = vmul.f32 1.442695, %v20361_v60  ;;  %v9665_v60 = vsub.f32 %v18244_v19, %v9579_v61 }
 0xc6d   : > { %v8511_v13 = vpop.xlane.xlu1 %8510  ;;  %20357 = vst [vmem:[#allocation59_spill] sm:$0xff] %v18772_v58  ;;  %13741 = vpow2.f32 %v8476_v57  ;;  %v18776_v31 = vpop.eup %13725  ;;  %v20365_v57 = vld [vmem:[#allocation72_spill] sm:$0xff] }
 0xc6e   : > { %20358 = vst [vmem:[#allocation77_spill] sm:$0xff] %v18776_v31  ;;  %13743 = vrcp.f32 %v8508_v11  ;;  %v20364_v11 = vsub.f32 %v20304_v2, %v18582_v26  ;;  %v8369_v63 = vsub.f32 %v20365_v57, %v18642_v44  ;;  %v8486_v26 = vmul.f32 1.442695, %v8368_v9 }
 0xc6f   : > { %v18778_v1 = vpop.xlane.xlu0 %9599  ;;  %13745 = vpow2.f32 %v8478_v17  ;;  %v9853_v17 = vadd.f32 %v18776_v31, %v18772_v58 }
 0xc70   : > { %v18780_v45 = vpop.eup %13727  ;;  %9851 = vadd.xlane.f32.xlu1 %v9850_v35  ;;  %13747 = vpow2.f32 %v8480_v53  ;;  %v8484_v15 = vmul.f32 1.442695, %v20364_v11  ;;  %v9666_v11 = vsub.f32 %v18246_v40, %v9579_v61 }
 0xc71   : > { %20359 = vst [vmem:[#allocation55_spill] sm:$0xff] %v18780_v45  ;;  %v18782_v62 = vpop.eup %13729  ;;  %v9582_v8 = vpop.xlane.xlu1 %9581  ;;  %13749 = vrcp.f32 %v8511_v13  ;;  %v8488_v13 = vmul.f32 1.442695, %v8369_v63 }
 0xc72   : > { %20360 = vst [vmem:[#allocation75_spill] sm:$0xff] %v18782_v62  ;;  %v18789_v32 = vpop.eup %13731  ;;  %v9859_v35 = vadd.f32 %v18782_v62, %v18780_v45  ;;  %13751 = vpow2.f32 %v8482_v28  ;;  %v9667_v28 = vsub.f32 %v18250_v37, %v9582_v8  ;;  %v9747_v63 = vmul.f32 1.442695, %v9666_v11 }
 0xc73   : > { %20363 = vst [vmem:[#allocation76_spill] sm:$0xff] %v18789_v32  ;;  %v18798_v53 = vpop.eup %13733  ;;  %v18800_v36 = vpop.xlane.xlu0 %8531  ;;  %13753 = vpow2.f32 %v8484_v15  ;;  %v20370_v15 = vmax.f32 %v18598_v55, %v18600_v24 }
 0xc74   : > { %9854 = vadd.xlane.f32.xlu1 %v9853_v17  ;;  %v18805_v59 = vpop.eup %13735  ;;  %9860 = vadd.xlane.f32.xlu0 %v9859_v35  ;;  %v9856_v57 = vadd.f32 %v18798_v53, %v18789_v32  ;;  %v9745_v17 = vmul.f32 1.442695, %v9665_v60  ;;  %13755 = vpow2.f32 %v8486_v26  ;;  %v9668_v35 = vsub.f32 %v18252_v43, %v9582_v8  ;;  %v20371_v8 = vld [vmem:[#allocation38_spill] sm:$0xff] }
 0xc75   : > { %20366 = vst [vmem:[#allocation74_spill] sm:$0xff] %v18805_v59  ;;  %v8514_v44 = vpop.xlane.xlu1 %8513  ;;  %v18807_v2 = vpop.eup %13737  ;;  %13757 = vpow2.f32 %v8488_v13  ;;  %v9749_v32 = vmul.f32 1.442695, %v9667_v28 }
 0xc76   : > { %20367 = vst [vmem:[#allocation9_spill] sm:$0xff] %v18807_v2  ;;  %v18812_v58 = vpop.eup %13739  ;;  %13759 = vpow2.f32 %v9745_v17  ;;  %v9751_v31 = vmul.f32 1.442695, %v9668_v35 }
 0xc77   : > { %20368 = vst [vmem:[#allocation35_spill] sm:$0xff] %v18812_v58  ;;  %v18814_v45 = vpop.xlane.xlu0 %9602  ;;  %v18816_v19 = vpop.eup %13741  ;;  %v9862_v62 = vadd.f32 %v18812_v58, %v18807_v2  ;;  %13761 = vpow2.f32 %v9747_v63 }
 0xc78   : > { %20369 = vst [vmem:[#allocation10_spill] sm:$0xff] %v18816_v19  ;;  %9857 = vadd.xlane.f32.xlu1 %v9856_v57  ;;  %v13744_v9 = vpop.eup %13743  ;;  %9647 = vmax.xlane.f32.xlu0 %v20370_v15  ;;  %v8578_v26 = vadd.f32 %v18816_v19, %v18805_v59  ;;  %13763 = vrcp.f32 %v8514_v44 }
 0xc79   : > { %v9585_v40 = vpop.xlane.xlu1 %9584  ;;  %v18822_v61 = vpop.eup %13745  ;;  %v8634_v15 = vmul.f32 %v13744_v9, %v18316_v42  ;;  %v8635_v11 = vmul.f32 %v13744_v9, %v20371_v8  ;;  %13765 = vpow2.f32 %v9749_v32  ;;  %v20375_v32 = vld [vmem:[#allocation58_spill] sm:$0xff] }
 0xc7a   : > { %v18827_v60 = vpop.eup %13747  ;;  %v9669_v43 = vsub.f32 %v18258_v10, %v9585_v40  ;;  %v9670_v59 = vsub.f32 %v18260_v6, %v9585_v40  ;;  %v20374_v40 = vsub.f32 %v20314_v3, %v18621_v5  ;;  %v8372_v35 = vsub.f32 %v20375_v32, %v18653_v21  ;;  %v20383_v32 = vld [vmem:[#allocation40_spill] sm:$0xff] }
 0xc7b   : > { %v18829_v37 = vpop.xlane.xlu0 %8534  ;;  %v13750_v57 = vpop.eup %13749  ;;  %v8581_v10 = vadd.f32 %v18827_v60, %v18822_v61 }
 0xc7c   : > { %9863 = vadd.xlane.f32.xlu1 %v9862_v62  ;;  %v8636_v13 = vmul.f32 %v13750_v57, %v18355_v30  ;;  %8579 = vadd.xlane.f32.xlu0 %v8578_v26  ;;  %v8637_v2 = vmul.f32 %v13750_v57, %v18357_v25  ;;  %v18839_v19 = vpop.eup %13751  ;;  %v9753_v28 = vmul.f32 1.442695, %v9669_v43  ;;  %v9755_v6 = vmul.f32 1.442695, %v9670_v59  ;;  %v20377_v59 = vld [vmem:[#allocation48_spill] sm:$0xff]  ;;  %v20379_v43 = vld [vmem:[#allocation51_spill] sm:$0xff] }
 0xc7d   : > { %v8517_v58 = vpop.xlane.xlu1 %8516  ;;  %20372 = vst [vmem:[#allocation11_spill] sm:$0xff] %v18839_v19  ;;  %v18845_v30 = vpop.eup %13753  ;;  %v8490_v63 = vmul.f32 1.442695, %v20374_v40  ;;  %v8373_v57 = vsub.f32 %v20377_v59, %v18653_v21  ;;  %v8374_v8 = vsub.f32 %v20379_v43, %v18671_v38  ;;  %v20386_v59 = vld [vmem:[#allocation41_spill] sm:$0xff]  ;;  %v20387_v43 = vld [vmem:[#allocation24_spill] sm:$0xff] }
 0xc7e   : > { %v8699_v42 = vpack.c.bf16 %v8637_v2, %v8635_v11  ;;  %v8698_v17 = vpack.c.bf16 %v8636_v13, %v8634_v15  ;;  %13767 = vrcp.f32 %v8517_v58  ;;  %v18849_v9 = vpop.eup %13755  ;;  %v8584_v58 = vadd.f32 %v18845_v30, %v18839_v19  ;;  %v20423_v19 = vld [vmem:[#allocation25_spill] sm:$0xff] }
 0xc7f   : > { %v18841_v62 = vpop.xlane.xlu0 %9605  ;;  %13769 = vpow2.f32 %v9751_v31  ;;  %20373 = vst [vmem:[#allocation12_spill] sm:$0xff] %v18849_v9  ;;  %v18860_v31 = vpop.eup %13757  ;;  %v8496_v21 = vmul.f32 1.442695, %v8373_v57 }
 0xc80   : > { %8810 = vmatprep.mubr.bf16.mxu0 %v8699_v42  ;;  %8582 = vadd.xlane.f32.xlu0 %v8581_v10  ;;  %13771 = vpow2.f32 %v9753_v28  ;;  %v18867_v13 = vpop.eup %13759  ;;  %v8494_v42 = vmul.f32 1.442695, %v8372_v35 }
 0xc81   : > { %v9588_v25 = vpop.xlane.xlu1 %9587  ;;  %8811 = vmatmul.mubr.bf16.vlgmr.msra.gmra.mrb[64].mxu0 %v8698_v17  ;;  %20378 = vst [vmem:[#allocation54_spill] sm:$0xff] %v18867_v13  ;;  %13773 = vpow2.f32 %v9755_v6  ;;  %v8498_v6 = vmul.f32 1.442695, %v8374_v8 }
 0xc82   : > { %v9671_v44 = vsub.f32 %v18264_v52, %v9588_v25  ;;  %v9672_v2 = vsub.f32 %v18266_v29, %v9588_v25  ;;  %v20376_v52 = vsub.f32 %v20315_v0, %v18621_v5  ;;  %13775 = vpow2.f32 %v8490_v63  ;;  %v18875_v0 = vpop.eup %13761 }
 0xc83   : > { %v18856_v26 = vpop.xlane.xlu0 %8537  ;;  %v8587_v5 = vadd.f32 %v18860_v31, %v18849_v9  ;;  %20380 = vst [vmem:[#allocation72_spill] sm:$0xff] %v18875_v0  ;;  %v13764_v10 = vpop.eup %13763  ;;  %v9865_v40 = vadd.f32 %v18875_v0, %v18867_v13 }
 0xc84   : > { %v8492_v29 = vmul.f32 1.442695, %v20376_v52  ;;  %v9757_v3 = vmul.f32 1.442695, %v9671_v44  ;;  %8585 = vadd.xlane.f32.xlu0 %v8584_v58  ;;  %v9759_v11 = vmul.f32 1.442695, %v9672_v2  ;;  %v18879_v25 = vpop.eup %13765  ;;  %v8639_v35 = vmul.f32 %v13764_v10, %v20383_v32 }
 0xc85   : > { %v8520_v15 = vpop.xlane.xlu1 %8519  ;;  %20381 = vst [vmem:[#allocation38_spill] sm:$0xff] %v18879_v25  ;;  %v20384_v58 = vsub.f32 %v20325_v54, %v18657_v22  ;;  %v8638_v8 = vmul.f32 %v13764_v10, %v20387_v43  ;;  %v20391_v54 = vsub.f32 %v20326_v51, %v18657_v22 }
 0xc86   : > { %13777 = vpow2.f32 %v8492_v29  ;;  %v20385_v29 = vld [vmem:[#allocation7_spill] sm:$0xff] }
 0xc87   : > { %v18871_v17 = vpop.xlane.xlu0 %8540  ;;  %13779 = vpow2.f32 %v9757_v3  ;;  %v8502_v52 = vmul.f32 1.442695, %v20384_v58 }
 0xc88   : > { %8588 = vadd.xlane.f32.xlu0 %v8587_v5  ;;  %13781 = vpow2.f32 %v9759_v11  ;;  %v13768_v44 = vpop.eup %13767  ;;  %v20388_v11 = vld [vmem:[#allocation45_spill] sm:$0xff] }
 0xc89   : > { %v18877_v28 = vpop.xlane.xlu1 %9590  ;;  %13783 = vpow2.f32 %v8494_v42  ;;  %v18885_v63 = vpop.eup %13769  ;;  %v8641_v57 = vmul.f32 %v13768_v44, %v20386_v59  ;;  %v8640_v42 = vmul.f32 %v13768_v44, %v20388_v11  ;;  %v20389_v5 = vld [vmem:[#allocation57_spill] sm:$0xff] }
 0xc8a   : > { %20382 = vst [vmem:[#allocation58_spill] sm:$0xff] %v18885_v63  ;;  %13785 = vpow2.f32 %v8496_v21  ;;  %v8375_v21 = vsub.f32 %v20389_v5, %v18671_v38  ;;  %v18898_v32 = vpop.eup %13771  ;;  %v9868_v59 = vadd.f32 %v18885_v63, %v18879_v25 }
 0xc8b   : > { %v18881_v2 = vpop.xlane.xlu0 %9611  ;;  %13787 = vpow2.f32 %v8498_v6  ;;  %20390 = vst [vmem:[#allocation48_spill] sm:$0xff] %v18898_v32  ;;  %v8701_v58 = vpack.c.bf16 %v8641_v57, %v8639_v35  ;;  %v8700_v13 = vpack.c.bf16 %v8640_v42, %v8638_v8  ;;  %v18907_v10 = vpop.eup %13773 }
 0xc8c   : > { %9866 = vadd.xlane.f32.xlu0 %v9865_v40  ;;  %v8504_v40 = vmul.f32 1.442695, %v20391_v54  ;;  %20392 = vst [vmem:[#allocation51_spill] sm:$0xff] %v18907_v10  ;;  %13789 = vrcp.f32 %v8520_v15  ;;  %v18909_v44 = vpop.eup %13775  ;;  %v8500_v57 = vmul.f32 1.442695, %v8375_v21  ;;  %v20394_v15 = vld [vmem:[#allocation37_spill] sm:$0xff] }
 0xc8d   : > { %10079 = vrot.lane.b32.xlu1 %v20385_v29, %s14019_s23  ;;  %v8523_v3 = vpop.xlane.xlu1 %8522  ;;  %13791 = vpow2.f32 %v8502_v52  ;;  %8818 = vmatprep.mubr.bf16.mxu0 %v8701_v58  ;;  %v9679_v43 = vsub.f32 %v20394_v15, %v18778_v1  ;;  %v9871_v52 = vadd.f32 %v18907_v10, %v18898_v32  ;;  %v20399_v54 = vld [vmem:[#allocation23_spill] sm:$0xff] }
 0xc8e   : > { %13793 = vrcp.f32 %v8523_v3  ;;  %8819 = vmatmul.mubr.bf16.gmra.mrb[68].mxu0 %v8700_v13 }
 0xc8f   : > { %v18903_v29 = vpop.xlane.xlu0 %8546  ;;  %13795 = vpow2.f32 %v8504_v40  ;;  %v9683_v40 = vsub.f32 %v20399_v54, %v18841_v62  ;;  %v9773_v58 = vmul.f32 1.442695, %v9679_v43 }
 0xc90   : > { %9869 = vadd.xlane.f32.xlu0 %v9868_v59  ;;  %v18911_v6 = vpop.eup %13777  ;;  %13797 = vrcp.f32 %v18754_v16  ;;  %v20400_v16 = vld [vmem:[#allocation28_spill] sm:$0xff] }
 0xc91   : > { %v9594_v38 = vpop.xlane.xlu1 %9593  ;;  %v18915_v35 = vpop.eup %13779  ;;  %13799 = vrcp.f32 %v18829_v37  ;;  %v9684_v59 = vsub.f32 %v20400_v16, %v18841_v62  ;;  %v9781_v43 = vmul.f32 1.442695, %v9683_v40  ;;  %v20404_v40 = vld [vmem:[#allocation21_spill] sm:$0xff] }
 0xc92   : > { %v9675_v22 = vsub.f32 %v18280_v47, %v9594_v38  ;;  %v9676_v51 = vsub.f32 %v18284_v4, %v9594_v38  ;;  %20393 = vst [vmem:[#allocation40_spill] sm:$0xff] %v18915_v35  ;;  %v18923_v11 = vpop.eup %13781  ;;  %v20396_v47 = vld [vmem:[#allocation18_spill] sm:$0xff]  ;;  %v9687_v16 = vsub.f32 %v20404_v40, %v18881_v2 }
 0xc93   : > { %v18919_v8 = vpop.xlane.xlu0 %9617  ;;  %20395 = vst [vmem:[#allocation7_spill] sm:$0xff] %v18923_v11  ;;  %v9680_v13 = vsub.f32 %v20396_v47, %v18778_v1  ;;  %v18928_v42 = vpop.eup %13783  ;;  %v9874_v38 = vadd.f32 %v18923_v11, %v18915_v35  ;;  %v20408_v35 = vld [vmem:[#allocation81_spill] sm:$0xff] }
 0xc94   : > { %v9765_v4 = vmul.f32 1.442695, %v9675_v22  ;;  %v9767_v3 = vmul.f32 1.442695, %v9676_v51  ;;  %20397 = vst [vmem:[#allocation41_spill] sm:$0xff] %v18928_v42  ;;  %9872 = vadd.xlane.f32.xlu0 %v9871_v52  ;;  %v18931_v21 = vpop.eup %13785  ;;  %v20401_v52 = vld [vmem:[#allocation34_spill] sm:$0xff] }
 0xc95   : > { %v8529_v5 = vpop.xlane.xlu1 %8528  ;;  %20398 = vst [vmem:[#allocation24_spill] sm:$0xff] %v18931_v21  ;;  %v18941_v22 = vpop.eup %13787  ;;  %v9775_v37 = vmul.f32 1.442695, %v9680_v13  ;;  %v9673_v62 = vsub.f32 %v20401_v52, %v18877_v28 }
 0xc96   : > { %13801 = vpow2.f32 %v9765_v4  ;;  %v13790_v15 = vpop.eup %13789  ;;  %v9783_v4 = vmul.f32 1.442695, %v9684_v59 }
 0xc97   : > { %13803 = vpow2.f32 %v9767_v3  ;;  %v18937_v1 = vpop.xlane.xlu0 %9620  ;;  %v18948_v47 = vpop.eup %13791  ;;  %v20403_v3 = vld [vmem:[#allocation16_spill] sm:$0xff] }
 0xc98   : > { %13805 = vpow2.f32 %v8500_v57  ;;  %9875 = vadd.xlane.f32.xlu0 %v9874_v38  ;;  %20402 = vst [vmem:[#allocation45_spill] sm:$0xff] %v18948_v47  ;;  %v9674_v54 = vsub.f32 %v20403_v3, %v18877_v28  ;;  %v13794_v13 = vpop.eup %13793  ;;  %v8642_v28 = vmul.f32 %v13790_v15, %v20408_v35  ;;  %v20409_v3 = vld [vmem:[#allocation15_spill] sm:$0xff]  ;;  %v9789_v35 = vmul.f32 1.442695, %v9687_v16 }
 0xc99   : > { %13807 = vrcp.f32 %v18800_v36  ;;  %v18944_v51 = vpop.xlane.xlu1 %9608  ;;  %v8593_v36 = vadd.f32 %v18931_v21, %v18928_v42  ;;  %v18958_v38 = vpop.eup %13795  ;;  %v8644_v11 = vmul.f32 %v13794_v13, %v20409_v3  ;;  %v9761_v42 = vmul.f32 1.442695, %v9673_v62 }
 0xc9a   : > { %13809 = vrcp.f32 %v8529_v5  ;;  %20405 = vst [vmem:[#allocation57_spill] sm:$0xff] %v18958_v38  ;;  %v20406_v5 = vld [vmem:[#allocation82_spill] sm:$0xff]  ;;  %v13798_v10 = vpop.eup %13797  ;;  %v9763_v40 = vmul.f32 1.442695, %v9674_v54  ;;  %v8599_v3 = vadd.f32 %v18958_v38, %v18948_v47 }
 0xc9b   : > { %13811 = vpow2.f32 %v9773_v58  ;;  %v18952_v57 = vpop.xlane.xlu0 %8552  ;;  %v8643_v52 = vmul.f32 %v13790_v15, %v20406_v5  ;;  %v20407_v58 = vld [vmem:[#allocation8_spill] sm:$0xff]  ;;  %v18966_v25 = vpop.eup %13799  ;;  %v8702_v63 = vpack.c.bf16 %v8644_v11, %v8642_v28 }
 0xc9c   : > { %13813 = vpow2.f32 %v9775_v37  ;;  %8594 = vadd.xlane.f32.xlu0 %v8593_v36  ;;  %v8645_v59 = vmul.f32 %v13794_v13, %v20407_v58  ;;  %v20410_v37 = vld [vmem:[#allocation32_spill] sm:$0xff] }
 0xc9d   : > { %v8544_v32 = vpop.xlane.xlu1 %8543  ;;  %13815 = vpow2.f32 %v9781_v43  ;;  %v9688_v21 = vsub.f32 %v20410_v37, %v18881_v2  ;;  %v20413_v43 = vld [vmem:[#allocation29_spill] sm:$0xff]  ;;  %v20414_v11 = vld [vmem:[#allocation36_spill] sm:$0xff] }
 0xc9e   : > { %13817 = vpow2.f32 %v9783_v4  ;;  %v8703_v36 = vpack.c.bf16 %v8645_v59, %v8643_v52  ;;  %v9691_v62 = vsub.f32 %v20413_v43, %v18919_v8  ;;  %v9677_v54 = vsub.f32 %v20414_v11, %v18770_v27 }
 0xc9f   : > { %v9624_v5 = vpop.xlane.xlu0 %9623  ;;  %13819 = vrcp.f32 %v18871_v17  ;;  %v9791_v13 = vmul.f32 1.442695, %v9688_v21  ;;  %v20415_v17 = vld [vmem:[#allocation44_spill] sm:$0xff] }
 0xca0   : > { %v18968_v0 = vpop.eup %13801  ;;  %13821 = vrcp.f32 %v18856_v26  ;;  %8826 = vmatprep.mubr.bf16.mxu0 %v8703_v36  ;;  %v9692_v16 = vsub.f32 %v20415_v17, %v18919_v8  ;;  %v20416_v26 = vld [vmem:[#allocation17_spill] sm:$0xff]  ;;  %v20417_v21 = vld [vmem:[#allocation20_spill] sm:$0xff]  ;;  %v20418_v8 = vld [vmem:[#allocation39_spill] sm:$0xff] }
 0xca1   : > { %20411 = vst [vmem:[#allocation37_spill] sm:$0xff] %v18968_v0  ;;  %v18971_v15 = vpop.eup %13803  ;;  %v18976_v2 = vpop.xlane.xlu1 %9614  ;;  %13823 = vpow2.f32 %v9761_v42  ;;  %8827 = vmatmul.mubr.bf16.gmra.mrb[72].mxu0 %v8702_v63  ;;  %v9678_v58 = vsub.f32 %v20416_v26, %v18770_v27  ;;  %v8647_v37 = vmul.f32 %v13798_v10, %v20417_v21  ;;  %v8646_v63 = vmul.f32 %v13798_v10, %v20418_v8  ;;  %v20419_v36 = vld [vmem:[#allocation42_spill] sm:$0xff] }
 0xca2   : > { %20412 = vst [vmem:[#allocation18_spill] sm:$0xff] %v18971_v15  ;;  %v18978_v4 = vpop.eup %13805  ;;  %13825 = vpow2.f32 %v9763_v40  ;;  %v9880_v28 = vadd.f32 %v18971_v15, %v18968_v0  ;;  %v8653_v43 = vmul.f32 %v18966_v25, %v20419_v36  ;;  %v9797_v27 = vmul.f32 1.442695, %v9691_v62  ;;  %v20420_v17 = vld [vmem:[#allocation66_spill] sm:$0xff]  ;;  %v20421_v0 = vld [vmem:[#allocation60_spill] sm:$0xff] }
 0xca3   : > { %v18984_v52 = vpop.eup %13807  ;;  %v18988_v59 = vpop.xlane.xlu0 %8558  ;;  %13827 = vpow2.f32 %v9789_v35  ;;  %v9695_v40 = vsub.f32 %v18442_v49, %v9624_v5  ;;  %v9769_v35 = vmul.f32 1.442695, %v9677_v54  ;;  %v9799_v21 = vmul.f32 1.442695, %v9692_v16  ;;  %v20422_v10 = vld [vmem:[#allocation78_spill] sm:$0xff] }
 0xca4   : > { %v13810_v42 = vpop.eup %13809  ;;  %9881 = vadd.xlane.f32.xlu0 %v9880_v28  ;;  %13829 = vpow2.f32 %v9791_v13  ;;  %v9696_v8 = vsub.f32 %v20422_v10, %v9624_v5  ;;  %v8651_v49 = vmul.f32 %v18984_v52, %v20423_v19  ;;  %v20429_v10 = vld [vmem:[#allocation47_spill] sm:$0xff] }
 0xca5   : > { %v18998_v11 = vpop.eup %13811  ;;  %v8649_v26 = vmul.f32 %v13810_v42, %v20420_v17  ;;  %v8550_v15 = vpop.xlane.xlu1 %8549  ;;  %v8648_v47 = vmul.f32 %v13810_v42, %v20421_v0  ;;  %13831 = vrcp.f32 %v18903_v29  ;;  %v9771_v17 = vmul.f32 1.442695, %v9678_v58 }
 0xca6   : > { %v19003_v38 = vpop.eup %13813  ;;  %13833 = vrcp.f32 %v8544_v32  ;;  %v9805_v54 = vmul.f32 1.442695, %v9695_v40  ;;  %v8707_v5 = vpack.c.bf16 %v8653_v43, %v8651_v49  ;;  %v9807_v16 = vmul.f32 1.442695, %v9696_v8  ;;  %v20431_v49 = vld [vmem:[#allocation27_spill] sm:$0xff] }
 0xca7   : > { %v8705_v36 = vpack.c.bf16 %v8649_v26, %v8647_v37  ;;  %v8704_v9 = vpack.c.bf16 %v8648_v47, %v8646_v63  ;;  %v9630_v62 = vpop.xlane.xlu0 %9629  ;;  %v19009_v28 = vpop.eup %13815  ;;  %13835 = vpow2.f32 %v9797_v27  ;;  %v9886_v32 = vadd.f32 %v19003_v38, %v18998_v11  ;;  %v20425_v37 = vld [vmem:[#allocation43_spill] sm:$0xff]  ;;  %v20427_v26 = vld [vmem:[#allocation86_spill] sm:$0xff] }
 0xca8   : > { %v19011_v0 = vpop.eup %13817  ;;  %v9699_v13 = vsub.f32 %v18482_v14, %v9630_v62  ;;  %8600 = vadd.xlane.f32.xlu0 %v8599_v3  ;;  %13837 = vpow2.f32 %v9799_v21  ;;  %v9700_v19 = vsub.f32 %v18487_v50, %v9630_v62  ;;  %v20424_v14 = vld [vmem:[#allocation19_spill] sm:$0xff]  ;;  %v8652_v63 = vmul.f32 %v18966_v25, %v20425_v37 }
 0xca9   : > { %8834 = vmatprep.mubr.bf16.mxu0 %v8705_v36  ;;  %v19014_v29 = vpop.xlane.xlu1 %8555  ;;  %v13820_v47 = vpop.eup %13819  ;;  %13839 = vpow2.f32 %v9769_v35  ;;  %v9681_v3 = vsub.f32 %v20424_v14, %v18814_v45  ;;  %v9693_v8 = vsub.f32 %v20429_v10, %v18937_v1  ;;  %v20430_v25 = vld [vmem:[#allocation31_spill] sm:$0xff] }
 0xcaa   : > { %8835 = vmatmul.mubr.bf16.gmra.mrb[76].mxu0 %v8704_v9  ;;  %v13822_v42 = vpop.eup %13821  ;;  %13841 = vpow2.f32 %v9771_v17  ;;  %v20426_v9 = vld [vmem:[#allocation26_spill] sm:$0xff]  ;;  %v9813_v27 = vmul.f32 1.442695, %v9699_v13  ;;  %v8657_v35 = vmul.f32 %v13820_v47, %v20427_v26  ;;  %v9815_v36 = vmul.f32 1.442695, %v9700_v19  ;;  %v20435_v26 = vld [vmem:[#allocation65_spill] sm:$0xff] }
 0xcab   : > { %8842 = vmatprep.mubr.bf16.mxu0 %v8707_v5  ;;  %v19019_v58 = vpop.eup %13823  ;;  %v9682_v50 = vsub.f32 %v20426_v9, %v18814_v45  ;;  %13843 = vpow2.f32 %v9805_v54  ;;  %v8650_v62 = vmul.f32 %v18984_v52, %v20430_v25  ;;  %v9685_v45 = vsub.f32 %v20431_v49, %v18944_v51  ;;  %v20432_v54 = vld [vmem:[#allocation80_spill] sm:$0xff]  ;;  %v20433_v52 = vld [vmem:[#allocation22_spill] sm:$0xff] }
 0xcac   : > { %v19025_v43 = vpop.eup %13825  ;;  %9887 = vadd.xlane.f32.xlu0 %v9886_v32  ;;  %13845 = vpow2.f32 %v9807_v16  ;;  %v9892_v17 = vadd.f32 %v19011_v0, %v19009_v28  ;;  %v8655_v13 = vmul.f32 %v13822_v42, %v20432_v54  ;;  %v9777_v32 = vmul.f32 1.442695, %v9681_v3 }
 0xcad   : > { %v19029_v40 = vpop.xlane.xlu1 %9626  ;;  %v19032_v21 = vpop.eup %13827  ;;  %13847 = vrcp.f32 %v18952_v57  ;;  %v8706_v14 = vpack.c.bf16 %v8652_v63, %v8650_v62  ;;  %v9779_v19 = vmul.f32 1.442695, %v9682_v50  ;;  %v9686_v37 = vsub.f32 %v20433_v52, %v18944_v51  ;;  %v20434_v57 = vld [vmem:[#allocation93_spill] sm:$0xff]  ;;  %v20439_v62 = vld [vmem:[#allocation84_spill] sm:$0xff] }
 0xcae   : > { %20428 = vst [vmem:[#allocation23_spill] sm:$0xff] %v19032_v21  ;;  %v19044_v5 = vpop.eup %13829  ;;  %13849 = vrcp.f32 %v8550_v15  ;;  %v8709_v9 = vpack.c.bf16 %v8657_v35, %v8655_v13  ;;  %v20436_v10 = vmax.f32 %v20434_v57, %v20435_v26  ;;  %v9801_v54 = vmul.f32 1.442695, %v9693_v8  ;;  %v20438_v63 = vld [vmem:[#allocation33_spill] sm:$0xff]  ;;  %v20441_v52 = vld [vmem:[#allocation92_spill] sm:$0xff] }
 0xcaf   : > { %v19046_v16 = vpop.eup %13831  ;;  %13851 = vpow2.f32 %v9813_v27  ;;  %v9785_v3 = vmul.f32 1.442695, %v9685_v45  ;;  %v9689_v50 = vsub.f32 %v20438_v63, %v18976_v2  ;;  %v9898_v51 = vadd.f32 %v19044_v5, %v19032_v21  ;;  %v20440_v45 = vld [vmem:[#allocation30_spill] sm:$0xff]  ;;  %v20442_v63 = vld [vmem:[#allocation79_spill] sm:$0xff] }
 0xcb0   : > { %9893 = vadd.xlane.f32.xlu0 %v9892_v17  ;;  %v13834_v49 = vpop.eup %13833  ;;  %13853 = vpow2.f32 %v9815_v36  ;;  %v8590_v27 = vadd.f32 %v18911_v6, %v18909_v44  ;;  %v8656_v8 = vmul.f32 %v13820_v47, %v20439_v62  ;;  %v9787_v17 = vmul.f32 1.442695, %v9686_v37  ;;  %v20444_v37 = vld [vmem:[#allocation90_spill] sm:$0xff] }
 0xcb1   : > { %9644 = vmax.xlane.f32.xlu1 %v20436_v10  ;;  %v19053_v25 = vpop.xlane.xlu1 %8561  ;;  %v19055_v15 = vpop.eup %13835  ;;  %13855 = vpow2.f32 %v9777_v32  ;;  %v9690_v13 = vsub.f32 %v20440_v45, %v18976_v2  ;;  %v8654_v21 = vmul.f32 %v13822_v42, %v20442_v63  ;;  %v9877_v47 = vadd.f32 %v19025_v43, %v19019_v58  ;;  %v20446_v42 = vld [vmem:[#allocation46_spill] sm:$0xff] }
 0xcb2   : > { %8843 = vmatmul.mubr.bf16.gmra.mrb[80].mxu0 %v8706_v14  ;;  %20437 = vst [vmem:[#allocation28_spill] sm:$0xff] %v19055_v15  ;;  %v19063_v35 = vpop.eup %13837  ;;  %13857 = vpow2.f32 %v9779_v19  ;;  %v9793_v19 = vmul.f32 1.442695, %v9689_v50  ;;  %v9694_v45 = vsub.f32 %v20446_v42, %v18937_v1  ;;  %v20451_v42 = vld [vmem:[#allocation67_spill] sm:$0xff] }
 0xcb3   : > { %8850 = vmatprep.mubr.bf16.mxu0 %v8709_v9  ;;  %v19066_v36 = vpop.eup %13839  ;;  %v8659_v9 = vmul.f32 %v13834_v49, %v20441_v52  ;;  %13859 = vpow2.f32 %v9801_v54  ;;  %v9904_v2 = vadd.f32 %v19063_v35, %v19055_v15  ;;  %v8708_v54 = vpack.c.bf16 %v8656_v8, %v8654_v21 }
 0xcb4   : > { %9899 = vadd.xlane.f32.xlu0 %v9898_v51  ;;  %v19071_v10 = vpop.eup %13841  ;;  %13861 = vpow2.f32 %v9785_v3  ;;  %v8661_v51 = vmul.f32 %v19046_v16, %v20444_v37  ;;  %v9795_v52 = vmul.f32 1.442695, %v9690_v13  ;;  %v9633_v3 = vpop.xlane.xlu0 %9632  ;;  %v8596_v8 = vadd.f32 %v18978_v4, %v18941_v22  ;;  %v20448_v13 = vld [vmem:[#allocation87_spill] sm:$0xff] }
 0xcb5   : > { %8591 = vadd.xlane.f32.xlu1 %v8590_v27  ;;  %v8565_v14 = vpop.xlane.xlu1 %8564  ;;  %v19076_v32 = vpop.eup %13843  ;;  %13863 = vrcp.f32 %v19014_v29 }
 0xcb6   : > { %20443 = vst [vmem:[#allocation34_spill] sm:$0xff] %v19076_v32  ;;  %v19082_v27 = vpop.eup %13845  ;;  %13865 = vpow2.f32 %v9787_v17  ;;  %v8711_v50 = vpack.c.bf16 %v8661_v51, %v8659_v9  ;;  %v9701_v9 = vsub.f32 %v20448_v13, %v9633_v3  ;;  %v9803_v51 = vmul.f32 1.442695, %v9694_v45  ;;  %v20455_v13 = vld [vmem:[#allocation64_spill] sm:$0xff] }
 0xcb7   : > { %20445 = vst [vmem:[#allocation16_spill] sm:$0xff] %v19082_v27  ;;  %v19085_v62 = vpop.eup %13847  ;;  %13867 = vrcp.f32 %v18988_v59  ;;  %v9910_v1 = vadd.f32 %v19082_v27, %v19076_v32  ;;  %v20452_v32 = vld [vmem:[#allocation85_spill] sm:$0xff] }
 0xcb8   : > { %9905 = vadd.xlane.f32.xlu0 %v9904_v2  ;;  %v13850_v15 = vpop.eup %13849  ;;  %13869 = vpow2.f32 %v9793_v19  ;;  %v20449_v2 = vld [vmem:[#allocation91_spill] sm:$0xff]  ;;  %v9698_v27 = vsub.f32 %v20452_v32, %v19029_v40 }
 0xcb9   : > { %9878 = vadd.xlane.f32.xlu1 %v9877_v47  ;;  %v9636_v63 = vpop.xlane.xlu1 %9635  ;;  %v19092_v21 = vpop.eup %13851  ;;  %13871 = vpow2.f32 %v9795_v52  ;;  %v20454_v52 = vld [vmem:[#allocation89_spill] sm:$0xff] }
 0xcba   : > { %8851 = vmatmul.mubr.bf16.gmra.mrb[84].mxu0 %v8708_v54  ;;  %v9703_v37 = vsub.f32 %v18517_v34, %v9636_v63  ;;  %v9704_v29 = vsub.f32 %v18523_v41, %v9636_v63  ;;  %20447 = vst [vmem:[#allocation21_spill] sm:$0xff] %v19092_v21  ;;  %v19098_v17 = vpop.eup %13853  ;;  %v8658_v34 = vmul.f32 %v13834_v49, %v20449_v2  ;;  %v20450_v41 = vld [vmem:[#allocation83_spill] sm:$0xff] }
 0xcbb   : > { %8858 = vmatprep.mubr.bf16.mxu0 %v8711_v50  ;;  %v9697_v19 = vsub.f32 %v20450_v41, %v19029_v40  ;;  %v8663_v50 = vmul.f32 %v13850_v15, %v20451_v42  ;;  %v19105_v63 = vpop.eup %13855  ;;  %v9883_v49 = vadd.f32 %v19071_v10, %v19066_v36  ;;  %v8665_v2 = vmul.f32 %v19085_v62, %v20455_v13 }
 0xcbc   : > { %v9821_v59 = vmul.f32 1.442695, %v9703_v37  ;;  %v9823_v47 = vmul.f32 1.442695, %v9704_v29  ;;  %9911 = vadd.xlane.f32.xlu0 %v9910_v1  ;;  %v20453_v37 = vld [vmem:[#allocation88_spill] sm:$0xff]  ;;  %v19113_v45 = vpop.eup %13857  ;;  %v9702_v1 = vsub.f32 %v20454_v52, %v9633_v3  ;;  %v9639_v52 = vpop.xlane.xlu0 %9638 }
 0xcbd   : > { %8597 = vadd.xlane.f32.xlu1 %v8596_v8  ;;  %v8568_v54 = vpop.xlane.xlu1 %8567  ;;  %v8660_v29 = vmul.f32 %v19046_v16, %v20453_v37  ;;  %v9916_v8 = vadd.f32 %v19098_v17, %v19092_v21  ;;  %v19120_v41 = vpop.eup %13859  ;;  %v9817_v40 = vmul.f32 1.442695, %v9701_v9  ;;  %v8713_v42 = vpack.c.bf16 %v8665_v2, %v8663_v50  ;;  %v20457_v50 = vld [vmem:[#allocation61_spill] sm:$0xff]  ;;  %v20460_v2 = vld [vmem:[#allocation62_spill] sm:$0xff] }
 0xcbe   : > { %13873 = vpow2.f32 %v9821_v59  ;;  %v19122_v16 = vpop.eup %13861  ;;  %v9809_v59 = vmul.f32 1.442695, %v9697_v19  ;;  %v9811_v37 = vmul.f32 1.442695, %v9698_v27  ;;  %v9819_v21 = vmul.f32 1.442695, %v9702_v1 }
 0xcbf   : > { %13875 = vpow2.f32 %v9823_v47  ;;  %v8710_v32 = vpack.c.bf16 %v8660_v29, %v8658_v34  ;;  %v13864_v47 = vpop.eup %13863  ;;  %v20456_v34 = vld [vmem:[#allocation52_spill] sm:$0xff]  ;;  %v9705_v27 = vsub.f32 %v20457_v50, %v9639_v52 }
 0xcc0   : > { %13877 = vrcp.f32 %v8565_v14  ;;  %9917 = vadd.xlane.f32.xlu0 %v9916_v8  ;;  %v19125_v13 = vpop.eup %13865  ;;  %v9889_v14 = vadd.f32 %v19113_v45, %v19105_v63  ;;  %v20459_v8 = vld [vmem:[#allocation49_spill] sm:$0xff] }
 0xcc1   : > { %13879 = vpow2.f32 %v9803_v51  ;;  %9884 = vadd.xlane.f32.xlu1 %v9883_v49  ;;  %v8571_v3 = vpop.xlane.xlu1 %8570  ;;  %v13868_v9 = vpop.eup %13867  ;;  %v8662_v51 = vmul.f32 %v13850_v15, %v20456_v34  ;;  %v8667_v1 = vmul.f32 %v13864_v47, %v20459_v8 }
 0xcc2   : > { %13881 = vrcp.f32 %v19053_v25  ;;  %8859 = vmatmul.mubr.bf16.gmra.mrb[88].mxu0 %v8710_v32  ;;  %v19130_v19 = vpop.eup %13869  ;;  %v20458_v25 = vld [vmem:[#allocation63_spill] sm:$0xff]  ;;  %v9706_v32 = vsub.f32 %v20460_v2, %v9639_v52  ;;  %v9825_v52 = vmul.f32 1.442695, %v9705_v27 }
 0xcc3   : > { %8866 = vmatprep.mubr.bf16.mxu0 %v8713_v42  ;;  %13883 = vpow2.f32 %v9817_v40  ;;  %v8664_v49 = vmul.f32 %v19085_v62, %v20458_v25  ;;  %v19139_v15 = vpop.eup %13871 }
 0xcc4   : > { %13885 = vpow2.f32 %v9809_v59  ;;  %v20461_v59 = vld [vmem:[#allocation13_spill] sm:$0xff] }
 0xcc5   : > { %9890 = vadd.xlane.f32.xlu1 %v9889_v14  ;;  %v9642_v29 = vpop.xlane.xlu1 %9641  ;;  %13887 = vpow2.f32 %v9811_v37  ;;  %v8669_v34 = vmul.f32 %v13868_v9, %v20461_v59  ;;  %v9895_v14 = vadd.f32 %v19125_v13, %v19122_v16  ;;  %v8712_v37 = vpack.c.bf16 %v8664_v49, %v8662_v51 }
 0xcc6   : > { %v9707_v42 = vsub.f32 %v18555_v33, %v9642_v29  ;;  %v9708_v40 = vsub.f32 %v18557_v7, %v9642_v29  ;;  %13889 = vpow2.f32 %v9819_v21  ;;  %v9827_v21 = vmul.f32 1.442695, %v9706_v32 }
 0xcc7   : > { %13891 = vrcp.f32 %v8571_v3  ;;  %v8715_v33 = vpack.c.bf16 %v8669_v34, %v8667_v1  ;;  %v9901_v3 = vadd.f32 %v19139_v15, %v19130_v19  ;;  %v20464_v1 = vld [vmem:[#allocation2_spill] sm:$0xff] }
 0xcc8   : > { %v19144_v50 = vpop.eup %13873  ;;  %v9829_v62 = vmul.f32 1.442695, %v9707_v42  ;;  %v9831_v25 = vmul.f32 1.442695, %v9708_v40  ;;  %13893 = vrcp.f32 %v8568_v54  ;;  %v20463_v54 = vld [vmem:[#allocation70_spill] sm:$0xff]  ;;  %v20466_v40 = vld [vmem:[#allocation68_spill] sm:$0xff] }
 0xcc9   : > { %20462 = vst [vmem:[#allocation82_spill] sm:$0xff] %v19144_v50  ;;  %v19146_v8 = vpop.eup %13875  ;;  %9896 = vadd.xlane.f32.xlu1 %v9895_v14  ;;  %v8574_v7 = vpop.xlane.xlu1 %8573  ;;  %v8666_v27 = vmul.f32 %v13864_v47, %v20463_v54  ;;  %v8668_v34 = vmul.f32 %v13868_v9, %v20466_v40  ;;  %v20469_v40 = vld [vmem:[#allocation69_spill] sm:$0xff] }
 0xcca   : > { %v13878_v29 = vpop.eup %13877  ;;  %13895 = vpow2.f32 %v9829_v62  ;;  %8867 = vmatmul.mubr.bf16.gmra.mrb[92].mxu0 %v8712_v37  ;;  %v9922_v2 = vadd.f32 %v19146_v8, %v19144_v50  ;;  %v20467_v62 = vld [vmem:[#allocation14_spill] sm:$0xff] }
 0xccb   : > { %v19150_v59 = vpop.eup %13879  ;;  %13897 = vpow2.f32 %v9831_v25  ;;  %8874 = vmatprep.mubr.bf16.mxu0 %v8715_v33  ;;  %v8673_v32 = vmul.f32 %v13878_v29, %v20464_v1  ;;  %v8714_v47 = vpack.c.bf16 %v8668_v34, %v8666_v27  ;;  %v20471_v34 = vld [vmem:[#allocation53_spill] sm:$0xff] }
 0xccc   : > { %v13882_v51 = vpop.eup %13881  ;;  %9923 = vadd.xlane.f32.xlu0 %v9922_v2  ;;  %13899 = vpow2.f32 %v9825_v52  ;;  %v9907_v37 = vadd.f32 %v19150_v59, %v19120_v41 }
 0xccd   : > { %9902 = vadd.xlane.f32.xlu1 %v9901_v3  ;;  %v8577_v49 = vpop.xlane.xlu1 %8576  ;;  %v19156_v42 = vpop.eup %13883  ;;  %13901 = vpow2.f32 %v9827_v21  ;;  %v8671_v25 = vmul.f32 %v13882_v51, %v20467_v62  ;;  %v8672_v62 = vmul.f32 %v13878_v29, %v20469_v40 }
 0xcce   : > { %20465 = vst [vmem:[#allocation8_spill] sm:$0xff] %v19156_v42  ;;  %v19159_v14 = vpop.eup %13885  ;;  %13903 = vrcp.f32 %v8577_v49 }
 0xccf   : > { %v19164_v33 = vpop.eup %13887  ;;  %v8717_v2 = vpack.c.bf16 %v8673_v32, %v8671_v25  ;;  %13905 = vrcp.f32 %v8574_v7  ;;  %v8670_v7 = vmul.f32 %v13882_v51, %v20471_v34 }
 0xcd0   : > { %v19166_v52 = vpop.eup %13889  ;;  %v9913_v21 = vadd.f32 %v19164_v33, %v19159_v14 }
 0xcd1   : > { %9908 = vadd.xlane.f32.xlu1 %v9907_v37  ;;  %v9843_v3 = vpop.xlane.xlu1 %9842  ;;  %v13892_v54 = vpop.eup %13891 }
 0xcd2   : > { %8875 = vmatmul.mubr.bf16.gmra.mrb[96].mxu0 %v8714_v47  ;;  %v13894_v9 = vpop.eup %13893  ;;  %13907 = vrcp.f32 %v9843_v3  ;;  %v8677_v32 = vmul.f32 %v13892_v54, %v18705_v39  ;;  %v8716_v3 = vpack.c.bf16 %v8672_v62, %v8670_v7 }
 0xcd3   : > { %8882 = vmatprep.mubr.bf16.mxu0 %v8717_v2  ;;  %v8675_v47 = vmul.f32 %v13894_v9, %v18694_v23  ;;  %v9919_v2 = vadd.f32 %v19166_v52, %v19156_v42  ;;  %v20473_v23 = vld [vmem:[#allocation3_spill] sm:$0xff]  ;;  %v20475_v42 = vld [vmem:[#allocation50_spill] sm:$0xff] }
 0xcd4   : > { %v19170_v1 = vpop.eup %13895 }
 0xcd5   : > { %20468 = vst [vmem:[#allocation81_spill] sm:$0xff] %v19170_v1  ;;  %v19173_v49 = vpop.eup %13897  ;;  %9914 = vadd.xlane.f32.xlu1 %v9913_v21  ;;  %v9846_v27 = vpop.xlane.xlu1 %9845  ;;  %v8719_v21 = vpack.c.bf16 %v8677_v32, %v8675_v47  ;;  %v20476_v47 = vld [vmem:[#allocation6_spill] sm:$0xff] }
 0xcd6   : > { %20470 = vst [vmem:[#allocation15_spill] sm:$0xff] %v19173_v49  ;;  %13909 = vrcp.f32 %v9846_v27  ;;  %v9928_v25 = vadd.f32 %v19173_v49, %v19170_v1  ;;  %v19179_v37 = vpop.eup %13899  ;;  %v8676_v27 = vmul.f32 %v13892_v54, %v18701_v46  ;;  %v20474_v49 = vld [vmem:[#allocation4_spill] sm:$0xff]  ;;  %v20478_v54 = vld [vmem:[#allocation73_spill] sm:$0xff] }
 0xcd7   : > { %20472 = vst [vmem:[#allocation32_spill] sm:$0xff] %v19179_v37  ;;  %v19184_v29 = vpop.eup %13901  ;;  %v8674_v50 = vmul.f32 %v13894_v9, %v20474_v49 }
 0xcd8   : > { %9929 = vadd.xlane.f32.xlu0 %v9928_v25  ;;  %v13904_v39 = vpop.eup %13903  ;;  %v9925_v51 = vadd.f32 %v19184_v29, %v19179_v37  ;;  %v20477_v37 = vld [vmem:[#allocation71_spill] sm:$0xff] }
 0xcd9   : > { %9920 = vadd.xlane.f32.xlu1 %v9919_v2  ;;  %v13906_v40 = vpop.eup %13905  ;;  %v8681_v34 = vmul.f32 %v13904_v39, %v20473_v23  ;;  %v8718_v32 = vpack.c.bf16 %v8676_v27, %v8674_v50  ;;  %v8680_v46 = vmul.f32 %v13904_v39, %v20477_v37 }
 0xcda   : > { %8883 = vmatmul.mubr.bf16.gmra.mrb[100].mxu0 %v8716_v3  ;;  %v8679_v62 = vmul.f32 %v13906_v40, %v20475_v42  ;;  %v8955_v42 = vld [vmem:[%s19480_s5 + $0x8] sm:$0xf] }
 0xcdb   : > { %8890 = vmatprep.mubr.bf16.mxu0 %v8719_v21  ;;  %13129 = vmatprep.subr.msk.bf16.mxu0 %vm7488_vm8, %v8955_v42  ;;  %v9005_v50 = vsel %vm7488_vm8, %v8955_v42, 0 }
 0xcdc   : > { %v13908_v1 = vpop.eup %13907  ;;  %v8721_v25 = vpack.c.bf16 %v8681_v34, %v8679_v62  ;;  %12684 = vmatpush3.bf16.msra.mxu0 %v9005_v50 }
 0xcdd   : > { %9926 = vadd.xlane.f32.xlu1 %v9925_v51  ;;  %v9970_v2 = vmul.f32 %v13908_v1, %v20476_v47  ;;  %v8678_v51 = vmul.f32 %v13906_v40, %v20478_v54 }
 0xcdf   : > { %v8720_v23 = vpack.c.bf16 %v8680_v46, %v8678_v51  ;;  %v20480_v51 = vld [vmem:[#allocation5_spill] sm:$0xff] }
 0xce0   : > { %v13910_v7 = vpop.eup %13909 }
 0xce1   : > { %v9972_v3 = vmul.f32 %v13910_v7, %v18734_v20 }
 0xce2   : > { %8891 = vmatmul.mubr.bf16.gmra.mrb[104].mxu0 %v8718_v32 }
 0xce3   : > { %8898 = vmatprep.mubr.bf16.mxu0 %v8721_v25  ;;  %v10034_v21 = vpack.c.bf16 %v9972_v3, %v9970_v2 }
 0xce5   : > { %10145 = vmatprep.mubr.bf16.mxu1 %v10034_v21  ;;  %v20479_v21 = vld [vmem:[#allocation56_spill] sm:$0xff] }
 0xce6   : > { %v9971_v46 = vmul.f32 %v13910_v7, %v20479_v21 }
 0xcea   : > { %8899 = vmatmul.mubr.bf16.gmra.mrb[108].mxu0 %v8720_v23  ;;  %v9969_v23 = vmul.f32 %v13908_v1, %v20480_v51 }
 0xcec   : > { %v10033_v50 = vpack.c.bf16 %v9971_v46, %v9969_v23  ;;  %v20483_v46 = vld [vmem:[#allocation74_spill] sm:$0xff] }
 0xcf9   : > { %v9849_v20 = vpop.xlane.xlu1 %9848 }
 0xcfd   : > { %v9852_v9 = vpop.xlane.xlu1 %9851 }
 0xcfe   : > { %13911 = vrcp.f32 %v9852_v9 }
 0xcff   : > { %13913 = vrcp.f32 %v9849_v20 }
 0xd01   : > { %v9855_v49 = vpop.xlane.xlu1 %9854  ;;  %v9861_v37 = vpop.xlane.xlu0 %9860 }
 0xd05   : > { %v9858_v39 = vpop.xlane.xlu1 %9857  ;;  %v9648_v27 = vpop.xlane.xlu0 %9647 }
 0xd06   : > { %v9711_v40 = vsub.f32 %v18598_v55, %v9648_v27  ;;  %v9712_v34 = vsub.f32 %v18600_v24, %v9648_v27  ;;  %13915 = vrcp.f32 %v9858_v39 }
 0xd07   : > { %13917 = vrcp.f32 %v9855_v49 }
 0xd08   : > { %v13912_v62 = vpop.eup %13911  ;;  %v9837_v32 = vmul.f32 1.442695, %v9711_v40  ;;  %v9839_v25 = vmul.f32 1.442695, %v9712_v34  ;;  %v20481_v34 = vld [vmem:[#allocation77_spill] sm:$0xff] }
 0xd09   : > { %v9864_v47 = vpop.xlane.xlu1 %9863  ;;  %v8580_v2 = vpop.xlane.xlu0 %8579  ;;  %v9976_v54 = vmul.f32 %v13912_v62, %v18768_v18  ;;  %v9975_v18 = vmul.f32 %v13912_v62, %v18764_v12 }
 0xd0a   : > { %v13914_v3 = vpop.eup %13913  ;;  %13919 = vpow2.f32 %v9837_v32 }
 0xd0b   : > { %13921 = vpow2.f32 %v9839_v25  ;;  %v9974_v42 = vmul.f32 %v13914_v3, %v18760_v48  ;;  %v9973_v27 = vmul.f32 %v13914_v3, %v18756_v56  ;;  %v20482_v56 = vld [vmem:[#allocation10_spill] sm:$0xff] }
 0xd0c   : > { %13923 = vrcp.f32 %v8580_v2 }
 0xd0d   : > { %v10080_v55 = vpop.permute.xlu1 %10079  ;;  %13925 = vrcp.f32 %v9864_v47  ;;  %v8583_v24 = vpop.xlane.xlu0 %8582  ;;  %v10036_v20 = vpack.c.bf16 %v9976_v54, %v9974_v42 }
 0xd0e   : > { %12141 = vmatpush3.bf16.msra.mxu1 %v10080_v55  ;;  %13927 = vrcp.f32 %v8583_v24  ;;  %v20484_v55 = vld [vmem:[#allocation76_spill] sm:$0xff] }
 0xd0f   : > { %13929 = vrcp.f32 %v9861_v37  ;;  %v10035_v37 = vpack.c.bf16 %v9975_v18, %v9973_v27  ;;  %v20486_v18 = vld [vmem:[#allocation59_spill] sm:$0xff] }
 0xd10   : > { %v13916_v9 = vpop.eup %13915 }
 0xd11   : > { %10146 = vmatmul.mubr.bf16.vlgmr.msra.gmra.mrb[160].mxu1 %v10033_v50  ;;  %v8586_v7 = vpop.xlane.xlu0 %8585  ;;  %v13918_v49 = vpop.eup %13917  ;;  %v9980_v1 = vmul.f32 %v13916_v9, %v18798_v53  ;;  %v9979_v24 = vmul.f32 %v13916_v9, %v20484_v55 }
 0xd12   : > { %10153 = vmatprep.mubr.bf16.mxu1 %v10036_v20  ;;  %13931 = vrcp.f32 %v8586_v7  ;;  %v9978_v32 = vmul.f32 %v13918_v49, %v20481_v34  ;;  %v20485_v20 = vld [vmem:[#allocation35_spill] sm:$0xff] }
 0xd14   : > { %v19209_v39 = vpop.eup %13919  ;;  %v10038_v12 = vpack.c.bf16 %v9980_v1, %v9978_v32  ;;  %v9977_v1 = vmul.f32 %v13918_v49, %v20486_v18  ;;  %v20494_v18 = vld [vmem:[#allocation38_spill] sm:$0xff] }
 0xd15   : > { %v19212_v40 = vpop.eup %13921  ;;  %v8589_v48 = vpop.xlane.xlu0 %8588 }
 0xd16   : > { %v13924_v25 = vpop.eup %13923  ;;  %13933 = vrcp.f32 %v8589_v48  ;;  %v9934_v47 = vadd.f32 %v19212_v40, %v19209_v39  ;;  %v20487_v48 = vld [vmem:[#allocation75_spill] sm:$0xff] }
 0xd17   : > { %v13926_v2 = vpop.eup %13925  ;;  %v8683_v3 = vmul.f32 %v13924_v25, %v20482_v56  ;;  %v8682_v54 = vmul.f32 %v13924_v25, %v20483_v46  ;;  %v20490_v56 = vld [vmem:[#allocation9_spill] sm:$0xff] }
 0xd18   : > { %v13928_v62 = vpop.eup %13927  ;;  %9935 = vadd.xlane.f32.xlu0 %v9934_v47  ;;  %v9984_v7 = vmul.f32 %v13926_v2, %v20485_v20  ;;  %v20493_v20 = vld [vmem:[#allocation58_spill] sm:$0xff] }
 0xd19   : > { %10154 = vmatmul.mubr.bf16.gmra.mrb[164].mxu1 %v10035_v37  ;;  %v9867_v53 = vpop.xlane.xlu0 %9866  ;;  %v8685_v21 = vmul.f32 %v13928_v62, %v18827_v60  ;;  %v8684_v51 = vmul.f32 %v13928_v62, %v18822_v61  ;;  %v13930_v23 = vpop.eup %13929  ;;  %v10037_v60 = vpack.c.bf16 %v9979_v24, %v9977_v1  ;;  %v20489_v62 = vld [vmem:[#allocation12_spill] sm:$0xff] }
 0xd1a   : > { %10161 = vmatprep.mubr.bf16.mxu1 %v10038_v12  ;;  %13935 = vrcp.f32 %v9867_v53  ;;  %v9982_v34 = vmul.f32 %v13930_v23, %v20487_v48  ;;  %v20488_v12 = vld [vmem:[#allocation11_spill] sm:$0xff] }
 0xd1b   : > { %v8723_v42 = vpack.c.bf16 %v8685_v21, %v8683_v3  ;;  %v8722_v50 = vpack.c.bf16 %v8684_v51, %v8682_v54  ;;  %v9983_v3 = vmul.f32 %v13926_v2, %v20490_v56  ;;  %v20491_v54 = vld [vmem:[#allocation55_spill] sm:$0xff] }
 0xd1c   : > { %v13932_v32 = vpop.eup %13931  ;;  %v10040_v25 = vpack.c.bf16 %v9984_v7, %v9982_v34  ;;  %v9981_v51 = vmul.f32 %v13930_v23, %v20491_v54 }
 0xd1d   : > { %v9870_v27 = vpop.xlane.xlu0 %9869  ;;  %8906 = vmatprep.mubr.bf16.mxu0 %v8723_v42  ;;  %v8687_v9 = vmul.f32 %v13932_v32, %v18845_v30  ;;  %v8686_v49 = vmul.f32 %v13932_v32, %v20488_v12 }
 0xd1e   : > { %13937 = vrcp.f32 %v9870_v27  ;;  %8907 = vmatmul.mubr.bf16.gmra.mrb[112].mxu0 %v8722_v50  ;;  %v10039_v42 = vpack.c.bf16 %v9983_v3, %v9981_v51  ;;  %v20495_v27 = vld [vmem:[#allocation54_spill] sm:$0xff] }
 0xd20   : > { %v13934_v61 = vpop.eup %13933 }
 0xd21   : > { %10162 = vmatmul.mubr.bf16.gmra.mrb[168].mxu1 %v10037_v60  ;;  %v9873_v37 = vpop.xlane.xlu0 %9872  ;;  %v8689_v47 = vmul.f32 %v13934_v61, %v18860_v31  ;;  %v8688_v53 = vmul.f32 %v13934_v61, %v20489_v62  ;;  %v20492_v31 = vld [vmem:[#allocation72_spill] sm:$0xff]  ;;  %v20496_v60 = vld [vmem:[#allocation51_spill] sm:$0xff] }
 0xd22   : > { %10169 = vmatprep.mubr.bf16.mxu1 %v10040_v25  ;;  %13939 = vrcp.f32 %v9873_v37  ;;  %v20497_v61 = vld [vmem:[#allocation7_spill] sm:$0xff] }
 0xd23   : > { %v8725_v21 = vpack.c.bf16 %v8689_v47, %v8687_v9  ;;  %v8724_v46 = vpack.c.bf16 %v8688_v53, %v8686_v49  ;;  %v20498_v9 = vld [vmem:[#allocation40_spill] sm:$0xff] }
 0xd24   : > { %v13936_v24 = vpop.eup %13935  ;;  %v20499_v49 = vld [vmem:[#allocation48_spill] sm:$0xff] }
 0xd25   : > { %v9876_v55 = vpop.xlane.xlu0 %9875  ;;  %8914 = vmatprep.mubr.bf16.mxu0 %v8725_v21  ;;  %v9986_v50 = vmul.f32 %v13936_v24, %v20492_v31  ;;  %v9985_v48 = vmul.f32 %v13936_v24, %v20495_v27 }
 0xd26   : > { %13941 = vrcp.f32 %v9876_v55  ;;  %8915 = vmatmul.mubr.bf16.gmra.mrb[116].mxu0 %v8724_v46 }
 0xd28   : > { %v13938_v30 = vpop.eup %13937 }
 0xd29   : > { %10170 = vmatmul.mubr.bf16.gmra.mrb[172].mxu1 %v10039_v42  ;;  %v9988_v7 = vmul.f32 %v13938_v30, %v20493_v20  ;;  %v9987_v1 = vmul.f32 %v13938_v30, %v20494_v18  ;;  %v8595_v56 = vpop.xlane.xlu0 %8594 }
 0xd2a   : > { %13943 = vrcp.f32 %v8595_v56 }
 0xd2b   : > { %v10042_v2 = vpack.c.bf16 %v9988_v7, %v9986_v50  ;;  %v10041_v34 = vpack.c.bf16 %v9987_v1, %v9985_v48  ;;  %v20500_v48 = vld [vmem:[#allocation24_spill] sm:$0xff] }
 0xd2c   : > { %v13940_v23 = vpop.eup %13939 }
 0xd2d   : > { %10177 = vmatprep.mubr.bf16.mxu1 %v10042_v2  ;;  %v9990_v25 = vmul.f32 %v13940_v23, %v20496_v60  ;;  %v9989_v62 = vmul.f32 %v13940_v23, %v20499_v49  ;;  %v20501_v60 = vld [vmem:[#allocation41_spill] sm:$0xff] }
 0xd30   : > { %v13942_v32 = vpop.eup %13941 }
 0xd31   : > { %10178 = vmatmul.mubr.bf16.gmra.mrb[176].mxu1 %v10041_v34  ;;  %v9992_v37 = vmul.f32 %v13942_v32, %v20497_v61  ;;  %v9991_v47 = vmul.f32 %v13942_v32, %v20498_v9  ;;  %v9882_v3 = vpop.xlane.xlu0 %9881 }
 0xd33   : > { %v10044_v12 = vpack.c.bf16 %v9992_v37, %v9990_v25  ;;  %v10043_v53 = vpack.c.bf16 %v9991_v47, %v9989_v62  ;;  %v20502_v37 = vld [vmem:[#allocation37_spill] sm:$0xff] }
 0xd34   : > { %v13944_v20 = vpop.eup %13943 }
 0xd35   : > { %10185 = vmatprep.mubr.bf16.mxu1 %v10044_v12  ;;  %v8601_v24 = vpop.xlane.xlu0 %8600  ;;  %v8693_v23 = vmul.f32 %v13944_v20, %v20500_v48  ;;  %v8692_v25 = vmul.f32 %v13944_v20, %v20501_v60 }
 0xd39   : > { %10186 = vmatmul.mubr.bf16.gmra.mrb[180].mxu1 %v10043_v53  ;;  %v9888_v31 = vpop.xlane.xlu0 %9887 }
 0xd3e   : > { %v9645_v21 = vpop.xlane.xlu1 %9644 }
 0xd3f   : > { %v9709_v46 = vsub.f32 %v20434_v57, %v9645_v21  ;;  %v9710_v54 = vsub.f32 %v20435_v26, %v9645_v21  ;;  %v9894_v26 = vpop.xlane.xlu0 %9893 }
 0xd41   : > { %v9833_v51 = vmul.f32 1.442695, %v9709_v46  ;;  %v9835_v55 = vmul.f32 1.442695, %v9710_v54 }
 0xd42   : > { %v8592_v42 = vpop.xlane.xlu1 %8591 }
 0xd43   : > { %13945 = vpow2.f32 %v9833_v51  ;;  %v9900_v46 = vpop.xlane.xlu0 %9899 }
 0xd44   : > { %13947 = vpow2.f32 %v9835_v55 }
 0xd45   : > { %13949 = vrcp.f32 %v9882_v3  ;;  %v20503_v3 = vld [vmem:[#allocation18_spill] sm:$0xff] }
 0xd46   : > { %13951 = vrcp.f32 %v8592_v42  ;;  %v9879_v30 = vpop.xlane.xlu1 %9878  ;;  %v20504_v42 = vld [vmem:[#allocation57_spill] sm:$0xff] }
 0xd47   : > { %13953 = vrcp.f32 %v9879_v30 }
 0xd48   : > { %13955 = vrcp.f32 %v8601_v24 }
 0xd4a   : > { %v8598_v50 = vpop.xlane.xlu1 %8597 }
 0xd4b   : > { %13957 = vrcp.f32 %v8598_v50 }
 0xd4c   : > { %13959 = vrcp.f32 %v9888_v31 }
 0xd4d   : > { %v19241_v7 = vpop.eup %13945 }
 0xd4e   : > { %v19243_v57 = vpop.eup %13947  ;;  %v9885_v18 = vpop.xlane.xlu1 %9884 }
 0xd4f   : > { %v13950_v1 = vpop.eup %13949  ;;  %v9931_v2 = vadd.f32 %v19243_v57, %v19241_v7  ;;  %13961 = vrcp.f32 %v9885_v18  ;;  %v20505_v18 = vld [vmem:[#allocation45_spill] sm:$0xff] }
 0xd50   : > { %v13952_v27 = vpop.eup %13951  ;;  %13963 = vrcp.f32 %v9894_v26  ;;  %v9995_v9 = vmul.f32 %v13950_v1, %v20502_v37  ;;  %v9996_v21 = vmul.f32 %v13950_v1, %v20503_v3 }
 0xd51   : > { %9932 = vadd.xlane.f32.xlu1 %v9931_v2  ;;  %v8691_v34 = vmul.f32 %v13952_v27, %v18911_v6  ;;  %v8690_v32 = vmul.f32 %v13952_v27, %v18909_v44  ;;  %v13954_v61 = vpop.eup %13953 }
 0xd52   : > { %v9891_v47 = vpop.xlane.xlu1 %9890  ;;  %v13956_v12 = vpop.eup %13955  ;;  %v9993_v49 = vmul.f32 %v13954_v61, %v19019_v58  ;;  %v9994_v56 = vmul.f32 %v13954_v61, %v19025_v43 }
 0xd53   : > { %v8727_v62 = vpack.c.bf16 %v8693_v23, %v8691_v34  ;;  %13965 = vrcp.f32 %v9891_v47  ;;  %v8726_v53 = vpack.c.bf16 %v8692_v25, %v8690_v32  ;;  %v8697_v30 = vmul.f32 %v13956_v12, %v20504_v42 }
 0xd54   : > { %v10045_v6 = vpack.c.bf16 %v9995_v9, %v9993_v49  ;;  %v11965_v54 = vpop.f32.mrb[64].mxu0  ;;  %v10046_v55 = vpack.c.bf16 %v9996_v21, %v9994_v56  ;;  %v8696_v1 = vmul.f32 %v13956_v12, %v20505_v18  ;;  %v9906_v12 = vpop.xlane.xlu0 %9905 }
 0xd55   : > { %8922 = vmatprep.mubr.bf16.mxu0 %v8727_v62  ;;  %v13958_v44 = vpop.eup %13957  ;;  %v11966_v51 = vpop.f32.mrb[65].mxu0 }
 0xd56   : > { %8923 = vmatmul.mubr.bf16.gmra.mrb[120].mxu0 %v8726_v53  ;;  %v9897_v24 = vpop.xlane.xlu1 %9896  ;;  %v13960_v31 = vpop.eup %13959  ;;  %v11967_v58 = vadd.f32 %v11966_v51, %v11965_v54  ;;  %v8695_v20 = vmul.f32 %v13958_v44, %v18978_v4  ;;  %v8694_v43 = vmul.f32 %v13958_v44, %v18941_v22  ;;  %10193 = vmatprep.mubr.bf16.mxu1 %v10046_v55 }
 0xd57   : > { %v11968_v50 = vpop.f32.mrb[66].mxu0  ;;  %13967 = vrcp.f32 %v9897_v24  ;;  %10194 = vmatmul.mubr.bf16.gmra.mrb[184].mxu1 %v10045_v6  ;;  %v9999_v23 = vmul.f32 %v13960_v31, %v18998_v11  ;;  %v10000_v22 = vmul.f32 %v13960_v31, %v19003_v38 }
 0xd58   : > { %v11969_v26 = vpop.f32.mrb[67].mxu0  ;;  %13969 = vrcp.f32 %v9900_v46  ;;  %v8729_v27 = vpack.c.bf16 %v8697_v30, %v8695_v20  ;;  %v8728_v34 = vpack.c.bf16 %v8696_v1, %v8694_v43  ;;  %v9912_v21 = vpop.xlane.xlu0 %9911 }
 0xd59   : > { %v11970_v2 = vadd.f32 %v11969_v26, %v11968_v50  ;;  %v13962_v48 = vpop.eup %13961 }
 0xd5a   : > { %v13964_v32 = vpop.eup %13963  ;;  %v9997_v60 = vmul.f32 %v13962_v48, %v19066_v36  ;;  %8930 = vmatprep.mubr.bf16.mxu0 %v8729_v27  ;;  %v9998_v4 = vmul.f32 %v13962_v48, %v19071_v10  ;;  %v9903_v61 = vpop.xlane.xlu1 %9902  ;;  %v20507_v27 = vld [vmem:[#allocation28_spill] sm:$0xff] }
 0xd5b   : > { %v8939_v25 = vpack.c.bf16 %v11970_v2, %v11967_v58  ;;  %v10004_v11 = vmul.f32 %v13964_v32, %v19011_v0  ;;  %13971 = vrcp.f32 %v9903_v61  ;;  %v10003_v3 = vmul.f32 %v13964_v32, %v19009_v28  ;;  %v20506_v58 = vld [vmem:[#allocation23_spill] sm:$0xff] }
 0xd5c   : > { %v10047_v9 = vpack.c.bf16 %v9999_v23, %v9997_v60  ;;  %v10048_v47 = vpack.c.bf16 %v10000_v22, %v9998_v4  ;;  %13973 = vrcp.f32 %v9906_v12  ;;  %v9918_v50 = vpop.xlane.xlu0 %9917  ;;  %v20508_v60 = vld [vmem:[#allocation16_spill] sm:$0xff] }
 0xd5d   : > { %v13966_v37 = vpop.eup %13965 }
 0xd5e   : > { %8931 = vmatmul.mubr.bf16.gmra.mrb[124].mxu0 %v8728_v34  ;;  %v10002_v49 = vmul.f32 %v13966_v37, %v19113_v45  ;;  %10201 = vmatprep.mubr.bf16.mxu1 %v10048_v47  ;;  %v10001_v10 = vmul.f32 %v13966_v37, %v19105_v63  ;;  %v9909_v53 = vpop.xlane.xlu1 %9908 }
 0xd5f   : > { %12685 = vmatprep.mubr.msk.bf16.mxu0 %vm5321_vm7, %v8939_v25  ;;  %10202 = vmatmul.mubr.bf16.gmra.mrb[188].mxu1 %v10047_v9  ;;  %13975 = vrcp.f32 %v9909_v53 }
 0xd60   : > { %v10050_v36 = vpack.c.bf16 %v10004_v11, %v10002_v49  ;;  %v10049_v6 = vpack.c.bf16 %v10003_v3, %v10001_v10  ;;  %13977 = vrcp.f32 %v9912_v21  ;;  %v9924_v34 = vpop.xlane.xlu0 %9923 }
 0xd61   : > { %v13968_v62 = vpop.eup %13967  ;;  %v11971_v45 = vpop.f32.mrb[68].mxu0 }
 0xd62   : > { %10209 = vmatprep.mubr.bf16.mxu1 %v10050_v36  ;;  %v13970_v38 = vpop.eup %13969  ;;  %v10006_v56 = vmul.f32 %v13968_v62, %v19125_v13  ;;  %v11972_v0 = vpop.f32.mrb[69].mxu0  ;;  %v10005_v13 = vmul.f32 %v13968_v62, %v19122_v16  ;;  %v20509_v36 = vld [vmem:[#allocation34_spill] sm:$0xff] }
 0xd63   : > { %v10008_v46 = vmul.f32 %v13970_v38, %v19044_v5  ;;  %v11973_v54 = vadd.f32 %v11972_v0, %v11971_v45  ;;  %v11974_v44 = vpop.f32.mrb[70].mxu0  ;;  %v9915_v30 = vpop.xlane.xlu1 %9914  ;;  %v10007_v5 = vmul.f32 %v13970_v38, %v20506_v58 }
 0xd64   : > { %v11975_v51 = vpop.f32.mrb[71].mxu0  ;;  %13979 = vrcp.f32 %v9915_v30 }
 0xd65   : > { %v10052_v55 = vpack.c.bf16 %v10008_v46, %v10006_v56  ;;  %v13972_v24 = vpop.eup %13971  ;;  %v11976_v42 = vadd.f32 %v11975_v51, %v11974_v44  ;;  %v10051_v43 = vpack.c.bf16 %v10007_v5, %v10005_v13  ;;  %13981 = vrcp.f32 %v9918_v50  ;;  %v9930_v10 = vpop.xlane.xlu0 %9929 }
 0xd66   : > { %v13974_v63 = vpop.eup %13973  ;;  %v10010_v31 = vmul.f32 %v13972_v24, %v19139_v15  ;;  %v10009_v16 = vmul.f32 %v13972_v24, %v19130_v19 }
 0xd67   : > { %10210 = vmatmul.mubr.bf16.gmra.mrb[192].mxu1 %v10049_v6  ;;  %v8940_v28 = vpack.c.bf16 %v11976_v42, %v11973_v54  ;;  %v10012_v20 = vmul.f32 %v13974_v63, %v19063_v35  ;;  %v9921_v2 = vpop.xlane.xlu1 %9920  ;;  %v10011_v48 = vmul.f32 %v13974_v63, %v20507_v27 }
 0xd68   : > { %10217 = vmatprep.mubr.bf16.mxu1 %v10052_v55  ;;  %13983 = vrcp.f32 %v9921_v2  ;;  %v20510_v55 = vld [vmem:[#allocation21_spill] sm:$0xff]  ;;  %v20513_v2 = vld [vmem:[#allocation15_spill] sm:$0xff] }
 0xd69   : > { %12686 = vmatmul.mubr.msk.bf16.vlgmr.msra.gmra.mrb[32].mxu0 %vm5321_vm7, %v8940_v28  ;;  %v10054_v26 = vpack.c.bf16 %v10012_v20, %v10010_v31  ;;  %v13976_v18 = vpop.eup %13975  ;;  %v10053_v25 = vpack.c.bf16 %v10011_v48, %v10009_v16  ;;  %13985 = vrcp.f32 %v9924_v34  ;;  %v20511_v20 = vld [vmem:[#allocation8_spill] sm:$0xff] }
 0xd6a   : > { %v13978_v1 = vpop.eup %13977  ;;  %v10014_v15 = vmul.f32 %v13976_v18, %v19150_v59  ;;  %v10013_v59 = vmul.f32 %v13976_v18, %v19120_v41  ;;  %v20512_v18 = vld [vmem:[#allocation82_spill] sm:$0xff] }
 0xd6b   : > { %v10016_v35 = vmul.f32 %v13978_v1, %v20508_v60  ;;  %v9927_v49 = vpop.xlane.xlu1 %9926  ;;  %v10015_v62 = vmul.f32 %v13978_v1, %v20509_v36 }
 0xd6c   : > { %13987 = vrcp.f32 %v9927_v49 }
 0xd6d   : > { %v10056_v37 = vpack.c.bf16 %v10016_v35, %v10014_v15  ;;  %v10055_v3 = vpack.c.bf16 %v10015_v62, %v10013_v59  ;;  %13989 = vrcp.f32 %v9930_v10  ;;  %v20514_v35 = vld [vmem:[#allocation32_spill] sm:$0xff] }
 0xd6e   : > { %v13980_v9 = vpop.eup %13979 }
 0xd6f   : > { %10218 = vmatmul.mubr.bf16.gmra.mrb[196].mxu1 %v10051_v43  ;;  %v13982_v19 = vpop.eup %13981  ;;  %v10018_v11 = vmul.f32 %v13980_v9, %v19164_v33  ;;  %v10017_v54 = vmul.f32 %v13980_v9, %v19159_v14 }
 0xd70   : > { %10225 = vmatprep.mubr.bf16.mxu1 %v10054_v26  ;;  %v10020_v56 = vmul.f32 %v13982_v19, %v19098_v17  ;;  %v10019_v24 = vmul.f32 %v13982_v19, %v20510_v55 }
 0xd72   : > { %v10058_v46 = vpack.c.bf16 %v10020_v56, %v10018_v11  ;;  %v13984_v41 = vpop.eup %13983  ;;  %v10057_v13 = vpack.c.bf16 %v10019_v24, %v10017_v54 }
 0xd73   : > { %v13986_v33 = vpop.eup %13985  ;;  %v10022_v51 = vmul.f32 %v13984_v41, %v19166_v52  ;;  %v10021_v52 = vmul.f32 %v13984_v41, %v20511_v20 }
 0xd74   : > { %v11977_v23 = vpop.f32.mrb[72].mxu0  ;;  %v10024_v63 = vmul.f32 %v13986_v33, %v19146_v8  ;;  %v10023_v1 = vmul.f32 %v13986_v33, %v20512_v18 }
 0xd75   : > { %v11978_v32 = vpop.f32.mrb[73].mxu0 }
 0xd76   : > { %v11979_v4 = vadd.f32 %v11978_v32, %v11977_v23  ;;  %v11980_v22 = vpop.f32.mrb[74].mxu0  ;;  %v10060_v58 = vpack.c.bf16 %v10024_v63, %v10022_v51  ;;  %v13988_v5 = vpop.eup %13987  ;;  %v10059_v27 = vpack.c.bf16 %v10023_v1, %v10021_v52 }
 0xd77   : > { %v11981_v61 = vpop.f32.mrb[75].mxu0  ;;  %10226 = vmatmul.mubr.bf16.gmra.mrb[200].mxu1 %v10053_v25  ;;  %v13990_v14 = vpop.eup %13989  ;;  %v10026_v26 = vmul.f32 %v13988_v5, %v19184_v29  ;;  %v10025_v25 = vmul.f32 %v13988_v5, %v20514_v35  ;;  %v20515_v29 = vld [vmem:[#allocation81_spill] sm:$0xff]  ;;  %v10290_v5 = vld [vmem:[%s19480_s5 + $0xc] sm:$0xf] }
 0xd78   : > { %v11982_v47 = vadd.f32 %v11981_v61, %v11980_v22  ;;  %10233 = vmatprep.mubr.bf16.mxu1 %v10056_v37  ;;  %v10028_v15 = vmul.f32 %v13990_v14, %v20513_v2  ;;  %v10027_v22 = vmul.f32 %v13990_v14, %v20515_v29  ;;  %13138 = vmatprep.subr.msk.bf16.mxu0 %vm7488_vm8, %v10290_v5  ;;  %v10340_v20 = vsel %vm7488_vm8, %v10290_v5, 0 }
 0xd79   : > { %12718 = vmatpush3.bf16.msra.mxu0 %v10340_v20 }
 0xd7a   : > { %v8941_v12 = vpack.c.bf16 %v11982_v47, %v11979_v4  ;;  %v10062_v32 = vpack.c.bf16 %v10028_v15, %v10026_v26  ;;  %v10061_v9 = vpack.c.bf16 %v10027_v22, %v10025_v25 }
 0xd7c   : > { %12689 = vmatprep.mubr.msk.bf16.mxu0 %vm5321_vm7, %v8941_v12 }
 0xd7d   : > { %v11983_v38 = vpop.f32.mrb[76].mxu0 }
 0xd7e   : > { %v11984_v53 = vpop.f32.mrb[77].mxu0 }
 0xd7f   : > { %v11985_v45 = vadd.f32 %v11984_v53, %v11983_v38  ;;  %v11986_v21 = vpop.f32.mrb[78].mxu0  ;;  %10234 = vmatmul.mubr.bf16.gmra.mrb[204].mxu1 %v10055_v3 }
 0xd80   : > { %v11987_v0 = vpop.f32.mrb[79].mxu0  ;;  %10241 = vmatprep.mubr.bf16.mxu1 %v10058_v46 }
 0xd81   : > { %v11988_v6 = vadd.f32 %v11987_v0, %v11986_v21 }
 0xd83   : > { %v8942_v44 = vpack.c.bf16 %v11988_v6, %v11985_v45 }
 0xd85   : > { %v11989_v17 = vpop.f32.mrb[80].mxu0  ;;  %12690 = vmatmul.mubr.msk.bf16.gmra.mrb[36].mxu0 %vm5321_vm7, %v8942_v44 }
 0xd86   : > { %v11990_v42 = vpop.f32.mrb[81].mxu0 }
 0xd87   : > { %v11991_v28 = vadd.f32 %v11990_v42, %v11989_v17  ;;  %v11992_v30 = vpop.f32.mrb[82].mxu0  ;;  %10242 = vmatmul.mubr.bf16.gmra.mrb[208].mxu1 %v10057_v13 }
 0xd88   : > { %v11993_v31 = vpop.f32.mrb[83].mxu0  ;;  %10249 = vmatprep.mubr.bf16.mxu1 %v10060_v58 }
 0xd89   : > { %v11994_v50 = vadd.f32 %v11993_v31, %v11992_v30 }
 0xd8b   : > { %v8943_v43 = vpack.c.bf16 %v11994_v50, %v11991_v28 }
 0xd8d   : > { %v11995_v16 = vpop.f32.mrb[84].mxu0  ;;  %12693 = vmatprep.mubr.msk.bf16.mxu0 %vm5321_vm7, %v8943_v43 }
 0xd8e   : > { %v11996_v8 = vpop.f32.mrb[85].mxu0 }
 0xd8f   : > { %v11997_v48 = vadd.f32 %v11996_v8, %v11995_v16  ;;  %v11998_v23 = vpop.f32.mrb[86].mxu0  ;;  %10250 = vmatmul.mubr.bf16.gmra.mrb[212].mxu1 %v10059_v27 }
 0xd90   : > { %v11999_v34 = vpop.f32.mrb[87].mxu0  ;;  %10257 = vmatprep.mubr.bf16.mxu1 %v10062_v32 }
 0xd91   : > { %v12000_v60 = vadd.f32 %v11999_v34, %v11998_v23 }
 0xd93   : > { %v8944_v4 = vpack.c.bf16 %v12000_v60, %v11997_v48 }
 0xd95   : > { %v12001_v61 = vpop.f32.mrb[88].mxu0  ;;  %12694 = vmatmul.mubr.msk.bf16.gmra.mrb[40].mxu0 %vm5321_vm7, %v8944_v4 }
 0xd96   : > { %v12002_v37 = vpop.f32.mrb[89].mxu0 }
 0xd97   : > { %v12003_v47 = vadd.f32 %v12002_v37, %v12001_v61  ;;  %v12004_v19 = vpop.f32.mrb[90].mxu0  ;;  %10258 = vmatmul.mubr.bf16.gmra.mrb[216].mxu1 %v10061_v9 }
 0xd98   : > { %v12005_v59 = vpop.f32.mrb[91].mxu0 }
 0xd99   : > { %v12006_v12 = vadd.f32 %v12005_v59, %v12004_v19 }
 0xd9b   : > { %v8945_v49 = vpack.c.bf16 %v12006_v12, %v12003_v47 }
 0xd9d   : > { %v12007_v11 = vpop.f32.mrb[92].mxu0  ;;  %12697 = vmatprep.mubr.msk.bf16.mxu0 %vm5321_vm7, %v8945_v49 }
 0xd9e   : > { %v12008_v36 = vpop.f32.mrb[93].mxu0 }
 0xd9f   : > { %v12009_v62 = vadd.f32 %v12008_v36, %v12007_v11  ;;  %v12010_v38 = vpop.f32.mrb[94].mxu0 }
 0xda0   : > { %v12011_v10 = vpop.f32.mrb[95].mxu0 }
 0xda1   : > { %v12012_v53 = vadd.f32 %v12011_v10, %v12010_v38 }
 0xda3   : > { %v8946_v56 = vpack.c.bf16 %v12012_v53, %v12009_v62 }
 0xda5   : > { %v12013_v3 = vpop.f32.mrb[96].mxu0  ;;  %12698 = vmatmul.mubr.msk.bf16.gmra.mrb[44].mxu0 %vm5321_vm7, %v8946_v56  ;;  %v9936_v16 = vpop.xlane.xlu0 %9935 }
 0xda6   : > { %v12014_v45 = vpop.f32.mrb[97].mxu0  ;;  %13991 = vrcp.f32 %v9936_v16 }
 0xda7   : > { %v12015_v21 = vadd.f32 %v12014_v45, %v12013_v3  ;;  %v12016_v0 = vpop.f32.mrb[98].mxu0 }
 0xda8   : > { %v12017_v46 = vpop.f32.mrb[99].mxu0 }
 0xda9   : > { %v12018_v41 = vadd.f32 %v12017_v46, %v12016_v0 }
 0xdab   : > { %v8947_v6 = vpack.c.bf16 %v12018_v41, %v12015_v21 }
 0xdad   : > { %v12019_v33 = vpop.f32.mrb[100].mxu0  ;;  %12701 = vmatprep.mubr.msk.bf16.mxu0 %vm5321_vm7, %v8947_v6 }
 0xdae   : > { %v12020_v54 = vpop.f32.mrb[101].mxu0 }
 0xdaf   : > { %v12021_v44 = vadd.f32 %v12020_v54, %v12019_v33  ;;  %v12022_v51 = vpop.f32.mrb[102].mxu0 }
 0xdb0   : > { %v12023_v55 = vpop.f32.mrb[103].mxu0  ;;  %v13992_v27 = vpop.eup %13991 }
 0xdb1   : > { %v12024_v24 = vadd.f32 %v12023_v55, %v12022_v51  ;;  %v10031_v35 = vmul.f32 %v13992_v27, %v19209_v39  ;;  %v10032_v22 = vmul.f32 %v13992_v27, %v19212_v40 }
 0xdb3   : > { %v8948_v17 = vpack.c.bf16 %v12024_v24, %v12021_v44 }
 0xdb5   : > { %v12025_v42 = vpop.f32.mrb[104].mxu0  ;;  %12702 = vmatmul.mubr.msk.bf16.gmra.mrb[48].mxu0 %vm5321_vm7, %v8948_v17 }
 0xdb6   : > { %v12026_v63 = vpop.f32.mrb[105].mxu0 }
 0xdb7   : > { %v12027_v13 = vadd.f32 %v12026_v63, %v12025_v42  ;;  %v12028_v28 = vpop.f32.mrb[106].mxu0 }
 0xdb8   : > { %v12029_v30 = vpop.f32.mrb[107].mxu0 }
 0xdb9   : > { %v12030_v31 = vadd.f32 %v12029_v30, %v12028_v28 }
 0xdbb   : > { %v8949_v58 = vpack.c.bf16 %v12030_v31, %v12027_v13 }
 0xdbd   : > { %v12031_v50 = vpop.f32.mrb[108].mxu0  ;;  %12705 = vmatprep.mubr.msk.bf16.mxu0 %vm5321_vm7, %v8949_v58 }
 0xdbe   : > { %v12032_v14 = vpop.f32.mrb[109].mxu0 }
 0xdbf   : > { %v12033_v52 = vadd.f32 %v12032_v14, %v12031_v50  ;;  %v12034_v43 = vpop.f32.mrb[110].mxu0 }
 0xdc0   : > { %v12035_v26 = vpop.f32.mrb[111].mxu0 }
 0xdc1   : > { %v12036_v18 = vadd.f32 %v12035_v26, %v12034_v43 }
 0xdc3   : > { %v8950_v1 = vpack.c.bf16 %v12036_v18, %v12033_v52 }
 0xdc5   : > { %12706 = vmatmul.mubr.msk.bf16.gmra.mrb[52].mxu0 %vm5321_vm7, %v8950_v1 }
 0xdde   : > { %v9933_v8 = vpop.xlane.xlu1 %9932 }
 0xddf   : > { %13993 = vrcp.f32 %v9933_v8 }
 0xde4   : > { %v12142_v2 = vpop.f32.mrb[160].mxu1 }
 0xde5   : > { %v12143_v15 = vpop.f32.mrb[161].mxu1 }
 0xde6   : > { %v19308_v48 = vadd.f32 %v12143_v15, %v12142_v2  ;;  %v12145_v23 = vpop.f32.mrb[162].mxu1 }
 0xde7   : > { %v12146_v34 = vpop.f32.mrb[163].mxu1 }
 0xde8   : > { %v19310_v32 = vadd.f32 %v12146_v34, %v12145_v23 }
 0xde9   : > { %v13994_v60 = vpop.eup %13993 }
 0xdea   : > { %v10029_v25 = vmul.f32 %v13994_v60, %v19241_v7  ;;  %v10274_v4 = vpack.c.bf16 %v19310_v32, %v19308_v48  ;;  %v10030_v29 = vmul.f32 %v13994_v60, %v19243_v57 }
 0xdec   : > { %v10063_v61 = vpack.c.bf16 %v10031_v35, %v10029_v25  ;;  %v12148_v37 = vpop.f32.mrb[164].mxu1  ;;  %v10064_v9 = vpack.c.bf16 %v10032_v22, %v10030_v29 }
 0xded   : > { %v12149_v47 = vpop.f32.mrb[165].mxu1 }
 0xdee   : > { %v19318_v19 = vadd.f32 %v12149_v47, %v12148_v37  ;;  %10265 = vmatprep.mubr.bf16.mxu1 %v10064_v9  ;;  %v12151_v59 = vpop.f32.mrb[166].mxu1 }
 0xdef   : > { %10266 = vmatmul.mubr.bf16.gmra.mrb[220].mxu1 %v10063_v61  ;;  %v12152_v12 = vpop.f32.mrb[167].mxu1 }
 0xdf0   : > { %v19320_v39 = vadd.f32 %v12152_v12, %v12151_v59 }
 0xdf1   : > { %v12037_v49 = vpop.f32.mrb[112].mxu0 }
 0xdf2   : > { %v10275_v7 = vpack.c.bf16 %v19320_v39, %v19318_v19  ;;  %v12038_v11 = vpop.f32.mrb[113].mxu0 }
 0xdf3   : > { %v12039_v57 = vadd.f32 %v12038_v11, %v12037_v49  ;;  %v12040_v36 = vpop.f32.mrb[114].mxu0 }
 0xdf4   : > { %v12154_v40 = vpop.f32.mrb[168].mxu1  ;;  %v12041_v62 = vpop.f32.mrb[115].mxu0 }
 0xdf5   : > { %v12155_v38 = vpop.f32.mrb[169].mxu1  ;;  %v12042_v10 = vadd.f32 %v12041_v62, %v12040_v36 }
 0xdf6   : > { %v19324_v53 = vadd.f32 %v12155_v38, %v12154_v40  ;;  %v12157_v56 = vpop.f32.mrb[170].mxu1 }
 0xdf7   : > { %v12158_v3 = vpop.f32.mrb[171].mxu1  ;;  %v8951_v45 = vpack.c.bf16 %v12042_v10, %v12039_v57 }
 0xdf8   : > { %v19326_v21 = vadd.f32 %v12158_v3, %v12157_v56 }
 0xdf9   : > { %v12043_v46 = vpop.f32.mrb[116].mxu0  ;;  %12709 = vmatprep.mubr.msk.bf16.mxu0 %vm5321_vm7, %v8951_v45 }
 0xdfa   : > { %v10276_v0 = vpack.c.bf16 %v19326_v21, %v19324_v53  ;;  %v12044_v41 = vpop.f32.mrb[117].mxu0 }
 0xdfb   : > { %v12045_v6 = vadd.f32 %v12044_v41, %v12043_v46  ;;  %v12046_v33 = vpop.f32.mrb[118].mxu0 }
 0xdfc   : > { %v12160_v54 = vpop.f32.mrb[172].mxu1  ;;  %v12047_v44 = vpop.f32.mrb[119].mxu0 }
 0xdfd   : > { %v12161_v51 = vpop.f32.mrb[173].mxu1  ;;  %v12048_v55 = vadd.f32 %v12047_v44, %v12046_v33 }
 0xdfe   : > { %v19331_v24 = vadd.f32 %v12161_v51, %v12160_v54  ;;  %v12163_v17 = vpop.f32.mrb[174].mxu1 }
 0xdff   : > { %v12164_v42 = vpop.f32.mrb[175].mxu1  ;;  %v8952_v63 = vpack.c.bf16 %v12048_v55, %v12045_v6 }
 0xe00   : > { %v19333_v13 = vadd.f32 %v12164_v42, %v12163_v17 }
 0xe01   : > { %12710 = vmatmul.mubr.msk.bf16.gmra.mrb[56].mxu0 %vm5321_vm7, %v8952_v63 }
 0xe02   : > { %v10277_v28 = vpack.c.bf16 %v19333_v13, %v19331_v24 }
 0xe04   : > { %v12166_v30 = vpop.f32.mrb[176].mxu1 }
 0xe05   : > { %v12167_v31 = vpop.f32.mrb[177].mxu1 }
 0xe06   : > { %v12168_v58 = vadd.f32 %v12167_v31, %v12166_v30  ;;  %v12169_v5 = vpop.f32.mrb[178].mxu1 }
 0xe07   : > { %v12170_v50 = vpop.f32.mrb[179].mxu1 }
 0xe08   : > { %v12171_v14 = vadd.f32 %v12170_v50, %v12169_v5 }
 0xe0a   : > { %v10278_v20 = vpack.c.bf16 %v12171_v14, %v12168_v58 }
 0xe0c   : > { %v12172_v52 = vpop.f32.mrb[180].mxu1 }
 0xe0d   : > { %v12173_v43 = vpop.f32.mrb[181].mxu1 }
 0xe0e   : > { %v12174_v26 = vadd.f32 %v12173_v43, %v12172_v52  ;;  %v12175_v18 = vpop.f32.mrb[182].mxu1 }
 0xe0f   : > { %v12176_v1 = vpop.f32.mrb[183].mxu1 }
 0xe10   : > { %v12177_v16 = vadd.f32 %v12176_v1, %v12175_v18 }
 0xe12   : > { %v10279_v8 = vpack.c.bf16 %v12177_v16, %v12174_v26 }
 0xe29   : > { %v12049_v2 = vpop.f32.mrb[120].mxu0 }
 0xe2a   : > { %v12050_v15 = vpop.f32.mrb[121].mxu0  ;;  %v12178_v60 = vpop.f32.mrb[184].mxu1 }
 0xe2b   : > { %v12051_v27 = vadd.f32 %v12050_v15, %v12049_v2  ;;  %v12052_v23 = vpop.f32.mrb[122].mxu0  ;;  %v12179_v25 = vpop.f32.mrb[185].mxu1 }
 0xe2c   : > { %v12053_v34 = vpop.f32.mrb[123].mxu0  ;;  %v12180_v29 = vadd.f32 %v12179_v25, %v12178_v60  ;;  %v12181_v22 = vpop.f32.mrb[186].mxu1 }
 0xe2d   : > { %v12054_v35 = vadd.f32 %v12053_v34, %v12052_v23  ;;  %v12182_v37 = vpop.f32.mrb[187].mxu1 }
 0xe2e   : > { %v12183_v9 = vadd.f32 %v12182_v37, %v12181_v22 }
 0xe2f   : > { %v8953_v61 = vpack.c.bf16 %v12054_v35, %v12051_v27 }
 0xe30   : > { %v10280_v59 = vpack.c.bf16 %v12183_v9, %v12180_v29 }
 0xe31   : > { %v12055_v47 = vpop.f32.mrb[124].mxu0  ;;  %12713 = vmatprep.mubr.msk.bf16.mxu0 %vm5321_vm7, %v8953_v61 }
 0xe32   : > { %v12056_v12 = vpop.f32.mrb[125].mxu0  ;;  %v12184_v36 = vpop.f32.mrb[188].mxu1 }
 0xe33   : > { %v12057_v49 = vadd.f32 %v12056_v12, %v12055_v47  ;;  %v12058_v11 = vpop.f32.mrb[126].mxu0  ;;  %v12185_v62 = vpop.f32.mrb[189].mxu1 }
 0xe34   : > { %v12059_v57 = vpop.f32.mrb[127].mxu0  ;;  %v12186_v38 = vadd.f32 %v12185_v62, %v12184_v36  ;;  %v12187_v10 = vpop.f32.mrb[190].mxu1 }
 0xe35   : > { %v12060_v40 = vadd.f32 %v12059_v57, %v12058_v11  ;;  %v12188_v3 = vpop.f32.mrb[191].mxu1 }
 0xe36   : > { %v12189_v45 = vadd.f32 %v12188_v3, %v12187_v10 }
 0xe37   : > { %v8954_v56 = vpack.c.bf16 %v12060_v40, %v12057_v49  ;;  %v19369_v40 = vld [vmem:[%s19481_s6] ss:$0 sm:$0xff] }
 0xe38   : > { %v10281_v46 = vpack.c.bf16 %v12189_v45, %v12186_v38 }
 0xe39   : > { %12714 = vmatmul.mubr.msk.bf16.gmra.mrb[60].mxu0 %vm5321_vm7, %v8954_v56 }
 0xe3a   : > { %12719 = vmatprep.mubr.msk.bf16.mxu0 %vm5321_vm7, %v10274_v4  ;;  %v12190_v41 = vpop.f32.mrb[192].mxu1 }
 0xe3b   : > { %v12191_v6 = vpop.f32.mrb[193].mxu1 }
 0xe3c   : > { %v12192_v33 = vadd.f32 %v12191_v6, %v12190_v41  ;;  %v12193_v54 = vpop.f32.mrb[194].mxu1 }
 0xe3d   : > { %v12194_v44 = vpop.f32.mrb[195].mxu1 }
 0xe3e   : > { %v12195_v51 = vadd.f32 %v12194_v44, %v12193_v54 }
 0xe40   : > { %v10282_v55 = vpack.c.bf16 %v12195_v51, %v12192_v33 }
 0xe41   : > { %12720 = vmatmul.mubr.msk.bf16.vlgmr.msra.gmra.mrb[32].mxu0 %vm5321_vm7, %v10275_v7 }
 0xe42   : > { %12723 = vmatprep.mubr.msk.bf16.mxu0 %vm5321_vm7, %v10276_v0  ;;  %v12196_v48 = vpop.f32.mrb[196].mxu1 }
 0xe43   : > { %v12197_v32 = vpop.f32.mrb[197].mxu1 }
 0xe44   : > { %v12198_v4 = vadd.f32 %v12197_v32, %v12196_v48  ;;  %v12199_v24 = vpop.f32.mrb[198].mxu1 }
 0xe45   : > { %v12200_v17 = vpop.f32.mrb[199].mxu1 }
 0xe46   : > { %v12201_v42 = vadd.f32 %v12200_v17, %v12199_v24 }
 0xe48   : > { %v10283_v63 = vpack.c.bf16 %v12201_v42, %v12198_v4 }
 0xe49   : > { %12724 = vmatmul.mubr.msk.bf16.gmra.mrb[36].mxu0 %vm5321_vm7, %v10277_v28 }
 0xe4a   : > { %12727 = vmatprep.mubr.msk.bf16.mxu0 %vm5321_vm7, %v10278_v20  ;;  %v12202_v19 = vpop.f32.mrb[200].mxu1 }
 0xe4b   : > { %v12203_v39 = vpop.f32.mrb[201].mxu1 }
 0xe4c   : > { %v12204_v7 = vadd.f32 %v12203_v39, %v12202_v19  ;;  %v12205_v13 = vpop.f32.mrb[202].mxu1 }
 0xe4d   : > { %v12206_v30 = vpop.f32.mrb[203].mxu1 }
 0xe4e   : > { %v12207_v31 = vadd.f32 %v12206_v30, %v12205_v13 }
 0xe50   : > { %v10284_v53 = vpack.c.bf16 %v12207_v31, %v12204_v7 }
 0xe51   : > { %12728 = vmatmul.mubr.msk.bf16.gmra.mrb[40].mxu0 %vm5321_vm7, %v10279_v8 }
 0xe52   : > { %12731 = vmatprep.mubr.msk.bf16.mxu0 %vm5321_vm7, %v10280_v59  ;;  %v12208_v21 = vpop.f32.mrb[204].mxu1 }
 0xe53   : > { %v12209_v0 = vpop.f32.mrb[205].mxu1 }
 0xe54   : > { %v12210_v58 = vadd.f32 %v12209_v0, %v12208_v21  ;;  %v12211_v5 = vpop.f32.mrb[206].mxu1 }
 0xe55   : > { %v12212_v50 = vpop.f32.mrb[207].mxu1 }
 0xe56   : > { %v12213_v28 = vadd.f32 %v12212_v50, %v12211_v5 }
 0xe58   : > { %v10285_v14 = vpack.c.bf16 %v12213_v28, %v12210_v58 }
 0xe59   : > { %12732 = vmatmul.mubr.msk.bf16.gmra.mrb[44].mxu0 %vm5321_vm7, %v10281_v46 }
 0xe5a   : > { %12735 = vmatprep.mubr.msk.bf16.mxu0 %vm5321_vm7, %v10282_v55  ;;  %v12214_v20 = vpop.f32.mrb[208].mxu1 }
 0xe5b   : > { %v12215_v52 = vpop.f32.mrb[209].mxu1 }
 0xe5c   : > { %v12216_v43 = vadd.f32 %v12215_v52, %v12214_v20  ;;  %v12217_v26 = vpop.f32.mrb[210].mxu1 }
 0xe5d   : > { %v12218_v18 = vpop.f32.mrb[211].mxu1 }
 0xe5e   : > { %v12219_v1 = vadd.f32 %v12218_v18, %v12217_v26 }
 0xe60   : > { %v10286_v16 = vpack.c.bf16 %v12219_v1, %v12216_v43 }
 0xe61   : > { %12736 = vmatmul.mubr.msk.bf16.gmra.mrb[48].mxu0 %vm5321_vm7, %v10283_v63 }
 0xe62   : > { %12739 = vmatprep.mubr.msk.bf16.mxu0 %vm5321_vm7, %v10284_v53  ;;  %v12220_v8 = vpop.f32.mrb[212].mxu1 }
 0xe63   : > { %v12221_v2 = vpop.f32.mrb[213].mxu1 }
 0xe64   : > { %v12222_v15 = vadd.f32 %v12221_v2, %v12220_v8  ;;  %v12223_v27 = vpop.f32.mrb[214].mxu1 }
 0xe65   : > { %v12224_v23 = vpop.f32.mrb[215].mxu1 }
 0xe66   : > { %v12225_v34 = vadd.f32 %v12224_v23, %v12223_v27 }
 0xe68   : > { %v10287_v60 = vpack.c.bf16 %v12225_v34, %v12222_v15 }
 0xe69   : > { %12740 = vmatmul.mubr.msk.bf16.gmra.mrb[52].mxu0 %vm5321_vm7, %v10285_v14 }
 0xe6a   : > { %12743 = vmatprep.mubr.msk.bf16.mxu0 %vm5321_vm7, %v10286_v16  ;;  %v12226_v35 = vpop.f32.mrb[216].mxu1 }
 0xe6b   : > { %v12227_v25 = vpop.f32.mrb[217].mxu1 }
 0xe6c   : > { %v12228_v29 = vadd.f32 %v12227_v25, %v12226_v35  ;;  %v12229_v22 = vpop.f32.mrb[218].mxu1 }
 0xe6d   : > { %v12230_v61 = vpop.f32.mrb[219].mxu1 }
 0xe6e   : > { %v12231_v37 = vadd.f32 %v12230_v61, %v12229_v22 }
 0xe70   : > { %v10288_v9 = vpack.c.bf16 %v12231_v37, %v12228_v29 }
 0xe71   : > { %12744 = vmatmul.mubr.msk.bf16.gmra.mrb[56].mxu0 %vm5321_vm7, %v10287_v60 }
 0xe72   : > { %12747 = vmatprep.mubr.msk.bf16.mxu0 %vm5321_vm7, %v10288_v9 }
 0xec2   : > { %v12232_v47 = vpop.f32.mrb[220].mxu1 }
 0xec3   : > { %v12233_v59 = vpop.f32.mrb[221].mxu1 }
 0xec4   : > { %v12234_v12 = vadd.f32 %v12233_v59, %v12232_v47  ;;  %v12235_v49 = vpop.f32.mrb[222].mxu1 }
 0xec5   : > { %v12236_v11 = vpop.f32.mrb[223].mxu1 }
 0xec6   : > { %v12237_v57 = vadd.f32 %v12236_v11, %v12235_v49 }
 0xec8   : > { %v10289_v36 = vpack.c.bf16 %v12237_v57, %v12234_v12 }
 0xeca   : > { %12748 = vmatmul.mubr.msk.bf16.gmra.mrb[60].mxu0 %vm5321_vm7, %v10289_v36 }
 0xf14   : > { %v12721_v62 = vpop.f32.mrb[32].mxu0 }
 0xf15   : > { %v10544_v38 = vadd.f32 %v12721_v62, %v19369_v40  ;;  %v10376_v10 = vpop.f32.mrb[33].mxu0 }
 0xf16   : > { %v10542_v56 = vadd.f32 %v19369_v40, %v10376_v10  ;;  %v12722_v3 = vpop.f32.mrb[34].mxu0 }
 0xf17   : > { %10576 = vst.msk [vmem:[%s19374_s13 + $0x10] sm:$0xff] %vm783_vm3, %v10544_v38  ;;  %v10545_v45 = vadd.f32 %v12722_v3, %v19369_v40  ;;  %v10379_v46 = vpop.f32.mrb[35].mxu0 }
 0xf18   : > { %10574 = vst.msk [vmem:[%s19374_s13] sm:$0xff] %vm783_vm3, %v10542_v56  ;;  %v10543_v41 = vadd.f32 %v19369_v40, %v10379_v46 }
 0xf19   : > { %10577 = vst.msk [vmem:[%s19374_s13 + $0x18] sm:$0xff] %vm783_vm3, %v10545_v45 }
 0xf1a   : > { %10575 = vst.msk [vmem:[%s19374_s13 + $0x8] sm:$0xff] %vm783_vm3, %v10543_v41 }
 0xf1c   : > { %v12725_v6 = vpop.f32.mrb[36].mxu0 }
 0xf1d   : > { %v10548_v33 = vadd.f32 %v12725_v6, %v19369_v40  ;;  %v10392_v54 = vpop.f32.mrb[37].mxu0 }
 0xf1e   : > { %v10546_v44 = vadd.f32 %v19369_v40, %v10392_v54  ;;  %v12726_v51 = vpop.f32.mrb[38].mxu0 }
 0xf1f   : > { %10580 = vst.msk [vmem:[%s19374_s13 + $0x30] sm:$0xff] %vm783_vm3, %v10548_v33  ;;  %v10549_v55 = vadd.f32 %v12726_v51, %v19369_v40  ;;  %v10395_v48 = vpop.f32.mrb[39].mxu0 }
 0xf20   : > { %10578 = vst.msk [vmem:[%s19374_s13 + $0x20] sm:$0xff] %vm783_vm3, %v10546_v44  ;;  %v10547_v32 = vadd.f32 %v19369_v40, %v10395_v48 }
 0xf21   : > { %10581 = vst.msk [vmem:[%s19374_s13 + $0x38] sm:$0xff] %vm783_vm3, %v10549_v55 }
 0xf22   : > { %10579 = vst.msk [vmem:[%s19374_s13 + $0x28] sm:$0xff] %vm783_vm3, %v10547_v32 }
 0xf24   : > { %v12729_v4 = vpop.f32.mrb[40].mxu0 }
 0xf25   : > { %v10552_v24 = vadd.f32 %v12729_v4, %v19369_v40  ;;  %v10408_v17 = vpop.f32.mrb[41].mxu0 }
 0xf26   : > { %v10550_v42 = vadd.f32 %v19369_v40, %v10408_v17  ;;  %v12730_v63 = vpop.f32.mrb[42].mxu0 }
 0xf27   : > { %10584 = vst.msk [vmem:[%s19374_s13 + $0x50] sm:$0xff] %vm783_vm3, %v10552_v24  ;;  %v10553_v19 = vadd.f32 %v12730_v63, %v19369_v40  ;;  %v10411_v39 = vpop.f32.mrb[43].mxu0 }
 0xf28   : > { %10582 = vst.msk [vmem:[%s19374_s13 + $0x40] sm:$0xff] %vm783_vm3, %v10550_v42  ;;  %v10551_v7 = vadd.f32 %v19369_v40, %v10411_v39 }
 0xf29   : > { %10585 = vst.msk [vmem:[%s19374_s13 + $0x58] sm:$0xff] %vm783_vm3, %v10553_v19 }
 0xf2a   : > { %10583 = vst.msk [vmem:[%s19374_s13 + $0x48] sm:$0xff] %vm783_vm3, %v10551_v7 }
 0xf2c   : > { %v12733_v13 = vpop.f32.mrb[44].mxu0 }
 0xf2d   : > { %v10556_v30 = vadd.f32 %v12733_v13, %v19369_v40  ;;  %v10424_v31 = vpop.f32.mrb[45].mxu0 }
 0xf2e   : > { %v10554_v53 = vadd.f32 %v19369_v40, %v10424_v31  ;;  %v12734_v21 = vpop.f32.mrb[46].mxu0 }
 0xf2f   : > { %10588 = vst.msk [vmem:[%s19374_s13 + $0x70] sm:$0xff] %vm783_vm3, %v10556_v30  ;;  %v10557_v0 = vadd.f32 %v12734_v21, %v19369_v40  ;;  %v10427_v58 = vpop.f32.mrb[47].mxu0 }
 0xf30   : > { %10586 = vst.msk [vmem:[%s19374_s13 + $0x60] sm:$0xff] %vm783_vm3, %v10554_v53  ;;  %v10555_v5 = vadd.f32 %v19369_v40, %v10427_v58 }
 0xf31   : > { %10589 = vst.msk [vmem:[%s19374_s13 + $0x78] sm:$0xff] %vm783_vm3, %v10557_v0 }
 0xf32   : > { %10587 = vst.msk [vmem:[%s19374_s13 + $0x68] sm:$0xff] %vm783_vm3, %v10555_v5 }
 0xf34   : > { %v12737_v50 = vpop.f32.mrb[48].mxu0 }
 0xf35   : > { %v10560_v28 = vadd.f32 %v12737_v50, %v19369_v40  ;;  %v10440_v14 = vpop.f32.mrb[49].mxu0 }
 0xf36   : > { %v10558_v20 = vadd.f32 %v19369_v40, %v10440_v14  ;;  %v12738_v52 = vpop.f32.mrb[50].mxu0 }
 0xf37   : > { %10592 = vst.msk [vmem:[%s19374_s13 + $0x90] sm:$0xff] %vm783_vm3, %v10560_v28  ;;  %v10561_v43 = vadd.f32 %v12738_v52, %v19369_v40  ;;  %v10443_v26 = vpop.f32.mrb[51].mxu0 }
 0xf38   : > { %10590 = vst.msk [vmem:[%s19374_s13 + $0x80] sm:$0xff] %vm783_vm3, %v10558_v20  ;;  %v10559_v18 = vadd.f32 %v19369_v40, %v10443_v26 }
 0xf39   : > { %10593 = vst.msk [vmem:[%s19374_s13 + $0x98] sm:$0xff] %vm783_vm3, %v10561_v43 }
 0xf3a   : > { %10591 = vst.msk [vmem:[%s19374_s13 + $0x88] sm:$0xff] %vm783_vm3, %v10559_v18 }
 0xf3c   : > { %v12741_v1 = vpop.f32.mrb[52].mxu0 }
 0xf3d   : > { %v10564_v16 = vadd.f32 %v12741_v1, %v19369_v40  ;;  %v10456_v8 = vpop.f32.mrb[53].mxu0 }
 0xf3e   : > { %v10562_v2 = vadd.f32 %v19369_v40, %v10456_v8  ;;  %v12742_v15 = vpop.f32.mrb[54].mxu0 }
 0xf3f   : > { %10596 = vst.msk [vmem:[%s19374_s13 + $0xb0] sm:$0xff] %vm783_vm3, %v10564_v16  ;;  %v10565_v27 = vadd.f32 %v12742_v15, %v19369_v40  ;;  %v10459_v23 = vpop.f32.mrb[55].mxu0 }
 0xf40   : > { %10594 = vst.msk [vmem:[%s19374_s13 + $0xa0] sm:$0xff] %vm783_vm3, %v10562_v2  ;;  %v10563_v34 = vadd.f32 %v19369_v40, %v10459_v23 }
 0xf41   : > { %10597 = vst.msk [vmem:[%s19374_s13 + $0xb8] sm:$0xff] %vm783_vm3, %v10565_v27 }
 0xf42   : > { %10595 = vst.msk [vmem:[%s19374_s13 + $0xa8] sm:$0xff] %vm783_vm3, %v10563_v34 }
 0xf44   : > { %v12745_v60 = vpop.f32.mrb[56].mxu0 }
 0xf45   : > { %v10568_v35 = vadd.f32 %v12745_v60, %v19369_v40  ;;  %v10472_v25 = vpop.f32.mrb[57].mxu0 }
 0xf46   : > { %v10566_v29 = vadd.f32 %v19369_v40, %v10472_v25  ;;  %v12746_v22 = vpop.f32.mrb[58].mxu0 }
 0xf47   : > { %10600 = vst.msk [vmem:[%s19374_s13 + $0xd0] sm:$0xff] %vm783_vm3, %v10568_v35  ;;  %v10569_v61 = vadd.f32 %v12746_v22, %v19369_v40  ;;  %v10475_v37 = vpop.f32.mrb[59].mxu0 }
 0xf48   : > { %10598 = vst.msk [vmem:[%s19374_s13 + $0xc0] sm:$0xff] %vm783_vm3, %v10566_v29  ;;  %v10567_v9 = vadd.f32 %v19369_v40, %v10475_v37 }
 0xf49   : > { %10601 = vst.msk [vmem:[%s19374_s13 + $0xd8] sm:$0xff] %vm783_vm3, %v10569_v61 }
 0xf4a   : > { %10599 = vst.msk [vmem:[%s19374_s13 + $0xc8] sm:$0xff] %vm783_vm3, %v10567_v9 }
 0xf9d   : > { %v12749_v47 = vpop.f32.mrb[60].mxu0 }
 0xf9e   : > { %v10572_v59 = vadd.f32 %v12749_v47, %v19369_v40  ;;  %v10488_v12 = vpop.f32.mrb[61].mxu0 }
 0xf9f   : > { %v10570_v49 = vadd.f32 %v19369_v40, %v10488_v12  ;;  %v12750_v11 = vpop.f32.mrb[62].mxu0 }
 0xfa0   : > { %10604 = vst.msk [vmem:[%s19374_s13 + $0xf0] sm:$0xff] %vm783_vm3, %v10572_v59  ;;  %v10573_v57 = vadd.f32 %v12750_v11, %v19369_v40  ;;  %v10491_v36 = vpop.f32.mrb[63].mxu0 }
 0xfa1   : > { %10602 = vst.msk [vmem:[%s19374_s13 + $0xe0] sm:$0xff] %vm783_vm3, %v10570_v49  ;;  %v10571_v62 = vadd.f32 %v19369_v40, %v10491_v36 }
 0xfa2   : > { %10605 = vst.msk [vmem:[%s19374_s13 + $0xf8] sm:$0xff] %vm783_vm3, %v10573_v57 }
 0xfa3   : > { %10603 = vst.msk [vmem:[%s19374_s13 + $0xe8] sm:$0xff] %vm783_vm3, %v10571_v62 }
 0xfa4 PF: > { %s17_s24 = sadd.s32 1, %s14007_s24  }
 0xfa5   : > { %p14_p4 = scmp.ge.s32.totalorder %s17_s24, 4  }
 0xfa7   :  { %16 = sbr.rel (!%p14_p4) target bundleno = 1 (0x1), region = 80 }

</bundles_post_ra>
